<compile_context>
chip_gen: v6e
topology: v6e:2x2x1
jax: 0.10.0
libtpu: 0.0.40
codegen_flags: <defaults>
</compile_context>

<pallas_src>
import functools

import jax
import jax.numpy as jnp
from jax.experimental import pallas as pl
from jax.experimental.pallas import tpu as pltpu


def _vmem_limit_bytes():
    """~3/4 of physical VMEM (v5e/v6e: ~96 MiB, v7x: ~48 MiB)."""
    try:
        cap = int(pltpu.get_tpu_info().vmem_capacity_bytes)
    except Exception:
        cap = 64 * 1024 * 1024
    return min((cap * 3) // 4, 96 * 1024 * 1024)


_VMEM_LIMIT = _vmem_limit_bytes()
_ACT_DTYPE = jnp.bfloat16          # inter-kernel activation / weight storage dtype


def _silu(x):
    return x * jax.nn.sigmoid(x)


def _row_tile(M):
    # Single block when it comfortably fits; otherwise 512-row tiles and the
    # ragged tail block is masked by Pallas (no HBM pad + slice round trip).
    return M if M <= 1024 else 512


# ---------------------------------------------------------------------------
# Kernel 1: fused cv1 + cv2 — one matmul against [w1 | w2], BN + SiLU, split.
# ---------------------------------------------------------------------------
def _fused_cv1_cv2_kernel(x_ref, w_ref, s_ref, b_ref, o1_ref, o2_ref, *, c1):
    y = jnp.dot(x_ref[...], w_ref[...], preferred_element_type=jnp.float32)
    y = _silu(y * s_ref[...] + b_ref[...])
    # When c1 is a multiple of 128 these are clean lane splits; for tiny c1 the
    # cost is negligible.
    o1_ref[...] = y[:, :c1].astype(o1_ref.dtype)
    o2_ref[...] = y[:, c1:].astype(o2_ref.dtype)


# ---------------------------------------------------------------------------
# Kernel 2: cv3 — 1x1 Conv+BN+SiLU over the *virtual* concat [y1, y2] done as
# two accumulating matmuls, so the (M, 2c_) concat never exists in HBM.
# ---------------------------------------------------------------------------
def _fused_cv3_kernel(x1_ref, x2_ref, w1_ref, w2_ref, s_ref, b_ref, o_ref):
    y = jnp.dot(x1_ref[...], w1_ref[...], preferred_element_type=jnp.float32)
    y = y + jnp.dot(x2_ref[...], w2_ref[...], preferred_element_type=jnp.float32)
    o_ref[...] = _silu(y * s_ref[...] + b_ref[...]).astype(o_ref.dtype)


# ---------------------------------------------------------------------------
# Kernel 3: fused Bottleneck (1x1 conv -> 3x3 conv pad=1 -> optional residual)
# working on flattened (h*W + x, C) tiles; one grid step per batch sample.
# ---------------------------------------------------------------------------
def _bottleneck_kernel(x_ref, w1_ref, s1_ref, b1_ref, w2_ref, s2_ref, b2_ref,
                       o_ref, zp_ref, *, H, W, add_residual):
    HW = H * W
    Cmid = w1_ref.shape[-1]
    Cout = o_ref.shape[-1]

    # ---- 1x1 Conv + BN + SiLU: one flat bf16 x bf16 MXU matmul (f32 acc).
    x2d = x_ref[0]                                               # (HW, Cin) bf16
    z = jnp.dot(x2d, w1_ref[...], preferred_element_type=jnp.float32)
    z = _silu(z * s1_ref[...] + b1_ref[...])                     # (HW, Cmid) f32

    # ---- Horizontal (x +/- 1) shifts via XLU roll + one-column masks.
    # In the flattened h*W + x domain a +/-1 sublane roll IS the horizontal
    # shift; the wrapped element always lands in the column that gets masked
    # to zero, so no sublane-unaligned slices / relayout copies are needed.
    col = jax.lax.broadcasted_iota(jnp.int32, (HW, Cmid), 0) % W
    z_left = jnp.where(col == 0, 0.0, pltpu.roll(z, shift=1, axis=0))
    z_right = jnp.where(col == W - 1, 0.0, pltpu.roll(z, shift=HW - 1, axis=0))

    # ---- Vertical halo: three dx-variants in an H-padded VMEM scratch.  Only
    # the 2*W halo rows are zeroed; every row offset is a multiple of W
    # (W % 8 == 0) so all loads/stores stay sublane aligned.
    zero_rows = jnp.zeros((W, Cmid), jnp.float32)
    for j, v in enumerate((z_left, z, z_right)):                 # j == dx tap
        zp_ref[j, 0:W] = zero_rows
        zp_ref[j, (H + 1) * W:(H + 2) * W] = zero_rows
        zp_ref[j, W:(H + 1) * W] = v

    # ---- 3x3 conv as 9 shifted MXU matmuls, accumulated in registers per
    # row-chunk and stored once (no 9x VMEM accumulator read-modify-write).
    # TODO(synk): group taps into K=3*Cmid matmuls when Cmid % 128 == 0 to
    # better fill the 256-wide v6e/v7x MXU.
    chunk = HW if HW <= 1024 else 1024
    for p0 in range(0, HW, chunk):
        rows = min(chunk, HW - p0)
        acc = jnp.zeros((rows, Cout), jnp.float32)
        for dy in range(3):
            for dx in range(3):
                patch = zp_ref[dx, p0 + dy * W:p0 + dy * W + rows]
                acc = acc + jnp.dot(patch, w2_ref[dy * 3 + dx],
                                    preferred_element_type=jnp.float32)
        y = _silu(acc * s2_ref[...] + b2_ref[...])
        if add_residual:
            y = y + x_ref[0, p0:p0 + rows].astype(jnp.float32)   # Cin == Cout
        o_ref[0, p0:p0 + rows] = y.astype(o_ref.dtype)


# ---------------------------------------------------------------------------
# Wrappers
# ---------------------------------------------------------------------------
def fused_cv1_cv2(x2d, p1, p2):
    """Both stem 1x1 Conv+BN+SiLU with one read of x and one MXU matmul."""
    M, Cin = x2d.shape
    C1 = p1["w"].shape[-1]
    C2 = p2["w"].shape[-1]
    w12 = jnp.concatenate([p1["w"][0, 0], p2["w"][0, 0]], axis=-1).astype(_ACT_DTYPE)
    s12 = jnp.concatenate([p1["scale"], p2["scale"]]).reshape(1, C1 + C2)
    b12 = jnp.concatenate([p1["bias"], p2["bias"]]).reshape(1, C1 + C2)
    tm = _row_tile(M)
    kernel = functools.partial(_fused_cv1_cv2_kernel, c1=C1)
    return pl.pallas_call(
        kernel,
        out_shape=(jax.ShapeDtypeStruct((M, C1), _ACT_DTYPE),
                   jax.ShapeDtypeStruct((M, C2), _ACT_DTYPE)),
        grid_spec=pltpu.PrefetchScalarGridSpec(
            num_scalar_prefetch=0,
            grid=(pl.cdiv(M, tm),),
            in_specs=[
                pl.BlockSpec((tm, Cin), lambda i: (i, 0)),
                pl.BlockSpec((Cin, C1 + C2), lambda i: (0, 0)),
                pl.BlockSpec((1, C1 + C2), lambda i: (0, 0)),
                pl.BlockSpec((1, C1 + C2), lambda i: (0, 0)),
            ],
            out_specs=(pl.BlockSpec((tm, C1), lambda i: (i, 0)),
                       pl.BlockSpec((tm, C2), lambda i: (i, 0))),
        ),
        compiler_params=pltpu.CompilerParams(
            dimension_semantics=("parallel",), vmem_limit_bytes=_VMEM_LIMIT),
    )(x2d.astype(_ACT_DTYPE), w12, s12, b12)


def fused_cv3(y1, y2, p3):
    """cv3 over the virtual concat [y1, y2] without materializing it."""
    M, Ca = y1.shape
    Cb = y2.shape[1]
    Cout = p3["w"].shape[-1]
    w3 = p3["w"][0, 0].astype(_ACT_DTYPE)                        # (Ca + Cb, Cout)
    tm = _row_tile(M)
    return pl.pallas_call(
        _fused_cv3_kernel,
        out_shape=jax.ShapeDtypeStruct((M, Cout), jnp.float32),  # final output f32
        grid_spec=pltpu.PrefetchScalarGridSpec(
            num_scalar_prefetch=0,
            grid=(pl.cdiv(M, tm),),
            in_specs=[
                pl.BlockSpec((tm, Ca), lambda i: (i, 0)),
                pl.BlockSpec((tm, Cb), lambda i: (i, 0)),
                pl.BlockSpec((Ca, Cout), lambda i: (0, 0)),
                pl.BlockSpec((Cb, Cout), lambda i: (0, 0)),
                pl.BlockSpec((1, Cout), lambda i: (0, 0)),
                pl.BlockSpec((1, Cout), lambda i: (0, 0)),
            ],
            out_specs=pl.BlockSpec((tm, Cout), lambda i: (i, 0)),
        ),
        compiler_params=pltpu.CompilerParams(
            dimension_semantics=("parallel",), vmem_limit_bytes=_VMEM_LIMIT),
    )(y1, y2, w3[:Ca], w3[Ca:],
      p3["scale"].reshape(1, Cout), p3["bias"].reshape(1, Cout))


def bottleneck(x_3d, H, W, p_cv1, p_cv2, shortcut=True):
    """Fused Bottleneck block on (N, H*W, C) activations, tiled over batch."""
    N, HW, Cin = x_3d.shape
    assert HW == H * W
    Cmid = p_cv1["w"].shape[-1]
    Cout = p_cv2["w"].shape[-1]
    add_residual = bool(shortcut and Cin == Cout)
    # Sublane-aligned flat (h*W + x) addressing needs W % 8 == 0.
    assert W % 8 == 0, "bottleneck kernel requires W % 8 == 0"
    # TODO(synk): for very large H*W*C per-sample tiles (v7x 64MiB VMEM), add a
    # second grid axis over row tiles with explicit halo handling.

    w1 = p_cv1["w"][0, 0].astype(_ACT_DTYPE)                     # (Cin, Cmid)
    w2 = p_cv2["w"].reshape(9, Cmid, Cout).astype(_ACT_DTYPE)    # (ky*3+kx, Cmid, Cout)

    kernel = functools.partial(_bottleneck_kernel, H=H, W=W,
                               add_residual=add_residual)
    return pl.pallas_call(
        kernel,
        out_shape=jax.ShapeDtypeStruct((N, HW, Cout), _ACT_DTYPE),
        grid_spec=pltpu.PrefetchScalarGridSpec(
            num_scalar_prefetch=0,
            grid=(N,),          # pipelined over batch; 'parallel' => megacore
            in_specs=[
                pl.BlockSpec((1, HW, Cin), lambda n: (n, 0, 0)),
                pl.BlockSpec((Cin, Cmid), lambda n: (0, 0)),
                pl.BlockSpec((1, Cmid), lambda n: (0, 0)),
                pl.BlockSpec((1, Cmid), lambda n: (0, 0)),
                pl.BlockSpec((9, Cmid, Cout), lambda n: (0, 0, 0)),
                pl.BlockSpec((1, Cout), lambda n: (0, 0)),
                pl.BlockSpec((1, Cout), lambda n: (0, 0)),
            ],
            out_specs=pl.BlockSpec((1, HW, Cout), lambda n: (n, 0, 0)),
            scratch_shapes=[
                # Three dx-shifted variants with a 1-row vertical halo (f32 so
                # all in-kernel slices stay on 8-row sublane boundaries).
                pltpu.VMEM((3, (H + 2) * W, Cmid), jnp.float32),
            ],
        ),
        compiler_params=pltpu.CompilerParams(
            dimension_semantics=("parallel",), vmem_limit_bytes=_VMEM_LIMIT),
    )(x_3d.astype(_ACT_DTYPE), w1,
      p_cv1["scale"].reshape(1, Cmid), p_cv1["bias"].reshape(1, Cmid),
      w2, p_cv2["scale"].reshape(1, Cout), p_cv2["bias"].reshape(1, Cout))


# ---------------------------------------------------------------------------
# Parameter setup (deterministic, synthetic) and C3 forward
# ---------------------------------------------------------------------------
def _make_conv_params(key, cin, cout, k):
    """Conv2d weight (k,k,cin,cout) + BatchNorm folded to (scale, bias)."""
    k1, k2, k3, k4, k5 = jax.random.split(key, 5)
    w = 0.1 * jax.random.normal(k1, (k, k, cin, cout), jnp.float32)
    gamma = 1.0 + 0.1 * jax.random.normal(k2, (cout,), jnp.float32)
    beta = 0.1 * jax.random.normal(k3, (cout,), jnp.float32)
    mean = 0.1 * jax.random.normal(k4, (cout,), jnp.float32)
    var = jax.random.uniform(k5, (cout,), jnp.float32, minval=0.5, maxval=1.5)
    eps = 1e-5
    scale = gamma / jnp.sqrt(var + eps)
    bias = beta - mean * scale
    return {"w": w, "scale": scale, "bias": bias}


def make_c3_params(key, c1, c2, n=1, e=0.5):
    c_ = int(c2 * e)
    keys = jax.random.split(key, 3 + 2 * n)
    params = {
        "cv1": _make_conv_params(keys[0], c1, c_, 1),
        "cv2": _make_conv_params(keys[1], c1, c_, 1),
        "cv3": _make_conv_params(keys[2], 2 * c_, c2, 1),
        "m": [],
    }
    for i in range(n):
        params["m"].append({
            "cv1": _make_conv_params(keys[3 + 2 * i], c_, c_, 1),   # k=1
            "cv2": _make_conv_params(keys[4 + 2 * i], c_, c_, 3),   # k=3
        })
    return params


def c3_forward(x_nchw, params, shortcut=True):
    """C3 forward. Input/output follow PyTorch NCHW (f32 in, f32 out)."""
    x = jnp.transpose(x_nchw, (0, 2, 3, 1)).astype(_ACT_DTYPE)   # -> NHWC bf16
    N, H, W, C1 = x.shape
    x2d = x.reshape(N * H * W, C1)

    # cv1 + cv2 fused: one read of x, one MXU pass, two outputs.
    y1, y2 = fused_cv1_cv2(x2d, params["cv1"], params["cv2"])
    c_ = y1.shape[1]

    # Bottleneck chain (each block = one fused Pallas kernel on (N, H*W, C)).
    y1_3d = y1.reshape(N, H * W, c_)                              # free reshape
    for bp in params["m"]:
        y1_3d = bottleneck(y1_3d, H, W, bp["cv1"], bp["cv2"], shortcut=shortcut)
    y1 = y1_3d.reshape(N * H * W, c_)

    # cv3 over the virtual concat [y1, y2] (no HBM concat).
    out2d = fused_cv3(y1, y2, params["cv3"])
    out = out2d.reshape(N, H, W, -1)
    return jnp.transpose(out, (0, 3, 1, 2))                       # -> NCHW


# ---------------------------------------------------------------------------
# Pure-JAX reference (for correctness check)
# ---------------------------------------------------------------------------
def _conv_ref(x, p, res=None):
    y = jax.lax.conv_general_dilated(
        x, p["w"], (1, 1), "SAME",
        dimension_numbers=("NHWC", "HWIO", "NHWC"))
    y = y * p["scale"] + p["bias"]
    y = y * jax.nn.sigmoid(y)
    if res is not None:
        y = res + y
    return y


def c3_ref(x_nchw, params):
    x = jnp.transpose(x_nchw, (0, 2, 3, 1)).astype(jnp.float32)
    y1 = _conv_ref(x, params["cv1"])
    y2 = _conv_ref(x, params["cv2"])
    for bp in params["m"]:
        z = _conv_ref(y1, bp["cv1"])
        y1 = _conv_ref(z, bp["cv2"], res=y1)
    cat = jnp.concatenate([y1, y2], axis=-1)
    out = _conv_ref(cat, params["cv3"])
    return jnp.transpose(out, (0, 3, 1, 2))


# ---------------------------------------------------------------------------
if __name__ == "__main__":
    key = jax.random.PRNGKey(0)
    kx, kp = jax.random.split(key)

    c1, c2, n = 4, 4, 1
    x = jax.random.normal(kx, (2, c1, 16, 16), jnp.float32)  # NCHW, like PyTorch
    params = make_c3_params(kp, c1, c2, n=n, e=0.5)

    fwd = jax.jit(lambda xx: c3_forward(xx, params, shortcut=True))
    out = jax.block_until_ready(fwd(x))
    ref = jax.block_until_ready(c3_ref(x, params))

    assert out.shape == (2, c2, 16, 16)
    # Tolerance reflects bf16 activation storage + bf16 MXU passes vs the f32
    # conv reference (intentional, per performance guidance).
    err = float(jnp.max(jnp.abs(out - ref)))
    assert jnp.allclose(out, ref, rtol=2e-2, atol=2e-2), err
    print("KERNEL_OK")
</pallas_src>

<mosaic_0001>
module attributes {stable_mosaic.version = 11 : i64} {
  func.func @_fused_cv1_cv2_kernel(%arg0: i32, %arg1: memref<512x4xbf16, #tpu.memory_space<vmem>>, %arg2: memref<4x4xbf16, #tpu.memory_space<vmem>>, %arg3: memref<1x4xf32, #tpu.memory_space<vmem>>, %arg4: memref<1x4xf32, #tpu.memory_space<vmem>>, %arg5: memref<512x2xbf16, #tpu.memory_space<vmem>>, %arg6: memref<512x2xbf16, #tpu.memory_space<vmem>>) attributes {dimension_semantics = [#tpu.dimension_semantics<parallel>], iteration_bounds = array<i64: 1>, scalar_prefetch = 0 : i64, scratch_operands = 0 : i64, tpu.core_type = #tpu.core_type<tc>, window_params = [{transform_indices = @transform_0, window_bounds = array<i64: 512, 4>}, {pipeline_mode = #tpu.pipeline_mode<synchronous>, transform_indices = @transform_1, window_bounds = array<i64: 4, 4>}, {pipeline_mode = #tpu.pipeline_mode<synchronous>, transform_indices = @transform_2, window_bounds = array<i64: 1, 4>}, {pipeline_mode = #tpu.pipeline_mode<synchronous>, transform_indices = @transform_3, window_bounds = array<i64: 1, 4>}, {transform_indices = @transform_4, window_bounds = array<i64: 512, 2>}, {transform_indices = @transform_5, window_bounds = array<i64: 512, 2>}]} {
    %c0 = arith.constant 0 : index
    %c0_0 = arith.constant 0 : index
    %0 = vector.load %arg1[%c0, %c0_0] : memref<512x4xbf16, #tpu.memory_space<vmem>>, vector<512x4xbf16>
    %c0_1 = arith.constant 0 : index
    %c0_2 = arith.constant 0 : index
    %1 = vector.load %arg2[%c0_1, %c0_2] : memref<4x4xbf16, #tpu.memory_space<vmem>>, vector<4x4xbf16>
    %cst = arith.constant dense<0.000000e+00> : vector<512x4xf32>
    %2 = tpu.matmul %0, %1, %cst {dimension_numbers = #tpu.dot_dimension_numbers<[1], [0], [0], [1], [0, 0, 1, 1], [], []>} : vector<512x4xbf16>, vector<4x4xbf16>, vector<512x4xf32> -> vector<512x4xf32>
    %c0_3 = arith.constant 0 : index
    %c0_4 = arith.constant 0 : index
    %3 = vector.load %arg3[%c0_3, %c0_4] : memref<1x4xf32, #tpu.memory_space<vmem>>, vector<1x4xf32>
    %4 = vector.broadcast %3 : vector<1x4xf32> to vector<512x4xf32>
    %5 = arith.mulf %2, %4 : vector<512x4xf32>
    %c0_5 = arith.constant 0 : index
    %c0_6 = arith.constant 0 : index
    %6 = vector.load %arg4[%c0_5, %c0_6] : memref<1x4xf32, #tpu.memory_space<vmem>>, vector<1x4xf32>
    %7 = vector.broadcast %6 : vector<1x4xf32> to vector<512x4xf32>
    %8 = arith.addf %5, %7 : vector<512x4xf32>
    %9 = arith.negf %8 : vector<512x4xf32>
    %10 = math.exp %9 : vector<512x4xf32>
    %cst_7 = arith.constant 1.000000e+00 : f32
    %11 = vector.broadcast %cst_7 : f32 to vector<512x4xf32>
    %12 = arith.addf %11, %10 : vector<512x4xf32>
    %13 = arith.divf %11, %12 : vector<512x4xf32>
    %14 = arith.mulf %8, %13 : vector<512x4xf32>
    %15 = vector.extract_strided_slice %14 {offsets = [0, 0], sizes = [512, 2], strides = [1, 1]} : vector<512x4xf32> to vector<512x2xf32>
    %16 = arith.truncf %15 : vector<512x2xf32> to vector<512x2xbf16>
    %c0_8 = arith.constant 0 : index
    %c0_9 = arith.constant 0 : index
    %17 = vector.load %arg5[%c0_8, %c0_9] : memref<512x2xbf16, #tpu.memory_space<vmem>>, vector<512x2xbf16>
    tpu.vector_store %arg5[%c0_8, %c0_9], %16 {strides = array<i32>} : memref<512x2xbf16, #tpu.memory_space<vmem>>, vector<512x2xbf16>,
    %18 = vector.extract_strided_slice %14 {offsets = [0, 2], sizes = [512, 2], strides = [1, 1]} : vector<512x4xf32> to vector<512x2xf32>
    %19 = arith.truncf %18 : vector<512x2xf32> to vector<512x2xbf16>
    %c0_10 = arith.constant 0 : index
    %c0_11 = arith.constant 0 : index
    %20 = vector.load %arg6[%c0_10, %c0_11] : memref<512x2xbf16, #tpu.memory_space<vmem>>, vector<512x2xbf16>
    tpu.vector_store %arg6[%c0_10, %c0_11], %19 {strides = array<i32>} : memref<512x2xbf16, #tpu.memory_space<vmem>>, vector<512x2xbf16>,
    return
  }
  func.func @transform_0(%arg0: i32) -> (i32, i32) {
    %c0_i32 = arith.constant 0 : i32
    %c0_i32_0 = arith.constant 0 : i32
    return %arg0, %c0_i32 : i32, i32
  }
  func.func @transform_1(%arg0: i32) -> (i32, i32) {
    %c0_i32 = arith.constant 0 : i32
    %c0_i32_0 = arith.constant 0 : i32
    %c0_i32_1 = arith.constant 0 : i32
    return %c0_i32, %c0_i32_0 : i32, i32
  }
  func.func @transform_2(%arg0: i32) -> (i32, i32) {
    %c0_i32 = arith.constant 0 : i32
    %c0_i32_0 = arith.constant 0 : i32
    %c0_i32_1 = arith.constant 0 : i32
    return %c0_i32, %c0_i32_0 : i32, i32
  }
  func.func @transform_3(%arg0: i32) -> (i32, i32) {
    %c0_i32 = arith.constant 0 : i32
    %c0_i32_0 = arith.constant 0 : i32
    %c0_i32_1 = arith.constant 0 : i32
    return %c0_i32, %c0_i32_0 : i32, i32
  }
  func.func @transform_4(%arg0: i32) -> (i32, i32) {
    %c0_i32 = arith.constant 0 : i32
    %c0_i32_0 = arith.constant 0 : i32
    return %arg0, %c0_i32 : i32, i32
  }
  func.func @transform_5(%arg0: i32) -> (i32, i32) {
    %c0_i32 = arith.constant 0 : i32
    %c0_i32_0 = arith.constant 0 : i32
    return %arg0, %c0_i32 : i32, i32
  }
}

module attributes {stable_mosaic.version = 11 : i64} {
  func.func @_bottleneck_kernel(%arg0: i32, %arg1: memref<1x256x2xbf16, #tpu.memory_space<vmem>>, %arg2: memref<2x2xbf16, #tpu.memory_space<vmem>>, %arg3: memref<1x2xf32, #tpu.memory_space<vmem>>, %arg4: memref<1x2xf32, #tpu.memory_space<vmem>>, %arg5: memref<9x2x2xbf16, #tpu.memory_space<vmem>>, %arg6: memref<1x2xf32, #tpu.memory_space<vmem>>, %arg7: memref<1x2xf32, #tpu.memory_space<vmem>>, %arg8: memref<1x256x2xbf16, #tpu.memory_space<vmem>>, %arg9: memref<3x288x2xf32, #tpu.memory_space<vmem>>) attributes {dimension_semantics = [#tpu.dimension_semantics<parallel>], iteration_bounds = array<i64: 2>, scalar_prefetch = 0 : i64, scratch_operands = 1 : i64, tpu.core_type = #tpu.core_type<tc>, window_params = [{transform_indices = @transform_0, window_bounds = array<i64: 1, 256, 2>}, {pipeline_mode = #tpu.pipeline_mode<synchronous>, transform_indices = @transform_1, window_bounds = array<i64: 2, 2>}, {pipeline_mode = #tpu.pipeline_mode<synchronous>, transform_indices = @transform_2, window_bounds = array<i64: 1, 2>}, {pipeline_mode = #tpu.pipeline_mode<synchronous>, transform_indices = @transform_3, window_bounds = array<i64: 1, 2>}, {pipeline_mode = #tpu.pipeline_mode<synchronous>, transform_indices = @transform_4, window_bounds = array<i64: 9, 2, 2>}, {pipeline_mode = #tpu.pipeline_mode<synchronous>, transform_indices = @transform_5, window_bounds = array<i64: 1, 2>}, {pipeline_mode = #tpu.pipeline_mode<synchronous>, transform_indices = @transform_6, window_bounds = array<i64: 1, 2>}, {transform_indices = @transform_7, window_bounds = array<i64: 1, 256, 2>}]} {
    %c0 = arith.constant 0 : index
    %c0_0 = arith.constant 0 : index
    %c0_1 = arith.constant 0 : index
    %0 = vector.load %arg1[%c0, %c0_0, %c0_1] : memref<1x256x2xbf16, #tpu.memory_space<vmem>>, vector<1x256x2xbf16>
    %1 = vector.shape_cast %0 : vector<1x256x2xbf16> to vector<256x2xbf16>
    %c0_2 = arith.constant 0 : index
    %c0_3 = arith.constant 0 : index
    %2 = vector.load %arg2[%c0_2, %c0_3] : memref<2x2xbf16, #tpu.memory_space<vmem>>, vector<2x2xbf16>
    %cst = arith.constant dense<0.000000e+00> : vector<256x2xf32>
    %3 = tpu.matmul %1, %2, %cst {dimension_numbers = #tpu.dot_dimension_numbers<[1], [0], [0], [1], [0, 0, 1, 1], [], []>} : vector<256x2xbf16>, vector<2x2xbf16>, vector<256x2xf32> -> vector<256x2xf32>
    %c0_4 = arith.constant 0 : index
    %c0_5 = arith.constant 0 : index
    %4 = vector.load %arg3[%c0_4, %c0_5] : memref<1x2xf32, #tpu.memory_space<vmem>>, vector<1x2xf32>
    %5 = vector.broadcast %4 : vector<1x2xf32> to vector<256x2xf32>
    %6 = arith.mulf %3, %5 : vector<256x2xf32>
    %c0_6 = arith.constant 0 : index
    %c0_7 = arith.constant 0 : index
    %7 = vector.load %arg4[%c0_6, %c0_7] : memref<1x2xf32, #tpu.memory_space<vmem>>, vector<1x2xf32>
    %8 = vector.broadcast %7 : vector<1x2xf32> to vector<256x2xf32>
    %9 = arith.addf %6, %8 : vector<256x2xf32>
    %10 = arith.negf %9 : vector<256x2xf32>
    %11 = math.exp %10 : vector<256x2xf32>
    %cst_8 = arith.constant 1.000000e+00 : f32
    %12 = vector.broadcast %cst_8 : f32 to vector<256x2xf32>
    %13 = arith.addf %12, %11 : vector<256x2xf32>
    %14 = arith.divf %12, %13 : vector<256x2xf32>
    %15 = arith.mulf %9, %14 : vector<256x2xf32>
    %16 = tpu.iota {dimensions = array<i32: 0>} : vector<256x2xi32>
    %c16_i32 = arith.constant 16 : i32
    %c0_i32 = arith.constant 0 : i32
    %17 = arith.cmpi eq, %c16_i32, %c0_i32 : i32
    %c1_i32 = arith.constant 1 : i32
    %18 = arith.select %17, %c1_i32, %c16_i32 : i32
    %19 = vector.broadcast %18 : i32 to vector<256x2xi32>
    %20 = arith.remsi %16, %19 : vector<256x2xi32>
    %c0_i32_9 = arith.constant 0 : i32
    %21 = vector.broadcast %c0_i32_9 : i32 to vector<256x2xi32>
    %22 = arith.cmpi ne, %20, %21 : vector<256x2xi32>
    %c0_i32_10 = arith.constant 0 : i32
    %23 = vector.broadcast %c0_i32_10 : i32 to vector<256x2xi32>
    %24 = arith.cmpi slt, %20, %23 : vector<256x2xi32>
    %c0_i32_11 = arith.constant 0 : i32
    %25 = arith.cmpi slt, %18, %c0_i32_11 : i32
    %26 = vector.broadcast %25 : i1 to vector<256x2xi1>
    %27 = vector.broadcast %26 : vector<256x2xi1> to vector<256x2xi1>
    %28 = arith.xori %24, %27 : vector<256x2xi1>
    %29 = arith.andi %28, %22 : vector<256x2xi1>
    %30 = vector.broadcast %18 : i32 to vector<256x2xi32>
    %31 = arith.addi %20, %30 : vector<256x2xi32>
    %32 = arith.select %29, %31, %20 : vector<256x2xi1>, vector<256x2xi32>
    %c0_i32_12 = arith.constant 0 : i32
    %33 = vector.broadcast %c0_i32_12 : i32 to vector<256x2xi32>
    %34 = arith.cmpi eq, %32, %33 : vector<256x2xi32>
    %c1_i32_13 = arith.constant 1 : i32
    %35 = tpu.dynamic_rotate %15 by %c1_i32_13 dim 0 : vector<256x2xf32>, i32 -> vector<256x2xf32>
    %cst_14 = arith.constant 0.000000e+00 : f32
    %36 = vector.broadcast %cst_14 : f32 to vector<256x2xf32>
    %37 = arith.select %34, %36, %35 : vector<256x2xi1>, vector<256x2xf32>
    %c15_i32 = arith.constant 15 : i32
    %38 = vector.broadcast %c15_i32 : i32 to vector<256x2xi32>
    %39 = arith.cmpi eq, %32, %38 : vector<256x2xi32>
    %c255_i32 = arith.constant 255 : i32
    %40 = tpu.dynamic_rotate %15 by %c255_i32 dim 0 : vector<256x2xf32>, i32 -> vector<256x2xf32>
    %cst_15 = arith.constant 0.000000e+00 : f32
    %41 = vector.broadcast %cst_15 : f32 to vector<256x2xf32>
    %42 = arith.select %39, %41, %40 : vector<256x2xi1>, vector<256x2xf32>
    %cst_16 = arith.constant 0.000000e+00 : f32
    %43 = vector.broadcast %cst_16 : f32 to vector<16x2xf32>
    %c0_17 = arith.constant 0 : index
    %c0_18 = arith.constant 0 : index
    %c0_19 = arith.constant 0 : index
    %44 = vector.load %arg9[%c0_17, %c0_18, %c0_19] : memref<3x288x2xf32, #tpu.memory_space<vmem>>, vector<1x16x2xf32>
    %45 = vector.shape_cast %44 : vector<1x16x2xf32> to vector<16x2xf32>
    %46 = vector.shape_cast %43 : vector<16x2xf32> to vector<1x16x2xf32>
    tpu.vector_store %arg9[%c0_17, %c0_18, %c0_19], %46 {strides = array<i32>} : memref<3x288x2xf32, #tpu.memory_space<vmem>>, vector<1x16x2xf32>,
    %c0_20 = arith.constant 0 : index
    %c272 = arith.constant 272 : index
    %c0_21 = arith.constant 0 : index
    %47 = vector.load %arg9[%c0_20, %c272, %c0_21] : memref<3x288x2xf32, #tpu.memory_space<vmem>>, vector<1x16x2xf32>
    %48 = vector.shape_cast %47 : vector<1x16x2xf32> to vector<16x2xf32>
    %49 = vector.shape_cast %43 : vector<16x2xf32> to vector<1x16x2xf32>
    tpu.vector_store %arg9[%c0_20, %c272, %c0_21], %49 {strides = array<i32>} : memref<3x288x2xf32, #tpu.memory_space<vmem>>, vector<1x16x2xf32>,
    %c0_22 = arith.constant 0 : index
    %c16 = arith.constant 16 : index
    %c0_23 = arith.constant 0 : index
    %50 = vector.load %arg9[%c0_22, %c16, %c0_23] : memref<3x288x2xf32, #tpu.memory_space<vmem>>, vector<1x256x2xf32>
    %51 = vector.shape_cast %50 : vector<1x256x2xf32> to vector<256x2xf32>
    %52 = vector.shape_cast %37 : vector<256x2xf32> to vector<1x256x2xf32>
    tpu.vector_store %arg9[%c0_22, %c16, %c0_23], %52 {strides = array<i32>} : memref<3x288x2xf32, #tpu.memory_space<vmem>>, vector<1x256x2xf32>,
    %c1 = arith.constant 1 : index
    %c0_24 = arith.constant 0 : index
    %c0_25 = arith.constant 0 : index
    %53 = vector.load %arg9[%c1, %c0_24, %c0_25] : memref<3x288x2xf32, #tpu.memory_space<vmem>>, vector<1x16x2xf32>
    %54 = vector.shape_cast %53 : vector<1x16x2xf32> to vector<16x2xf32>
    %55 = vector.shape_cast %43 : vector<16x2xf32> to vector<1x16x2xf32>
    tpu.vector_store %arg9[%c1, %c0_24, %c0_25], %55 {strides = array<i32>} : memref<3x288x2xf32, #tpu.memory_space<vmem>>, vector<1x16x2xf32>,
    %c1_26 = arith.constant 1 : index
    %c272_27 = arith.constant 272 : index
    %c0_28 = arith.constant 0 : index
    %56 = vector.load %arg9[%c1_26, %c272_27, %c0_28] : memref<3x288x2xf32, #tpu.memory_space<vmem>>, vector<1x16x2xf32>
    %57 = vector.shape_cast %56 : vector<1x16x2xf32> to vector<16x2xf32>
    %58 = vector.shape_cast %43 : vector<16x2xf32> to vector<1x16x2xf32>
    tpu.vector_store %arg9[%c1_26, %c272_27, %c0_28], %58 {strides = array<i32>} : memref<3x288x2xf32, #tpu.memory_space<vmem>>, vector<1x16x2xf32>,
    %c1_29 = arith.constant 1 : index
    %c16_30 = arith.constant 16 : index
    %c0_31 = arith.constant 0 : index
    %59 = vector.load %arg9[%c1_29, %c16_30, %c0_31] : memref<3x288x2xf32, #tpu.memory_space<vmem>>, vector<1x256x2xf32>
    %60 = vector.shape_cast %59 : vector<1x256x2xf32> to vector<256x2xf32>
    %61 = vector.shape_cast %15 : vector<256x2xf32> to vector<1x256x2xf32>
    tpu.vector_store %arg9[%c1_29, %c16_30, %c0_31], %61 {strides = array<i32>} : memref<3x288x2xf32, #tpu.memory_space<vmem>>, vector<1x256x2xf32>,
    %c2 = arith.constant 2 : index
    %c0_32 = arith.constant 0 : index
    %c0_33 = arith.constant 0 : index
    %62 = vector.load %arg9[%c2, %c0_32, %c0_33] : memref<3x288x2xf32, #tpu.memory_space<vmem>>, vector<1x16x2xf32>
    %63 = vector.shape_cast %62 : vector<1x16x2xf32> to vector<16x2xf32>
    %64 = vector.shape_cast %43 : vector<16x2xf32> to vector<1x16x2xf32>
    tpu.vector_store %arg9[%c2, %c0_32, %c0_33], %64 {strides = array<i32>} : memref<3x288x2xf32, #tpu.memory_space<vmem>>, vector<1x16x2xf32>,
    %c2_34 = arith.constant 2 : index
    %c272_35 = arith.constant 272 : index
    %c0_36 = arith.constant 0 : index
    %65 = vector.load %arg9[%c2_34, %c272_35, %c0_36] : memref<3x288x2xf32, #tpu.memory_space<vmem>>, vector<1x16x2xf32>
    %66 = vector.shape_cast %65 : vector<1x16x2xf32> to vector<16x2xf32>
    %67 = vector.shape_cast %43 : vector<16x2xf32> to vector<1x16x2xf32>
    tpu.vector_store %arg9[%c2_34, %c272_35, %c0_36], %67 {strides = array<i32>} : memref<3x288x2xf32, #tpu.memory_space<vmem>>, vector<1x16x2xf32>,
    %c2_37 = arith.constant 2 : index
    %c16_38 = arith.constant 16 : index
    %c0_39 = arith.constant 0 : index
    %68 = vector.load %arg9[%c2_37, %c16_38, %c0_39] : memref<3x288x2xf32, #tpu.memory_space<vmem>>, vector<1x256x2xf32>
    %69 = vector.shape_cast %68 : vector<1x256x2xf32> to vector<256x2xf32>
    %70 = vector.shape_cast %42 : vector<256x2xf32> to vector<1x256x2xf32>
    tpu.vector_store %arg9[%c2_37, %c16_38, %c0_39], %70 {strides = array<i32>} : memref<3x288x2xf32, #tpu.memory_space<vmem>>, vector<1x256x2xf32>,
    %cst_40 = arith.constant 0.000000e+00 : f32
    %71 = vector.broadcast %cst_40 : f32 to vector<256x2xf32>
    %c0_41 = arith.constant 0 : index
    %c0_42 = arith.constant 0 : index
    %c0_43 = arith.constant 0 : index
    %72 = vector.load %arg9[%c0_41, %c0_42, %c0_43] : memref<3x288x2xf32, #tpu.memory_space<vmem>>, vector<1x256x2xf32>
    %73 = vector.shape_cast %72 : vector<1x256x2xf32> to vector<256x2xf32>
    %c0_44 = arith.constant 0 : index
    %c0_45 = arith.constant 0 : index
    %c0_46 = arith.constant 0 : index
    %74 = vector.load %arg5[%c0_44, %c0_45, %c0_46] : memref<9x2x2xbf16, #tpu.memory_space<vmem>>, vector<1x2x2xbf16>
    %75 = vector.shape_cast %74 : vector<1x2x2xbf16> to vector<2x2xbf16>
    %cst_47 = arith.constant dense<0.000000e+00> : vector<256x2xf32>
    %76 = tpu.matmul %73, %75, %cst_47 {dimension_numbers = #tpu.dot_dimension_numbers<[1], [0], [0], [1], [0, 0, 1, 1], [], []>} : vector<256x2xf32>, vector<2x2xbf16>, vector<256x2xf32> -> vector<256x2xf32>
    %77 = arith.addf %71, %76 : vector<256x2xf32>
    %c1_48 = arith.constant 1 : index
    %c0_49 = arith.constant 0 : index
    %c0_50 = arith.constant 0 : index
    %78 = vector.load %arg9[%c1_48, %c0_49, %c0_50] : memref<3x288x2xf32, #tpu.memory_space<vmem>>, vector<1x256x2xf32>
    %79 = vector.shape_cast %78 : vector<1x256x2xf32> to vector<256x2xf32>
    %c1_51 = arith.constant 1 : index
    %c0_52 = arith.constant 0 : index
    %c0_53 = arith.constant 0 : index
    %80 = vector.load %arg5[%c1_51, %c0_52, %c0_53] : memref<9x2x2xbf16, #tpu.memory_space<vmem>>, vector<1x2x2xbf16>
    %81 = vector.shape_cast %80 : vector<1x2x2xbf16> to vector<2x2xbf16>
    %cst_54 = arith.constant dense<0.000000e+00> : vector<256x2xf32>
    %82 = tpu.matmul %79, %81, %cst_54 {dimension_numbers = #tpu.dot_dimension_numbers<[1], [0], [0], [1], [0, 0, 1, 1], [], []>} : vector<256x2xf32>, vector<2x2xbf16>, vector<256x2xf32> -> vector<256x2xf32>
    %83 = arith.addf %77, %82 : vector<256x2xf32>
    %c2_55 = arith.constant 2 : index
    %c0_56 = arith.constant 0 : index
    %c0_57 = arith.constant 0 : index
    %84 = vector.load %arg9[%c2_55, %c0_56, %c0_57] : memref<3x288x2xf32, #tpu.memory_space<vmem>>, vector<1x256x2xf32>
    %85 = vector.shape_cast %84 : vector<1x256x2xf32> to vector<256x2xf32>
    %c2_58 = arith.constant 2 : index
    %c0_59 = arith.constant 0 : index
    %c0_60 = arith.constant 0 : index
    %86 = vector.load %arg5[%c2_58, %c0_59, %c0_60] : memref<9x2x2xbf16, #tpu.memory_space<vmem>>, vector<1x2x2xbf16>
    %87 = vector.shape_cast %86 : vector<1x2x2xbf16> to vector<2x2xbf16>
    %cst_61 = arith.constant dense<0.000000e+00> : vector<256x2xf32>
    %88 = tpu.matmul %85, %87, %cst_61 {dimension_numbers = #tpu.dot_dimension_numbers<[1], [0], [0], [1], [0, 0, 1, 1], [], []>} : vector<256x2xf32>, vector<2x2xbf16>, vector<256x2xf32> -> vector<256x2xf32>
    %89 = arith.addf %83, %88 : vector<256x2xf32>
    %c0_62 = arith.constant 0 : index
    %c16_63 = arith.constant 16 : index
    %c0_64 = arith.constant 0 : index
    %90 = vector.load %arg9[%c0_62, %c16_63, %c0_64] : memref<3x288x2xf32, #tpu.memory_space<vmem>>, vector<1x256x2xf32>
    %91 = vector.shape_cast %90 : vector<1x256x2xf32> to vector<256x2xf32>
    %c3 = arith.constant 3 : index
    %c0_65 = arith.constant 0 : index
    %c0_66 = arith.constant 0 : index
    %92 = vector.load %arg5[%c3, %c0_65, %c0_66] : memref<9x2x2xbf16, #tpu.memory_space<vmem>>, vector<1x2x2xbf16>
    %93 = vector.shape_cast %92 : vector<1x2x2xbf16> to vector<2x2xbf16>
    %cst_67 = arith.constant dense<0.000000e+00> : vector<256x2xf32>
    %94 = tpu.matmul %91, %93, %cst_67 {dimension_numbers = #tpu.dot_dimension_numbers<[1], [0], [0], [1], [0, 0, 1, 1], [], []>} : vector<256x2xf32>, vector<2x2xbf16>, vector<256x2xf32> -> vector<256x2xf32>
    %95 = arith.addf %89, %94 : vector<256x2xf32>
    %c1_68 = arith.constant 1 : index
    %c16_69 = arith.constant 16 : index
    %c0_70 = arith.constant 0 : index
    %96 = vector.load %arg9[%c1_68, %c16_69, %c0_70] : memref<3x288x2xf32, #tpu.memory_space<vmem>>, vector<1x256x2xf32>
    %97 = vector.shape_cast %96 : vector<1x256x2xf32> to vector<256x2xf32>
    %c4 = arith.constant 4 : index
    %c0_71 = arith.constant 0 : index
    %c0_72 = arith.constant 0 : index
    %98 = vector.load %arg5[%c4, %c0_71, %c0_72] : memref<9x2x2xbf16, #tpu.memory_space<vmem>>, vector<1x2x2xbf16>
    %99 = vector.shape_cast %98 : vector<1x2x2xbf16> to vector<2x2xbf16>
    %cst_73 = arith.constant dense<0.000000e+00> : vector<256x2xf32>
    %100 = tpu.matmul %97, %99, %cst_73 {dimension_numbers = #tpu.dot_dimension_numbers<[1], [0], [0], [1], [0, 0, 1, 1], [], []>} : vector<256x2xf32>, vector<2x2xbf16>, vector<256x2xf32> -> vector<256x2xf32>
    %101 = arith.addf %95, %100 : vector<256x2xf32>
    %c2_74 = arith.constant 2 : index
    %c16_75 = arith.constant 16 : index
    %c0_76 = arith.constant 0 : index
    %102 = vector.load %arg9[%c2_74, %c16_75, %c0_76] : memref<3x288x2xf32, #tpu.memory_space<vmem>>, vector<1x256x2xf32>
    %103 = vector.shape_cast %102 : vector<1x256x2xf32> to vector<256x2xf32>
    %c5 = arith.constant 5 : index
    %c0_77 = arith.constant 0 : index
    %c0_78 = arith.constant 0 : index
    %104 = vector.load %arg5[%c5, %c0_77, %c0_78] : memref<9x2x2xbf16, #tpu.memory_space<vmem>>, vector<1x2x2xbf16>
    %105 = vector.shape_cast %104 : vector<1x2x2xbf16> to vector<2x2xbf16>
    %cst_79 = arith.constant dense<0.000000e+00> : vector<256x2xf32>
    %106 = tpu.matmul %103, %105, %cst_79 {dimension_numbers = #tpu.dot_dimension_numbers<[1], [0], [0], [1], [0, 0, 1, 1], [], []>} : vector<256x2xf32>, vector<2x2xbf16>, vector<256x2xf32> -> vector<256x2xf32>
    %107 = arith.addf %101, %106 : vector<256x2xf32>
    %c0_80 = arith.constant 0 : index
    %c32 = arith.constant 32 : index
    %c0_81 = arith.constant 0 : index
    %108 = vector.load %arg9[%c0_80, %c32, %c0_81] : memref<3x288x2xf32, #tpu.memory_space<vmem>>, vector<1x256x2xf32>
    %109 = vector.shape_cast %108 : vector<1x256x2xf32> to vector<256x2xf32>
    %c6 = arith.constant 6 : index
    %c0_82 = arith.constant 0 : index
    %c0_83 = arith.constant 0 : index
    %110 = vector.load %arg5[%c6, %c0_82, %c0_83] : memref<9x2x2xbf16, #tpu.memory_space<vmem>>, vector<1x2x2xbf16>
    %111 = vector.shape_cast %110 : vector<1x2x2xbf16> to vector<2x2xbf16>
    %cst_84 = arith.constant dense<0.000000e+00> : vector<256x2xf32>
    %112 = tpu.matmul %109, %111, %cst_84 {dimension_numbers = #tpu.dot_dimension_numbers<[1], [0], [0], [1], [0, 0, 1, 1], [], []>} : vector<256x2xf32>, vector<2x2xbf16>, vector<256x2xf32> -> vector<256x2xf32>
    %113 = arith.addf %107, %112 : vector<256x2xf32>
    %c1_85 = arith.constant 1 : index
    %c32_86 = arith.constant 32 : index
    %c0_87 = arith.constant 0 : index
    %114 = vector.load %arg9[%c1_85, %c32_86, %c0_87] : memref<3x288x2xf32, #tpu.memory_space<vmem>>, vector<1x256x2xf32>
    %115 = vector.shape_cast %114 : vector<1x256x2xf32> to vector<256x2xf32>
    %c7 = arith.constant 7 : index
    %c0_88 = arith.constant 0 : index
    %c0_89 = arith.constant 0 : index
    %116 = vector.load %arg5[%c7, %c0_88, %c0_89] : memref<9x2x2xbf16, #tpu.memory_space<vmem>>, vector<1x2x2xbf16>
    %117 = vector.shape_cast %116 : vector<1x2x2xbf16> to vector<2x2xbf16>
    %cst_90 = arith.constant dense<0.000000e+00> : vector<256x2xf32>
    %118 = tpu.matmul %115, %117, %cst_90 {dimension_numbers = #tpu.dot_dimension_numbers<[1], [0], [0], [1], [0, 0, 1, 1], [], []>} : vector<256x2xf32>, vector<2x2xbf16>, vector<256x2xf32> -> vector<256x2xf32>
    %119 = arith.addf %113, %118 : vector<256x2xf32>
    %c2_91 = arith.constant 2 : index
    %c32_92 = arith.constant 32 : index
    %c0_93 = arith.constant 0 : index
    %120 = vector.load %arg9[%c2_91, %c32_92, %c0_93] : memref<3x288x2xf32, #tpu.memory_space<vmem>>, vector<1x256x2xf32>
    %121 = vector.shape_cast %120 : vector<1x256x2xf32> to vector<256x2xf32>
    %c8 = arith.constant 8 : index
    %c0_94 = arith.constant 0 : index
    %c0_95 = arith.constant 0 : index
    %122 = vector.load %arg5[%c8, %c0_94, %c0_95] : memref<9x2x2xbf16, #tpu.memory_space<vmem>>, vector<1x2x2xbf16>
    %123 = vector.shape_cast %122 : vector<1x2x2xbf16> to vector<2x2xbf16>
    %cst_96 = arith.constant dense<0.000000e+00> : vector<256x2xf32>
    %124 = tpu.matmul %121, %123, %cst_96 {dimension_numbers = #tpu.dot_dimension_numbers<[1], [0], [0], [1], [0, 0, 1, 1], [], []>} : vector<256x2xf32>, vector<2x2xbf16>, vector<256x2xf32> -> vector<256x2xf32>
    %125 = arith.addf %119, %124 : vector<256x2xf32>
    %c0_97 = arith.constant 0 : index
    %c0_98 = arith.constant 0 : index
    %126 = vector.load %arg6[%c0_97, %c0_98] : memref<1x2xf32, #tpu.memory_space<vmem>>, vector<1x2xf32>
    %127 = vector.broadcast %126 : vector<1x2xf32> to vector<256x2xf32>
    %128 = arith.mulf %125, %127 : vector<256x2xf32>
    %c0_99 = arith.constant 0 : index
    %c0_100 = arith.constant 0 : index
    %129 = vector.load %arg7[%c0_99, %c0_100] : memref<1x2xf32, #tpu.memory_space<vmem>>, vector<1x2xf32>
    %130 = vector.broadcast %129 : vector<1x2xf32> to vector<256x2xf32>
    %131 = arith.addf %128, %130 : vector<256x2xf32>
    %132 = arith.negf %131 : vector<256x2xf32>
    %133 = math.exp %132 : vector<256x2xf32>
    %cst_101 = arith.constant 1.000000e+00 : f32
    %134 = vector.broadcast %cst_101 : f32 to vector<256x2xf32>
    %135 = arith.addf %134, %133 : vector<256x2xf32>
    %136 = arith.divf %134, %135 : vector<256x2xf32>
    %137 = arith.mulf %131, %136 : vector<256x2xf32>
    %c0_102 = arith.constant 0 : index
    %c0_103 = arith.constant 0 : index
    %c0_104 = arith.constant 0 : index
    %138 = vector.load %arg1[%c0_102, %c0_103, %c0_104] : memref<1x256x2xbf16, #tpu.memory_space<vmem>>, vector<1x256x2xbf16>
    %139 = vector.shape_cast %138 : vector<1x256x2xbf16> to vector<256x2xbf16>
    %140 = arith.extf %139 : vector<256x2xbf16> to vector<256x2xf32>
    %141 = arith.addf %137, %140 : vector<256x2xf32>
    %142 = arith.truncf %141 : vector<256x2xf32> to vector<256x2xbf16>
    %c0_105 = arith.constant 0 : index
    %c0_106 = arith.constant 0 : index
    %c0_107 = arith.constant 0 : index
    %143 = vector.load %arg8[%c0_105, %c0_106, %c0_107] : memref<1x256x2xbf16, #tpu.memory_space<vmem>>, vector<1x256x2xbf16>
    %144 = vector.shape_cast %143 : vector<1x256x2xbf16> to vector<256x2xbf16>
    %145 = vector.shape_cast %142 : vector<256x2xbf16> to vector<1x256x2xbf16>
    tpu.vector_store %arg8[%c0_105, %c0_106, %c0_107], %145 {strides = array<i32>} : memref<1x256x2xbf16, #tpu.memory_space<vmem>>, vector<1x256x2xbf16>,
    return
  }
  func.func @transform_0(%arg0: i32) -> (i32, i32, i32) {
    %c0_i32 = arith.constant 0 : i32
    %c0_i32_0 = arith.constant 0 : i32
    %c0_i32_1 = arith.constant 0 : i32
    return %arg0, %c0_i32, %c0_i32_0 : i32, i32, i32
  }
  func.func @transform_1(%arg0: i32) -> (i32, i32) {
    %c0_i32 = arith.constant 0 : i32
    %c0_i32_0 = arith.constant 0 : i32
    %c0_i32_1 = arith.constant 0 : i32
    return %c0_i32, %c0_i32_0 : i32, i32
  }
  func.func @transform_2(%arg0: i32) -> (i32, i32) {
    %c0_i32 = arith.constant 0 : i32
    %c0_i32_0 = arith.constant 0 : i32
    %c0_i32_1 = arith.constant 0 : i32
    return %c0_i32, %c0_i32_0 : i32, i32
  }
  func.func @transform_3(%arg0: i32) -> (i32, i32) {
    %c0_i32 = arith.constant 0 : i32
    %c0_i32_0 = arith.constant 0 : i32
    %c0_i32_1 = arith.constant 0 : i32
    return %c0_i32, %c0_i32_0 : i32, i32
  }
  func.func @transform_4(%arg0: i32) -> (i32, i32, i32) {
    %c0_i32 = arith.constant 0 : i32
    %c0_i32_0 = arith.constant 0 : i32
    %c0_i32_1 = arith.constant 0 : i32
    %c0_i32_2 = arith.constant 0 : i32
    return %c0_i32, %c0_i32_0, %c0_i32_1 : i32, i32, i32
  }
  func.func @transform_5(%arg0: i32) -> (i32, i32) {
    %c0_i32 = arith.constant 0 : i32
    %c0_i32_0 = arith.constant 0 : i32
    %c0_i32_1 = arith.constant 0 : i32
    return %c0_i32, %c0_i32_0 : i32, i32
  }
  func.func @transform_6(%arg0: i32) -> (i32, i32) {
    %c0_i32 = arith.constant 0 : i32
    %c0_i32_0 = arith.constant 0 : i32
    %c0_i32_1 = arith.constant 0 : i32
    return %c0_i32, %c0_i32_0 : i32, i32
  }
  func.func @transform_7(%arg0: i32) -> (i32, i32, i32) {
    %c0_i32 = arith.constant 0 : i32
    %c0_i32_0 = arith.constant 0 : i32
    %c0_i32_1 = arith.constant 0 : i32
    return %arg0, %c0_i32, %c0_i32_0 : i32, i32, i32
  }
}

module attributes {stable_mosaic.version = 11 : i64} {
  func.func @_fused_cv3_kernel(%arg0: i32, %arg1: memref<512x2xbf16, #tpu.memory_space<vmem>>, %arg2: memref<512x2xbf16, #tpu.memory_space<vmem>>, %arg3: memref<2x4xbf16, #tpu.memory_space<vmem>>, %arg4: memref<2x4xbf16, #tpu.memory_space<vmem>>, %arg5: memref<1x4xf32, #tpu.memory_space<vmem>>, %arg6: memref<1x4xf32, #tpu.memory_space<vmem>>, %arg7: memref<512x4xf32, #tpu.memory_space<vmem>>) attributes {dimension_semantics = [#tpu.dimension_semantics<parallel>], iteration_bounds = array<i64: 1>, scalar_prefetch = 0 : i64, scratch_operands = 0 : i64, tpu.core_type = #tpu.core_type<tc>, window_params = [{transform_indices = @transform_0, window_bounds = array<i64: 512, 2>}, {transform_indices = @transform_1, window_bounds = array<i64: 512, 2>}, {pipeline_mode = #tpu.pipeline_mode<synchronous>, transform_indices = @transform_2, window_bounds = array<i64: 2, 4>}, {pipeline_mode = #tpu.pipeline_mode<synchronous>, transform_indices = @transform_3, window_bounds = array<i64: 2, 4>}, {pipeline_mode = #tpu.pipeline_mode<synchronous>, transform_indices = @transform_4, window_bounds = array<i64: 1, 4>}, {pipeline_mode = #tpu.pipeline_mode<synchronous>, transform_indices = @transform_5, window_bounds = array<i64: 1, 4>}, {transform_indices = @transform_6, window_bounds = array<i64: 512, 4>}]} {
    %c0 = arith.constant 0 : index
    %c0_0 = arith.constant 0 : index
    %0 = vector.load %arg1[%c0, %c0_0] : memref<512x2xbf16, #tpu.memory_space<vmem>>, vector<512x2xbf16>
    %c0_1 = arith.constant 0 : index
    %c0_2 = arith.constant 0 : index
    %1 = vector.load %arg3[%c0_1, %c0_2] : memref<2x4xbf16, #tpu.memory_space<vmem>>, vector<2x4xbf16>
    %cst = arith.constant dense<0.000000e+00> : vector<512x4xf32>
    %2 = tpu.matmul %0, %1, %cst {dimension_numbers = #tpu.dot_dimension_numbers<[1], [0], [0], [1], [0, 0, 1, 1], [], []>} : vector<512x2xbf16>, vector<2x4xbf16>, vector<512x4xf32> -> vector<512x4xf32>
    %c0_3 = arith.constant 0 : index
    %c0_4 = arith.constant 0 : index
    %3 = vector.load %arg2[%c0_3, %c0_4] : memref<512x2xbf16, #tpu.memory_space<vmem>>, vector<512x2xbf16>
    %c0_5 = arith.constant 0 : index
    %c0_6 = arith.constant 0 : index
    %4 = vector.load %arg4[%c0_5, %c0_6] : memref<2x4xbf16, #tpu.memory_space<vmem>>, vector<2x4xbf16>
    %cst_7 = arith.constant dense<0.000000e+00> : vector<512x4xf32>
    %5 = tpu.matmul %3, %4, %cst_7 {dimension_numbers = #tpu.dot_dimension_numbers<[1], [0], [0], [1], [0, 0, 1, 1], [], []>} : vector<512x2xbf16>, vector<2x4xbf16>, vector<512x4xf32> -> vector<512x4xf32>
    %6 = arith.addf %2, %5 : vector<512x4xf32>
    %c0_8 = arith.constant 0 : index
    %c0_9 = arith.constant 0 : index
    %7 = vector.load %arg5[%c0_8, %c0_9] : memref<1x4xf32, #tpu.memory_space<vmem>>, vector<1x4xf32>
    %8 = vector.broadcast %7 : vector<1x4xf32> to vector<512x4xf32>
    %9 = arith.mulf %6, %8 : vector<512x4xf32>
    %c0_10 = arith.constant 0 : index
    %c0_11 = arith.constant 0 : index
    %10 = vector.load %arg6[%c0_10, %c0_11] : memref<1x4xf32, #tpu.memory_space<vmem>>, vector<1x4xf32>
    %11 = vector.broadcast %10 : vector<1x4xf32> to vector<512x4xf32>
    %12 = arith.addf %9, %11 : vector<512x4xf32>
    %13 = arith.negf %12 : vector<512x4xf32>
    %14 = math.exp %13 : vector<512x4xf32>
    %cst_12 = arith.constant 1.000000e+00 : f32
    %15 = vector.broadcast %cst_12 : f32 to vector<512x4xf32>
    %16 = arith.addf %15, %14 : vector<512x4xf32>
    %17 = arith.divf %15, %16 : vector<512x4xf32>
    %18 = arith.mulf %12, %17 : vector<512x4xf32>
    %c0_13 = arith.constant 0 : index
    %c0_14 = arith.constant 0 : index
    %19 = vector.load %arg7[%c0_13, %c0_14] : memref<512x4xf32, #tpu.memory_space<vmem>>, vector<512x4xf32>
    tpu.vector_store %arg7[%c0_13, %c0_14], %18 {strides = array<i32>} : memref<512x4xf32, #tpu.memory_space<vmem>>, vector<512x4xf32>,
    return
  }
  func.func @transform_0(%arg0: i32) -> (i32, i32) {
    %c0_i32 = arith.constant 0 : i32
    %c0_i32_0 = arith.constant 0 : i32
    return %arg0, %c0_i32 : i32, i32
  }
  func.func @transform_1(%arg0: i32) -> (i32, i32) {
    %c0_i32 = arith.constant 0 : i32
    %c0_i32_0 = arith.constant 0 : i32
    return %arg0, %c0_i32 : i32, i32
  }
  func.func @transform_2(%arg0: i32) -> (i32, i32) {
    %c0_i32 = arith.constant 0 : i32
    %c0_i32_0 = arith.constant 0 : i32
    %c0_i32_1 = arith.constant 0 : i32
    return %c0_i32, %c0_i32_0 : i32, i32
  }
  func.func @transform_3(%arg0: i32) -> (i32, i32) {
    %c0_i32 = arith.constant 0 : i32
    %c0_i32_0 = arith.constant 0 : i32
    %c0_i32_1 = arith.constant 0 : i32
    return %c0_i32, %c0_i32_0 : i32, i32
  }
  func.func @transform_4(%arg0: i32) -> (i32, i32) {
    %c0_i32 = arith.constant 0 : i32
    %c0_i32_0 = arith.constant 0 : i32
    %c0_i32_1 = arith.constant 0 : i32
    return %c0_i32, %c0_i32_0 : i32, i32
  }
  func.func @transform_5(%arg0: i32) -> (i32, i32) {
    %c0_i32 = arith.constant 0 : i32
    %c0_i32_0 = arith.constant 0 : i32
    %c0_i32_1 = arith.constant 0 : i32
    return %c0_i32, %c0_i32_0 : i32, i32
  }
  func.func @transform_6(%arg0: i32) -> (i32, i32) {
    %c0_i32 = arith.constant 0 : i32
    %c0_i32_0 = arith.constant 0 : i32
    return %arg0, %c0_i32 : i32, i32
  }
}

</mosaic_0001>

<bundles_post_ra>
// kernel: _lambda_.5
= control target key start
LH: loop header
LB: loop body
LE: loop exit
PB: predicated region body
PF: predicated region fallthrough
CT: control target
= control target key end

     0   :  { %vm411_vm0 = vcmask 1040384   ;;  %vm314_vm1 = vcmask 15360   ;;  %vm1842_vm2 = vcmask 31744   ;;  %s3584_s3 = inlined_call_operand.vmem [shape: bf16[2,4], index: 3, kind: input, shape index: {}]   ;;  %s3585_s2 = inlined_call_operand.vmem [shape: bf16[2,4], index: 2, kind: input, shape index: {}]   ;;  %s3586_s1 = inlined_call_operand.vmem [shape: bf16[512,2], index: 1, kind: input, shape index: {}]   ;;  %s3587_s0 = inlined_call_operand.vmem [shape: bf16[512,2], index: 0, kind: input, shape index: {}]   ;;  %s3588_s4 = inlined_call_operand.vmem [shape: f32[1,4], index: 4, kind: input, shape index: {}]   ;;  %s3589_s5 = inlined_call_operand.vmem [shape: f32[1,4], index: 5, kind: input, shape index: {}]   ;;  %s3590_s6 = inlined_call_operand.vmem [shape: f32[512,4], index: 6, kind: output, shape index: {}]  }
   0x1   :  { %v153_v0 = vld [vmem:[%s3584_s3] sm:$0x1]  ;;  %v2307_v6 = vld [vmem:[%s3586_s1 + $0x8] sm:$0xff]   ;;  %v2309_v8 = vld [vmem:[%s3586_s1 + $0x10] sm:$0xff]  }
   0x2   :  { %v88_v1 = vld [vmem:[%s3585_s2] sm:$0x1]  ;;  %2303 = vmatprep.subr.msk.bf16.mxu0 %vm411_vm0, %v153_v0  ;;  %v413_v2 = vsel %vm411_vm0, %v153_v0, 0  ;;  %v2308_v7 = vld [vmem:[%s3587_s0 + $0x8] sm:$0xff]   ;;  %v2310_v9 = vld [vmem:[%s3587_s0 + $0x10] sm:$0xff]  }
   0x3   :  { %2304 = vmatprep.subr.msk.bf16.mxu1 %vm411_vm0, %v88_v1  ;;  %v961_v3 = vsel %vm411_vm0, %v88_v1, 0  ;;  %v2305_v4 = vld [vmem:[%s3586_s1] sm:$0xff]   ;;  %2172 = vmatpush3.bf16.msra.mxu0 %v413_v2  ;;  %v2311_v10 = vld [vmem:[%s3586_s1 + $0x18] sm:$0xff]   ;;  %v2315_v14 = vld [vmem:[%s3586_s1 + $0x28] sm:$0xff]  }
   0x4   :  { %v2306_v5 = vld [vmem:[%s3587_s0] sm:$0xff]   ;;  %2238 = vmatpush3.bf16.msra.mxu1 %v961_v3  ;;  %2173 = vmatprep.mubr.msk.bf16.mxu0 %vm314_vm1, %v2305_v4  ;;  %v2312_v11 = vld [vmem:[%s3587_s0 + $0x18] sm:$0xff]   ;;  %v2316_v15 = vld [vmem:[%s3587_s0 + $0x28] sm:$0xff]  }
   0x5   :  { %2239 = vmatprep.mubr.msk.bf16.mxu1 %vm314_vm1, %v2306_v5  ;;  %v2313_v12 = vld [vmem:[%s3586_s1 + $0x20] sm:$0xff]   ;;  %v2317_v16 = vld [vmem:[%s3586_s1 + $0x30] sm:$0xff]   ;;  %v2319_v18 = vld [vmem:[%s3586_s1 + $0x38] sm:$0xff]  }
   0x6   :  { %2174 = vmatmul.mubr.msk.bf16.vlgmr.msra.gmra.mxu0 %vm314_vm1, %v2307_v6  ;;  %v2314_v13 = vld [vmem:[%s3587_s0 + $0x20] sm:$0xff]   ;;  %v2318_v17 = vld [vmem:[%s3587_s0 + $0x30] sm:$0xff]   ;;  %v2320_v19 = vld [vmem:[%s3587_s0 + $0x38] sm:$0xff]  }
   0x7   :  { %2240 = vmatmul.mubr.msk.bf16.vlgmr.msra.gmra.mxu1 %vm314_vm1, %v2308_v7  ;;  %2177 = vmatprep.mubr.msk.bf16.mxu0 %vm314_vm1, %v2309_v8  ;;  %v2321_v20 = vld [vmem:[%s3586_s1 + $0x40] sm:$0xff]   ;;  %v2323_v22 = vld [vmem:[%s3586_s1 + $0x48] sm:$0xff]   ;;  %v2325_v24 = vld [vmem:[%s3586_s1 + $0x50] sm:$0xff]  }
   0x8   :  { %2243 = vmatprep.mubr.msk.bf16.mxu1 %vm314_vm1, %v2310_v9  ;;  %v2322_v21 = vld [vmem:[%s3587_s0 + $0x40] sm:$0xff]   ;;  %v2324_v23 = vld [vmem:[%s3587_s0 + $0x48] sm:$0xff]   ;;  %v2326_v25 = vld [vmem:[%s3587_s0 + $0x50] sm:$0xff]  }
   0x9   :  { %v2327_v26 = vld [vmem:[%s3586_s1 + $0x58] sm:$0xff]   ;;  %v2329_v28 = vld [vmem:[%s3586_s1 + $0x60] sm:$0xff]   ;;  %v2331_v30 = vld [vmem:[%s3586_s1 + $0x68] sm:$0xff]  }
   0xa   :  { %v2328_v27 = vld [vmem:[%s3587_s0 + $0x58] sm:$0xff]   ;;  %v2330_v29 = vld [vmem:[%s3587_s0 + $0x60] sm:$0xff]   ;;  %v2332_v31 = vld [vmem:[%s3587_s0 + $0x68] sm:$0xff]  }
   0xb   :  { %v2333_v32 = vld [vmem:[%s3586_s1 + $0x70] sm:$0xff]   ;;  %v2335_v34 = vld [vmem:[%s3586_s1 + $0x78] sm:$0xff]   ;;  %v2337_v36 = vld [vmem:[%s3586_s1 + $0x80] sm:$0xff]  }
   0xc   :  { %v2334_v33 = vld [vmem:[%s3587_s0 + $0x70] sm:$0xff]   ;;  %v2336_v35 = vld [vmem:[%s3587_s0 + $0x78] sm:$0xff]   ;;  %v2338_v37 = vld [vmem:[%s3587_s0 + $0x80] sm:$0xff]  }
   0xd   :  { %v2339_v38 = vld [vmem:[%s3586_s1 + $0x88] sm:$0xff]   ;;  %v2341_v40 = vld [vmem:[%s3586_s1 + $0x90] sm:$0xff]   ;;  %v2343_v42 = vld [vmem:[%s3586_s1 + $0x98] sm:$0xff]  }
   0xe   :  { %2178 = vmatmul.mubr.msk.bf16.gmra.mxu0 %vm314_vm1, %v2311_v10  ;;  %v2340_v39 = vld [vmem:[%s3587_s0 + $0x88] sm:$0xff]   ;;  %v2342_v41 = vld [vmem:[%s3587_s0 + $0x90] sm:$0xff]   ;;  %v2344_v43 = vld [vmem:[%s3587_s0 + $0x98] sm:$0xff]  }
   0xf   :  { %2244 = vmatmul.mubr.msk.bf16.gmra.mxu1 %vm314_vm1, %v2312_v11  ;;  %2181 = vmatprep.mubr.msk.bf16.mxu0 %vm314_vm1, %v2313_v12  ;;  %v2345_v44 = vld [vmem:[%s3586_s1 + $0xa0] sm:$0xff]   ;;  %v2347_v46 = vld [vmem:[%s3586_s1 + $0xa8] sm:$0xff]   ;;  %v2349_v48 = vld [vmem:[%s3586_s1 + $0xb0] sm:$0xff]  }
  0x10   :  { %2247 = vmatprep.mubr.msk.bf16.mxu1 %vm314_vm1, %v2314_v13  ;;  %v2346_v45 = vld [vmem:[%s3587_s0 + $0xa0] sm:$0xff]   ;;  %v2348_v47 = vld [vmem:[%s3587_s0 + $0xa8] sm:$0xff]   ;;  %v2350_v49 = vld [vmem:[%s3587_s0 + $0xb0] sm:$0xff]  }
  0x11   :  { %v2351_v50 = vld [vmem:[%s3586_s1 + $0xb8] sm:$0xff]   ;;  %v2353_v52 = vld [vmem:[%s3586_s1 + $0xc0] sm:$0xff]   ;;  %v2355_v54 = vld [vmem:[%s3586_s1 + $0xc8] sm:$0xff]  }
  0x12   :  { %v2352_v51 = vld [vmem:[%s3587_s0 + $0xb8] sm:$0xff]   ;;  %v2354_v53 = vld [vmem:[%s3587_s0 + $0xc0] sm:$0xff]   ;;  %v2356_v55 = vld [vmem:[%s3587_s0 + $0xc8] sm:$0xff]  }
  0x13   :  { %v2357_v56 = vld [vmem:[%s3586_s1 + $0xd0] sm:$0xff]   ;;  %v2359_v58 = vld [vmem:[%s3586_s1 + $0xd8] sm:$0xff]   ;;  %v2361_v60 = vld [vmem:[%s3586_s1 + $0xe0] sm:$0xff]  }
  0x14   :  { %v2358_v57 = vld [vmem:[%s3587_s0 + $0xd0] sm:$0xff]   ;;  %v2360_v59 = vld [vmem:[%s3587_s0 + $0xd8] sm:$0xff]   ;;  %v2362_v61 = vld [vmem:[%s3587_s0 + $0xe0] sm:$0xff]  }
  0x15   :  { %v2363_v62 = vld [vmem:[%s3586_s1 + $0xe8] sm:$0xff]   ;;  %v2365_v0 = vld [vmem:[%s3586_s1 + $0xf0] sm:$0xff]   ;;  %v2367_v2 = vld [vmem:[%s3586_s1 + $0xf8] sm:$0xff]  }
  0x16   :  { %2182 = vmatmul.mubr.msk.bf16.gmra.mxu0 %vm314_vm1, %v2315_v14  ;;  %v2364_v63 = vld [vmem:[%s3587_s0 + $0xe8] sm:$0xff]   ;;  %v2366_v1 = vld [vmem:[%s3587_s0 + $0xf0] sm:$0xff]   ;;  %v2368_v3 = vld [vmem:[%s3587_s0 + $0xf8] sm:$0xff]  }
  0x17   :  { %2248 = vmatmul.mubr.msk.bf16.gmra.mxu1 %vm314_vm1, %v2316_v15  ;;  %2185 = vmatprep.mubr.msk.bf16.mxu0 %vm314_vm1, %v2317_v16  ;;  %v2927_v6 = vld [vmem:[%s3588_s4] ss:$0 sm:$0xff] }
  0x18   :  { %2251 = vmatprep.mubr.msk.bf16.mxu1 %vm314_vm1, %v2318_v17  ;;  %v2932_v9 = vld [vmem:[%s3589_s5] ss:$0 sm:$0xff] }
  0x1e   :  { %2186 = vmatmul.mubr.msk.bf16.gmra.mxu0 %vm314_vm1, %v2319_v18 }
  0x1f   :  { %2252 = vmatmul.mubr.msk.bf16.gmra.mxu1 %vm314_vm1, %v2320_v19  ;;  %2189 = vmatprep.mubr.msk.bf16.mxu0 %vm314_vm1, %v2321_v20 }
  0x20   :  { %2255 = vmatprep.mubr.msk.bf16.mxu1 %vm314_vm1, %v2322_v21 }
  0x26   :  { %2190 = vmatmul.mubr.msk.bf16.gmra.mxu0 %vm314_vm1, %v2323_v22 }
  0x27   :  { %2256 = vmatmul.mubr.msk.bf16.gmra.mxu1 %vm314_vm1, %v2324_v23  ;;  %2193 = vmatprep.mubr.msk.bf16.mxu0 %vm314_vm1, %v2325_v24 }
  0x28   :  { %2259 = vmatprep.mubr.msk.bf16.mxu1 %vm314_vm1, %v2326_v25 }
  0x2e   :  { %2194 = vmatmul.mubr.msk.bf16.gmra.mxu0 %vm314_vm1, %v2327_v26 }
  0x2f   :  { %2260 = vmatmul.mubr.msk.bf16.gmra.mxu1 %vm314_vm1, %v2328_v27  ;;  %2197 = vmatprep.mubr.msk.bf16.mxu0 %vm314_vm1, %v2329_v28 }
  0x30   :  { %2263 = vmatprep.mubr.msk.bf16.mxu1 %vm314_vm1, %v2330_v29 }
  0x36   :  { %2198 = vmatmul.mubr.msk.bf16.gmra.mxu0 %vm314_vm1, %v2331_v30 }
  0x37   :  { %2264 = vmatmul.mubr.msk.bf16.gmra.mxu1 %vm314_vm1, %v2332_v31  ;;  %2201 = vmatprep.mubr.msk.bf16.mxu0 %vm314_vm1, %v2333_v32 }
  0x38   :  { %2267 = vmatprep.mubr.msk.bf16.mxu1 %vm314_vm1, %v2334_v33 }
  0x3e   :  { %2202 = vmatmul.mubr.msk.bf16.gmra.mxu0 %vm314_vm1, %v2335_v34 }
  0x3f   :  { %2268 = vmatmul.mubr.msk.bf16.gmra.mxu1 %vm314_vm1, %v2336_v35  ;;  %2205 = vmatprep.mubr.msk.bf16.mxu0 %vm314_vm1, %v2337_v36 }
  0x40   :  { %2271 = vmatprep.mubr.msk.bf16.mxu1 %vm314_vm1, %v2338_v37 }
  0x46   :  { %2206 = vmatmul.mubr.msk.bf16.gmra.mxu0 %vm314_vm1, %v2339_v38 }
  0x47   :  { %2272 = vmatmul.mubr.msk.bf16.gmra.mxu1 %vm314_vm1, %v2340_v39  ;;  %2209 = vmatprep.mubr.msk.bf16.mxu0 %vm314_vm1, %v2341_v40 }
  0x48   :  { %2275 = vmatprep.mubr.msk.bf16.mxu1 %vm314_vm1, %v2342_v41 }
  0x4e   :  { %2210 = vmatmul.mubr.msk.bf16.gmra.mxu0 %vm314_vm1, %v2343_v42 }
  0x4f   :  { %2276 = vmatmul.mubr.msk.bf16.gmra.mxu1 %vm314_vm1, %v2344_v43  ;;  %2213 = vmatprep.mubr.msk.bf16.mxu0 %vm314_vm1, %v2345_v44 }
  0x50   :  { %2279 = vmatprep.mubr.msk.bf16.mxu1 %vm314_vm1, %v2346_v45 }
  0x56   :  { %2214 = vmatmul.mubr.msk.bf16.gmra.mxu0 %vm314_vm1, %v2347_v46 }
  0x57   :  { %2280 = vmatmul.mubr.msk.bf16.gmra.mxu1 %vm314_vm1, %v2348_v47  ;;  %2217 = vmatprep.mubr.msk.bf16.mxu0 %vm314_vm1, %v2349_v48 }
  0x58   :  { %2283 = vmatprep.mubr.msk.bf16.mxu1 %vm314_vm1, %v2350_v49 }
  0x5e   :  { %2218 = vmatmul.mubr.msk.bf16.gmra.mxu0 %vm314_vm1, %v2351_v50 }
  0x5f   :  { %2284 = vmatmul.mubr.msk.bf16.gmra.mxu1 %vm314_vm1, %v2352_v51  ;;  %2221 = vmatprep.mubr.msk.bf16.mxu0 %vm314_vm1, %v2353_v52 }
  0x60   :  { %2287 = vmatprep.mubr.msk.bf16.mxu1 %vm314_vm1, %v2354_v53 }
  0x66   :  { %2222 = vmatmul.mubr.msk.bf16.gmra.mxu0 %vm314_vm1, %v2355_v54 }
  0x67   :  { %2288 = vmatmul.mubr.msk.bf16.gmra.mxu1 %vm314_vm1, %v2356_v55  ;;  %2225 = vmatprep.mubr.msk.bf16.mxu0 %vm314_vm1, %v2357_v56 }
  0x68   :  { %2291 = vmatprep.mubr.msk.bf16.mxu1 %vm314_vm1, %v2358_v57 }
  0x6e   :  { %2226 = vmatmul.mubr.msk.bf16.gmra.mxu0 %vm314_vm1, %v2359_v58 }
  0x6f   :  { %2292 = vmatmul.mubr.msk.bf16.gmra.mxu1 %vm314_vm1, %v2360_v59  ;;  %2229 = vmatprep.mubr.msk.bf16.mxu0 %vm314_vm1, %v2361_v60 }
  0x70   :  { %2295 = vmatprep.mubr.msk.bf16.mxu1 %vm314_vm1, %v2362_v61 }
  0x76   :  { %2230 = vmatmul.mubr.msk.bf16.gmra.mxu0 %vm314_vm1, %v2363_v62 }
  0x77   :  { %2296 = vmatmul.mubr.msk.bf16.gmra.mxu1 %vm314_vm1, %v2364_v63  ;;  %2233 = vmatprep.mubr.msk.bf16.mxu0 %vm314_vm1, %v2365_v0 }
  0x78   :  { %2299 = vmatprep.mubr.msk.bf16.mxu1 %vm314_vm1, %v2366_v1 }
  0x7e   :  { %2234 = vmatmul.mubr.msk.bf16.gmra.mxu0 %vm314_vm1, %v2367_v2 }
  0x7f   :  { %2300 = vmatmul.mubr.msk.bf16.gmra.mxu1 %vm314_vm1, %v2368_v3 }
  0xc6   :  { %v2175_v4 = vpop.f32.mrf.mxu0 }
  0xc7   :  { %v2241_v5 = vpop.f32.mrf.mxu1 }
  0xc8   :  { %v1006_v7 = vadd.f32 %v2241_v5, %v2175_v4  ;;  %v449_v8 = vpop.f32.mrf.mxu0 }
  0xc9   :  { %v997_v10 = vpop.f32.mrf.mxu1 }
  0xca   :  { %v1261_v11 = vmul.f32 %v2927_v6, %v1006_v7  ;;  %v998_v12 = vadd.f32 %v997_v10, %v449_v8  ;;  %v2176_v13 = vpop.f32.mrf.mxu0 }
  0xcb   :  { %v2242_v14 = vpop.f32.mrf.mxu1 }
  0xcc   :  { %v2936_v15 = vadd.f32 %v2932_v9, %v1261_v11  ;;  %v1259_v16 = vmul.f32 %v2927_v6, %v998_v12  ;;  %v1009_v17 = vadd.f32 %v2242_v14, %v2176_v13  ;;  %v452_v18 = vpop.f32.mrf.mxu0 }
  0xcd   :  { %v1000_v19 = vpop.f32.mrf.mxu1 }
  0xce   :  { %v2043_v20 = vmul.f32 -1.442695, %v2936_v15  ;;  %v2941_v21 = vadd.f32 %v2932_v9, %v1259_v16  ;;  %v1262_v22 = vmul.f32 %v2927_v6, %v1009_v17  ;;  %v1001_v23 = vadd.f32 %v1000_v19, %v452_v18  ;;  %v2179_v24 = vpop.f32.mrf.mxu0 }
  0xcf   :  { %v2245_v25 = vpop.f32.mrf.mxu1 }
  0xd0   :  { %2369 = vpow2.f32 %v2043_v20  ;;  %v2041_v26 = vmul.f32 -1.442695, %v2941_v21  ;;  %v2946_v27 = vadd.f32 %v2932_v9, %v1262_v22  ;;  %v1260_v28 = vmul.f32 %v2927_v6, %v1001_v23  ;;  %v465_v29 = vpop.f32.mrf.mxu0 }
  0xd1   :  { %v1022_v30 = vadd.f32 %v2245_v25, %v2179_v24  ;;  %v1013_v31 = vpop.f32.mrf.mxu1 }
  0xd2   :  { %2371 = vpow2.f32 %v2041_v26  ;;  %v2044_v32 = vmul.f32 -1.442695, %v2946_v27  ;;  %v2951_v33 = vadd.f32 %v2932_v9, %v1260_v28  ;;  %v1014_v34 = vadd.f32 %v1013_v31, %v465_v29  ;;  %v2180_v35 = vpop.f32.mrf.mxu0 }
  0xd3   :  { %v1265_v36 = vmul.f32 %v2927_v6, %v1022_v30  ;;  %v2246_v37 = vpop.f32.mrf.mxu1 }
  0xd4   :  { %2373 = vpow2.f32 %v2044_v32  ;;  %v2042_v38 = vmul.f32 -1.442695, %v2951_v33  ;;  %v1263_v39 = vmul.f32 %v2927_v6, %v1014_v34  ;;  %v1025_v40 = vadd.f32 %v2246_v37, %v2180_v35  ;;  %v468_v41 = vpop.f32.mrf.mxu0 }
  0xd5   :  { %v2957_v42 = vadd.f32 %v2932_v9, %v1265_v36  ;;  %v1016_v43 = vpop.f32.mrf.mxu1 }
  0xd6   :  { %2375 = vpow2.f32 %v2042_v38  ;;  %v2960_v44 = vadd.f32 %v2932_v9, %v1263_v39  ;;  %v1266_v45 = vmul.f32 %v2927_v6, %v1025_v40  ;;  %v1017_v46 = vadd.f32 %v1016_v43, %v468_v41  ;;  %v2183_v47 = vpop.f32.mrf.mxu0 }
  0xd7   :  { %v2047_v48 = vmul.f32 -1.442695, %v2957_v42  ;;  %v2249_v49 = vpop.f32.mrf.mxu1 }
  0xd8   :  { %v2045_v50 = vmul.f32 -1.442695, %v2960_v44  ;;  %v2966_v51 = vadd.f32 %v2932_v9, %v1266_v45  ;;  %v1264_v52 = vmul.f32 %v2927_v6, %v1017_v46  ;;  %v1038_v53 = vadd.f32 %v2249_v49, %v2183_v47  ;;  %v481_v54 = vpop.f32.mrf.mxu0 }
  0xd9   :  { %2377 = vpow2.f32 %v2047_v48  ;;  %v1029_v55 = vpop.f32.mrf.mxu1 }
  0xda   :  { %2379 = vpow2.f32 %v2045_v50  ;;  %v2048_v56 = vmul.f32 -1.442695, %v2966_v51  ;;  %v2971_v57 = vadd.f32 %v2932_v9, %v1264_v52  ;;  %v1269_v58 = vmul.f32 %v2927_v6, %v1038_v53  ;;  %v2184_v59 = vpop.f32.mrf.mxu0 }
  0xdb   :  { %v1030_v60 = vadd.f32 %v1029_v55, %v481_v54  ;;  %v2250_v61 = vpop.f32.mrf.mxu1 }
  0xdc   :  { %2381 = vpow2.f32 %v2048_v56  ;;  %v2046_v62 = vmul.f32 -1.442695, %v2971_v57  ;;  %v2976_v63 = vadd.f32 %v2932_v9, %v1269_v58  ;;  %v1041_v0 = vadd.f32 %v2250_v61, %v2184_v59  ;;  %v484_v1 = vpop.f32.mrf.mxu0 }
  0xdd   :  { %v2370_v2 = vpop.eup %2369  ;;  %v1267_v3 = vmul.f32 %v2927_v6, %v1030_v60  ;;  %v1032_v4 = vpop.f32.mrf.mxu1 }
  0xde   :  { %v1588_v5 = vadd.f32 1.0, %v2370_v2  ;;  %2383 = vpow2.f32 %v2046_v62  ;;  %v2051_v7 = vmul.f32 -1.442695, %v2976_v63  ;;  %v1270_v8 = vmul.f32 %v2927_v6, %v1041_v0  ;;  %v2187_v10 = vpop.f32.mrf.mxu0 }
  0xdf   :  { %v2372_v11 = vpop.eup %2371  ;;  %v2982_v12 = vadd.f32 %v2932_v9, %v1267_v3  ;;  %v1033_v13 = vadd.f32 %v1032_v4, %v484_v1  ;;  %v2253_v14 = vpop.f32.mrf.mxu1 }
  0xe0   :  { %2385 = vrcp.f32 %v1588_v5  ;;  %v1586_v16 = vadd.f32 1.0, %v2372_v11  ;;  %v2985_v17 = vadd.f32 %v2932_v9, %v1270_v8  ;;  %v1054_v18 = vadd.f32 %v2253_v14, %v2187_v10  ;;  %v497_v19 = vpop.f32.mrf.mxu0 }
  0xe1   :  { %v2374_v20 = vpop.eup %2373  ;;  %2387 = vpow2.f32 %v2051_v7  ;;  %v2049_v22 = vmul.f32 -1.442695, %v2982_v12  ;;  %v1268_v23 = vmul.f32 %v2927_v6, %v1033_v13  ;;  %v1045_v24 = vpop.f32.mrf.mxu1 }
  0xe2   :  { %2389 = vrcp.f32 %v1586_v16  ;;  %v1589_v25 = vadd.f32 1.0, %v2374_v20  ;;  %v2052_v26 = vmul.f32 -1.442695, %v2985_v17  ;;  %v1273_v28 = vmul.f32 %v2927_v6, %v1054_v18  ;;  %v2188_v29 = vpop.f32.mrf.mxu0 }
  0xe3   :  { %v2376_v30 = vpop.eup %2375  ;;  %2391 = vpow2.f32 %v2049_v22  ;;  %v2992_v31 = vadd.f32 %v2932_v9, %v1268_v23  ;;  %v1046_v32 = vadd.f32 %v1045_v24, %v497_v19  ;;  %v2254_v34 = vpop.f32.mrf.mxu1 }
  0xe4   :  { %2393 = vrcp.f32 %v1589_v25  ;;  %v1587_v35 = vadd.f32 1.0, %v2376_v30  ;;  %v2995_v36 = vadd.f32 %v2932_v9, %v1273_v28  ;;  %v1057_v37 = vadd.f32 %v2254_v34, %v2188_v29  ;;  %v500_v38 = vpop.f32.mrf.mxu0 }
  0xe5   :  { %2395 = vpow2.f32 %v2052_v26  ;;  %v2050_v39 = vmul.f32 -1.442695, %v2992_v31  ;;  %v1271_v40 = vmul.f32 %v2927_v6, %v1046_v32  ;;  %v1048_v41 = vpop.f32.mrf.mxu1 }
  0xe6   :  { %v2378_v43 = vpop.eup %2377  ;;  %2397 = vrcp.f32 %v1587_v35  ;;  %v2055_v45 = vmul.f32 -1.442695, %v2995_v36  ;;  %v1274_v46 = vmul.f32 %v2927_v6, %v1057_v37  ;;  %v1049_v47 = vadd.f32 %v1048_v41, %v500_v38  ;;  %v2191_v48 = vpop.f32.mrf.mxu0 }
  0xe7   :  { %v2380_v49 = vpop.eup %2379  ;;  %v1592_v50 = vadd.f32 1.0, %v2378_v43  ;;  %2399 = vpow2.f32 %v2050_v39  ;;  %v3002_v52 = vadd.f32 %v2932_v9, %v1271_v40  ;;  %v2257_v53 = vpop.f32.mrf.mxu1 }
  0xe8   :  { %v1590_v54 = vadd.f32 1.0, %v2380_v49  ;;  %2401 = vpow2.f32 %v2055_v45  ;;  %v3005_v55 = vadd.f32 %v2932_v9, %v1274_v46  ;;  %v1272_v56 = vmul.f32 %v2927_v6, %v1049_v47  ;;  %v513_v58 = vpop.f32.mrf.mxu0 }
  0xe9   :  { %v2382_v59 = vpop.eup %2381  ;;  %2403 = vrcp.f32 %v1592_v50  ;;  %v2053_v60 = vmul.f32 -1.442695, %v3002_v52  ;;  %v1070_v61 = vadd.f32 %v2257_v53, %v2191_v48  ;;  %v1061_v62 = vpop.f32.mrf.mxu1 }
  0xea   :  { %2405 = vrcp.f32 %v1590_v54  ;;  %v1593_v0 = vadd.f32 1.0, %v2382_v59  ;;  %v2056_v1 = vmul.f32 -1.442695, %v3005_v55  ;;  %v3011_v2 = vadd.f32 %v2932_v9, %v1272_v56  ;;  %v2192_v3 = vpop.f32.mrf.mxu0 }
  0xeb   :  { %v2384_v4 = vpop.eup %2383  ;;  %2407 = vpow2.f32 %v2053_v60  ;;  %v1277_v5 = vmul.f32 %v2927_v6, %v1070_v61  ;;  %v1062_v7 = vadd.f32 %v1061_v62, %v513_v58  ;;  %v2258_v8 = vpop.f32.mrf.mxu1 }
  0xec   :  { %2409 = vrcp.f32 %v1593_v0  ;;  %v1591_v10 = vadd.f32 1.0, %v2384_v4  ;;  %v2054_v11 = vmul.f32 -1.442695, %v3011_v2  ;;  %v1073_v13 = vadd.f32 %v2258_v8, %v2192_v3  ;;  %v516_v14 = vpop.f32.mrf.mxu0 }
  0xed   :  { %v2386_v16 = vpop.eup %2385  ;;  %2411 = vpow2.f32 %v2056_v1  ;;  %v3016_v18 = vadd.f32 %v2932_v9, %v1277_v5  ;;  %v1275_v19 = vmul.f32 %v2927_v6, %v1062_v7  ;;  %v1064_v20 = vpop.f32.mrf.mxu1 }
  0xee   :  { %v2388_v22 = vpop.eup %2387  ;;  %v1780_v23 = vmul.f32 %v2386_v16, %v2936_v15  ;;  %2413 = vrcp.f32 %v1591_v10  ;;  %v1278_v24 = vmul.f32 %v2927_v6, %v1073_v13  ;;  %v1065_v25 = vadd.f32 %v1064_v20, %v516_v14  ;;  %v2195_v26 = vpop.f32.mrf.mxu0 }
  0xef   :  { %v2390_v28 = vpop.eup %2389  ;;  %v1596_v29 = vadd.f32 1.0, %v2388_v22  ;;  %2415 = vpow2.f32 %v2054_v11  ;;  %v2059_v30 = vmul.f32 -1.442695, %v3016_v18  ;;  %v3023_v32 = vadd.f32 %v2932_v9, %v1275_v19  ;;  %v2261_v34 = vpop.f32.mrf.mxu1 }
  0xf0   :  { %v2392_v35 = vpop.eup %2391  ;;  %1845 = vst.msk [vmem:[%s3590_s6 + $0x10] sm:$0xff] %vm1842_vm2, %v1780_v23  ;;  %v1778_v15 = vmul.f32 %v2390_v28, %v2941_v21  ;;  %v3031_v37 = vadd.f32 %v2932_v9, %v1278_v24  ;;  %v1276_v38 = vmul.f32 %v2927_v6, %v1065_v25  ;;  %v1086_v39 = vadd.f32 %v2261_v34, %v2195_v26  ;;  %v529_v40 = vpop.f32.mrf.mxu0 }
  0xf1   :  { %v2394_v41 = vpop.eup %2393  ;;  %2417 = vrcp.f32 %v1596_v29  ;;  %v1594_v43 = vadd.f32 1.0, %v2392_v35  ;;  %v2057_v45 = vmul.f32 -1.442695, %v3023_v32  ;;  %v1077_v46 = vpop.f32.mrf.mxu1 }
  0xf2   :  { %v2396_v47 = vpop.eup %2395  ;;  %1843 = vst.msk [vmem:[%s3590_s6] sm:$0xff] %vm1842_vm2, %v1778_v15  ;;  %v1781_v21 = vmul.f32 %v2394_v41, %v2946_v27  ;;  %2419 = vpow2.f32 %v2059_v30  ;;  %v2060_v48 = vmul.f32 -1.442695, %v3031_v37  ;;  %v3042_v49 = vadd.f32 %v2932_v9, %v1276_v38  ;;  %v2196_v50 = vpop.f32.mrf.mxu0 }
  0xf3   :  { %v2398_v53 = vpop.eup %2397  ;;  %2421 = vrcp.f32 %v1594_v43  ;;  %v1597_v54 = vadd.f32 1.0, %v2396_v47  ;;  %v1281_v56 = vmul.f32 %v2927_v6, %v1086_v39  ;;  %v1078_v58 = vadd.f32 %v1077_v46, %v529_v40  ;;  %v2262_v59 = vpop.f32.mrf.mxu1 }
  0xf4   :  { %v2400_v60 = vpop.eup %2399  ;;  %1846 = vst.msk [vmem:[%s3590_s6 + $0x18] sm:$0xff] %vm1842_vm2, %v1781_v21  ;;  %v1779_v27 = vmul.f32 %v2398_v53, %v2951_v33  ;;  %2423 = vpow2.f32 %v2057_v45  ;;  %v2058_v61 = vmul.f32 -1.442695, %v3042_v49  ;;  %v1089_v62 = vadd.f32 %v2262_v59, %v2196_v50  ;;  %v532_v0 = vpop.f32.mrf.mxu0 }
  0xf5   :  { %v2402_v1 = vpop.eup %2401  ;;  %2425 = vrcp.f32 %v1597_v54  ;;  %v1595_v3 = vadd.f32 1.0, %v2400_v60  ;;  %v3052_v4 = vadd.f32 %v2932_v9, %v1281_v56  ;;  %v1279_v5 = vmul.f32 %v2927_v6, %v1078_v58  ;;  %v1080_v7 = vpop.f32.mrf.mxu1 }
  0xf6   :  { %v2404_v8 = vpop.eup %2403  ;;  %1844 = vst.msk [vmem:[%s3590_s6 + $0x8] sm:$0xff] %vm1842_vm2, %v1779_v27  ;;  %v1600_v33 = vadd.f32 1.0, %v2402_v1  ;;  %2427 = vpow2.f32 %v2060_v48  ;;  %v1282_v10 = vmul.f32 %v2927_v6, %v1089_v62  ;;  %v1081_v11 = vadd.f32 %v1080_v7, %v532_v0  ;;  %v2199_v13 = vpop.f32.mrf.mxu0 }
  0xf7   :  { %v2406_v14 = vpop.eup %2405  ;;  %v1784_v16 = vmul.f32 %v2404_v8, %v2957_v42  ;;  %2429 = vrcp.f32 %v1595_v3  ;;  %v2063_v19 = vmul.f32 -1.442695, %v3052_v4  ;;  %v3063_v20 = vadd.f32 %v2932_v9, %v1279_v5  ;;  %v2265_v22 = vpop.f32.mrf.mxu1 }
  0xf8   :  { %v2408_v23 = vpop.eup %2407  ;;  %v1782_v24 = vmul.f32 %v2406_v14, %v2960_v44  ;;  %2431 = vrcp.f32 %v1600_v33  ;;  %v3067_v25 = vadd.f32 %v2932_v9, %v1282_v10  ;;  %v1280_v26 = vmul.f32 %v2927_v6, %v1081_v11  ;;  %v545_v28 = vpop.f32.mrf.mxu0 }
  0xf9   :  { %v2410_v29 = vpop.eup %2409  ;;  %1849 = vst.msk [vmem:[%s3590_s6 + $0x30] sm:$0xff] %vm1842_vm2, %v1784_v16  ;;  %v1598_v42 = vadd.f32 1.0, %v2408_v23  ;;  %2433 = vpow2.f32 %v2058_v61  ;;  %v2061_v30 = vmul.f32 -1.442695, %v3063_v20  ;;  %v1102_v34 = vadd.f32 %v2265_v22, %v2199_v13  ;;  %v1093_v35 = vpop.f32.mrf.mxu1 }
  0xfa   :  { %v2412_v44 = vpop.eup %2411  ;;  %1847 = vst.msk [vmem:[%s3590_s6 + $0x20] sm:$0xff] %vm1842_vm2, %v1782_v24  ;;  %v1785_v15 = vmul.f32 %v2410_v29, %v2966_v51  ;;  %2435 = vpow2.f32 %v2063_v19  ;;  %v2064_v38 = vmul.f32 -1.442695, %v3067_v25  ;;  %v3082_v39 = vadd.f32 %v2932_v9, %v1280_v26  ;;  %v2200_v40 = vpop.f32.mrf.mxu0 }
  0xfb   :  { %v2414_v41 = vpop.eup %2413  ;;  %2437 = vrcp.f32 %v1598_v42  ;;  %v1601_v43 = vadd.f32 1.0, %v2412_v44  ;;  %v1285_v45 = vmul.f32 %v2927_v6, %v1102_v34  ;;  %v1094_v46 = vadd.f32 %v1093_v35, %v545_v28  ;;  %v2266_v47 = vpop.f32.mrf.mxu1 }
  0xfc   :  { %v2416_v21 = vpop.eup %2415  ;;  %1850 = vst.msk [vmem:[%s3590_s6 + $0x38] sm:$0xff] %vm1842_vm2, %v1785_v15  ;;  %v1783_v51 = vmul.f32 %v2414_v41, %v2971_v57  ;;  %2439 = vpow2.f32 %v2061_v30  ;;  %v2062_v48 = vmul.f32 -1.442695, %v3082_v39  ;;  %v1105_v50 = vadd.f32 %v2266_v47, %v2200_v40  ;;  %v548_v53 = vpop.f32.mrf.mxu0 }
  0xfd   :  { %2441 = vrcp.f32 %v1601_v43  ;;  %v1599_v54 = vadd.f32 1.0, %v2416_v21  ;;  %v3092_v56 = vadd.f32 %v2932_v9, %v1285_v45  ;;  %v1283_v58 = vmul.f32 %v2927_v6, %v1094_v46  ;;  %v1096_v59 = vpop.f32.mrf.mxu1 }
  0xfe   :  { %v2418_v60 = vpop.eup %2417  ;;  %1848 = vst.msk [vmem:[%s3590_s6 + $0x28] sm:$0xff] %vm1842_vm2, %v1783_v51  ;;  %2443 = vpow2.f32 %v2064_v38  ;;  %v1286_v57 = vmul.f32 %v2927_v6, %v1105_v50  ;;  %v1097_v27 = vadd.f32 %v1096_v59, %v548_v53  ;;  %v2203_v61 = vpop.f32.mrf.mxu0 }
  0xff   :  { %v2420_v62 = vpop.eup %2419  ;;  %v1788_v0 = vmul.f32 %v2418_v60, %v2976_v63  ;;  %2445 = vrcp.f32 %v1599_v54  ;;  %v2067_v1 = vmul.f32 -1.442695, %v3092_v56  ;;  %v3103_v3 = vadd.f32 %v2932_v9, %v1283_v58  ;;  %v2269_v5 = vpop.f32.mrf.mxu1 }
 0x100   :  { %v2422_v7 = vpop.eup %2421  ;;  %v1604_v8 = vadd.f32 1.0, %v2420_v62  ;;  %2447 = vpow2.f32 %v2062_v48  ;;  %v3106_v33 = vadd.f32 %v2932_v9, %v1286_v57  ;;  %v1284_v10 = vmul.f32 %v2927_v6, %v1097_v27  ;;  %v561_v11 = vpop.f32.mrf.mxu0 }
 0x101   :  { %v2424_v13 = vpop.eup %2423  ;;  %1853 = vst.msk [vmem:[%s3590_s6 + $0x50] sm:$0xff] %vm1842_vm2, %v1788_v0  ;;  %v1786_v63 = vmul.f32 %v2422_v7, %v2982_v12  ;;  %2449 = vpow2.f32 %v2067_v1  ;;  %v2065_v14 = vmul.f32 -1.442695, %v3103_v3  ;;  %v1118_v16 = vadd.f32 %v2269_v5, %v2203_v61  ;;  %v1109_v19 = vpop.f32.mrf.mxu1 }
 0x102   :  { %v2426_v22 = vpop.eup %2425  ;;  %2451 = vrcp.f32 %v1604_v8  ;;  %v1602_v23 = vadd.f32 1.0, %v2424_v13  ;;  %v2068_v24 = vmul.f32 -1.442695, %v3106_v33  ;;  %v3117_v26 = vadd.f32 %v2932_v9, %v1284_v10  ;;  %v2204_v28 = vpop.f32.mrf.mxu0 }
 0x103   :  { %v2428_v29 = vpop.eup %2427  ;;  %1851 = vst.msk [vmem:[%s3590_s6 + $0x40] sm:$0xff] %vm1842_vm2, %v1786_v63  ;;  %v1789_v12 = vmul.f32 %v2426_v22, %v2985_v17  ;;  %2453 = vpow2.f32 %v2065_v14  ;;  %v1289_v42 = vmul.f32 %v2927_v6, %v1118_v16  ;;  %v1110_v30 = vadd.f32 %v1109_v19, %v561_v11  ;;  %v2270_v34 = vpop.f32.mrf.mxu1 }
 0x104   :  { %v2430_v35 = vpop.eup %2429  ;;  %2455 = vrcp.f32 %v1602_v23  ;;  %v1605_v44 = vadd.f32 1.0, %v2428_v29  ;;  %v2066_v15 = vmul.f32 -1.442695, %v3117_v26  ;;  %v1121_v38 = vadd.f32 %v2270_v34, %v2204_v28  ;;  %v564_v40 = vpop.f32.mrf.mxu0 }
 0x105   :  { %v2432_v41 = vpop.eup %2431  ;;  %1854 = vst.msk [vmem:[%s3590_s6 + $0x58] sm:$0xff] %vm1842_vm2, %v1789_v12  ;;  %v1787_v17 = vmul.f32 %v2430_v35, %v2992_v31  ;;  %2457 = vpow2.f32 %v2068_v24  ;;  %v3132_v43 = vadd.f32 %v2932_v9, %v1289_v42  ;;  %v1287_v45 = vmul.f32 %v2927_v6, %v1110_v30  ;;  %v1112_v46 = vpop.f32.mrf.mxu1 }
 0x106   :  { %v2434_v47 = vpop.eup %2433  ;;  %v1792_v21 = vmul.f32 %v2432_v41, %v2995_v36  ;;  %2459 = vrcp.f32 %v1605_v44  ;;  %v1290_v51 = vmul.f32 %v2927_v6, %v1121_v38  ;;  %v1113_v48 = vadd.f32 %v1112_v46, %v564_v40  ;;  %v2207_v50 = vpop.f32.mrf.mxu0 }
 0x107   :  { %v2436_v53 = vpop.eup %2435  ;;  %1852 = vst.msk [vmem:[%s3590_s6 + $0x48] sm:$0xff] %vm1842_vm2, %v1787_v17  ;;  %v1603_v31 = vadd.f32 1.0, %v2434_v47  ;;  %2461 = vpow2.f32 %v2066_v15  ;;  %v2071_v54 = vmul.f32 -1.442695, %v3132_v43  ;;  %v3143_v58 = vadd.f32 %v2932_v9, %v1287_v45  ;;  %v2273_v59 = vpop.f32.mrf.mxu1 }
 0x108   :  { %v2438_v36 = vpop.eup %2437  ;;  %1857 = vst.msk [vmem:[%s3590_s6 + $0x70] sm:$0xff] %vm1842_vm2, %v1792_v21  ;;  %v1608_v60 = vadd.f32 1.0, %v2436_v53  ;;  %v3150_v57 = vadd.f32 %v2932_v9, %v1290_v51  ;;  %v1288_v27 = vmul.f32 %v2927_v6, %v1113_v48  ;;  %v1134_v61 = vadd.f32 %v2273_v59, %v2207_v50  ;;  %v577_v62 = vpop.f32.mrf.mxu0 }
 0x109   :  { %v2440_v0 = vpop.eup %2439  ;;  %v1790_v1 = vmul.f32 %v2438_v36, %v3002_v52  ;;  %2463 = vrcp.f32 %v1603_v31  ;;  %v2069_v5 = vmul.f32 -1.442695, %v3143_v58  ;;  %v1125_v7 = vpop.f32.mrf.mxu1 }
 0x10a   :  { %v2442_v8 = vpop.eup %2441  ;;  %2465 = vrcp.f32 %v1608_v60  ;;  %v1606_v10 = vadd.f32 1.0, %v2440_v0  ;;  %v2072_v11 = vmul.f32 -1.442695, %v3150_v57  ;;  %v3157_v13 = vadd.f32 %v2932_v9, %v1288_v27  ;;  %v2208_v63 = vpop.f32.mrf.mxu0 }
 0x10b   :  { %v2444_v14 = vpop.eup %2443  ;;  %1855 = vst.msk [vmem:[%s3590_s6 + $0x60] sm:$0xff] %vm1842_vm2, %v1790_v1  ;;  %v1793_v52 = vmul.f32 %v2442_v8, %v3005_v55  ;;  %2467 = vpow2.f32 %v2071_v54  ;;  %v1293_v16 = vmul.f32 %v2927_v6, %v1134_v61  ;;  %v1126_v19 = vadd.f32 %v1125_v7, %v577_v62  ;;  %v2274_v22 = vpop.f32.mrf.mxu1 }
 0x10c   :  { %v2446_v23 = vpop.eup %2445  ;;  %2469 = vrcp.f32 %v1606_v10  ;;  %v1609_v24 = vadd.f32 1.0, %v2444_v14  ;;  %v2070_v28 = vmul.f32 -1.442695, %v3157_v13  ;;  %v1137_v29 = vadd.f32 %v2274_v22, %v2208_v63  ;;  %v580_v12 = vpop.f32.mrf.mxu0 }
 0x10d   :  { %v2448_v42 = vpop.eup %2447  ;;  %1858 = vst.msk [vmem:[%s3590_s6 + $0x78] sm:$0xff] %vm1842_vm2, %v1793_v52  ;;  %v1791_v55 = vmul.f32 %v2446_v23, %v3011_v2  ;;  %2471 = vpow2.f32 %v2069_v5  ;;  %v3172_v30 = vadd.f32 %v2932_v9, %v1293_v16  ;;  %v1291_v34 = vmul.f32 %v2927_v6, %v1126_v19  ;;  %v1128_v35 = vpop.f32.mrf.mxu1 }
 0x10e   :  { %v2450_v44 = vpop.eup %2449  ;;  %2473 = vrcp.f32 %v1609_v24  ;;  %v1607_v15 = vadd.f32 1.0, %v2448_v42  ;;  %v1294_v38 = vmul.f32 %v2927_v6, %v1137_v29  ;;  %v1129_v40 = vadd.f32 %v1128_v35, %v580_v12  ;;  %v2211_v41 = vpop.f32.mrf.mxu0 }
 0x10f   :  { %v2452_v17 = vpop.eup %2451  ;;  %1856 = vst.msk [vmem:[%s3590_s6 + $0x68] sm:$0xff] %vm1842_vm2, %v1791_v55  ;;  %v1612_v2 = vadd.f32 1.0, %v2450_v44  ;;  %2475 = vpow2.f32 %v2072_v11  ;;  %v2075_v45 = vmul.f32 -1.442695, %v3172_v30  ;;  %v3182_v46 = vadd.f32 %v2932_v9, %v1291_v34  ;;  %v2277_v47 = vpop.f32.mrf.mxu1 }
 0x110   :  { %v2454_v21 = vpop.eup %2453  ;;  %v1796_v51 = vmul.f32 %v2452_v17, %v3016_v18  ;;  %2477 = vrcp.f32 %v1607_v15  ;;  %v3186_v48 = vadd.f32 %v2932_v9, %v1294_v38  ;;  %v1292_v50 = vmul.f32 %v2927_v6, %v1129_v40  ;;  %v593_v53 = vpop.f32.mrf.mxu0 }
 0x111   :  { %v2456_v31 = vpop.eup %2455  ;;  %2479 = vrcp.f32 %v1612_v2  ;;  %v1610_v54 = vadd.f32 1.0, %v2454_v21  ;;  %v2073_v59 = vmul.f32 -1.442695, %v3182_v46  ;;  %v1150_v36 = vadd.f32 %v2277_v47, %v2211_v41  ;;  %v1141_v60 = vpop.f32.mrf.mxu1 }
 0x112   :  { %v2458_v27 = vpop.eup %2457  ;;  %1861 = vst.msk [vmem:[%s3590_s6 + $0x90] sm:$0xff] %vm1842_vm2, %v1796_v51  ;;  %v1794_v18 = vmul.f32 %v2456_v31, %v3023_v32  ;;  %2481 = vpow2.f32 %v2070_v28  ;;  %v2076_v61 = vmul.f32 -1.442695, %v3186_v48  ;;  %v3197_v62 = vadd.f32 %v2932_v9, %v1292_v50  ;;  %v2212_v0 = vpop.f32.mrf.mxu0 }
 0x113   :  { %v2460_v1 = vpop.eup %2459  ;;  %2483 = vrcp.f32 %v1610_v54  ;;  %v1613_v5 = vadd.f32 1.0, %v2458_v27  ;;  %v1297_v7 = vmul.f32 %v2927_v6, %v1150_v36  ;;  %v1142_v8 = vadd.f32 %v1141_v60, %v593_v53  ;;  %v2278_v10 = vpop.f32.mrf.mxu1 }
 0x114   :  { %v2462_v11 = vpop.eup %2461  ;;  %1859 = vst.msk [vmem:[%s3590_s6 + $0x80] sm:$0xff] %vm1842_vm2, %v1794_v18  ;;  %v1797_v32 = vmul.f32 %v2460_v1, %v3031_v37  ;;  %2485 = vpow2.f32 %v2075_v45  ;;  %v2074_v63 = vmul.f32 -1.442695, %v3197_v62  ;;  %v1153_v14 = vadd.f32 %v2278_v10, %v2212_v0  ;;  %v596_v52 = vpop.f32.mrf.mxu0 }
 0x115   :  { %2487 = vrcp.f32 %v1613_v5  ;;  %v1611_v16 = vadd.f32 1.0, %v2462_v11  ;;  %v3207_v19 = vadd.f32 %v2932_v9, %v1297_v7  ;;  %v1295_v22 = vmul.f32 %v2927_v6, %v1142_v8  ;;  %v1144_v23 = vpop.f32.mrf.mxu1 }
 0x116   :  { %v2464_v24 = vpop.eup %2463  ;;  %1862 = vst.msk [vmem:[%s3590_s6 + $0x98] sm:$0xff] %vm1842_vm2, %v1797_v32  ;;  %2489 = vpow2.f32 %v2073_v59  ;;  %v1298_v37 = vmul.f32 %v2927_v6, %v1153_v14  ;;  %v1145_v28 = vadd.f32 %v1144_v23, %v596_v52  ;;  %v2215_v29 = vpop.f32.mrf.mxu0 }
 0x117   :  { %v2466_v12 = vpop.eup %2465  ;;  %v1795_v42 = vmul.f32 %v2464_v24, %v3042_v49  ;;  %2491 = vrcp.f32 %v1611_v16  ;;  %v2079_v55 = vmul.f32 -1.442695, %v3207_v19  ;;  %v3218_v34 = vadd.f32 %v2932_v9, %v1295_v22  ;;  %v2281_v35 = vpop.f32.mrf.mxu1 }
 0x118   :  { %v2468_v44 = vpop.eup %2467  ;;  %v1800_v15 = vmul.f32 %v2466_v12, %v3052_v4  ;;  %2493 = vpow2.f32 %v2076_v61  ;;  %v3222_v38 = vadd.f32 %v2932_v9, %v1298_v37  ;;  %v1296_v40 = vmul.f32 %v2927_v6, %v1145_v28  ;;  %v609_v41 = vpop.f32.mrf.mxu0 }
 0x119   :  { %v2470_v17 = vpop.eup %2469  ;;  %1860 = vst.msk [vmem:[%s3590_s6 + $0x88] sm:$0xff] %vm1842_vm2, %v1795_v42  ;;  %v1616_v49 = vadd.f32 1.0, %v2468_v44  ;;  %2495 = vpow2.f32 %v2074_v63  ;;  %v2077_v2 = vmul.f32 -1.442695, %v3218_v34  ;;  %v1166_v45 = vadd.f32 %v2281_v35, %v2215_v29  ;;  %v1157_v47 = vpop.f32.mrf.mxu1 }
 0x11a   :  { %v2472_v4 = vpop.eup %2471  ;;  %1865 = vst.msk [vmem:[%s3590_s6 + $0xb0] sm:$0xff] %vm1842_vm2, %v1800_v15  ;;  %v1798_v21 = vmul.f32 %v2470_v17, %v3063_v20  ;;  %2497 = vpow2.f32 %v2079_v55  ;;  %v2080_v51 = vmul.f32 -1.442695, %v3222_v38  ;;  %v3237_v50 = vadd.f32 %v2932_v9, %v1296_v40  ;;  %v2216_v53 = vpop.f32.mrf.mxu0 }
 0x11b   :  { %v2474_v31 = vpop.eup %2473  ;;  %2499 = vrcp.f32 %v1616_v49  ;;  %v1614_v54 = vadd.f32 1.0, %v2472_v4  ;;  %v1301_v59 = vmul.f32 %v2927_v6, %v1166_v45  ;;  %v1158_v36 = vadd.f32 %v1157_v47, %v609_v41  ;;  %v2282_v60 = vpop.f32.mrf.mxu1 }
 0x11c   :  { %v2476_v27 = vpop.eup %2475  ;;  %1863 = vst.msk [vmem:[%s3590_s6 + $0xa0] sm:$0xff] %vm1842_vm2, %v1798_v21  ;;  %v1801_v20 = vmul.f32 %v2474_v31, %v3067_v25  ;;  %2501 = vpow2.f32 %v2077_v2  ;;  %v2078_v18 = vmul.f32 -1.442695, %v3237_v50  ;;  %v1169_v61 = vadd.f32 %v2282_v60, %v2216_v53  ;;  %v612_v0 = vpop.f32.mrf.mxu0 }
 0x11d   :  { %v2478_v1 = vpop.eup %2477  ;;  %2503 = vrcp.f32 %v1614_v54  ;;  %v1617_v5 = vadd.f32 1.0, %v2476_v27  ;;  %v3247_v7 = vadd.f32 %v2932_v9, %v1301_v59  ;;  %v1299_v8 = vmul.f32 %v2927_v6, %v1158_v36  ;;  %v1160_v10 = vpop.f32.mrf.mxu1 }
 0x11e   :  { %v2480_v11 = vpop.eup %2479  ;;  %1866 = vst.msk [vmem:[%s3590_s6 + $0xb8] sm:$0xff] %vm1842_vm2, %v1801_v20  ;;  %v1799_v25 = vmul.f32 %v2478_v1, %v3082_v39  ;;  %2505 = vpow2.f32 %v2080_v51  ;;  %v1302_v32 = vmul.f32 %v2927_v6, %v1169_v61  ;;  %v1161_v63 = vadd.f32 %v1160_v10, %v612_v0  ;;  %v2219_v14 = vpop.f32.mrf.mxu0 }
 0x11f   :  { %v2482_v52 = vpop.eup %2481  ;;  %v1804_v16 = vmul.f32 %v2480_v11, %v3092_v56  ;;  %2507 = vrcp.f32 %v1617_v5  ;;  %v2083_v22 = vmul.f32 -1.442695, %v3247_v7  ;;  %v3259_v23 = vadd.f32 %v2932_v9, %v1299_v8  ;;  %v2285_v24 = vpop.f32.mrf.mxu1  ;;  %v3304_v8 = vld [vmem:[%s3589_s5] ss:$0 sm:$0xff] }
 0x120   :  { %v2484_v37 = vpop.eup %2483  ;;  %1864 = vst.msk [vmem:[%s3590_s6 + $0xa8] sm:$0xff] %vm1842_vm2, %v1799_v25  ;;  %v1615_v39 = vadd.f32 1.0, %v2482_v52  ;;  %2509 = vpow2.f32 %v2078_v18  ;;  %v3266_v28 = vadd.f32 %v2932_v9, %v1302_v32  ;;  %v1300_v56 = vmul.f32 %v2927_v6, %v1161_v63  ;;  %v625_v29 = vpop.f32.mrf.mxu0  ;;  %v3315_v63 = vld [vmem:[%s3588_s4] ss:$0 sm:$0xff] }
 0x121   :  { %v2486_v12 = vpop.eup %2485  ;;  %1869 = vst.msk [vmem:[%s3590_s6 + $0xd0] sm:$0xff] %vm1842_vm2, %v1804_v16  ;;  %v1802_v42 = vmul.f32 %v2484_v37, %v3103_v3  ;;  %2511 = vpow2.f32 %v2083_v22  ;;  %v2081_v55 = vmul.f32 -1.442695, %v3259_v23  ;;  %v1182_v35 = vadd.f32 %v2285_v24, %v2219_v14  ;;  %v1173_v44 = vpop.f32.mrf.mxu1 }
 0x122   :  { %v2488_v15 = vpop.eup %2487  ;;  %2513 = vrcp.f32 %v1615_v39  ;;  %v1620_v40 = vadd.f32 1.0, %v2486_v12  ;;  %v2084_v41 = vmul.f32 -1.442695, %v3266_v28  ;;  %v3277_v17 = vadd.f32 %v2932_v9, %v1300_v56  ;;  %v2220_v49 = vpop.f32.mrf.mxu0 }
 0x123   :  { %v2490_v2 = vpop.eup %2489  ;;  %1867 = vst.msk [vmem:[%s3590_s6 + $0xc0] sm:$0xff] %vm1842_vm2, %v1802_v42  ;;  %v1805_v3 = vmul.f32 %v2488_v15, %v3106_v33  ;;  %2515 = vpow2.f32 %v2081_v55  ;;  %v1305_v45 = vmul.f32 %v2927_v6, %v1182_v35  ;;  %v1174_v47 = vadd.f32 %v1173_v44, %v625_v29  ;;  %v2286_v4 = vpop.f32.mrf.mxu1 }
 0x124   :  { %v2492_v21 = vpop.eup %2491  ;;  %2517 = vrcp.f32 %v1620_v40  ;;  %v1618_v51 = vadd.f32 1.0, %v2490_v2  ;;  %v2082_v53 = vmul.f32 -1.442695, %v3277_v17  ;;  %v1185_v31 = vadd.f32 %v2286_v4, %v2220_v49  ;;  %v628_v54 = vpop.f32.mrf.mxu0 }
 0x125   :  { %v2494_v59 = vpop.eup %2493  ;;  %1870 = vst.msk [vmem:[%s3590_s6 + $0xd8] sm:$0xff] %vm1842_vm2, %v1805_v3  ;;  %v1803_v33 = vmul.f32 %v2492_v21, %v3117_v26  ;;  %2519 = vpow2.f32 %v2084_v41  ;;  %v3292_v36 = vadd.f32 %v2932_v9, %v1305_v45  ;;  %v1303_v60 = vmul.f32 %v2927_v6, %v1174_v47  ;;  %v1176_v27 = vpop.f32.mrf.mxu1 }
 0x126   :  { %v2496_v20 = vpop.eup %2495  ;;  %2521 = vrcp.f32 %v1618_v51  ;;  %v1621_v18 = vadd.f32 1.0, %v2494_v59  ;;  %v1306_v61 = vmul.f32 %v2927_v6, %v1185_v31  ;;  %v1177_v0 = vadd.f32 %v1176_v27, %v628_v54  ;;  %v2223_v1 = vpop.f32.mrf.mxu0 }
 0x127   :  { %v2498_v5 = vpop.eup %2497  ;;  %1868 = vst.msk [vmem:[%s3590_s6 + $0xc8] sm:$0xff] %vm1842_vm2, %v1803_v33  ;;  %v1619_v26 = vadd.f32 1.0, %v2496_v20  ;;  %2523 = vpow2.f32 %v2082_v53  ;;  %v2087_v9 = vmul.f32 -1.442695, %v3292_v36  ;;  %v3307_v10 = vadd.f32 %v3304_v8, %v1303_v60  ;;  %v2289_v6 = vpop.f32.mrf.mxu1 }
 0x128   :  { %v2500_v11 = vpop.eup %2499  ;;  %2525 = vrcp.f32 %v1621_v18  ;;  %v1624_v25 = vadd.f32 1.0, %v2498_v5  ;;  %v3310_v32 = vadd.f32 %v3304_v8, %v1306_v61  ;;  %v1304_v14 = vmul.f32 %v3315_v63, %v1177_v0  ;;  %v641_v52 = vpop.f32.mrf.mxu0 }
 0x129   :  { %v2502_v16 = vpop.eup %2501  ;;  %v1808_v22 = vmul.f32 %v2500_v11, %v3132_v43  ;;  %2527 = vrcp.f32 %v1619_v26  ;;  %v2085_v24 = vmul.f32 -1.442695, %v3307_v10  ;;  %v1198_v37 = vadd.f32 %v2289_v6, %v2223_v1  ;;  %v1189_v39 = vpop.f32.mrf.mxu1 }
 0x12a   :  { %v2504_v56 = vpop.eup %2503  ;;  %2529 = vrcp.f32 %v1624_v25  ;;  %v1622_v29 = vadd.f32 1.0, %v2502_v16  ;;  %v2088_v12 = vmul.f32 -1.442695, %v3310_v32  ;;  %v3322_v42 = vadd.f32 %v3304_v8, %v1304_v14  ;;  %v2224_v55 = vpop.f32.mrf.mxu0 }
 0x12b   :  { %v2506_v35 = vpop.eup %2505  ;;  %1873 = vst.msk [vmem:[%s3590_s6 + $0xf0] sm:$0xff] %vm1842_vm2, %v1808_v22  ;;  %v1806_v43 = vmul.f32 %v2504_v56, %v3143_v58  ;;  %2531 = vpow2.f32 %v2087_v9  ;;  %v1309_v44 = vmul.f32 %v3315_v63, %v1198_v37  ;;  %v1190_v15 = vadd.f32 %v1189_v39, %v641_v52  ;;  %v2290_v40 = vpop.f32.mrf.mxu1 }
 0x12c   :  { %v2508_v41 = vpop.eup %2507  ;;  %2533 = vrcp.f32 %v1622_v29  ;;  %v1625_v49 = vadd.f32 1.0, %v2506_v35  ;;  %v2086_v2 = vmul.f32 -1.442695, %v3322_v42  ;;  %v1201_v3 = vadd.f32 %v2290_v40, %v2224_v55  ;;  %v644_v45 = vpop.f32.mrf.mxu0 }
 0x12d   :  { %v2510_v47 = vpop.eup %2509  ;;  %1871 = vst.msk [vmem:[%s3590_s6 + $0xe0] sm:$0xff] %vm1842_vm2, %v1806_v43  ;;  %v1809_v58 = vmul.f32 %v2508_v41, %v3150_v57  ;;  %2535 = vpow2.f32 %v2085_v24  ;;  %v3337_v4 = vadd.f32 %v3304_v8, %v1309_v44  ;;  %v1307_v21 = vmul.f32 %v3315_v63, %v1190_v15  ;;  %v1192_v51 = vpop.f32.mrf.mxu1 }
 0x12e   :  { %v2512_v53 = vpop.eup %2511  ;;  %2537 = vrcp.f32 %v1625_v49  ;;  %v1623_v31 = vadd.f32 1.0, %v2510_v47  ;;  %v1310_v54 = vmul.f32 %v3315_v63, %v1201_v3  ;;  %v1193_v59 = vadd.f32 %v1192_v51, %v644_v45  ;;  %v2227_v33 = vpop.f32.mrf.mxu0 }
 0x12f   :  { %v2514_v60 = vpop.eup %2513  ;;  %1874 = vst.msk [vmem:[%s3590_s6 + $0xf8] sm:$0xff] %vm1842_vm2, %v1809_v58  ;;  %v1628_v57 = vadd.f32 1.0, %v2512_v53  ;;  %2539 = vpow2.f32 %v2088_v12  ;;  %v2091_v27 = vmul.f32 -1.442695, %v3337_v4  ;;  %v3347_v20 = vadd.f32 %v3304_v8, %v1307_v21  ;;  %v2293_v18 = vpop.f32.mrf.mxu1 }
 0x130   :  { %v2516_v61 = vpop.eup %2515  ;;  %v1807_v0 = vmul.f32 %v2514_v60, %v3157_v13  ;;  %2541 = vrcp.f32 %v1623_v31  ;;  %v3351_v1 = vadd.f32 %v3304_v8, %v1310_v54  ;;  %v1308_v5 = vmul.f32 %v3315_v63, %v1193_v59  ;;  %v657_v26 = vpop.f32.mrf.mxu0 }
 0x131   :  { %v2518_v9 = vpop.eup %2517  ;;  %2543 = vrcp.f32 %v1628_v57  ;;  %v1626_v6 = vadd.f32 1.0, %v2516_v61  ;;  %v2089_v11 = vmul.f32 -1.442695, %v3347_v20  ;;  %v1214_v25 = vadd.f32 %v2293_v18, %v2227_v33  ;;  %v1205_v14 = vpop.f32.mrf.mxu1 }
 0x132   :  { %v2520_v52 = vpop.eup %2519  ;;  %1872 = vst.msk [vmem:[%s3590_s6 + $0xe8] sm:$0xff] %vm1842_vm2, %v1807_v0  ;;  %v1812_v13 = vmul.f32 %v2518_v9, %v3172_v30  ;;  %2545 = vpow2.f32 %v2086_v2  ;;  %v2092_v16 = vmul.f32 -1.442695, %v3351_v1  ;;  %v3362_v22 = vadd.f32 %v3304_v8, %v1308_v5  ;;  %v2228_v24 = vpop.f32.mrf.mxu0 }
 0x133   :  { %v2522_v37 = vpop.eup %2521  ;;  %2547 = vrcp.f32 %v1626_v6  ;;  %v1629_v39 = vadd.f32 1.0, %v2520_v52  ;;  %v1313_v56 = vmul.f32 %v3315_v63, %v1214_v25  ;;  %v1206_v29 = vadd.f32 %v1205_v14, %v657_v26  ;;  %v2294_v12 = vpop.f32.mrf.mxu1 }
 0x134   :  { %v2524_v55 = vpop.eup %2523  ;;  %1877 = vst.msk [vmem:[%s3590_s6 + $0x110] sm:$0xff] %vm1842_vm2, %v1812_v13  ;;  %v1810_v30 = vmul.f32 %v2522_v37, %v3182_v46  ;;  %2549 = vpow2.f32 %v2091_v27  ;;  %v2090_v35 = vmul.f32 -1.442695, %v3362_v22  ;;  %v1217_v43 = vadd.f32 %v2294_v12, %v2228_v24  ;;  %v660_v44 = vpop.f32.mrf.mxu0 }
 0x135   :  { %v2526_v15 = vpop.eup %2525  ;;  %2551 = vrcp.f32 %v1629_v39  ;;  %v1627_v40 = vadd.f32 1.0, %v2524_v55  ;;  %v3372_v41 = vadd.f32 %v3304_v8, %v1313_v56  ;;  %v1311_v49 = vmul.f32 %v3315_v63, %v1206_v29  ;;  %v1208_v2 = vpop.f32.mrf.mxu1 }
 0x136   :  { %v2528_v3 = vpop.eup %2527  ;;  %1875 = vst.msk [vmem:[%s3590_s6 + $0x100] sm:$0xff] %vm1842_vm2, %v1810_v30  ;;  %v1813_v46 = vmul.f32 %v2526_v15, %v3186_v48  ;;  %2553 = vpow2.f32 %v2089_v11  ;;  %v1314_v45 = vmul.f32 %v3315_v63, %v1217_v43  ;;  %v1209_v47 = vadd.f32 %v1208_v2, %v660_v44  ;;  %v2231_v58 = vpop.f32.mrf.mxu0 }
 0x137   :  { %v2530_v21 = vpop.eup %2529  ;;  %v1811_v51 = vmul.f32 %v2528_v3, %v3197_v62  ;;  %2555 = vrcp.f32 %v1627_v40  ;;  %v2095_v53 = vmul.f32 -1.442695, %v3372_v41  ;;  %v3384_v31 = vadd.f32 %v3304_v8, %v1311_v49  ;;  %v2297_v54 = vpop.f32.mrf.mxu1 }
 0x138   :  { %v2532_v59 = vpop.eup %2531  ;;  %1878 = vst.msk [vmem:[%s3590_s6 + $0x118] sm:$0xff] %vm1842_vm2, %v1813_v46  ;;  %v1816_v48 = vmul.f32 %v2530_v21, %v3207_v19  ;;  %2557 = vpow2.f32 %v2092_v16  ;;  %v3392_v33 = vadd.f32 %v3304_v8, %v1314_v45  ;;  %v1312_v62 = vmul.f32 %v3315_v63, %v1209_v47  ;;  %v673_v60 = vpop.f32.mrf.mxu0 }
 0x139   :  { %v2534_v57 = vpop.eup %2533  ;;  %1876 = vst.msk [vmem:[%s3590_s6 + $0x108] sm:$0xff] %vm1842_vm2, %v1811_v51  ;;  %v1632_v27 = vadd.f32 1.0, %v2532_v59  ;;  %2559 = vpow2.f32 %v2090_v35  ;;  %v2093_v18 = vmul.f32 -1.442695, %v3384_v31  ;;  %v1230_v61 = vadd.f32 %v2297_v54, %v2231_v58  ;;  %v1221_v0 = vpop.f32.mrf.mxu1 }
 0x13a   :  { %v2536_v19 = vpop.eup %2535  ;;  %1881 = vst.msk [vmem:[%s3590_s6 + $0x130] sm:$0xff] %vm1842_vm2, %v1816_v48  ;;  %v1814_v5 = vmul.f32 %v2534_v57, %v3218_v34  ;;  %2561 = vpow2.f32 %v2095_v53  ;;  %v2096_v26 = vmul.f32 -1.442695, %v3392_v33  ;;  %v3407_v9 = vadd.f32 %v3304_v8, %v1312_v62  ;;  %v2232_v6 = vpop.f32.mrf.mxu0 }
 0x13b   :  { %v2538_v11 = vpop.eup %2537  ;;  %2563 = vrcp.f32 %v1632_v27  ;;  %v1630_v25 = vadd.f32 1.0, %v2536_v19  ;;  %v1317_v14 = vmul.f32 %v3315_v63, %v1230_v61  ;;  %v1222_v52 = vadd.f32 %v1221_v0, %v673_v60  ;;  %v2298_v13 = vpop.f32.mrf.mxu1 }
 0x13c   :  { %v2540_v16 = vpop.eup %2539  ;;  %1879 = vst.msk [vmem:[%s3590_s6 + $0x120] sm:$0xff] %vm1842_vm2, %v1814_v5  ;;  %v1817_v34 = vmul.f32 %v2538_v11, %v3222_v38  ;;  %2565 = vpow2.f32 %v2093_v18  ;;  %v2094_v24 = vmul.f32 -1.442695, %v3407_v9  ;;  %v1233_v37 = vadd.f32 %v2298_v13, %v2232_v6  ;;  %v676_v39 = vpop.f32.mrf.mxu0 }
 0x13d   :  { %v2542_v56 = vpop.eup %2541  ;;  %2567 = vrcp.f32 %v1630_v25  ;;  %v1633_v29 = vadd.f32 1.0, %v2540_v16  ;;  %v3417_v12 = vadd.f32 %v3304_v8, %v1317_v14  ;;  %v1315_v55 = vmul.f32 %v3315_v63, %v1222_v52  ;;  %v1224_v30 = vpop.f32.mrf.mxu1 }
 0x13e   :  { %v2544_v35 = vpop.eup %2543  ;;  %1882 = vst.msk [vmem:[%s3590_s6 + $0x138] sm:$0xff] %vm1842_vm2, %v1817_v34  ;;  %v1815_v38 = vmul.f32 %v2542_v56, %v3237_v50  ;;  %2569 = vpow2.f32 %v2096_v26  ;;  %v1318_v43 = vmul.f32 %v3315_v63, %v1233_v37  ;;  %v1225_v44 = vadd.f32 %v1224_v30, %v676_v39  ;;  %v2235_v15 = vpop.f32.mrf.mxu0 }
 0x13f   :  { %v2546_v40 = vpop.eup %2545  ;;  %v1820_v49 = vmul.f32 %v2544_v35, %v3247_v7  ;;  %2571 = vrcp.f32 %v1633_v29  ;;  %v2099_v2 = vmul.f32 -1.442695, %v3417_v12  ;;  %v3429_v3 = vadd.f32 %v3304_v8, %v1315_v55  ;;  %v2301_v46 = vpop.f32.mrf.mxu1 }
 0x140   :  { %v2548_v45 = vpop.eup %2547  ;;  %1880 = vst.msk [vmem:[%s3590_s6 + $0x128] sm:$0xff] %vm1842_vm2, %v1815_v38  ;;  %v1631_v50 = vadd.f32 1.0, %v2546_v40  ;;  %2573 = vpow2.f32 %v2094_v24  ;;  %v3436_v47 = vadd.f32 %v3304_v8, %v1318_v43  ;;  %v1316_v7 = vmul.f32 %v3315_v63, %v1225_v44  ;;  %v689_v58 = vpop.f32.mrf.mxu0 }
 0x141   :  { %v2550_v21 = vpop.eup %2549  ;;  %1885 = vst.msk [vmem:[%s3590_s6 + $0x150] sm:$0xff] %vm1842_vm2, %v1820_v49  ;;  %v1818_v51 = vmul.f32 %v2548_v45, %v3259_v23  ;;  %2575 = vpow2.f32 %v2099_v2  ;;  %v2097_v53 = vmul.f32 -1.442695, %v3429_v3  ;;  %v1246_v54 = vadd.f32 %v2301_v46, %v2235_v15  ;;  %v1237_v59 = vpop.f32.mrf.mxu1 }
 0x142   :  { %v2552_v48 = vpop.eup %2551  ;;  %2577 = vrcp.f32 %v1631_v50  ;;  %v1636_v62 = vadd.f32 1.0, %v2550_v21  ;;  %v2100_v60 = vmul.f32 -1.442695, %v3436_v47  ;;  %v3447_v57 = vadd.f32 %v3304_v8, %v1316_v7  ;;  %v2236_v27 = vpop.f32.mrf.mxu0 }
 0x143   :  { %v2554_v18 = vpop.eup %2553  ;;  %1883 = vst.msk [vmem:[%s3590_s6 + $0x140] sm:$0xff] %vm1842_vm2, %v1818_v51  ;;  %v1821_v23 = vmul.f32 %v2552_v48, %v3266_v28  ;;  %2579 = vpow2.f32 %v2097_v53  ;;  %v1321_v61 = vmul.f32 %v3315_v63, %v1246_v54  ;;  %v1238_v0 = vadd.f32 %v1237_v59, %v689_v58  ;;  %v2302_v19 = vpop.f32.mrf.mxu1 }
 0x144   :  { %v2556_v5 = vpop.eup %2555  ;;  %2581 = vrcp.f32 %v1636_v62  ;;  %v1634_v26 = vadd.f32 1.0, %v2554_v18  ;;  %v2098_v6 = vmul.f32 -1.442695, %v3447_v57  ;;  %v1249_v11 = vadd.f32 %v2302_v19, %v2236_v27  ;;  %v692_v25 = vpop.f32.mrf.mxu0 }
 0x145   :  { %v2558_v14 = vpop.eup %2557  ;;  %1886 = vst.msk [vmem:[%s3590_s6 + $0x158] sm:$0xff] %vm1842_vm2, %v1821_v23  ;;  %v1819_v28 = vmul.f32 %v2556_v5, %v3277_v17  ;;  %2583 = vpow2.f32 %v2100_v60  ;;  %v3462_v52 = vadd.f32 %v3304_v8, %v1321_v61  ;;  %v1319_v13 = vmul.f32 %v3315_v63, %v1238_v0  ;;  %v1240_v16 = vpop.f32.mrf.mxu1 }
 0x146   :  { %v2560_v34 = vpop.eup %2559  ;;  %2585 = vrcp.f32 %v1634_v26  ;;  %v1637_v24 = vadd.f32 1.0, %v2558_v14  ;;  %v1322_v37 = vmul.f32 %v3315_v63, %v1249_v11  ;;  %v1241_v39 = vadd.f32 %v1240_v16, %v692_v25 }
 0x147   :  { %v2562_v56 = vpop.eup %2561  ;;  %1884 = vst.msk [vmem:[%s3590_s6 + $0x148] sm:$0xff] %vm1842_vm2, %v1819_v28  ;;  %v1635_v17 = vadd.f32 1.0, %v2560_v34  ;;  %2587 = vpow2.f32 %v2098_v6  ;;  %v2103_v29 = vmul.f32 -1.442695, %v3462_v52  ;;  %v3472_v55 = vadd.f32 %v3304_v8, %v1319_v13 }
 0x148   :  { %v2564_v30 = vpop.eup %2563  ;;  %2589 = vrcp.f32 %v1637_v24  ;;  %v1640_v35 = vadd.f32 1.0, %v2562_v56  ;;  %v3475_v38 = vadd.f32 %v3304_v8, %v1322_v37  ;;  %v1320_v43 = vmul.f32 %v3315_v63, %v1241_v39 }
 0x149   :  { %v2566_v44 = vpop.eup %2565  ;;  %v1824_v15 = vmul.f32 %v2564_v30, %v3292_v36  ;;  %2591 = vrcp.f32 %v1635_v17  ;;  %v2101_v40 = vmul.f32 -1.442695, %v3472_v55 }
 0x14a   :  { %v2568_v49 = vpop.eup %2567  ;;  %2593 = vrcp.f32 %v1640_v35  ;;  %v1638_v2 = vadd.f32 1.0, %v2566_v44  ;;  %v3481_v46 = vadd.f32 %v3304_v8, %v1320_v43  ;;  %v2104_v36 = vmul.f32 -1.442695, %v3475_v38 }
 0x14b   :  { %v2570_v45 = vpop.eup %2569  ;;  %1889 = vst.msk [vmem:[%s3590_s6 + $0x170] sm:$0xff] %vm1842_vm2, %v1824_v15  ;;  %v1822_v63 = vmul.f32 %v2568_v49, %v3307_v10  ;;  %2595 = vpow2.f32 %v2103_v29 }
 0x14c   :  { %v2572_v50 = vpop.eup %2571  ;;  %2597 = vrcp.f32 %v1638_v2  ;;  %v1641_v7 = vadd.f32 1.0, %v2570_v45  ;;  %v2102_v10 = vmul.f32 -1.442695, %v3481_v46 }
 0x14d   :  { %v2574_v58 = vpop.eup %2573  ;;  %1887 = vst.msk [vmem:[%s3590_s6 + $0x160] sm:$0xff] %vm1842_vm2, %v1822_v63  ;;  %v1825_v8 = vmul.f32 %v2572_v50, %v3310_v32  ;;  %2599 = vpow2.f32 %v2101_v40 }
 0x14e   :  { %v2576_v21 = vpop.eup %2575  ;;  %2601 = vrcp.f32 %v1641_v7  ;;  %v1639_v51 = vadd.f32 1.0, %v2574_v58 }
 0x14f   :  { %v2578_v53 = vpop.eup %2577  ;;  %1890 = vst.msk [vmem:[%s3590_s6 + $0x178] sm:$0xff] %vm1842_vm2, %v1825_v8  ;;  %v1644_v54 = vadd.f32 1.0, %v2576_v21  ;;  %2603 = vpow2.f32 %v2104_v36 }
 0x150   :  { %v2580_v59 = vpop.eup %2579  ;;  %v1823_v48 = vmul.f32 %v2578_v53, %v3322_v42  ;;  %2605 = vrcp.f32 %v1639_v51 }
 0x151   :  { %v2582_v62 = vpop.eup %2581  ;;  %2607 = vrcp.f32 %v1644_v54  ;;  %v1642_v32 = vadd.f32 1.0, %v2580_v59 }
 0x152   :  { %v2584_v60 = vpop.eup %2583  ;;  %1888 = vst.msk [vmem:[%s3590_s6 + $0x168] sm:$0xff] %vm1842_vm2, %v1823_v48  ;;  %v1828_v27 = vmul.f32 %v2582_v62, %v3337_v4  ;;  %2609 = vpow2.f32 %v2102_v10 }
 0x153   :  { %v2586_v18 = vpop.eup %2585  ;;  %2611 = vrcp.f32 %v1642_v32  ;;  %v1645_v23 = vadd.f32 1.0, %v2584_v60 }
 0x154   :  { %v2588_v61 = vpop.eup %2587  ;;  %1893 = vst.msk [vmem:[%s3590_s6 + $0x190] sm:$0xff] %vm1842_vm2, %v1828_v27  ;;  %v1826_v42 = vmul.f32 %v2586_v18, %v3347_v20 }
 0x155   :  { %v2590_v0 = vpop.eup %2589  ;;  %2613 = vrcp.f32 %v1645_v23  ;;  %v1643_v19 = vadd.f32 1.0, %v2588_v61 }
 0x156   :  { %v2592_v5 = vpop.eup %2591  ;;  %1891 = vst.msk [vmem:[%s3590_s6 + $0x180] sm:$0xff] %vm1842_vm2, %v1826_v42  ;;  %v1829_v4 = vmul.f32 %v2590_v0, %v3351_v1 }
 0x157   :  { %v2594_v26 = vpop.eup %2593  ;;  %v1827_v6 = vmul.f32 %v2592_v5, %v3362_v22  ;;  %2615 = vrcp.f32 %v1643_v19 }
 0x158   :  { %v2596_v11 = vpop.eup %2595  ;;  %1894 = vst.msk [vmem:[%s3590_s6 + $0x198] sm:$0xff] %vm1842_vm2, %v1829_v4  ;;  %v1832_v20 = vmul.f32 %v2594_v26, %v3372_v41 }
 0x159   :  { %v2598_v25 = vpop.eup %2597  ;;  %1892 = vst.msk [vmem:[%s3590_s6 + $0x188] sm:$0xff] %vm1842_vm2, %v1827_v6  ;;  %v1648_v14 = vadd.f32 1.0, %v2596_v11 }
 0x15a   :  { %v2600_v1 = vpop.eup %2599  ;;  %1897 = vst.msk [vmem:[%s3590_s6 + $0x1b0] sm:$0xff] %vm1842_vm2, %v1832_v20  ;;  %v1830_v22 = vmul.f32 %v2598_v25, %v3384_v31 }
 0x15b   :  { %v2602_v28 = vpop.eup %2601  ;;  %2617 = vrcp.f32 %v1648_v14  ;;  %v1646_v13 = vadd.f32 1.0, %v2600_v1 }
 0x15c   :  { %v2604_v16 = vpop.eup %2603  ;;  %1895 = vst.msk [vmem:[%s3590_s6 + $0x1a0] sm:$0xff] %vm1842_vm2, %v1830_v22  ;;  %v1833_v41 = vmul.f32 %v2602_v28, %v3392_v33 }
 0x15d   :  { %v2606_v34 = vpop.eup %2605  ;;  %2619 = vrcp.f32 %v1646_v13  ;;  %v1649_v24 = vadd.f32 1.0, %v2604_v16 }
 0x15e   :  { %v2608_v37 = vpop.eup %2607  ;;  %1898 = vst.msk [vmem:[%s3590_s6 + $0x1b8] sm:$0xff] %vm1842_vm2, %v1833_v41  ;;  %v1831_v31 = vmul.f32 %v2606_v34, %v3407_v9 }
 0x15f   :  { %v2610_v39 = vpop.eup %2609  ;;  %v1836_v56 = vmul.f32 %v2608_v37, %v3417_v12  ;;  %2621 = vrcp.f32 %v1649_v24 }
 0x160   :  { %v2612_v17 = vpop.eup %2611  ;;  %1896 = vst.msk [vmem:[%s3590_s6 + $0x1a8] sm:$0xff] %vm1842_vm2, %v1831_v31  ;;  %v1647_v33 = vadd.f32 1.0, %v2610_v39 }
 0x161   :  { %1901 = vst.msk [vmem:[%s3590_s6 + $0x1d0] sm:$0xff] %vm1842_vm2, %v1836_v56  ;;  %v1834_v29 = vmul.f32 %v2612_v17, %v3429_v3 }
 0x162   :  { %v2614_v30 = vpop.eup %2613  ;;  %2623 = vrcp.f32 %v1647_v33 }
 0x163   :  { %1899 = vst.msk [vmem:[%s3590_s6 + $0x1c0] sm:$0xff] %vm1842_vm2, %v1834_v29  ;;  %v1837_v9 = vmul.f32 %v2614_v30, %v3436_v47 }
 0x164   :  { %v2616_v12 = vpop.eup %2615 }
 0x165   :  { %1902 = vst.msk [vmem:[%s3590_s6 + $0x1d8] sm:$0xff] %vm1842_vm2, %v1837_v9  ;;  %v1835_v35 = vmul.f32 %v2616_v12, %v3447_v57 }
 0x167   :  { %1900 = vst.msk [vmem:[%s3590_s6 + $0x1c8] sm:$0xff] %vm1842_vm2, %v1835_v35 }
 0x168   :  { %v2618_v3 = vpop.eup %2617 }
 0x169   :  { %v1840_v43 = vmul.f32 %v2618_v3, %v3462_v52 }
 0x16a   :  { %v2620_v44 = vpop.eup %2619 }
 0x16b   :  { %1905 = vst.msk [vmem:[%s3590_s6 + $0x1f0] sm:$0xff] %vm1842_vm2, %v1840_v43  ;;  %v1838_v47 = vmul.f32 %v2620_v44, %v3472_v55 }
 0x16c   :  { %v2622_v15 = vpop.eup %2621 }
 0x16d   :  { %1903 = vst.msk [vmem:[%s3590_s6 + $0x1e0] sm:$0xff] %vm1842_vm2, %v1838_v47  ;;  %v1841_v57 = vmul.f32 %v2622_v15, %v3475_v38 }
 0x16f   :  { %v2624_v40 = vpop.eup %2623  ;;  %1906 = vst.msk [vmem:[%s3590_s6 + $0x1f8] sm:$0xff] %vm1842_vm2, %v1841_v57 }
 0x170   :  { %v1839_v52 = vmul.f32 %v2624_v40, %v3481_v46 }
 0x172   :  { %1904 = vst.msk [vmem:[%s3590_s6 + $0x1e8] sm:$0xff] %vm1842_vm2, %v1839_v52 }

// kernel: _lambda_.3
= control target key start
LH: loop header
LB: loop body
LE: loop exit
PB: predicated region body
PF: predicated region fallthrough
CT: control target
= control target key end

     0   :  { %vm342_vm0 = vcmask 1041408   ;;  %vm245_vm1 = vcmask 31744   ;;  %vm1481_vm2 = vcmask 11264   ;;  %s3896_s1 = inlined_call_operand.vmem [shape: bf16[4,4], index: 1, kind: input, shape index: {}]   ;;  %s3897_s0 = inlined_call_operand.vmem [shape: bf16[512,4], index: 0, kind: input, shape index: {}]   ;;  %s3898_s2 = inlined_call_operand.vmem [shape: f32[1,4], index: 2, kind: input, shape index: {}]   ;;  %s3899_s3 = inlined_call_operand.vmem [shape: f32[1,4], index: 3, kind: input, shape index: {}]   ;;  %s3900_s4 = inlined_call_operand.vmem [shape: bf16[512,2], index: 4, kind: output, shape index: {0}]   ;;  %s3901_s5 = inlined_call_operand.vmem [shape: bf16[512,2], index: 5, kind: output, shape index: {1}]  }
   0x1   :  { %v84_v0 = vld [vmem:[%s3896_s1] sm:$0x3]  ;;  %v2174_v4 = vld [vmem:[%s3897_s0 + $0x8] sm:$0xff]   ;;  %v2176_v6 = vld [vmem:[%s3897_s0 + $0x10] sm:$0xff]  }
   0x2   :  { %2169 = vmatprep.subr.msk.bf16.mxu0 %vm342_vm0, %v84_v0  ;;  %2170 = vmatprep.subr.msk.bf16.mxu1 %vm342_vm0, %v84_v0  ;;  %v344_v1 = vsel %vm342_vm0, %v84_v0, 0  ;;  %v2172_v2 = vld [vmem:[%s3897_s0] sm:$0xff]   ;;  %v2175_v5 = vld [vmem:[%s3897_s0 + $0x88] sm:$0xff]   ;;  %v2177_v7 = vld [vmem:[%s3897_s0 + $0x90] sm:$0xff]  }
   0x3   :  { %2102 = vmatpush3.bf16.msra.mxu0 %v344_v1  ;;  %2168 = vmatpush3.bf16.msra.mxu1 %v344_v1  ;;  %v2173_v3 = vld [vmem:[%s3897_s0 + $0x80] sm:$0xff]   ;;  %v2178_v8 = vld [vmem:[%s3897_s0 + $0x18] sm:$0xff]   ;;  %v2182_v12 = vld [vmem:[%s3897_s0 + $0x28] sm:$0xff]  }
   0x4   :  { %2103 = vmatprep.mubr.msk.bf16.mxu0 %vm245_vm1, %v2172_v2  ;;  %2135 = vmatprep.mubr.msk.bf16.mxu1 %vm245_vm1, %v2173_v3  ;;  %v2179_v9 = vld [vmem:[%s3897_s0 + $0x98] sm:$0xff]   ;;  %v2180_v10 = vld [vmem:[%s3897_s0 + $0x20] sm:$0xff]   ;;  %v2183_v13 = vld [vmem:[%s3897_s0 + $0xa8] sm:$0xff]  }
   0x5   :  { %v2181_v11 = vld [vmem:[%s3897_s0 + $0xa0] sm:$0xff]   ;;  %v2184_v14 = vld [vmem:[%s3897_s0 + $0x30] sm:$0xff]   ;;  %v2186_v16 = vld [vmem:[%s3897_s0 + $0x38] sm:$0xff]  }
   0x6   :  { %2104 = vmatmul.mubr.msk.bf16.vlgmr.msra.gmra.mxu0 %vm245_vm1, %v2174_v4  ;;  %2136 = vmatmul.mubr.msk.bf16.vlgmr.msra.gmra.mxu1 %vm245_vm1, %v2175_v5  ;;  %v2185_v15 = vld [vmem:[%s3897_s0 + $0xb0] sm:$0xff]   ;;  %v2187_v17 = vld [vmem:[%s3897_s0 + $0xb8] sm:$0xff]   ;;  %v2188_v18 = vld [vmem:[%s3897_s0 + $0x40] sm:$0xff]  }
   0x7   :  { %2107 = vmatprep.mubr.msk.bf16.mxu0 %vm245_vm1, %v2176_v6  ;;  %2139 = vmatprep.mubr.msk.bf16.mxu1 %vm245_vm1, %v2177_v7  ;;  %v2189_v19 = vld [vmem:[%s3897_s0 + $0xc0] sm:$0xff]   ;;  %v2190_v20 = vld [vmem:[%s3897_s0 + $0x48] sm:$0xff]   ;;  %v2192_v22 = vld [vmem:[%s3897_s0 + $0x50] sm:$0xff]  }
   0x8   :  { %v2191_v21 = vld [vmem:[%s3897_s0 + $0xc8] sm:$0xff]   ;;  %v2194_v23 = vld [vmem:[%s3897_s0 + $0xd0] sm:$0xff]   ;;  %v2193_v24 = vld [vmem:[%s3897_s0 + $0x58] sm:$0xff]  }
   0x9   :  { %v2195_v25 = vld [vmem:[%s3897_s0 + $0xd8] sm:$0xff]   ;;  %v2196_v26 = vld [vmem:[%s3897_s0 + $0x60] sm:$0xff]   ;;  %v2197_v28 = vld [vmem:[%s3897_s0 + $0x68] sm:$0xff]  }
   0xa   :  { %v2198_v27 = vld [vmem:[%s3897_s0 + $0xe0] sm:$0xff]   ;;  %v2199_v29 = vld [vmem:[%s3897_s0 + $0xe8] sm:$0xff]   ;;  %v2200_v30 = vld [vmem:[%s3897_s0 + $0x70] sm:$0xff]  }
   0xb   :  { %v2202_v31 = vld [vmem:[%s3897_s0 + $0xf0] sm:$0xff]   ;;  %v2201_v32 = vld [vmem:[%s3897_s0 + $0x78] sm:$0xff]   ;;  %v2627_v34 = vld [vmem:[%s3898_s2] ss:$0 sm:$0xff] }
   0xc   :  { %v2203_v33 = vld [vmem:[%s3897_s0 + $0xf8] sm:$0xff]   ;;  %v2632_v36 = vld [vmem:[%s3899_s3] ss:$0 sm:$0xff]  ;;  %s2462_s0 = smov 126  }
   0xe   :  { %2108 = vmatmul.mubr.msk.bf16.gmra.mxu0 %vm245_vm1, %v2178_v8  ;;  %2140 = vmatmul.mubr.msk.bf16.gmra.mxu1 %vm245_vm1, %v2179_v9 }
   0xf   :  { %2111 = vmatprep.mubr.msk.bf16.mxu0 %vm245_vm1, %v2180_v10  ;;  %2143 = vmatprep.mubr.msk.bf16.mxu1 %vm245_vm1, %v2181_v11 }
  0x16   :  { %2112 = vmatmul.mubr.msk.bf16.gmra.mxu0 %vm245_vm1, %v2182_v12  ;;  %2144 = vmatmul.mubr.msk.bf16.gmra.mxu1 %vm245_vm1, %v2183_v13 }
  0x17   :  { %2115 = vmatprep.mubr.msk.bf16.mxu0 %vm245_vm1, %v2184_v14  ;;  %2147 = vmatprep.mubr.msk.bf16.mxu1 %vm245_vm1, %v2185_v15 }
  0x1e   :  { %2116 = vmatmul.mubr.msk.bf16.gmra.mxu0 %vm245_vm1, %v2186_v16  ;;  %2148 = vmatmul.mubr.msk.bf16.gmra.mxu1 %vm245_vm1, %v2187_v17 }
  0x1f   :  { %2119 = vmatprep.mubr.msk.bf16.mxu0 %vm245_vm1, %v2188_v18  ;;  %2151 = vmatprep.mubr.msk.bf16.mxu1 %vm245_vm1, %v2189_v19 }
  0x26   :  { %2120 = vmatmul.mubr.msk.bf16.gmra.mxu0 %vm245_vm1, %v2190_v20  ;;  %2152 = vmatmul.mubr.msk.bf16.gmra.mxu1 %vm245_vm1, %v2191_v21 }
  0x27   :  { %2123 = vmatprep.mubr.msk.bf16.mxu0 %vm245_vm1, %v2192_v22  ;;  %2155 = vmatprep.mubr.msk.bf16.mxu1 %vm245_vm1, %v2194_v23 }
  0x2e   :  { %2124 = vmatmul.mubr.msk.bf16.gmra.mxu0 %vm245_vm1, %v2193_v24  ;;  %2156 = vmatmul.mubr.msk.bf16.gmra.mxu1 %vm245_vm1, %v2195_v25 }
  0x2f   :  { %2127 = vmatprep.mubr.msk.bf16.mxu0 %vm245_vm1, %v2196_v26  ;;  %2159 = vmatprep.mubr.msk.bf16.mxu1 %vm245_vm1, %v2198_v27 }
  0x36   :  { %2128 = vmatmul.mubr.msk.bf16.gmra.mxu0 %vm245_vm1, %v2197_v28  ;;  %2160 = vmatmul.mubr.msk.bf16.gmra.mxu1 %vm245_vm1, %v2199_v29 }
  0x37   :  { %2131 = vmatprep.mubr.msk.bf16.mxu0 %vm245_vm1, %v2200_v30  ;;  %2163 = vmatprep.mubr.msk.bf16.mxu1 %vm245_vm1, %v2202_v31 }
  0x3e   :  { %2132 = vmatmul.mubr.msk.bf16.gmra.mxu0 %vm245_vm1, %v2201_v32  ;;  %2164 = vmatmul.mubr.msk.bf16.gmra.mxu1 %vm245_vm1, %v2203_v33 }
  0xc6   :  { %v2105_v35 = vpop.f32.mrf.mxu0  ;;  %v2137_v38 = vpop.f32.mrf.mxu1 }
  0xc7   :  { %v644_v37 = vmul.f32 %v2105_v35, %v2627_v34  ;;  %v676_v39 = vmul.f32 %v2137_v38, %v2627_v34 }
  0xc8   :  { %v380_v40 = vpop.f32.mrf.mxu0  ;;  %v508_v43 = vpop.f32.mrf.mxu1 }
  0xc9   :  { %v2637_v41 = vadd.f32 %v2632_v36, %v644_v37  ;;  %v642_v42 = vmul.f32 %v2627_v34, %v380_v40  ;;  %v2641_v44 = vadd.f32 %v2632_v36, %v676_v39  ;;  %v674_v45 = vmul.f32 %v2627_v34, %v508_v43 }
  0xca   :  { %v2106_v46 = vpop.f32.mrf.mxu0  ;;  %v2138_v50 = vpop.f32.mrf.mxu1 }
  0xcb   :  { %v1878_v47 = vmul.f32 -1.442695, %v2637_v41  ;;  %v2646_v48 = vadd.f32 %v2632_v36, %v642_v42  ;;  %v645_v49 = vmul.f32 %v2106_v46, %v2627_v34  ;;  %v1910_v51 = vmul.f32 -1.442695, %v2641_v44 }
  0xcc   :  { %v2651_v52 = vadd.f32 %v2632_v36, %v674_v45  ;;  %v677_v53 = vmul.f32 %v2138_v50, %v2627_v34  ;;  %v383_v54 = vpop.f32.mrf.mxu0  ;;  %v511_v58 = vpop.f32.mrf.mxu1 }
  0xcd   :  { %2204 = vpow2.f32 %v1878_v47  ;;  %v1876_v55 = vmul.f32 -1.442695, %v2646_v48  ;;  %v2656_v56 = vadd.f32 %v2632_v36, %v645_v49  ;;  %v643_v57 = vmul.f32 %v2627_v34, %v383_v54 }
  0xce   :  { %2206 = vpow2.f32 %v1910_v51  ;;  %v1908_v59 = vmul.f32 -1.442695, %v2651_v52  ;;  %v2661_v60 = vadd.f32 %v2632_v36, %v677_v53  ;;  %v675_v61 = vmul.f32 %v2627_v34, %v511_v58  ;;  %v2109_v62 = vpop.f32.mrf.mxu0  ;;  %v2141_v2 = vpop.f32.mrf.mxu1 }
  0xcf   :  { %2208 = vpow2.f32 %v1876_v55  ;;  %v1879_v63 = vmul.f32 -1.442695, %v2656_v56  ;;  %v2666_v0 = vadd.f32 %v2632_v36, %v643_v57  ;;  %v648_v1 = vmul.f32 %v2109_v62, %v2627_v34 }
  0xd0   :  { %2210 = vpow2.f32 %v1908_v59  ;;  %v1911_v3 = vmul.f32 -1.442695, %v2661_v60  ;;  %v2671_v4 = vadd.f32 %v2632_v36, %v675_v61  ;;  %v680_v5 = vmul.f32 %v2141_v2, %v2627_v34  ;;  %v396_v6 = vpop.f32.mrf.mxu0  ;;  %v524_v10 = vpop.f32.mrf.mxu1 }
  0xd1   :  { %2212 = vpow2.f32 %v1879_v63  ;;  %v1877_v7 = vmul.f32 -1.442695, %v2666_v0  ;;  %v2676_v8 = vadd.f32 %v2632_v36, %v648_v1  ;;  %v646_v9 = vmul.f32 %v2627_v34, %v396_v6 }
  0xd2   :  { %2214 = vpow2.f32 %v1911_v3  ;;  %v1909_v11 = vmul.f32 -1.442695, %v2671_v4  ;;  %v2681_v12 = vadd.f32 %v2632_v36, %v680_v5  ;;  %v678_v13 = vmul.f32 %v2627_v34, %v524_v10  ;;  %v2110_v14 = vpop.f32.mrf.mxu0  ;;  %v2142_v18 = vpop.f32.mrf.mxu1 }
  0xd3   :  { %2216 = vpow2.f32 %v1877_v7  ;;  %v1882_v15 = vmul.f32 -1.442695, %v2676_v8  ;;  %v2686_v16 = vadd.f32 %v2632_v36, %v646_v9  ;;  %v649_v17 = vmul.f32 %v2110_v14, %v2627_v34 }
  0xd4   :  { %2218 = vpow2.f32 %v1909_v11  ;;  %v1914_v19 = vmul.f32 -1.442695, %v2681_v12  ;;  %v2691_v20 = vadd.f32 %v2632_v36, %v678_v13  ;;  %v681_v21 = vmul.f32 %v2142_v18, %v2627_v34  ;;  %v399_v22 = vpop.f32.mrf.mxu0  ;;  %v527_v26 = vpop.f32.mrf.mxu1 }
  0xd5   :  { %2220 = vpow2.f32 %v1882_v15  ;;  %v1880_v23 = vmul.f32 -1.442695, %v2686_v16  ;;  %v2696_v24 = vadd.f32 %v2632_v36, %v649_v17  ;;  %v647_v25 = vmul.f32 %v2627_v34, %v399_v22 }
  0xd6   :  { %2222 = vpow2.f32 %v1914_v19  ;;  %v1912_v27 = vmul.f32 -1.442695, %v2691_v20  ;;  %v2701_v28 = vadd.f32 %v2632_v36, %v681_v21  ;;  %v679_v29 = vmul.f32 %v2627_v34, %v527_v26  ;;  %v2113_v30 = vpop.f32.mrf.mxu0  ;;  %v2145_v35 = vpop.f32.mrf.mxu1 }
  0xd7   :  { %2224 = vpow2.f32 %v1880_v23  ;;  %v1883_v31 = vmul.f32 -1.442695, %v2696_v24  ;;  %v2706_v32 = vadd.f32 %v2632_v36, %v647_v25  ;;  %v652_v33 = vmul.f32 %v2113_v30, %v2627_v34 }
  0xd8   :  { %2226 = vpow2.f32 %v1912_v27  ;;  %v1915_v37 = vmul.f32 -1.442695, %v2701_v28  ;;  %v2711_v38 = vadd.f32 %v2632_v36, %v679_v29  ;;  %v684_v39 = vmul.f32 %v2145_v35, %v2627_v34  ;;  %v412_v40 = vpop.f32.mrf.mxu0  ;;  %v540_v45 = vpop.f32.mrf.mxu1 }
  0xd9   :  { %2228 = vpow2.f32 %v1883_v31  ;;  %v1881_v42 = vmul.f32 -1.442695, %v2706_v32  ;;  %v650_v43 = vmul.f32 %v2627_v34, %v412_v40  ;;  %v682_v49 = vmul.f32 %v2627_v34, %v540_v45 }
  0xda   :  { %v2205_v46 = vpop.eup %2204  ;;  %2230 = vpow2.f32 %v1915_v37  ;;  %v1913_v47 = vmul.f32 -1.442695, %v2711_v38  ;;  %v2114_v50 = vpop.f32.mrf.mxu0  ;;  %v2719_v58 = vadd.f32 %v2632_v36, %v652_v33  ;;  %v2722_v59 = vadd.f32 %v2632_v36, %v684_v39 }
  0xdb   :  { %v2207_v51 = vpop.eup %2206  ;;  %v971_v53 = vadd.f32 1.0, %v2205_v46  ;;  %2232 = vpow2.f32 %v1881_v42  ;;  %v2146_v54 = vpop.f32.mrf.mxu1  ;;  %v2725_v1 = vadd.f32 %v2632_v36, %v650_v43  ;;  %v653_v2 = vmul.f32 %v2114_v50, %v2627_v34 }
  0xdc   :  { %v2209_v55 = vpop.eup %2208  ;;  %v1003_v57 = vadd.f32 1.0, %v2207_v51  ;;  %2234 = vpow2.f32 %v1913_v47  ;;  %v415_v61 = vpop.f32.mrf.mxu0  ;;  %v2729_v7 = vadd.f32 %v2632_v36, %v682_v49  ;;  %v685_v13 = vmul.f32 %v2146_v54, %v2627_v34 }
  0xdd   :  { %v2211_v62 = vpop.eup %2210  ;;  %2236 = vrcp.f32 %v971_v53  ;;  %v969_v63 = vadd.f32 1.0, %v2209_v55  ;;  %v543_v3 = vpop.f32.mrf.mxu1  ;;  %v2733_v18 = vmul.f32 -1.442695, %v2719_v58  ;;  %v2736_v19 = vmul.f32 -1.442695, %v2722_v59 }
  0xde   :  { %v2213_v5 = vpop.eup %2212  ;;  %2238 = vrcp.f32 %v1003_v57  ;;  %v1001_v6 = vadd.f32 1.0, %v2211_v62  ;;  %3923 = vst [vmem:[#allocation2_spill] sm:$0xff] %v2729_v7  ;;  %v2117_v9 = vpop.f32.mrf.mxu0  ;;  %v2739_v25 = vmul.f32 -1.442695, %v2725_v1  ;;  %v2742_v26 = vadd.f32 %v2632_v36, %v653_v2 }
  0xdf   :  { %v2215_v10 = vpop.eup %2214  ;;  %2240 = vrcp.f32 %v969_v63  ;;  %v972_v11 = vadd.f32 1.0, %v2213_v5  ;;  %v2149_v14 = vpop.f32.mrf.mxu1  ;;  %v2745_v31 = vmul.f32 -1.442695, %v2729_v7  ;;  %v651_v33 = vmul.f32 %v2627_v34, %v415_v61 }
  0xe0   :  { %v2217_v15 = vpop.eup %2216  ;;  %2242 = vrcp.f32 %v1001_v6  ;;  %v1004_v17 = vadd.f32 1.0, %v2215_v10  ;;  %v428_v21 = vpop.f32.mrf.mxu0  ;;  %v2749_v40 = vadd.f32 %v2632_v36, %v685_v13  ;;  %v683_v42 = vmul.f32 %v2627_v34, %v543_v3 }
  0xe1   :  { %v2219_v22 = vpop.eup %2218  ;;  %2244 = vrcp.f32 %v972_v11  ;;  %v970_v23 = vadd.f32 1.0, %v2217_v15  ;;  %v556_v27 = vpop.f32.mrf.mxu1  ;;  %v656_v47 = vmul.f32 %v2117_v9, %v2627_v34  ;;  %v688_v49 = vmul.f32 %v2149_v14, %v2627_v34 }
  0xe2   :  { %v2221_v29 = vpop.eup %2220  ;;  %2246 = vrcp.f32 %v1004_v17  ;;  %v1002_v30 = vadd.f32 1.0, %v2219_v22  ;;  %v2118_v35 = vpop.f32.mrf.mxu0  ;;  %v2755_v54 = vmul.f32 -1.442695, %v2742_v26  ;;  %v654_v55 = vmul.f32 %v2627_v34, %v428_v21 }
  0xe3   :  { %v2223_v37 = vpop.eup %2222  ;;  %2248 = vrcp.f32 %v970_v23  ;;  %v975_v39 = vadd.f32 1.0, %v2221_v29  ;;  %v2150_v43 = vpop.f32.mrf.mxu1  ;;  %v2759_v63 = vadd.f32 %v2632_v36, %v651_v33  ;;  %v686_v2 = vmul.f32 %v2627_v34, %v556_v27 }
  0xe4   :  { %v2225_v45 = vpop.eup %2224  ;;  %2250 = vrcp.f32 %v1002_v30  ;;  %v1007_v46 = vadd.f32 1.0, %v2223_v37  ;;  %v431_v50 = vpop.f32.mrf.mxu0  ;;  %v1919_v9 = vmul.f32 -1.442695, %v2749_v40  ;;  %v2764_v10 = vadd.f32 %v2632_v36, %v683_v42 }
  0xe5   :  { %v2227_v51 = vpop.eup %2226  ;;  %2252 = vrcp.f32 %v975_v39  ;;  %v973_v53 = vadd.f32 1.0, %v2225_v45  ;;  %v559_v57 = vpop.f32.mrf.mxu1  ;;  %v2767_v15 = vadd.f32 %v2632_v36, %v656_v47  ;;  %v2770_v17 = vadd.f32 %v2632_v36, %v688_v49 }
  0xe6   :  { %v2229_v61 = vpop.eup %2228  ;;  %2254 = vrcp.f32 %v1007_v46  ;;  %v1005_v62 = vadd.f32 1.0, %v2227_v51  ;;  %v2121_v3 = vpop.f32.mrf.mxu0  ;;  %3924 = vst [vmem:[#allocation3_spill] sm:$0xff] %v2764_v10  ;;  %v2773_v27 = vadd.f32 %v2632_v36, %v654_v55  ;;  %v657_v29 = vmul.f32 %v2118_v35, %v2627_v34 }
  0xe7   :  { %v2231_v5 = vpop.eup %2230  ;;  %2256 = vrcp.f32 %v973_v53  ;;  %v976_v6 = vadd.f32 1.0, %v2229_v61  ;;  %v2153_v11 = vpop.f32.mrf.mxu1  ;;  %3925 = vst [vmem:[#allocation4_spill] sm:$0xff] %v2767_v15  ;;  %3926 = vst [vmem:[#allocation5_spill] sm:$0xff] %v2770_v17  ;;  %v2779_v39 = vadd.f32 %v2632_v36, %v686_v2  ;;  %v689_v42 = vmul.f32 %v2150_v43, %v2627_v34 }
  0xe8   :  { %v2233_v13 = vpop.eup %2232  ;;  %2258 = vrcp.f32 %v1005_v62  ;;  %v1008_v14 = vadd.f32 1.0, %v2231_v5  ;;  %v444_v21 = vpop.f32.mrf.mxu0  ;;  %3927 = vst [vmem:[#allocation6_spill] sm:$0xff] %v2773_v27  ;;  %v1885_v47 = vmul.f32 -1.442695, %v2759_v63  ;;  %v655_v49 = vmul.f32 %v2627_v34, %v431_v50 }
  0xe9   :  { %v2235_v22 = vpop.eup %2234  ;;  %2260 = vrcp.f32 %v976_v6  ;;  %v974_v23 = vadd.f32 1.0, %v2233_v13  ;;  %v572_v30 = vpop.f32.mrf.mxu1  ;;  %3928 = vst [vmem:[#allocation7_spill] sm:$0xff] %v2779_v39  ;;  %v687_v35 = vmul.f32 %v2627_v34, %v559_v57  ;;  %v1917_v55 = vmul.f32 -1.442695, %v2764_v10 }
  0xea   :  { %v2776_v33 = vpop.eup %2236  ;;  %2262 = vrcp.f32 %v1008_v14  ;;  %v1006_v37 = vadd.f32 1.0, %v2235_v22  ;;  %v2122_v45 = vpop.f32.mrf.mxu0  ;;  %v660_v61 = vmul.f32 %v2121_v3, %v2627_v34  ;;  %v692_v43 = vmul.f32 %v2153_v11, %v2627_v34 }
  0xeb   :  { %v2782_v46 = vpop.eup %2238  ;;  %2264 = vrcp.f32 %v974_v23  ;;  %v2154_v51 = vpop.f32.mrf.mxu1  ;;  %v1890_v5 = vmul.f32 -1.442695, %v2767_v15  ;;  %v1922_v50 = vmul.f32 -1.442695, %v2770_v17  ;;  %v2798_v57 = vadd.f32 %v2632_v36, %v657_v29 }
  0xec   :  { %v2787_v53 = vpop.eup %2240  ;;  %2266 = vrcp.f32 %v1006_v37  ;;  %v447_v62 = vpop.f32.mrf.mxu0  ;;  %v1888_v3 = vmul.f32 -1.442695, %v2773_v27  ;;  %v1920_v11 = vmul.f32 -1.442695, %v2779_v39  ;;  %v2806_v13 = vadd.f32 %v2632_v36, %v689_v42 }
  0xed   :  { %v2792_v2 = vpop.eup %2242  ;;  %2268 = vpow2.f32 %v2733_v18  ;;  %3929 = vst [vmem:[#allocation8_spill] sm:$0xff] %v2798_v57  ;;  %v2812_v18 = vadd.f32 %v2632_v36, %v655_v49  ;;  %v2815_v22 = vadd.f32 %v2632_v36, %v687_v35  ;;  %v658_v23 = vmul.f32 %v2627_v34, %v444_v21 }
  0xee   :  { %v2800_v6 = vpop.eup %2244  ;;  %2270 = vpow2.f32 %v2736_v19  ;;  %3930 = vst [vmem:[#allocation9_spill] sm:$0xff] %v2806_v13  ;;  %v575_v19 = vpop.f32.mrf.mxu1  ;;  %v2822_v42 = vadd.f32 %v2632_v36, %v660_v61  ;;  %v690_v49 = vmul.f32 %v2627_v34, %v572_v30  ;;  %v1891_v21 = vmul.f32 -1.442695, %v2798_v57 }
  0xef   :  { %v2808_v14 = vpop.eup %2246  ;;  %2272 = vpow2.f32 %v2739_v25  ;;  %3931 = vst [vmem:[#allocation10_spill] sm:$0xff] %v2812_v18  ;;  %3932 = vst [vmem:[#allocation11_spill] sm:$0xff] %v2815_v22  ;;  %v2125_v29 = vpop.f32.mrf.mxu0  ;;  %v2825_v25 = vadd.f32 %v2632_v36, %v692_v43  ;;  %v661_v35 = vmul.f32 %v2122_v45, %v2627_v34  ;;  %v693_v27 = vmul.f32 %v2154_v51, %v2627_v34 }
  0xf0   :  { %v2818_v37 = vpop.eup %2248  ;;  %2274 = vpow2.f32 %v2745_v31  ;;  %3933 = vst [vmem:[#allocation12_spill] sm:$0xff] %v2822_v42  ;;  %v1923_v31 = vmul.f32 -1.442695, %v2806_v13  ;;  %v659_v61 = vmul.f32 %v2627_v34, %v447_v62  ;;  %v691_v43 = vmul.f32 %v2627_v34, %v575_v19 }
  0xf1   :  { %3934 = vst [vmem:[#allocation13_spill] sm:$0xff] %v2825_v25  ;;  %v2828_v39 = vpop.eup %2250  ;;  %2276 = vpow2.f32 %v2755_v54  ;;  %v1889_v54 = vmul.f32 -1.442695, %v2812_v18  ;;  %v2843_v57 = vadd.f32 %v2632_v36, %v658_v23  ;;  %v2846_v45 = vadd.f32 %v2632_v36, %v690_v49  ;;  %v460_v51 = vpop.f32.mrf.mxu0 }
  0xf2   :  { %v2834_v17 = vpop.eup %2252  ;;  %2278 = vpow2.f32 %v1919_v9  ;;  %v1921_v9 = vmul.f32 -1.442695, %v2815_v22  ;;  %v2852_v62 = vmul.f32 -1.442695, %v2822_v42  ;;  %v2855_v19 = vmul.f32 -1.442695, %v2825_v25 }
  0xf3   :  { %v2839_v30 = vpop.eup %2254  ;;  %2280 = vpow2.f32 %v1885_v47  ;;  %3935 = vst [vmem:[#allocation14_spill] sm:$0xff] %v2843_v57  ;;  %3936 = vst [vmem:[#allocation15_spill] sm:$0xff] %v2846_v45  ;;  %v2860_v23 = vadd.f32 %v2632_v36, %v661_v35  ;;  %v2863_v49 = vadd.f32 %v2632_v36, %v693_v27  ;;  %v664_v18 = vmul.f32 %v2125_v29, %v2627_v34 }
  0xf4   :  { %v2848_v15 = vpop.eup %2256  ;;  %2282 = vpow2.f32 %v1917_v55  ;;  %v2157_v55 = vpop.f32.mrf.mxu1  ;;  %v2869_v42 = vadd.f32 %v2632_v36, %v659_v61  ;;  %v2872_v25 = vadd.f32 %v2632_v36, %v691_v43  ;;  %v2879_v27 = vmul.f32 -1.442695, %v2843_v57 }
  0xf5   :  { %v2857_v47 = vpop.eup %2258  ;;  %2284 = vpow2.f32 %v1890_v5  ;;  %3937 = vst [vmem:[#allocation16_spill] sm:$0xff] %v2860_v23  ;;  %3938 = vst [vmem:[#allocation17_spill] sm:$0xff] %v2863_v49  ;;  %v1195_v5 = vmul.f32 %v2782_v46, %v2641_v44  ;;  %v2882_v29 = vmul.f32 -1.442695, %v2846_v45  ;;  %v2126_v61 = vpop.f32.mrf.mxu0  ;;  %v2889_v43 = vadd.f32 %v2632_v36, %v664_v18 }
  0xf6   :  { %v2866_v13 = vpop.eup %2260  ;;  %2286 = vpow2.f32 %v1922_v50  ;;  %3939 = vst [vmem:[#allocation18_spill] sm:$0xff] %v2869_v42  ;;  %3940 = vst [vmem:[#allocation19_spill] sm:$0xff] %v2872_v25  ;;  %v1163_v50 = vmul.f32 %v2776_v33, %v2637_v41  ;;  %v662_v46 = vmul.f32 %v2627_v34, %v460_v51  ;;  %v2895_v57 = vmul.f32 -1.442695, %v2860_v23  ;;  %v588_v41 = vpop.f32.mrf.mxu1 }
  0xf7   :  { %v2876_v35 = vpop.eup %2262  ;;  %2288 = vpow2.f32 %v1888_v3  ;;  %3941 = vst [vmem:[#allocation20_spill] sm:$0xff] %v2889_v43  ;;  %v2038_v44 = vpack.c.bf16 %v1195_v5, %v1195_v5  ;;  %v696_v10 = vmul.f32 %v2157_v55, %v2627_v34  ;;  %v2902_v18 = vmul.f32 -1.442695, %v2869_v42 }
  0xf8   :  { %v2886_v22 = vpop.eup %2264  ;;  %2290 = vpow2.f32 %v1920_v11  ;;  %v2006_v45 = vpack.c.bf16 %v1163_v50, %v1163_v50  ;;  %v2899_v11 = vmul.f32 -1.442695, %v2863_v49  ;;  %v2905_v51 = vmul.f32 -1.442695, %v2872_v25  ;;  %v463_v50 = vpop.f32.mrf.mxu0 }
  0xf9   :  { %v2892_v3 = vpop.eup %2266  ;;  %2292 = vpow2.f32 %v1891_v21  ;;  %1614 = vrot.lane.b32.xlu0 %v2038_v44, %s2462_s0  ;;  %1516 = vst.msk [vmem:[%s3900_s4 + $0x88] sm:$0xf] %vm1481_vm2, %v2038_v44  ;;  %v1161_v5 = vmul.f32 %v2787_v53, %v2646_v48  ;;  %v2921_v44 = vmul.f32 -1.442695, %v2889_v43  ;;  %v2158_v23 = vpop.f32.mrf.mxu1 }
  0xfa   :  { %v2269_v33 = vpop.eup %2268  ;;  %2294 = vpow2.f32 %v1923_v31  ;;  %1550 = vrot.lane.b32.xlu1 %v2006_v45, %s2462_s0  ;;  %1484 = vst.msk [vmem:[%s3900_s4 + $0x8] sm:$0xf] %vm1481_vm2, %v2006_v45  ;;  %v665_v31 = vmul.f32 %v2126_v61, %v2627_v34  ;;  %v2927_v45 = vadd.f32 %v2632_v36, %v696_v10  ;;  %v2129_v7 = vpop.f32.mrf.mxu0  ;;  %v663_v10 = vmul.f32 %v2627_v34, %v463_v50 }
  0xfb   :  { %v2271_v21 = vpop.eup %2270  ;;  %v979_v55 = vadd.f32 1.0, %v2269_v33  ;;  %2296 = vpow2.f32 %v1889_v54  ;;  %v2924_v54 = vadd.f32 %v2632_v36, %v662_v46  ;;  %v2004_v61 = vpack.c.bf16 %v1161_v5, %v1161_v5 }
  0xfc   :  { %v2273_v25 = vpop.eup %2272  ;;  %v1011_v42 = vadd.f32 1.0, %v2271_v21  ;;  %2298 = vpow2.f32 %v1921_v9  ;;  %3943 = vst [vmem:[#allocation22_spill] sm:$0xff] %v2927_v45  ;;  %v694_v9 = vmul.f32 %v2627_v34, %v588_v41  ;;  %v1164_v21 = vmul.f32 %v2800_v6, %v2656_v56  ;;  %v476_v50 = vpop.f32.mrf.mxu0 }
  0xfd   :  { %3942 = vst [vmem:[#allocation21_spill] sm:$0xff] %v2924_v54  ;;  %v2275_v33 = vpop.eup %2274  ;;  %2300 = vrcp.f32 %v979_v55  ;;  %v977_v49 = vadd.f32 1.0, %v2273_v25  ;;  %1546 = vrot.lane.b32.xlu0 %v2004_v61, %s2462_s0  ;;  %1482 = vst.msk [vmem:[%s3900_s4] sm:$0xf] %vm1481_vm2, %v2004_v61  ;;  %v2940_v55 = vadd.f32 %v2632_v36, %v665_v31  ;;  %v2943_v5 = vmul.f32 -1.442695, %v2924_v54  ;;  %v591_v61 = vpop.f32.mrf.mxu1 }
  0xfe   :  { %v2277_v48 = vpop.eup %2276  ;;  %2302 = vrcp.f32 %v1011_v42  ;;  %v1009_v53 = vadd.f32 1.0, %v2275_v33  ;;  %v697_v42 = vmul.f32 %v2158_v23, %v2627_v34  ;;  %v2007_v56 = vpack.c.bf16 %v1164_v21, %v1164_v21 }
  0xff   :  { %v2279_v43 = vpop.eup %2278  ;;  %2304 = vrcp.f32 %v977_v49  ;;  %v980_v46 = vadd.f32 1.0, %v2277_v48  ;;  %v2946_v33 = vmul.f32 -1.442695, %v2927_v45  ;;  %v1193_v31 = vmul.f32 %v2792_v2, %v2651_v52 }
 0x100   :  { %v2281_v25 = vpop.eup %2280  ;;  %2306 = vrcp.f32 %v1009_v53  ;;  %v1012_v41 = vadd.f32 1.0, %v2279_v43  ;;  %v2949_v43 = vadd.f32 %v2632_v36, %v694_v9  ;;  %1552 = vrot.lane.b32.xlu1 %v2007_v56, %s2462_s0  ;;  %1485 = vst.msk [vmem:[%s3900_s4 + $0xc] sm:$0xf] %vm1481_vm2, %v2007_v56  ;;  %v2964_v9 = vpop.f32.mrf.mxu1  ;;  %v1196_v56 = vmul.f32 %v2808_v14, %v2661_v60 }
 0x101   :  { %v2283_v6 = vpop.eup %2282  ;;  %2308 = vrcp.f32 %v980_v46  ;;  %v978_v49 = vadd.f32 1.0, %v2281_v25  ;;  %v2959_v46 = vadd.f32 %v2632_v36, %v663_v10  ;;  %v2962_v25 = vadd.f32 %v2632_v36, %v697_v42 }
 0x102   :  { %v2285_v48 = vpop.eup %2284  ;;  %2310 = vrcp.f32 %v1012_v41  ;;  %v1010_v23 = vadd.f32 1.0, %v2283_v6  ;;  %v2036_v45 = vpack.c.bf16 %v1193_v31, %v1193_v31  ;;  %v695_v2 = vmul.f32 %v2627_v34, %v591_v61 }
 0x103   :  { %v2287_v53 = vpop.eup %2286  ;;  %2312 = vrcp.f32 %v978_v49  ;;  %v983_v21 = vadd.f32 1.0, %v2285_v48  ;;  %v1194_v10 = vmul.f32 %v2828_v39, %v2671_v4  ;;  %v2130_v49 = vpop.f32.mrf.mxu0  ;;  %v2039_v60 = vpack.c.bf16 %v1196_v56, %v1196_v56 }
 0x104   :  { %v2289_v41 = vpop.eup %2288  ;;  %2314 = vrcp.f32 %v1010_v23  ;;  %v1015_v6 = vadd.f32 1.0, %v2287_v53  ;;  %1514 = vst.msk [vmem:[%s3900_s4 + $0x80] sm:$0xf] %vm1481_vm2, %v2036_v45  ;;  %1610 = vrot.lane.b32.xlu0 %v2036_v45, %s2462_s0  ;;  %v1162_v14 = vmul.f32 %v2818_v37, %v2666_v0  ;;  %v668_v4 = vmul.f32 %v2129_v7, %v2627_v34  ;;  %v2979_v39 = vpop.f32.mrf.mxu1 }
 0x105   :  { %v2291_v54 = vpop.eup %2290  ;;  %2316 = vrcp.f32 %v983_v21  ;;  %v981_v52 = vadd.f32 1.0, %v2289_v41  ;;  %v2037_v31 = vpack.c.bf16 %v1194_v10, %v1194_v10  ;;  %1517 = vst.msk [vmem:[%s3900_s4 + $0x8c] sm:$0xf] %vm1481_vm2, %v2039_v60  ;;  %1616 = vrot.lane.b32.xlu1 %v2039_v60, %s2462_s0  ;;  %v666_v0 = vmul.f32 %v2627_v34, %v476_v50 }
 0x106   :  { %v2293_v42 = vpop.eup %2292  ;;  %2318 = vrcp.f32 %v1015_v6  ;;  %v1013_v48 = vadd.f32 1.0, %v2291_v54  ;;  %v2005_v45 = vpack.c.bf16 %v1162_v14, %v1162_v14  ;;  %v2988_v7 = vadd.f32 %v2632_v36, %v695_v2  ;;  %v479_v6 = vpop.f32.mrf.mxu0 }
 0x107   :  { %v2295_v23 = vpop.eup %2294  ;;  %2320 = vrcp.f32 %v981_v52  ;;  %v984_v61 = vadd.f32 1.0, %v2293_v42  ;;  %1515 = vst.msk [vmem:[%s3900_s4 + $0x84] sm:$0xf] %vm1481_vm2, %v2037_v31  ;;  %v1167_v41 = vmul.f32 %v2834_v17, %v2676_v8  ;;  %v3004_v50 = vadd.f32 %v2632_v36, %v668_v4 }
 0x108   :  { %v2297_v54 = vpop.eup %2296  ;;  %2322 = vrcp.f32 %v1013_v48  ;;  %v1016_v53 = vadd.f32 1.0, %v2295_v23  ;;  %1548 = vrot.lane.b32.xlu0 %v2005_v45, %s2462_s0  ;;  %1483 = vst.msk [vmem:[%s3900_s4 + $0x4] sm:$0xf] %vm1481_vm2, %v2005_v45  ;;  %v1168_v2 = vmul.f32 %v2866_v13, %v2696_v24  ;;  %v3011_v8 = vadd.f32 %v2632_v36, %v666_v0  ;;  %v2162_v48 = vpop.f32.mrf.mxu1 }
 0x109   :  { %v2299_v37 = vpop.eup %2298  ;;  %2324 = vrcp.f32 %v984_v61  ;;  %v982_v21 = vadd.f32 1.0, %v2297_v54  ;;  %v2010_v17 = vpack.c.bf16 %v1167_v41, %v1167_v41  ;;  %v669_v42 = vmul.f32 %v2130_v49, %v2627_v34  ;;  %v3014_v60 = vpop.f32.mrf.mxu0  ;;  %1612 = vrot.lane.b32.xlu1 %v2037_v31, %s2462_s0 }
 0x10a   :  { %v2996_v56 = vpop.eup %2300  ;;  %2326 = vrcp.f32 %v1016_v53  ;;  %v1014_v52 = vadd.f32 1.0, %v2299_v37  ;;  %v3019_v23 = vmul.f32 -1.442695, %v2940_v55  ;;  %v3022_v24 = vmul.f32 -1.442695, %v2949_v43 }
 0x10b   :  { %v3008_v10 = vpop.eup %2302  ;;  %2328 = vrcp.f32 %v982_v21  ;;  %v2011_v13 = vpack.c.bf16 %v1168_v2, %v1168_v2  ;;  %v3029_v49 = vmul.f32 -1.442695, %v2959_v46  ;;  %v3032_v4 = vmul.f32 -1.442695, %v2962_v25  ;;  %1488 = vst.msk [vmem:[%s3900_s4 + $0x18] sm:$0xf] %vm1481_vm2, %v2010_v17  ;;  %v607_v21 = vpop.f32.mrf.mxu1 }
 0x10c   :  { %v3016_v14 = vpop.eup %2304  ;;  %2330 = vrcp.f32 %v1014_v52  ;;  %v700_v54 = vmul.f32 %v2964_v9, %v2627_v34  ;;  %1558 = vrot.lane.b32.xlu0 %v2010_v17, %s2462_s0  ;;  %v1199_v53 = vmul.f32 %v2839_v30, %v2681_v12  ;;  %v1200_v9 = vmul.f32 %v2876_v35, %v2701_v28  ;;  %v492_v41 = vpop.f32.mrf.mxu0 }
 0x10d   :  { %v3025_v61 = vpop.eup %2306  ;;  %2332 = vpow2.f32 %v2852_v62  ;;  %v3044_v62 = vmul.f32 -1.442695, %v2988_v7  ;;  %1489 = vst.msk [vmem:[%s3900_s4 + $0x1c] sm:$0xf] %vm1481_vm2, %v2011_v13  ;;  %v3062_v0 = vmul.f32 -1.442695, %v3011_v8  ;;  %v3065_v37 = vadd.f32 %v2632_v36, %v669_v42  ;;  %1560 = vrot.lane.b32.xlu1 %v2011_v13, %s2462_s0 }
 0x10e   :  { %v3040_v31 = vpop.eup %2308  ;;  %2334 = vpow2.f32 %v2855_v19  ;;  %v3059_v19 = vmul.f32 -1.442695, %v3004_v50  ;;  %v667_v12 = vmul.f32 %v2627_v34, %v479_v6  ;;  %v2042_v28 = vpack.c.bf16 %v1199_v53, %v1199_v53 }
 0x10f   :  { %v3055_v45 = vpop.eup %2310  ;;  %2336 = vpow2.f32 %v2879_v27  ;;  %v2043_v30 = vpack.c.bf16 %v1200_v9, %v1200_v9  ;;  %v3076_v27 = vadd.f32 %v2632_v36, %v700_v54  ;;  %v698_v2 = vmul.f32 %v2627_v34, %v2979_v39  ;;  %v2134_v54 = vpop.f32.mrf.mxu0 }
 0x110   :  { %v3067_v52 = vpop.eup %2312  ;;  %2338 = vpow2.f32 %v2882_v29  ;;  %v701_v17 = vmul.f32 %v2162_v48, %v2627_v34  ;;  %1520 = vst.msk [vmem:[%s3900_s4 + $0x98] sm:$0xf] %vm1481_vm2, %v2042_v28  ;;  %1622 = vrot.lane.b32.xlu0 %v2042_v28, %s2462_s0  ;;  %v1165_v29 = vmul.f32 %v2848_v15, %v2686_v16  ;;  %v3102_v6 = vmul.f32 -1.442695, %v3065_v37 }
 0x111   :  { %v3072_v35 = vpop.eup %2314  ;;  %2340 = vpow2.f32 %v2895_v57  ;;  %1521 = vst.msk [vmem:[%s3900_s4 + $0x9c] sm:$0xf] %vm1481_vm2, %v2043_v30  ;;  %v699_v57 = vmul.f32 %v2627_v34, %v607_v21  ;;  %v1197_v48 = vmul.f32 %v2857_v47, %v2691_v20  ;;  %v1198_v13 = vmul.f32 %v2892_v3, %v2711_v38  ;;  %1624 = vrot.lane.b32.xlu1 %v2043_v30, %s2462_s0 }
 0x112   :  { %v3081_v42 = vpop.eup %2316  ;;  %2342 = vpow2.f32 %v2899_v11  ;;  %v1166_v11 = vmul.f32 %v2886_v22, %v2706_v32  ;;  %v3112_v16 = vadd.f32 %v2632_v36, %v667_v12  ;;  %v2008_v32 = vpack.c.bf16 %v1165_v29, %v1165_v29  ;;  %v495_v12 = vpop.f32.mrf.mxu0 }
 0x113   :  { %v3098_v39 = vpop.eup %2318  ;;  %2344 = vpow2.f32 %v2902_v18  ;;  %v3119_v20 = vadd.f32 %v2632_v36, %v698_v2  ;;  %v2040_v38 = vpack.c.bf16 %v1197_v48, %v1197_v48  ;;  %v2041_v47 = vpack.c.bf16 %v1198_v13, %v1198_v13 }
 0x114   :  { %v3108_v53 = vpop.eup %2320  ;;  %2346 = vpow2.f32 %v2905_v51  ;;  %v2009_v15 = vpack.c.bf16 %v1166_v11, %v1166_v11  ;;  %v3125_v18 = vadd.f32 %v2632_v36, %v701_v17  ;;  %v3128_v51 = vadd.f32 %v2632_v36, %v699_v57  ;;  %1554 = vrot.lane.b32.xlu0 %v2008_v32, %s2462_s0  ;;  %1486 = vst.msk [vmem:[%s3900_s4 + $0x10] sm:$0xf] %vm1481_vm2, %v2008_v32 }
 0x115   :  { %v3115_v22 = vpop.eup %2322  ;;  %2348 = vpow2.f32 %v2921_v44  ;;  %v672_v44 = vmul.f32 %v3014_v60, %v2627_v34  ;;  %1518 = vst.msk [vmem:[%s3900_s4 + $0x90] sm:$0xf] %vm1481_vm2, %v2040_v38  ;;  %1519 = vst.msk [vmem:[%s3900_s4 + $0x94] sm:$0xf] %vm1481_vm2, %v2041_v47  ;;  %v670_v9 = vmul.f32 %v2627_v34, %v492_v41  ;;  %v1171_v21 = vmul.f32 %v2996_v56, %v2719_v58 }
 0x116   :  { %v3121_v3 = vpop.eup %2324  ;;  %2350 = vpow2.f32 %v2943_v5  ;;  %1487 = vst.msk [vmem:[%s3900_s4 + $0x14] sm:$0xf] %vm1481_vm2, %v2009_v15  ;;  %v1172_v60 = vmul.f32 %v3040_v31, %v2742_v26  ;;  %v3161_v28 = vmul.f32 -1.442695, %v3076_v27  ;;  %v3164_v30 = vmul.f32 -1.442695, %v3112_v16  ;;  %1556 = vrot.lane.b32.xlu1 %v2009_v15, %s2462_s0 }
 0x117   :  { %v3141_v5 = vpop.eup %2326  ;;  %2352 = vpow2.f32 %v2946_v33  ;;  %v673_v41 = vmul.f32 %v2134_v54, %v2627_v34  ;;  %v3172_v58 = vadd.f32 %v2632_v36, %v672_v44  ;;  %v2014_v26 = vpack.c.bf16 %v1171_v21, %v1171_v21 }
 0x118   :  { %v3157_v33 = vpop.eup %2328  ;;  %2354 = vpow2.f32 %v3019_v23  ;;  %v2015_v56 = vpack.c.bf16 %v1172_v60, %v1172_v60  ;;  %v2165_v23 = vpop.f32.mrf.mxu1  ;;  %v3176_v17 = vmul.f32 -1.442695, %v3119_v20  ;;  %v3179_v57 = vmul.f32 -1.442695, %v3125_v18  ;;  %1618 = vrot.lane.b32.xlu0 %v2040_v38, %s2462_s0 }
 0x119   :  { %v3168_v2 = vpop.eup %2330  ;;  %2356 = vpow2.f32 %v3022_v24  ;;  %v671_v29 = vmul.f32 %v2627_v34, %v495_v12  ;;  %v3185_v48 = vmul.f32 -1.442695, %v3128_v51  ;;  %v3188_v13 = vadd.f32 %v2632_v36, %v670_v9  ;;  %1492 = vst.msk [vmem:[%s3900_s4 + $0x28] sm:$0xf] %vm1481_vm2, %v2014_v26 }
 0x11a   :  { %v2333_v31 = vpop.eup %2332  ;;  %2358 = vpow2.f32 %v3029_v49  ;;  %1493 = vst.msk [vmem:[%s3900_s4 + $0x2c] sm:$0xf] %vm1481_vm2, %v2015_v56  ;;  %1620 = vrot.lane.b32.xlu1 %v2041_v47, %s2462_s0  ;;  %v1203_v54 = vmul.f32 %v3008_v10, %v2722_v59  ;;  %v3206_v38 = vmul.f32 -1.442695, %v3172_v58  ;;  %v1204_v44 = vmul.f32 %v3055_v45, %v2749_v40  ;;  %v620_v9 = vpop.f32.mrf.mxu1  ;;  %v2460_v45 = vld [vmem:[%s3898_s2] ss:$0 sm:$0xff] }
 0x11b   :  { %v2335_v24 = vpop.eup %2334  ;;  %v987_v11 = vadd.f32 1.0, %v2333_v31  ;;  %2360 = vpow2.f32 %v3032_v4  ;;  %v3201_v4 = vadd.f32 %v2632_v36, %v673_v41  ;;  %v3212_v47 = vadd.f32 %v2632_v36, %v671_v29 }
 0x11c   :  { %v2337_v34 = vpop.eup %2336  ;;  %v1019_v49 = vadd.f32 1.0, %v2335_v24  ;;  %2362 = vpow2.f32 %v3044_v62  ;;  %1566 = vrot.lane.b32.xlu0 %v2014_v26, %s2462_s0  ;;  %v2046_v60 = vpack.c.bf16 %v1203_v54, %v1203_v54  ;;  %v3215_v12 = vmul.f32 -1.442695, %v3188_v13 }
 0x11d   :  { %v2339_v32 = vpop.eup %2338  ;;  %2364 = vrcp.f32 %v987_v11  ;;  %v985_v15 = vadd.f32 1.0, %v2337_v34  ;;  %v2047_v41 = vpack.c.bf16 %v1204_v44, %v1204_v44  ;;  %v704_v26 = vmul.f32 %v2460_v45, %v2165_v23 }
 0x11e   :  { %v2341_v21 = vpop.eup %2340  ;;  %2366 = vrcp.f32 %v1019_v49  ;;  %v1017_v62 = vadd.f32 1.0, %v2339_v32  ;;  %1568 = vrot.lane.b32.xlu1 %v2015_v56, %s2462_s0  ;;  %1524 = vst.msk [vmem:[%s3900_s4 + $0xa8] sm:$0xf] %vm1481_vm2, %v2046_v60  ;;  %v702_v36 = vmul.f32 %v2460_v45, %v620_v9  ;;  %v2166_v56 = vpop.f32.mrf.mxu1  ;;  %v1169_v11 = vmul.f32 %v3016_v14, %v2725_v1 }
 0x11f   :  { %v2343_v59 = vpop.eup %2342  ;;  %2368 = vrcp.f32 %v985_v15  ;;  %v988_v10 = vadd.f32 1.0, %v2341_v21  ;;  %1525 = vst.msk [vmem:[%s3900_s4 + $0xac] sm:$0xf] %vm1481_vm2, %v2047_v41  ;;  %v1170_v23 = vmul.f32 %v3067_v52, %v2759_v63  ;;  %v3234_v54 = vmul.f32 -1.442695, %v3201_v4 }
 0x120   :  { %v2345_v31 = vpop.eup %2344  ;;  %2370 = vrcp.f32 %v1017_v62  ;;  %v1020_v40 = vadd.f32 1.0, %v2343_v59  ;;  %v3237_v32 = vmul.f32 -1.442695, %v3212_v47  ;;  %1630 = vrot.lane.b32.xlu0 %v2046_v60, %s2462_s0  ;;  %v2012_v9 = vpack.c.bf16 %v1169_v11, %v1169_v11  ;;  %v3243_v63 = vld [vmem:[%s3899_s3] ss:$0 sm:$0xff]  ;;  %v3946_v11 = vld [vmem:[#allocation4_spill] sm:$0xff] }
 0x121   :  { %v2347_v29 = vpop.eup %2346  ;;  %2372 = vrcp.f32 %v988_v10  ;;  %v986_v24 = vadd.f32 1.0, %v2345_v31  ;;  %v2013_v21 = vpack.c.bf16 %v1170_v23, %v1170_v23  ;;  %v3246_v52 = vadd.f32 %v3243_v63, %v704_v26  ;;  %v623_v10 = vpop.f32.mrf.mxu1  ;;  %v3944_v31 = vld [vmem:[#allocation2_spill] sm:$0xff] }
 0x122   :  { %v2349_v34 = vpop.eup %2348  ;;  %2374 = vrcp.f32 %v1020_v40  ;;  %v1018_v49 = vadd.f32 1.0, %v2347_v29  ;;  %1632 = vrot.lane.b32.xlu1 %v2047_v41, %s2462_s0  ;;  %v3250_v62 = vadd.f32 %v3243_v63, %v702_v36  ;;  %1490 = vst.msk [vmem:[%s3900_s4 + $0x20] sm:$0xf] %vm1481_vm2, %v2012_v9  ;;  %v1201_v41 = vmul.f32 %v3025_v61, %v3944_v31  ;;  %v3945_v40 = vld [vmem:[#allocation3_spill] sm:$0xff]  ;;  %v3949_v31 = vld [vmem:[#allocation9_spill] sm:$0xff] }
 0x123   :  { %v2351_v15 = vpop.eup %2350  ;;  %2376 = vrcp.f32 %v986_v24  ;;  %v991_v44 = vadd.f32 1.0, %v2349_v34  ;;  %1491 = vst.msk [vmem:[%s3900_s4 + $0x24] sm:$0xf] %vm1481_vm2, %v2013_v21  ;;  %v1202_v26 = vmul.f32 %v3072_v35, %v3945_v40  ;;  %v3264_v24 = vmul.f32 %v2460_v45, %v2166_v56  ;;  %v3950_v40 = vld [vmem:[#allocation6_spill] sm:$0xff] }
 0x124   :  { %v2353_v1 = vpop.eup %2352  ;;  %2378 = vrcp.f32 %v1018_v49  ;;  %v989_v14 = vadd.f32 1.0, %v2351_v15  ;;  %1562 = vrot.lane.b32.xlu0 %v2012_v9, %s2462_s0  ;;  %v1175_v23 = vmul.f32 %v3081_v42, %v3946_v11  ;;  %v2044_v15 = vpack.c.bf16 %v1201_v41, %v1201_v41  ;;  %v3947_v42 = vld [vmem:[#allocation8_spill] sm:$0xff] }
 0x125   :  { %v2355_v60 = vpop.eup %2354  ;;  %2380 = vrcp.f32 %v991_v44  ;;  %v1023_v59 = vadd.f32 1.0, %v2353_v1  ;;  %v2045_v44 = vpack.c.bf16 %v1202_v26, %v1202_v26  ;;  %v3270_v35 = vmul.f32 %v2460_v45, %v623_v10 }
 0x126   :  { %v2357_v36 = vpop.eup %2356  ;;  %2382 = vrcp.f32 %v989_v14  ;;  %v992_v29 = vadd.f32 1.0, %v2355_v60  ;;  %1564 = vrot.lane.b32.xlu1 %v2013_v21, %s2462_s0  ;;  %v2018_v14 = vpack.c.bf16 %v1175_v23, %v1175_v23  ;;  %1522 = vst.msk [vmem:[%s3900_s4 + $0xa0] sm:$0xf] %vm1481_vm2, %v2044_v15  ;;  %v1176_v9 = vmul.f32 %v3121_v3, %v3947_v42  ;;  %v3948_v21 = vld [vmem:[#allocation5_spill] sm:$0xff]  ;;  %v3956_v42 = vld [vmem:[#allocation14_spill] sm:$0xff] }
 0x127   :  { %v2359_v34 = vpop.eup %2358  ;;  %2384 = vrcp.f32 %v1023_v59  ;;  %v1021_v49 = vadd.f32 1.0, %v2357_v36  ;;  %1523 = vst.msk [vmem:[%s3900_s4 + $0xa4] sm:$0xf] %vm1481_vm2, %v2045_v44  ;;  %v1207_v45 = vmul.f32 %v3098_v39, %v3948_v21  ;;  %v1208_v41 = vmul.f32 %v3141_v5, %v3949_v31  ;;  %v3958_v31 = vld [vmem:[#allocation17_spill] sm:$0xff] }
 0x128   :  { %v2361_v1 = vpop.eup %2360  ;;  %2386 = vrcp.f32 %v992_v29  ;;  %v990_v61 = vadd.f32 1.0, %v2359_v34  ;;  %1626 = vrot.lane.b32.xlu0 %v2044_v15, %s2462_s0  ;;  %1496 = vst.msk [vmem:[%s3900_s4 + $0x38] sm:$0xf] %vm1481_vm2, %v2018_v14  ;;  %v1173_v26 = vmul.f32 %v3108_v53, %v3950_v40  ;;  %v2019_v36 = vpack.c.bf16 %v1176_v9, %v1176_v9  ;;  %v3951_v29 = vld [vmem:[#allocation10_spill] sm:$0xff]  ;;  %v3952_v15 = vld [vmem:[#allocation7_spill] sm:$0xff] }
 0x129   :  { %v2363_v56 = vpop.eup %2362  ;;  %2388 = vrcp.f32 %v1021_v49  ;;  %v1024_v60 = vadd.f32 1.0, %v2361_v1  ;;  %v2050_v39 = vpack.c.bf16 %v1207_v45, %v1207_v45  ;;  %v1174_v11 = vmul.f32 %v3157_v33, %v3951_v29  ;;  %v3953_v33 = vld [vmem:[#allocation11_spill] sm:$0xff]  ;;  %v3957_v45 = vld [vmem:[#allocation16_spill] sm:$0xff] }
 0x12a   :  { %v2365_v59 = vpop.eup %2364  ;;  %2390 = vrcp.f32 %v990_v61  ;;  %v1022_v10 = vadd.f32 1.0, %v2363_v56  ;;  %1628 = vrot.lane.b32.xlu1 %v2045_v44, %s2462_s0  ;;  %v2051_v34 = vpack.c.bf16 %v1208_v41, %v1208_v41  ;;  %v3296_v49 = vpack.c.bf16 %v1173_v26, %v1173_v26  ;;  %1497 = vst.msk [vmem:[%s3900_s4 + $0x3c] sm:$0xf] %vm1481_vm2, %v2019_v36  ;;  %v3954_v61 = vld [vmem:[#allocation12_spill] sm:$0xff]  ;;  %v3960_v29 = vld [vmem:[#allocation15_spill] sm:$0xff] }
 0x12b   :  { %v2367_v3 = vpop.eup %2366  ;;  %2392 = vrcp.f32 %v1024_v60  ;;  %v1205_v5 = vmul.f32 %v3115_v22, %v3952_v15  ;;  %1528 = vst.msk [vmem:[%s3900_s4 + $0xb8] sm:$0xf] %vm1481_vm2, %v2050_v39  ;;  %v3309_v53 = vpack.c.bf16 %v1174_v11, %v1174_v11  ;;  %v1206_v44 = vmul.f32 %v3168_v2, %v3953_v33  ;;  %v3955_v2 = vld [vmem:[#allocation13_spill] sm:$0xff]  ;;  %v3962_v33 = vld [vmem:[#allocation20_spill] sm:$0xff] }
 0x12c   :  { %v2369_v23 = vpop.eup %2368  ;;  %2394 = vrcp.f32 %v1022_v10  ;;  %v1179_v22 = vmul.f32 %v2365_v59, %v3954_v61  ;;  %1574 = vrot.lane.b32.xlu0 %v2018_v14, %s2462_s0  ;;  %1529 = vst.msk [vmem:[%s3900_s4 + $0xbc] sm:$0xf] %vm1481_vm2, %v2051_v34  ;;  %1494 = vst.msk [vmem:[%s3900_s4 + $0x30] sm:$0xf] %vm1481_vm2, %v3296_v49  ;;  %v1211_v60 = vmul.f32 %v2367_v3, %v3955_v2  ;;  %v3959_v3 = vld [vmem:[#allocation18_spill] sm:$0xff] }
 0x12d   :  { %v2371_v1 = vpop.eup %2370  ;;  %2396 = vpow2.f32 %v3059_v19  ;;  %v3325_v19 = vpack.c.bf16 %v1205_v5, %v1205_v5  ;;  %v1177_v9 = vmul.f32 %v2369_v23, %v3956_v42  ;;  %1495 = vst.msk [vmem:[%s3900_s4 + $0x34] sm:$0xf] %vm1481_vm2, %v3309_v53  ;;  %v3335_v14 = vpack.c.bf16 %v1206_v44, %v1206_v44 }
 0x12e   :  { %v2373_v56 = vpop.eup %2372  ;;  %2398 = vpow2.f32 %v3062_v0  ;;  %v3337_v21 = vpack.c.bf16 %v1179_v22, %v1179_v22  ;;  %1576 = vrot.lane.b32.xlu1 %v2019_v36, %s2462_s0  ;;  %v1209_v11 = vmul.f32 %v2371_v1, %v3960_v29  ;;  %v3400_v22 = vadd.f32 %v3243_v63, %v3270_v35  ;;  %v3964_v35 = vld [vmem:[#allocation22_spill] sm:$0xff] }
 0x12f   :  { %v2375_v0 = vpop.eup %2374  ;;  %2400 = vpow2.f32 %v3102_v6  ;;  %v1180_v59 = vmul.f32 %v2373_v56, %v3957_v45  ;;  %1526 = vst.msk [vmem:[%s3900_s4 + $0xb0] sm:$0xf] %vm1481_vm2, %v3325_v19  ;;  %v3347_v6 = vpack.c.bf16 %v1211_v60, %v1211_v60  ;;  %v3350_v40 = vpack.c.bf16 %v1177_v9, %v1177_v9  ;;  %1527 = vst.msk [vmem:[%s3900_s4 + $0xb4] sm:$0xf] %vm1481_vm2, %v3335_v14  ;;  %v3963_v56 = vld [vmem:[#allocation21_spill] sm:$0xff] }
 0x130   :  { %v2377_v10 = vpop.eup %2376  ;;  %2402 = vpow2.f32 %v3161_v28  ;;  %v1212_v41 = vmul.f32 %v2375_v0, %v3958_v31  ;;  %1500 = vst.msk [vmem:[%s3900_s4 + $0x48] sm:$0xf] %vm1481_vm2, %v3337_v21  ;;  %1638 = vrot.lane.b32.xlu0 %v2050_v39, %s2462_s0  ;;  %v3394_v1 = vpack.c.bf16 %v1209_v11, %v1209_v11 }
 0x131   :  { %v2379_v26 = vpop.eup %2378  ;;  %2404 = vpow2.f32 %v3164_v30  ;;  %v3363_v28 = vpack.c.bf16 %v1180_v59, %v1180_v59  ;;  %v1178_v36 = vmul.f32 %v2377_v10, %v3959_v3  ;;  %v3370_v30 = vadd.f32 %v3243_v63, %v3264_v24  ;;  %1532 = vst.msk [vmem:[%s3900_s4 + $0xc8] sm:$0xf] %vm1481_vm2, %v3347_v6  ;;  %1498 = vst.msk [vmem:[%s3900_s4 + $0x40] sm:$0xf] %vm1481_vm2, %v3350_v40 }
 0x132   :  { %v2381_v23 = vpop.eup %2380  ;;  %2406 = vpow2.f32 %v3176_v17  ;;  %v3378_v15 = vpack.c.bf16 %v1212_v41, %v1212_v41  ;;  %v3961_v17 = vld [vmem:[#allocation19_spill] sm:$0xff]  ;;  %1640 = vrot.lane.b32.xlu1 %v2051_v34, %s2462_s0  ;;  %1530 = vst.msk [vmem:[%s3900_s4 + $0xc0] sm:$0xf] %vm1481_vm2, %v3394_v1 }
 0x133   :  { %v1210_v5 = vmul.f32 %v2379_v26, %v3961_v17  ;;  %v2383_v24 = vpop.eup %2382  ;;  %2408 = vpow2.f32 %v3179_v57  ;;  %1501 = vst.msk [vmem:[%s3900_s4 + $0x4c] sm:$0xf] %vm1481_vm2, %v3363_v28  ;;  %v3392_v39 = vpack.c.bf16 %v1178_v36, %v1178_v36  ;;  %v1183_v44 = vmul.f32 %v2381_v23, %v3962_v33 }
 0x134   :  { %v2385_v61 = vpop.eup %2384  ;;  %2410 = vpow2.f32 %v3185_v48  ;;  %1533 = vst.msk [vmem:[%s3900_s4 + $0xcc] sm:$0xf] %vm1481_vm2, %v3378_v15  ;;  %v1181_v2 = vmul.f32 %v2383_v24, %v3963_v56  ;;  %v1938_v48 = vmul.f32 -1.442695, %v3246_v52  ;;  %1570 = vrot.lane.b32.xlu0 %v3296_v49, %s2462_s0 }
 0x135   :  { %v3408_v57 = vpack.c.bf16 %v1210_v5, %v1210_v5  ;;  %v2387_v60 = vpop.eup %2386  ;;  %2412 = vpow2.f32 %v3206_v38  ;;  %1499 = vst.msk [vmem:[%s3900_s4 + $0x44] sm:$0xf] %vm1481_vm2, %v3392_v39  ;;  %v3423_v63 = vpack.c.bf16 %v1183_v44, %v1183_v44  ;;  %v1215_v34 = vmul.f32 %v2385_v61, %v3964_v35 }
 0x136   :  { %v2389_v42 = vpop.eup %2388  ;;  %2414 = vpow2.f32 %v3215_v12  ;;  %v1936_v38 = vmul.f32 -1.442695, %v3250_v62  ;;  %v1184_v9 = vmul.f32 %v2387_v60, %v2940_v55  ;;  %v3436_v0 = vpack.c.bf16 %v1181_v2, %v1181_v2  ;;  %1572 = vrot.lane.b32.xlu1 %v3309_v53, %s2462_s0 }
 0x137   :  { %1531 = vst.msk [vmem:[%s3900_s4 + $0xc4] sm:$0xf] %vm1481_vm2, %v3408_v57  ;;  %v2391_v45 = vpop.eup %2390  ;;  %2416 = vpow2.f32 %v3234_v54  ;;  %v1939_v12 = vmul.f32 -1.442695, %v3370_v30  ;;  %1504 = vst.msk [vmem:[%s3900_s4 + $0x58] sm:$0xf] %vm1481_vm2, %v3423_v63  ;;  %v3445_v49 = vpack.c.bf16 %v1215_v34, %v1215_v34  ;;  %v1213_v59 = vmul.f32 %v2389_v42, %v2949_v43 }
 0x138   :  { %v2393_v10 = vpop.eup %2392  ;;  %2418 = vpow2.f32 %v3237_v32  ;;  %v1937_v55 = vmul.f32 -1.442695, %v3400_v22  ;;  %v3452_v54 = vpack.c.bf16 %v1184_v9, %v1184_v9  ;;  %1502 = vst.msk [vmem:[%s3900_s4 + $0x50] sm:$0xf] %vm1481_vm2, %v3436_v0  ;;  %v1182_v31 = vmul.f32 %v2391_v45, %v2959_v46  ;;  %1634 = vrot.lane.b32.xlu0 %v3325_v19, %s2462_s0 }
 0x139   :  { %v2395_v41 = vpop.eup %2394  ;;  %2420 = vpow2.f32 %v1938_v48  ;;  %1536 = vst.msk [vmem:[%s3900_s4 + $0xd8] sm:$0xf] %vm1481_vm2, %v3445_v49  ;;  %v1216_v43 = vmul.f32 %v2393_v10, %v2962_v25  ;;  %v3466_v32 = vpack.c.bf16 %v1213_v59, %v1213_v59 }
 0x13a   :  { %v2397_v53 = vpop.eup %2396  ;;  %2422 = vpow2.f32 %v1936_v38  ;;  %1505 = vst.msk [vmem:[%s3900_s4 + $0x5c] sm:$0xf] %vm1481_vm2, %v3452_v54  ;;  %v3475_v46 = vpack.c.bf16 %v1182_v31, %v1182_v31  ;;  %v1214_v26 = vmul.f32 %v2395_v41, %v2988_v7  ;;  %1636 = vrot.lane.b32.xlu1 %v3335_v14, %s2462_s0 }
 0x13b   :  { %v2399_v3 = vpop.eup %2398  ;;  %v995_v36 = vadd.f32 1.0, %v2397_v53  ;;  %2424 = vpow2.f32 %v1939_v12  ;;  %v3478_v25 = vpack.c.bf16 %v1216_v43, %v1216_v43  ;;  %1534 = vst.msk [vmem:[%s3900_s4 + $0xd0] sm:$0xf] %vm1481_vm2, %v3466_v32 }
 0x13c   :  { %v2401_v19 = vpop.eup %2400  ;;  %v993_v29 = vadd.f32 1.0, %v2399_v3  ;;  %2426 = vpow2.f32 %v1937_v55  ;;  %1503 = vst.msk [vmem:[%s3900_s4 + $0x54] sm:$0xf] %vm1481_vm2, %v3475_v46  ;;  %v3492_v7 = vpack.c.bf16 %v1214_v26, %v1214_v26  ;;  %1582 = vrot.lane.b32.xlu0 %v3337_v21, %s2462_s0 }
 0x13d   :  { %v2403_v11 = vpop.eup %2402  ;;  %2428 = vrcp.f32 %v995_v36  ;;  %v996_v23 = vadd.f32 1.0, %v2401_v19  ;;  %1537 = vst.msk [vmem:[%s3900_s4 + $0xdc] sm:$0xf] %vm1481_vm2, %v3478_v25 }
 0x13e   :  { %v2405_v17 = vpop.eup %2404  ;;  %2430 = vrcp.f32 %v993_v29  ;;  %v1027_v14 = vadd.f32 1.0, %v2403_v11  ;;  %1535 = vst.msk [vmem:[%s3900_s4 + $0xd4] sm:$0xf] %vm1481_vm2, %v3492_v7  ;;  %1584 = vrot.lane.b32.xlu1 %v3363_v28, %s2462_s0 }
 0x13f   :  { %v2407_v5 = vpop.eup %2406  ;;  %2432 = vrcp.f32 %v996_v23  ;;  %v994_v24 = vadd.f32 1.0, %v2405_v17 }
 0x140   :  { %v2409_v33 = vpop.eup %2408  ;;  %2434 = vrcp.f32 %v1027_v14  ;;  %v1025_v44 = vadd.f32 1.0, %v2407_v5  ;;  %1646 = vrot.lane.b32.xlu0 %v3347_v6, %s2462_s0 }
 0x141   :  { %v2411_v61 = vpop.eup %2410  ;;  %2436 = vrcp.f32 %v994_v24  ;;  %v1028_v56 = vadd.f32 1.0, %v2409_v33 }
 0x142   :  { %v2413_v2 = vpop.eup %2412  ;;  %2438 = vrcp.f32 %v1025_v44  ;;  %v1026_v21 = vadd.f32 1.0, %v2411_v61  ;;  %1648 = vrot.lane.b32.xlu1 %v3378_v15, %s2462_s0 }
 0x143   :  { %v2415_v60 = vpop.eup %2414  ;;  %2440 = vrcp.f32 %v1028_v56  ;;  %v999_v48 = vadd.f32 1.0, %v2413_v2 }
 0x144   :  { %v2417_v35 = vpop.eup %2416  ;;  %2442 = vrcp.f32 %v1026_v21  ;;  %v997_v34 = vadd.f32 1.0, %v2415_v60  ;;  %1578 = vrot.lane.b32.xlu0 %v3350_v40, %s2462_s0 }
 0x145   :  { %v2419_v42 = vpop.eup %2418  ;;  %2444 = vrcp.f32 %v999_v48  ;;  %v1000_v28 = vadd.f32 1.0, %v2417_v35 }
 0x146   :  { %v2421_v38 = vpop.eup %2420  ;;  %2446 = vrcp.f32 %v997_v34  ;;  %v998_v9 = vadd.f32 1.0, %v2419_v42  ;;  %1580 = vrot.lane.b32.xlu1 %v3392_v39, %s2462_s0 }
 0x147   :  { %v2423_v45 = vpop.eup %2422  ;;  %2448 = vrcp.f32 %v1000_v28  ;;  %v1031_v6 = vadd.f32 1.0, %v2421_v38 }
 0x148   :  { %v2425_v12 = vpop.eup %2424  ;;  %2450 = vrcp.f32 %v998_v9  ;;  %v1029_v59 = vadd.f32 1.0, %v2423_v45  ;;  %1642 = vrot.lane.b32.xlu0 %v3394_v1, %s2462_s0 }
 0x149   :  { %v2427_v10 = vpop.eup %2426  ;;  %2452 = vrcp.f32 %v1031_v6  ;;  %v1032_v15 = vadd.f32 1.0, %v2425_v12 }
 0x14a   :  { %v2429_v55 = vpop.eup %2428  ;;  %2454 = vrcp.f32 %v1029_v59  ;;  %v1030_v31 = vadd.f32 1.0, %v2427_v10  ;;  %1644 = vrot.lane.b32.xlu1 %v3408_v57, %s2462_s0 }
 0x14b   :  { %v2431_v41 = vpop.eup %2430  ;;  %2456 = vrcp.f32 %v1032_v15  ;;  %v1187_v40 = vmul.f32 %v2429_v55, %v3004_v50 }
 0x14c   :  { %v2433_v43 = vpop.eup %2432  ;;  %2458 = vrcp.f32 %v1030_v31  ;;  %v1185_v39 = vmul.f32 %v2431_v41, %v3011_v8  ;;  %1590 = vrot.lane.b32.xlu0 %v3423_v63, %s2462_s0 }
 0x14d   :  { %v2435_v53 = vpop.eup %2434  ;;  %v3522_v26 = vpack.c.bf16 %v1187_v40, %v1187_v40  ;;  %v1188_v3 = vmul.f32 %v2433_v43, %v3065_v37 }
 0x14e   :  { %v2437_v36 = vpop.eup %2436  ;;  %v1219_v1 = vmul.f32 %v2435_v53, %v3076_v27  ;;  %v3528_v19 = vpack.c.bf16 %v1185_v39, %v1185_v39  ;;  %1592 = vrot.lane.b32.xlu1 %v3452_v54, %s2462_s0 }
 0x14f   :  { %v2439_v50 = vpop.eup %2438  ;;  %1508 = vst.msk [vmem:[%s3900_s4 + $0x68] sm:$0xf] %vm1481_vm2, %v3522_v26  ;;  %v2031_v8 = vpack.c.bf16 %v1188_v3, %v1188_v3  ;;  %v1186_v57 = vmul.f32 %v2437_v36, %v3112_v16 }
 0x150   :  { %v2441_v29 = vpop.eup %2440  ;;  %v2062_v37 = vpack.c.bf16 %v1219_v1, %v1219_v1  ;;  %1506 = vst.msk [vmem:[%s3900_s4 + $0x60] sm:$0xf] %vm1481_vm2, %v3528_v19  ;;  %v1217_v27 = vmul.f32 %v2439_v50, %v3119_v20  ;;  %1654 = vrot.lane.b32.xlu0 %v3445_v49, %s2462_s0 }
 0x151   :  { %v2443_v63 = vpop.eup %2442  ;;  %1509 = vst.msk [vmem:[%s3900_s4 + $0x6c] sm:$0xf] %vm1481_vm2, %v2031_v8  ;;  %v1220_v16 = vmul.f32 %v2441_v29, %v3125_v18  ;;  %v2029_v11 = vpack.c.bf16 %v1186_v57, %v1186_v57 }
 0x152   :  { %v2445_v23 = vpop.eup %2444  ;;  %1540 = vst.msk [vmem:[%s3900_s4 + $0xe8] sm:$0xf] %vm1481_vm2, %v2062_v37  ;;  %v2060_v54 = vpack.c.bf16 %v1217_v27, %v1217_v27  ;;  %v1218_v20 = vmul.f32 %v2443_v63, %v3128_v51  ;;  %1656 = vrot.lane.b32.xlu1 %v3478_v25, %s2462_s0 }
 0x153   :  { %v2447_v17 = vpop.eup %2446  ;;  %v2063_v14 = vpack.c.bf16 %v1220_v16, %v1220_v16  ;;  %1507 = vst.msk [vmem:[%s3900_s4 + $0x64] sm:$0xf] %vm1481_vm2, %v2029_v11  ;;  %v1191_v18 = vmul.f32 %v2445_v23, %v3172_v58 }
 0x154   :  { %v2449_v5 = vpop.eup %2448  ;;  %1538 = vst.msk [vmem:[%s3900_s4 + $0xe0] sm:$0xf] %vm1481_vm2, %v2060_v54  ;;  %v2061_v49 = vpack.c.bf16 %v1218_v20, %v1218_v20  ;;  %v1189_v51 = vmul.f32 %v2447_v17, %v3188_v13  ;;  %1586 = vrot.lane.b32.xlu0 %v3436_v0, %s2462_s0 }
 0x155   :  { %v2451_v24 = vpop.eup %2450  ;;  %1541 = vst.msk [vmem:[%s3900_s4 + $0xec] sm:$0xf] %vm1481_vm2, %v2063_v14  ;;  %v2034_v33 = vpack.c.bf16 %v1191_v18, %v1191_v18  ;;  %v1192_v58 = vmul.f32 %v2449_v5, %v3201_v4 }
 0x156   :  { %v2453_v44 = vpop.eup %2452  ;;  %1539 = vst.msk [vmem:[%s3900_s4 + $0xe4] sm:$0xf] %vm1481_vm2, %v2061_v49  ;;  %v2032_v25 = vpack.c.bf16 %v1189_v51, %v1189_v51  ;;  %v1190_v13 = vmul.f32 %v2451_v24, %v3212_v47  ;;  %1588 = vrot.lane.b32.xlu1 %v3475_v46, %s2462_s0 }
 0x157   :  { %v2455_v61 = vpop.eup %2454  ;;  %1512 = vst.msk [vmem:[%s3900_s4 + $0x78] sm:$0xf] %vm1481_vm2, %v2034_v33  ;;  %v2035_v56 = vpack.c.bf16 %v1192_v58, %v1192_v58  ;;  %v1223_v4 = vmul.f32 %v2453_v44, %v3246_v52 }
 0x158   :  { %v2457_v2 = vpop.eup %2456  ;;  %1510 = vst.msk [vmem:[%s3900_s4 + $0x70] sm:$0xf] %vm1481_vm2, %v2032_v25  ;;  %v2033_v0 = vpack.c.bf16 %v1190_v13, %v1190_v13  ;;  %v1221_v47 = vmul.f32 %v2455_v61, %v3250_v62  ;;  %1650 = vrot.lane.b32.xlu0 %v3466_v32, %s2462_s0 }
 0x159   :  { %v2459_v21 = vpop.eup %2458  ;;  %1513 = vst.msk [vmem:[%s3900_s4 + $0x7c] sm:$0xf] %vm1481_vm2, %v2035_v56  ;;  %v2066_v60 = vpack.c.bf16 %v1223_v4, %v1223_v4  ;;  %v1224_v52 = vmul.f32 %v2457_v2, %v3370_v30 }
 0x15a   :  { %1511 = vst.msk [vmem:[%s3900_s4 + $0x74] sm:$0xf] %vm1481_vm2, %v2033_v0  ;;  %v2064_v46 = vpack.c.bf16 %v1221_v47, %v1221_v47  ;;  %v1222_v62 = vmul.f32 %v2459_v21, %v3400_v22  ;;  %1652 = vrot.lane.b32.xlu1 %v3492_v7, %s2462_s0 }
 0x15b   :  { %1544 = vst.msk [vmem:[%s3900_s4 + $0xf8] sm:$0xf] %vm1481_vm2, %v2066_v60  ;;  %v2067_v48 = vpack.c.bf16 %v1224_v52, %v1224_v52 }
 0x15c   :  { %1542 = vst.msk [vmem:[%s3900_s4 + $0xf0] sm:$0xf] %vm1481_vm2, %v2064_v46  ;;  %v2065_v30 = vpack.c.bf16 %v1222_v62, %v1222_v62  ;;  %1598 = vrot.lane.b32.xlu0 %v3522_v26, %s2462_s0 }
 0x15d   :  { %1545 = vst.msk [vmem:[%s3900_s4 + $0xfc] sm:$0xf] %vm1481_vm2, %v2067_v48 }
 0x15e   :  { %1543 = vst.msk [vmem:[%s3900_s4 + $0xf4] sm:$0xf] %vm1481_vm2, %v2065_v30  ;;  %1600 = vrot.lane.b32.xlu1 %v2031_v8, %s2462_s0 }
 0x160   :  { %1662 = vrot.lane.b32.xlu0 %v2062_v37, %s2462_s0 }
 0x162   :  { %1664 = vrot.lane.b32.xlu1 %v2063_v14, %s2462_s0 }
 0x164   :  { %1594 = vrot.lane.b32.xlu0 %v3528_v19, %s2462_s0 }
 0x166   :  { %1596 = vrot.lane.b32.xlu1 %v2029_v11, %s2462_s0 }
 0x168   :  { %1658 = vrot.lane.b32.xlu0 %v2060_v54, %s2462_s0 }
 0x16a   :  { %1660 = vrot.lane.b32.xlu1 %v2061_v49, %s2462_s0 }
 0x16b   :  { %v1615_v22 = vpop.permute.xlu0 %1614 }
 0x16c   :  { %1772 = vst.msk [vmem:[%s3901_s5 + $0x88] sm:$0xf] %vm1481_vm2, %v1615_v22  ;;  %v1551_v32 = vpop.permute.xlu1 %1550  ;;  %1606 = vrot.lane.b32.xlu0 %v2034_v33, %s2462_s0 }
 0x16d   :  { %1740 = vst.msk [vmem:[%s3901_s5 + $0x8] sm:$0xf] %vm1481_vm2, %v1551_v32 }
 0x16e   :  { %1608 = vrot.lane.b32.xlu1 %v2035_v56, %s2462_s0 }
 0x16f   :  { %v1547_v7 = vpop.permute.xlu0 %1546 }
 0x170   :  { %1602 = vrot.lane.b32.xlu0 %v2032_v25, %s2462_s0  ;;  %1738 = vst.msk [vmem:[%s3901_s5] sm:$0xf] %vm1481_vm2, %v1547_v7 }
 0x172   :  { %1604 = vrot.lane.b32.xlu1 %v2033_v0, %s2462_s0  ;;  %v1553_v35 = vpop.permute.xlu1 %1552 }
 0x173   :  { %1741 = vst.msk [vmem:[%s3901_s5 + $0xc] sm:$0xf] %vm1481_vm2, %v1553_v35 }
 0x174   :  { %1666 = vrot.lane.b32.xlu0 %v2064_v46, %s2462_s0 }
 0x176   :  { %1668 = vrot.lane.b32.xlu1 %v2065_v30, %s2462_s0  ;;  %v1611_v34 = vpop.permute.xlu0 %1610 }
 0x177   :  { %1770 = vst.msk [vmem:[%s3901_s5 + $0x80] sm:$0xf] %vm1481_vm2, %v1611_v34  ;;  %v1617_v42 = vpop.permute.xlu1 %1616 }
 0x178   :  { %1670 = vrot.lane.b32.xlu0 %v2066_v60, %s2462_s0  ;;  %1773 = vst.msk [vmem:[%s3901_s5 + $0x8c] sm:$0xf] %vm1481_vm2, %v1617_v42 }
 0x17a   :  { %1672 = vrot.lane.b32.xlu1 %v2067_v48, %s2462_s0  ;;  %v1549_v28 = vpop.permute.xlu0 %1548 }
 0x17b   :  { %1739 = vst.msk [vmem:[%s3901_s5 + $0x4] sm:$0xf] %vm1481_vm2, %v1549_v28  ;;  %v1613_v38 = vpop.permute.xlu1 %1612 }
 0x17c   :  { %1771 = vst.msk [vmem:[%s3901_s5 + $0x84] sm:$0xf] %vm1481_vm2, %v1613_v38 }
 0x17e   :  { %v1559_v9 = vpop.permute.xlu0 %1558 }
 0x17f   :  { %1744 = vst.msk [vmem:[%s3901_s5 + $0x18] sm:$0xf] %vm1481_vm2, %v1559_v9  ;;  %v1561_v45 = vpop.permute.xlu1 %1560 }
 0x180   :  { %1745 = vst.msk [vmem:[%s3901_s5 + $0x1c] sm:$0xf] %vm1481_vm2, %v1561_v45 }
 0x182   :  { %v1623_v6 = vpop.permute.xlu0 %1622 }
 0x183   :  { %1776 = vst.msk [vmem:[%s3901_s5 + $0x98] sm:$0xf] %vm1481_vm2, %v1623_v6  ;;  %v1625_v12 = vpop.permute.xlu1 %1624 }
 0x184   :  { %1777 = vst.msk [vmem:[%s3901_s5 + $0x9c] sm:$0xf] %vm1481_vm2, %v1625_v12 }
 0x186   :  { %v1555_v59 = vpop.permute.xlu0 %1554 }
 0x187   :  { %1742 = vst.msk [vmem:[%s3901_s5 + $0x10] sm:$0xf] %vm1481_vm2, %v1555_v59 }
 0x188   :  { %v1557_v10 = vpop.permute.xlu1 %1556 }
 0x189   :  { %1743 = vst.msk [vmem:[%s3901_s5 + $0x14] sm:$0xf] %vm1481_vm2, %v1557_v10 }
 0x18a   :  { %v1619_v15 = vpop.permute.xlu0 %1618 }
 0x18b   :  { %1774 = vst.msk [vmem:[%s3901_s5 + $0x90] sm:$0xf] %vm1481_vm2, %v1619_v15 }
 0x18c   :  { %v1621_v55 = vpop.permute.xlu1 %1620 }
 0x18d   :  { %1775 = vst.msk [vmem:[%s3901_s5 + $0x94] sm:$0xf] %vm1481_vm2, %v1621_v55 }
 0x18e   :  { %v1567_v31 = vpop.permute.xlu0 %1566 }
 0x18f   :  { %1748 = vst.msk [vmem:[%s3901_s5 + $0x28] sm:$0xf] %vm1481_vm2, %v1567_v31 }
 0x190   :  { %v1569_v41 = vpop.permute.xlu1 %1568 }
 0x191   :  { %1749 = vst.msk [vmem:[%s3901_s5 + $0x2c] sm:$0xf] %vm1481_vm2, %v1569_v41 }
 0x192   :  { %v1631_v40 = vpop.permute.xlu0 %1630 }
 0x193   :  { %1780 = vst.msk [vmem:[%s3901_s5 + $0xa8] sm:$0xf] %vm1481_vm2, %v1631_v40 }
 0x194   :  { %v1633_v43 = vpop.permute.xlu1 %1632 }
 0x195   :  { %1781 = vst.msk [vmem:[%s3901_s5 + $0xac] sm:$0xf] %vm1481_vm2, %v1633_v43 }
 0x196   :  { %v1563_v39 = vpop.permute.xlu0 %1562 }
 0x197   :  { %1746 = vst.msk [vmem:[%s3901_s5 + $0x20] sm:$0xf] %vm1481_vm2, %v1563_v39 }
 0x198   :  { %v1565_v53 = vpop.permute.xlu1 %1564 }
 0x199   :  { %1747 = vst.msk [vmem:[%s3901_s5 + $0x24] sm:$0xf] %vm1481_vm2, %v1565_v53 }
 0x19a   :  { %v1627_v26 = vpop.permute.xlu0 %1626 }
 0x19b   :  { %1778 = vst.msk [vmem:[%s3901_s5 + $0xa0] sm:$0xf] %vm1481_vm2, %v1627_v26 }
 0x19c   :  { %v1629_v3 = vpop.permute.xlu1 %1628 }
 0x19d   :  { %1779 = vst.msk [vmem:[%s3901_s5 + $0xa4] sm:$0xf] %vm1481_vm2, %v1629_v3 }
 0x19e   :  { %v1575_v36 = vpop.permute.xlu0 %1574 }
 0x19f   :  { %1752 = vst.msk [vmem:[%s3901_s5 + $0x38] sm:$0xf] %vm1481_vm2, %v1575_v36 }
 0x1a0   :  { %v1577_v1 = vpop.permute.xlu1 %1576 }
 0x1a1   :  { %1753 = vst.msk [vmem:[%s3901_s5 + $0x3c] sm:$0xf] %vm1481_vm2, %v1577_v1 }
 0x1a2   :  { %v1639_v19 = vpop.permute.xlu0 %1638 }
 0x1a3   :  { %1784 = vst.msk [vmem:[%s3901_s5 + $0xb8] sm:$0xf] %vm1481_vm2, %v1639_v19 }
 0x1a4   :  { %v1641_v50 = vpop.permute.xlu1 %1640 }
 0x1a5   :  { %1785 = vst.msk [vmem:[%s3901_s5 + $0xbc] sm:$0xf] %vm1481_vm2, %v1641_v50 }
 0x1a6   :  { %v1571_v8 = vpop.permute.xlu0 %1570 }
 0x1a7   :  { %1750 = vst.msk [vmem:[%s3901_s5 + $0x30] sm:$0xf] %vm1481_vm2, %v1571_v8 }
 0x1a8   :  { %v1573_v57 = vpop.permute.xlu1 %1572 }
 0x1a9   :  { %1751 = vst.msk [vmem:[%s3901_s5 + $0x34] sm:$0xf] %vm1481_vm2, %v1573_v57 }
 0x1aa   :  { %v1635_v29 = vpop.permute.xlu0 %1634 }
 0x1ab   :  { %1782 = vst.msk [vmem:[%s3901_s5 + $0xb0] sm:$0xf] %vm1481_vm2, %v1635_v29 }
 0x1ac   :  { %v1637_v37 = vpop.permute.xlu1 %1636 }
 0x1ad   :  { %1783 = vst.msk [vmem:[%s3901_s5 + $0xb4] sm:$0xf] %vm1481_vm2, %v1637_v37 }
 0x1ae   :  { %v1583_v27 = vpop.permute.xlu0 %1582 }
 0x1af   :  { %1756 = vst.msk [vmem:[%s3901_s5 + $0x48] sm:$0xf] %vm1481_vm2, %v1583_v27 }
 0x1b0   :  { %v1585_v63 = vpop.permute.xlu1 %1584 }
 0x1b1   :  { %1757 = vst.msk [vmem:[%s3901_s5 + $0x4c] sm:$0xf] %vm1481_vm2, %v1585_v63 }
 0x1b2   :  { %v1647_v16 = vpop.permute.xlu0 %1646 }
 0x1b3   :  { %1788 = vst.msk [vmem:[%s3901_s5 + $0xc8] sm:$0xf] %vm1481_vm2, %v1647_v16 }
 0x1b4   :  { %v1649_v11 = vpop.permute.xlu1 %1648 }
 0x1b5   :  { %1789 = vst.msk [vmem:[%s3901_s5 + $0xcc] sm:$0xf] %vm1481_vm2, %v1649_v11 }
 0x1b6   :  { %v1579_v23 = vpop.permute.xlu0 %1578 }
 0x1b7   :  { %1754 = vst.msk [vmem:[%s3901_s5 + $0x40] sm:$0xf] %vm1481_vm2, %v1579_v23 }
 0x1b8   :  { %v1581_v54 = vpop.permute.xlu1 %1580 }
 0x1b9   :  { %1755 = vst.msk [vmem:[%s3901_s5 + $0x44] sm:$0xf] %vm1481_vm2, %v1581_v54 }
 0x1ba   :  { %v1643_v20 = vpop.permute.xlu0 %1642 }
 0x1bb   :  { %1786 = vst.msk [vmem:[%s3901_s5 + $0xc0] sm:$0xf] %vm1481_vm2, %v1643_v20 }
 0x1bc   :  { %v1645_v17 = vpop.permute.xlu1 %1644 }
 0x1bd   :  { %1787 = vst.msk [vmem:[%s3901_s5 + $0xc4] sm:$0xf] %vm1481_vm2, %v1645_v17 }
 0x1be   :  { %v1591_v14 = vpop.permute.xlu0 %1590 }
 0x1bf   :  { %1760 = vst.msk [vmem:[%s3901_s5 + $0x58] sm:$0xf] %vm1481_vm2, %v1591_v14 }
 0x1c0   :  { %v1593_v18 = vpop.permute.xlu1 %1592 }
 0x1c1   :  { %1761 = vst.msk [vmem:[%s3901_s5 + $0x5c] sm:$0xf] %vm1481_vm2, %v1593_v18 }
 0x1c2   :  { %v1655_v5 = vpop.permute.xlu0 %1654 }
 0x1c3   :  { %1792 = vst.msk [vmem:[%s3901_s5 + $0xd8] sm:$0xf] %vm1481_vm2, %v1655_v5 }
 0x1c4   :  { %v1657_v49 = vpop.permute.xlu1 %1656 }
 0x1c5   :  { %1793 = vst.msk [vmem:[%s3901_s5 + $0xdc] sm:$0xf] %vm1481_vm2, %v1657_v49 }
 0x1c6   :  { %v1587_v51 = vpop.permute.xlu0 %1586 }
 0x1c7   :  { %1758 = vst.msk [vmem:[%s3901_s5 + $0x50] sm:$0xf] %vm1481_vm2, %v1587_v51 }
 0x1c8   :  { %v1589_v24 = vpop.permute.xlu1 %1588 }
 0x1c9   :  { %1759 = vst.msk [vmem:[%s3901_s5 + $0x54] sm:$0xf] %vm1481_vm2, %v1589_v24 }
 0x1ca   :  { %v1651_v33 = vpop.permute.xlu0 %1650 }
 0x1cb   :  { %1790 = vst.msk [vmem:[%s3901_s5 + $0xd0] sm:$0xf] %vm1481_vm2, %v1651_v33 }
 0x1cc   :  { %v1653_v58 = vpop.permute.xlu1 %1652 }
 0x1cd   :  { %1791 = vst.msk [vmem:[%s3901_s5 + $0xd4] sm:$0xf] %vm1481_vm2, %v1653_v58 }
 0x1ce   :  { %v1599_v44 = vpop.permute.xlu0 %1598 }
 0x1cf   :  { %1764 = vst.msk [vmem:[%s3901_s5 + $0x68] sm:$0xf] %vm1481_vm2, %v1599_v44 }
 0x1d0   :  { %v1601_v25 = vpop.permute.xlu1 %1600 }
 0x1d1   :  { %1765 = vst.msk [vmem:[%s3901_s5 + $0x6c] sm:$0xf] %vm1481_vm2, %v1601_v25 }
 0x1d2   :  { %v1663_v13 = vpop.permute.xlu0 %1662 }
 0x1d3   :  { %1796 = vst.msk [vmem:[%s3901_s5 + $0xe8] sm:$0xf] %vm1481_vm2, %v1663_v13 }
 0x1d4   :  { %v1665_v61 = vpop.permute.xlu1 %1664 }
 0x1d5   :  { %1797 = vst.msk [vmem:[%s3901_s5 + $0xec] sm:$0xf] %vm1481_vm2, %v1665_v61 }
 0x1d6   :  { %v1595_v56 = vpop.permute.xlu0 %1594 }
 0x1d7   :  { %1762 = vst.msk [vmem:[%s3901_s5 + $0x60] sm:$0xf] %vm1481_vm2, %v1595_v56 }
 0x1d8   :  { %v1597_v4 = vpop.permute.xlu1 %1596 }
 0x1d9   :  { %1763 = vst.msk [vmem:[%s3901_s5 + $0x64] sm:$0xf] %vm1481_vm2, %v1597_v4 }
 0x1da   :  { %v1659_v2 = vpop.permute.xlu0 %1658 }
 0x1db   :  { %1794 = vst.msk [vmem:[%s3901_s5 + $0xe0] sm:$0xf] %vm1481_vm2, %v1659_v2 }
 0x1dc   :  { %v1661_v0 = vpop.permute.xlu1 %1660 }
 0x1dd   :  { %1795 = vst.msk [vmem:[%s3901_s5 + $0xe4] sm:$0xf] %vm1481_vm2, %v1661_v0 }
 0x1de   :  { %v1607_v47 = vpop.permute.xlu0 %1606 }
 0x1df   :  { %1768 = vst.msk [vmem:[%s3901_s5 + $0x78] sm:$0xf] %vm1481_vm2, %v1607_v47 }
 0x1e0   :  { %v1609_v21 = vpop.permute.xlu1 %1608 }
 0x1e1   :  { %1769 = vst.msk [vmem:[%s3901_s5 + $0x7c] sm:$0xf] %vm1481_vm2, %v1609_v21 }
 0x1e2   :  { %v1603_v60 = vpop.permute.xlu0 %1602 }
 0x1e3   :  { %1766 = vst.msk [vmem:[%s3901_s5 + $0x70] sm:$0xf] %vm1481_vm2, %v1603_v60 }
 0x1e4   :  { %v1605_v52 = vpop.permute.xlu1 %1604 }
 0x1e5   :  { %1767 = vst.msk [vmem:[%s3901_s5 + $0x74] sm:$0xf] %vm1481_vm2, %v1605_v52 }
 0x1e6   :  { %v1667_v46 = vpop.permute.xlu0 %1666 }
 0x1e7   :  { %1798 = vst.msk [vmem:[%s3901_s5 + $0xf0] sm:$0xf] %vm1481_vm2, %v1667_v46 }
 0x1e8   :  { %v1669_v62 = vpop.permute.xlu1 %1668 }
 0x1e9   :  { %1799 = vst.msk [vmem:[%s3901_s5 + $0xf4] sm:$0xf] %vm1481_vm2, %v1669_v62 }
 0x1ea   :  { %v1671_v48 = vpop.permute.xlu0 %1670 }
 0x1eb   :  { %1800 = vst.msk [vmem:[%s3901_s5 + $0xf8] sm:$0xf] %vm1481_vm2, %v1671_v48 }
 0x1ec   :  { %v1673_v30 = vpop.permute.xlu1 %1672 }
 0x1ed   :  { %1801 = vst.msk [vmem:[%s3901_s5 + $0xfc] sm:$0xf] %vm1481_vm2, %v1673_v30 }

// kernel: _lambda_.4
= control target key start
LH: loop header
LB: loop body
LE: loop exit
PB: predicated region body
PF: predicated region fallthrough
CT: control target
= control target key end

     0   :  { %s7166_s24 = smov 0   ;;  %s9757_s0 = inlined_call_operand.vmem [shape: bf16[2,256,2], index: 0, kind: input, shape index: {}]   ;;  %s9758_s1 = inlined_call_operand.vmem [shape: bf16[2,2], index: 1, kind: input, shape index: {}]   ;;  %s9759_s2 = inlined_call_operand.vmem [shape: f32[1,2], index: 2, kind: input, shape index: {}]   ;;  %s9760_s3 = inlined_call_operand.vmem [shape: f32[1,2], index: 3, kind: input, shape index: {}]   ;;  %s9761_s4 = inlined_call_operand.vmem [shape: bf16[9,2,2], index: 4, kind: input, shape index: {}]   ;;  %s9762_s5 = inlined_call_operand.vmem [shape: f32[1,2], index: 5, kind: input, shape index: {}]   ;;  %s9763_s6 = inlined_call_operand.vmem [shape: f32[1,2], index: 6, kind: input, shape index: {}]   ;;  %s9764_s7 = inlined_call_operand.vmem [shape: bf16[2,256,2], index: 7, kind: output, shape index: {}]  }
   0x1 LB: > { %s5465_s25 = sadd.s32 4294967295, %s7123_s24   ;;  %p5469_p0 = scmp.ge.s32.totalorder %s7123_s24, 1  ;;  %s7123_s24 = sphi %s7166_s24, %s17_s24  }
   0x2   : > { %p237_p1 = scmp.lt.s32.totalorder %s7123_s24, 3 }
   0x4   : > { %p238_p2 = pnand %p5469_p0, %p237_p1 }
   0x6   : > { %241 = sbr.rel (%p238_p2) target bundleno = 864 (0x360), region = 48 }
   0xb   : > { %v312_v0 = vld [vmem:[%s9758_s1] sm:$0x1]  ;;  %vm442_vm0 = vcmask 1040384   ;;  %p269_p3 = scmp.lt.s32.totalorder %s5465_s25, 1  ;;  %vm393_vm1 = vcmask 15360   ;;  %v7125_v18 = vmov 0.0   ;;  %v909_v40 = vlaneseq }
   0xc   : > { %6815 = vmatprep.subr.msk.bf16.mxu0 %vm442_vm0, %v312_v0  ;;  %v444_v1 = vsel %vm442_vm0, %v312_v0, 0  ;;  %1621 = vst.msk [vmem:[#allocation2 + $0x120] sm:$0xff] %vm393_vm1, %v7125_v18  ;;  %1584 = vst.msk [vmem:[#allocation2] sm:$0xff] %vm393_vm1, %v7125_v18  ;;  %v5540_v19 = vld [vmem:[%s9761_s4 + $0x1] sm:$0x1] }
   0xd   : > { %6332 = vmatpush3.bf16.msra.mxu0 %v444_v1  ;;  %s9999_s25 = smov (!%p269_p3, %s5465_s25), 1  ;;  %1585 = vst.msk [vmem:[#allocation2 + $0x8] sm:$0xff] %vm393_vm1, %v7125_v18  ;;  %1586 = vst.msk [vmem:[#allocation2 + $0x110] sm:$0xff] %vm393_vm1, %v7125_v18  ;;  %v1726_v20 = vld [vmem:[%s9761_s4] sm:$0x1]  ;;  %6816 = vmatprep.subr.msk.bf16.mxu1 %vm442_vm0, %v5540_v19  ;;  %v1858_v21 = vsel %vm442_vm0, %v5540_v19, 0 }
   0xe   : > { %s5904_s28 = sshll.u32 %s9999_s25, 7  ;;  %1587 = vst.msk [vmem:[#allocation2 + $0x118] sm:$0xff] %vm393_vm1, %v7125_v18  ;;  %1622 = vst.msk [vmem:[#allocation2 + $0x128] sm:$0xff] %vm393_vm1, %v7125_v18  ;;  %6817 = vmatprep.subr.msk.bf16.mxu0 %vm442_vm0, %v1726_v20  ;;  %v2150_v22 = vsel %vm442_vm0, %v1726_v20, 0  ;;  %6366 = vmatpush3.bf16.msra.mxu1 %v1858_v21  ;;  %v5605_v27 = vld [vmem:[%s9761_s4 + $0x2] sm:$0x1] }
   0xf   : > { %s7187_s8 = scalar_lea.vmem %s9757_s0, %s5904_s28  ;;  %1623 = vst.msk [vmem:[#allocation2 + $0x230] sm:$0xff] %vm393_vm1, %v7125_v18  ;;  %1624 = vst.msk [vmem:[#allocation2 + $0x238] sm:$0xff] %vm393_vm1, %v7125_v18  ;;  %6818 = vmatprep.subr.msk.bf16.mxu1 %vm442_vm0, %v5605_v27  ;;  %v2476_v28 = vsel %vm442_vm0, %v5605_v27, 0  ;;  %v7255_v29 = vld [vmem:[%s9759_s2] ss:$0 sm:$0xff]  ;;  %v7286_v50 = vshrl.u32 %v909_v40, 7  ;;  %s9510_s20 = scalar_lea.vmem %s9764_s7, %s5904_s28 }
  0x10   : > { %v6834_v2 = vld [vmem:[%s7187_s8] sm:$0xff]   ;;  %v6835_v3 = vld [vmem:[%s7187_s8 + $0x8] sm:$0xff]   ;;  %v6836_v4 = vld [vmem:[%s7187_s8 + $0x10] sm:$0xff]   ;;  %1658 = vst.msk [vmem:[#allocation2 + $0x240] sm:$0xff] %vm393_vm1, %v7125_v18 }
  0x11   : > { %6333 = vmatprep.mubr.msk.bf16.mxu0 %vm393_vm1, %v6834_v2  ;;  %v6837_v5 = vld [vmem:[%s7187_s8 + $0x18] sm:$0xff]   ;;  %v6838_v6 = vld [vmem:[%s7187_s8 + $0x20] sm:$0xff]   ;;  %v6839_v7 = vld [vmem:[%s7187_s8 + $0x28] sm:$0xff]   ;;  %1659 = vst.msk [vmem:[#allocation2 + $0x248] sm:$0xff] %vm393_vm1, %v7125_v18  ;;  %v7304_v61 = vadd.s32 8, %v7286_v50  ;;  %v7307_v62 = vadd.s32 16, %v7286_v50 }
  0x12   : > { %6334 = vmatmul.mubr.msk.bf16.vlgmr.msra.gmra.mxu0 %vm393_vm1, %v6835_v3  ;;  %v6840_v8 = vld [vmem:[%s7187_s8 + $0x30] sm:$0xff]   ;;  %v6841_v9 = vld [vmem:[%s7187_s8 + $0x38] sm:$0xff]   ;;  %v6842_v10 = vld [vmem:[%s7187_s8 + $0x40] sm:$0xff]   ;;  %1660 = vst.msk [vmem:[#allocation2 + $0x350] sm:$0xff] %vm393_vm1, %v7125_v18  ;;  %v7315_v3 = vadd.s32 24, %v7286_v50  ;;  %vm1390_vm2 = vcmp.lt.s32.totalorder %v7286_v50, 1 }
  0x13   : > { %6337 = vmatprep.mubr.msk.bf16.mxu0 %vm393_vm1, %v6836_v4  ;;  %v6843_v11 = vld [vmem:[%s7187_s8 + $0x48] sm:$0xff]   ;;  %v6844_v12 = vld [vmem:[%s7187_s8 + $0x50] sm:$0xff]   ;;  %v6845_v13 = vld [vmem:[%s7187_s8 + $0x58] sm:$0xff]   ;;  %1661 = vst.msk [vmem:[#allocation2 + $0x358] sm:$0xff] %vm393_vm1, %v7125_v18  ;;  %6416 = vmatpush3.bf16.msra.mxu0 %v2150_v22  ;;  %v7318_v4 = vadd.s32 32, %v7286_v50  ;;  %vm1519_vm3 = vcmp.lt.s32.totalorder %v7286_v50, 7 }
  0x14   : > { %v6846_v14 = vld [vmem:[%s7187_s8 + $0x60] sm:$0xff]   ;;  %v6847_v15 = vld [vmem:[%s7187_s8 + $0x68] sm:$0xff]   ;;  %v6848_v16 = vld [vmem:[%s7187_s8 + $0x70] sm:$0xff]   ;;  %v967_v20 = vand.u32 15, %v7315_v3 }
  0x15   : > { %v6849_v17 = vld [vmem:[%s7187_s8 + $0x78] sm:$0xff]   ;;  %v1727_v23 = vld [vmem:[#allocation2 + $0x120] sm:$0xff]  ;;  %v1728_v25 = vld [vmem:[#allocation2 + $0x128] sm:$0xff]  ;;  %v974_v21 = vand.u32 15, %v7318_v4 }
  0x16   : > { %v1694_v24 = vld [vmem:[#allocation2] sm:$0xff]  ;;  %6367 = vmatprep.mubr.msk.f32.mxu1 %vm393_vm1, %v1727_v23  ;;  %v1695_v26 = vld [vmem:[#allocation2 + $0x8] sm:$0xff]  ;;  %vm7480_vm7 = vcmp.eq.s32.totalorder %v967_v20, 15 }
  0x17   : > { %6368 = vmatmul.mubr.msk.f32.vlgmr.msra.gmra.mxu1 %vm393_vm1, %v1728_v25  ;;  %v7260_v31 = vld [vmem:[%s9760_s3] ss:$0 sm:$0xff]  ;;  %v5638_v42 = vld [vmem:[%s9761_s4 + $0x3] sm:$0x1]  ;;  %v5671_v53 = vld [vmem:[%s9761_s4 + $0x4] sm:$0x1] }
  0x18   : > { %6466 = vmatpush3.bf16.msra.mxu1 %v2476_v28  ;;  %6819 = vmatprep.subr.msk.bf16.mxu0 %vm442_vm0, %v5638_v42  ;;  %v2834_v52 = vsel %vm442_vm0, %v5638_v42, 0  ;;  %vm7474_vm6 = vcmp.eq.s32.totalorder %v974_v21, 0 }
  0x19   : > { %6820 = vmatprep.subr.msk.bf16.mxu1 %vm442_vm0, %v5671_v53 }
  0x1a   : > { %6338 = vmatmul.mubr.msk.bf16.gmra.mxu0 %vm393_vm1, %v6837_v5  ;;  %v7321_v5 = vadd.s32 40, %v7286_v50 }
  0x1b   : > { %6341 = vmatprep.mubr.msk.bf16.mxu0 %vm393_vm1, %v6838_v6  ;;  %v7324_v6 = vadd.s32 48, %v7286_v50 }
  0x1c   : > { %v981_v22 = vand.u32 15, %v7321_v5 }
  0x1d   : > { %v988_v23 = vand.u32 15, %v7324_v6 }
  0x1e   : > { %vm7512_vm9 = vcmp.eq.s32.totalorder %v981_v22, 15 }
  0x1f   : > { %vm7506_vm8 = vcmp.eq.s32.totalorder %v988_v23, 0 }
  0x22   : > { %6342 = vmatmul.mubr.msk.bf16.gmra.mxu0 %vm393_vm1, %v6839_v7 }
  0x23   : > { %6345 = vmatprep.mubr.msk.bf16.mxu0 %vm393_vm1, %v6840_v8 }
  0x2a   : > { %6346 = vmatmul.mubr.msk.bf16.gmra.mxu0 %vm393_vm1, %v6841_v9 }
  0x2b   : > { %6349 = vmatprep.mubr.msk.bf16.mxu0 %vm393_vm1, %v6842_v10 }
  0x32   : > { %6350 = vmatmul.mubr.msk.bf16.gmra.mxu0 %vm393_vm1, %v6843_v11  ;;  %v953_v11 = vand.u32 15, %v7304_v61 }
  0x33   : > { %6353 = vmatprep.mubr.msk.bf16.mxu0 %vm393_vm1, %v6844_v12  ;;  %v960_v12 = vand.u32 15, %v7307_v62 }
  0x34   : > { %vm7434_vm5 = vcmp.eq.s32.totalorder %v953_v11, 15 }
  0x35   : > { %vm7428_vm4 = vcmp.eq.s32.totalorder %v960_v12, 0 }
  0x3a   : > { %6354 = vmatmul.mubr.msk.bf16.gmra.mxu0 %vm393_vm1, %v6845_v13 }
  0x3b   : > { %6357 = vmatprep.mubr.msk.bf16.mxu0 %vm393_vm1, %v6846_v14  ;;  %v7334_v14 = vadd.s32 56, %v7286_v50 }
  0x42   : > { %6358 = vmatmul.mubr.msk.bf16.gmra.mxu0 %vm393_vm1, %v6847_v15  ;;  %v7337_v15 = vadd.s32 64, %v7286_v50 }
  0x43   : > { %6361 = vmatprep.mubr.msk.bf16.mxu0 %vm393_vm1, %v6848_v16 }
  0x4a   : > { %6362 = vmatmul.mubr.msk.bf16.gmra.mxu0 %vm393_vm1, %v6849_v17 }
  0x4b   : > { %6417 = vmatprep.mubr.msk.f32.mxu0 %vm393_vm1, %v1694_v24 }
  0x52   : > { %6418 = vmatmul.mubr.msk.f32.vlgmr.msra.gmra.mxu0 %vm393_vm1, %v1695_v26 }
  0x53   : > { %6516 = vmatpush3.bf16.msra.mxu0 %v2834_v52 }
  0xd2   : > { %v6335_v30 = vpop.f32.mrf.mxu0 }
  0xd3   : > { %v616_v32 = vmul.f32 %v6335_v30, %v7255_v29  ;;  %v995_v30 = vand.u32 15, %v7334_v14 }
  0xd4   : > { %v480_v33 = vpop.f32.mrf.mxu0 }
  0xd5   : > { %v7264_v34 = vadd.f32 %v7260_v31, %v616_v32  ;;  %v614_v35 = vmul.f32 %v7255_v29, %v480_v33  ;;  %v1002_v32 = vand.u32 15, %v7337_v15  ;;  %vm7568_vm11 = vcmp.eq.s32.totalorder %v995_v30, 15 }
  0xd6   : > { %v6336_v36 = vpop.f32.mrf.mxu0 }
  0xd7   : > { %v5510_v37 = vmul.f32 -1.442695, %v7264_v34  ;;  %v7269_v38 = vadd.f32 %v7260_v31, %v614_v35  ;;  %v617_v39 = vmul.f32 %v6336_v36, %v7255_v29  ;;  %v7356_v36 = vadd.s32 72, %v7286_v50 }
  0xd8   : > { %v483_v41 = vpop.f32.mrf.mxu0  ;;  %vm7562_vm10 = vcmp.eq.s32.totalorder %v1002_v32, 0 }
  0xd9   : > { %6850 = vpow2.f32 %v5510_v37  ;;  %v5508_v43 = vmul.f32 -1.442695, %v7269_v38  ;;  %v7277_v44 = vadd.f32 %v7260_v31, %v617_v39  ;;  %v615_v45 = vmul.f32 %v7255_v29, %v483_v41 }
  0xda   : > { %v6339_v46 = vpop.f32.mrf.mxu0 }
  0xdb   : > { %6852 = vpow2.f32 %v5508_v43  ;;  %v5511_v47 = vmul.f32 -1.442695, %v7277_v44  ;;  %v7283_v48 = vadd.f32 %v7260_v31, %v615_v45  ;;  %v620_v49 = vmul.f32 %v6339_v46, %v7255_v29 }
  0xdc   : > { %v496_v51 = vpop.f32.mrf.mxu0  ;;  %v7364_v43 = vadd.s32 80, %v7286_v50  ;;  %v7367_v46 = vadd.s32 88, %v7286_v50 }
  0xdd   : > { %6854 = vpow2.f32 %v5511_v47  ;;  %v5509_v54 = vmul.f32 -1.442695, %v7283_v48  ;;  %v7294_v55 = vadd.f32 %v7260_v31, %v620_v49  ;;  %v618_v56 = vmul.f32 %v7255_v29, %v496_v51 }
  0xde   : > { %v6340_v57 = vpop.f32.mrf.mxu0 }
  0xdf   : > { %6856 = vpow2.f32 %v5509_v54  ;;  %v5514_v58 = vmul.f32 -1.442695, %v7294_v55  ;;  %v7300_v59 = vadd.f32 %v7260_v31, %v618_v56  ;;  %v621_v60 = vmul.f32 %v6340_v57, %v7255_v29 }
  0xe0   : > { %v499_v63 = vpop.f32.mrf.mxu0  ;;  %v7376_v57 = vadd.s32 96, %v7286_v50 }
  0xe1   : > { %6858 = vpow2.f32 %v5514_v58  ;;  %v5512_v0 = vmul.f32 -1.442695, %v7300_v59  ;;  %v7311_v1 = vadd.f32 %v7260_v31, %v621_v60  ;;  %v619_v2 = vmul.f32 %v7255_v29, %v499_v63 }
  0xe2   : > { %v6343_v7 = vpop.f32.mrf.mxu0 }
  0xe3   : > { %6860 = vpow2.f32 %v5512_v0  ;;  %v5515_v8 = vmul.f32 -1.442695, %v7311_v1  ;;  %v7328_v9 = vadd.f32 %v7260_v31, %v619_v2  ;;  %v624_v10 = vmul.f32 %v6343_v7, %v7255_v29 }
  0xe4   : > { %v512_v13 = vpop.f32.mrf.mxu0 }
  0xe5   : > { %6862 = vpow2.f32 %v5515_v8  ;;  %v5513_v16 = vmul.f32 -1.442695, %v7328_v9  ;;  %v7341_v17 = vadd.f32 %v7260_v31, %v624_v10  ;;  %v622_v18 = vmul.f32 %v7255_v29, %v512_v13 }
  0xe6   : > { %v6851_v19 = vpop.eup %6850  ;;  %v6344_v24 = vpop.f32.mrf.mxu0 }
  0xe7   : > { %v783_v25 = vadd.f32 1.0, %v6851_v19  ;;  %6864 = vpow2.f32 %v5513_v16  ;;  %v5518_v26 = vmul.f32 -1.442695, %v7341_v17  ;;  %v7350_v27 = vadd.f32 %v7260_v31, %v622_v18 }
  0xe8   : > { %v6853_v28 = vpop.eup %6852  ;;  %v625_v33 = vmul.f32 %v6344_v24, %v7255_v29  ;;  %v515_v35 = vpop.f32.mrf.mxu0 }
  0xe9   : > { %6866 = vrcp.f32 %v783_v25  ;;  %v781_v37 = vadd.f32 1.0, %v6853_v28  ;;  %v5516_v39 = vmul.f32 -1.442695, %v7350_v27  ;;  %v623_v40 = vmul.f32 %v7255_v29, %v515_v35 }
  0xea   : > { %v6855_v41 = vpop.eup %6854  ;;  %6868 = vpow2.f32 %v5518_v26  ;;  %v7361_v42 = vadd.f32 %v7260_v31, %v625_v33  ;;  %v6347_v45 = vpop.f32.mrf.mxu0  ;;  %v7392_v28 = vadd.s32 104, %v7286_v50 }
  0xeb   : > { %6870 = vrcp.f32 %v781_v37  ;;  %v784_v47 = vadd.f32 1.0, %v6855_v41  ;;  %v7370_v49 = vadd.f32 %v7260_v31, %v623_v40  ;;  %v628_v51 = vmul.f32 %v6347_v45, %v7255_v29 }
  0xec   : > { %v6857_v52 = vpop.eup %6856  ;;  %6872 = vpow2.f32 %v5516_v39  ;;  %v5519_v53 = vmul.f32 -1.442695, %v7361_v42  ;;  %v528_v56 = vpop.f32.mrf.mxu0  ;;  %v7400_v41 = vadd.s32 112, %v7286_v50 }
  0xed   : > { %6874 = vrcp.f32 %v784_v47  ;;  %v782_v58 = vadd.f32 1.0, %v6857_v52  ;;  %v5517_v60 = vmul.f32 -1.442695, %v7370_v49  ;;  %v7380_v63 = vadd.f32 %v7260_v31, %v628_v51 }
  0xee   : > { %v6859_v0 = vpop.eup %6858  ;;  %6876 = vpow2.f32 %v5519_v53  ;;  %v626_v7 = vmul.f32 %v7255_v29, %v528_v56  ;;  %v6348_v10 = vpop.f32.mrf.mxu0  ;;  %v7403_v47 = vadd.s32 120, %v7286_v50 }
  0xef   : > { %6878 = vrcp.f32 %v782_v58  ;;  %v787_v13 = vadd.f32 1.0, %v6859_v0  ;;  %v5522_v16 = vmul.f32 -1.442695, %v7380_v63  ;;  %v629_v18 = vmul.f32 %v6348_v10, %v7255_v29 }
  0xf0   : > { %v6861_v19 = vpop.eup %6860  ;;  %6880 = vpow2.f32 %v5517_v60  ;;  %v7388_v24 = vadd.f32 %v7260_v31, %v626_v7  ;;  %v531_v26 = vpop.f32.mrf.mxu0  ;;  %v7414_v7 = vadd.s32 128, %v7286_v50 }
  0xf1   : > { %6882 = vrcp.f32 %v787_v13  ;;  %v785_v33 = vadd.f32 1.0, %v6861_v19  ;;  %v7395_v35 = vadd.f32 %v7260_v31, %v629_v18  ;;  %v627_v37 = vmul.f32 %v7255_v29, %v531_v26 }
  0xf2   : > { %v6863_v39 = vpop.eup %6862  ;;  %6884 = vpow2.f32 %v5522_v16  ;;  %v5520_v40 = vmul.f32 -1.442695, %v7388_v24  ;;  %v6351_v45 = vpop.f32.mrf.mxu0 }
  0xf3   : > { %6886 = vrcp.f32 %v785_v33  ;;  %v788_v51 = vadd.f32 1.0, %v6863_v39  ;;  %v5523_v52 = vmul.f32 -1.442695, %v7395_v35  ;;  %v7407_v53 = vadd.f32 %v7260_v31, %v627_v37 }
  0xf4   : > { %v6865_v56 = vpop.eup %6864  ;;  %6888 = vpow2.f32 %v5520_v40  ;;  %v632_v60 = vmul.f32 %v6351_v45, %v7255_v29  ;;  %v544_v0 = vpop.f32.mrf.mxu0 }
  0xf5   : > { %6890 = vrcp.f32 %v788_v51  ;;  %v786_v10 = vadd.f32 1.0, %v6865_v56  ;;  %v5521_v13 = vmul.f32 -1.442695, %v7407_v53  ;;  %v630_v16 = vmul.f32 %v7255_v29, %v544_v0 }
  0xf6   : > { %v6867_v18 = vpop.eup %6866  ;;  %6892 = vpow2.f32 %v5523_v52  ;;  %v7420_v26 = vadd.f32 %v7260_v31, %v632_v60  ;;  %v6352_v37 = vpop.f32.mrf.mxu0 }
  0xf7   : > { %v6869_v39 = vpop.eup %6868  ;;  %v7424_v40 = vmul.f32 %v6867_v18, %v7264_v34  ;;  %6894 = vrcp.f32 %v786_v10  ;;  %v7439_v52 = vadd.f32 %v7260_v31, %v630_v16  ;;  %v633_v56 = vmul.f32 %v6352_v37, %v7255_v29 }
  0xf8   : > { %v6871_v34 = vpop.eup %6870  ;;  %v791_v60 = vadd.f32 1.0, %v6869_v39  ;;  %6896 = vpow2.f32 %v5521_v13  ;;  %v5526_v62 = vmul.f32 -1.442695, %v7420_v26  ;;  %v547_v0 = vpop.f32.mrf.mxu0 }
  0xf9   : > { %v6873_v18 = vpop.eup %6872  ;;  %v1360_v61 = vrot.slane %v7424_v40, 7  ;;  %v1489_v11 = vrot.slane %v7424_v40, 1  ;;  %1627 = vst.msk [vmem:[#allocation2 + $0x140] sm:$0xff] %vm393_vm1, %v7424_v40  ;;  %v7449_v10 = vmul.f32 %v6871_v34, %v7269_v38  ;;  %v5524_v16 = vmul.f32 -1.442695, %v7439_v52 }
  0xfa   : > { %v6875_v37 = vpop.eup %6874  ;;  %6898 = vrcp.f32 %v791_v60  ;;  %v789_v13 = vadd.f32 1.0, %v6873_v18  ;;  %v7453_v39 = vadd.f32 %v7260_v31, %v633_v56  ;;  %v631_v33 = vmul.f32 %v7255_v29, %v547_v0  ;;  %v6355_v12 = vpop.f32.mrf.mxu0 }
  0xfb   : > { %v6877_v58 = vpop.eup %6876  ;;  %v1358_v19 = vrot.slane %v7449_v10, 7  ;;  %v1487_v8 = vrot.slane %v7449_v10, 1  ;;  %1625 = vst.msk [vmem:[#allocation2 + $0x130] sm:$0xff] %vm393_vm1, %v7449_v10  ;;  %v7461_v38 = vmul.f32 %v6875_v37, %v7277_v44  ;;  %6900 = vpow2.f32 %v5526_v62 }
  0xfc   : > { %v6879_v40 = vpop.eup %6878  ;;  %6902 = vrcp.f32 %v789_v13  ;;  %v792_v34 = vadd.f32 1.0, %v6877_v58  ;;  %v5527_v56 = vmul.f32 -1.442695, %v7453_v39  ;;  %v7465_v60 = vadd.f32 %v7260_v31, %v631_v33  ;;  %v560_v0 = vpop.f32.mrf.mxu0 }
  0xfd   : > { %v6881_v18 = vpop.eup %6880  ;;  %v1361_v25 = vrot.slane %v7461_v38, 7  ;;  %v1490_v54 = vrot.slane %v7461_v38, 1  ;;  %1628 = vst.msk [vmem:[#allocation2 + $0x148] sm:$0xff] %vm393_vm1, %v7461_v38  ;;  %v878_v44 = vmul.f32 %v6879_v40, %v7283_v48  ;;  %6904 = vpow2.f32 %v5524_v16 }
  0xfe   : > { %v6883_v62 = vpop.eup %6882  ;;  %6906 = vrcp.f32 %v792_v34  ;;  %v790_v37 = vadd.f32 1.0, %v6881_v18  ;;  %v7485_v13 = vmul.f32 -1.442695, %v7465_v60  ;;  %v636_v48 = vmul.f32 %v6355_v12, %v7255_v29  ;;  %v7488_v4 = vpop.f32.mrf.mxu0 }
  0xff   : > { %v6885_v21 = vpop.eup %6884  ;;  %v1419_v3 = vsel %vm1390_vm2, %v1360_v61, %v1361_v25  ;;  %v1548_v20 = vsel %vm1519_vm3, %v1489_v11, %v1490_v54  ;;  %v1359_v16 = vrot.slane %v878_v44, 7  ;;  %v1488_v40 = vrot.slane %v878_v44, 1  ;;  %1626 = vst.msk [vmem:[#allocation2 + $0x138] sm:$0xff] %vm393_vm1, %v878_v44 }
 0x100   : > { %v6887_v34 = vpop.eup %6886  ;;  %1591 = vst.msk [vmem:[#allocation2 + $0x28] sm:$0xff] %vm393_vm1, %v1419_v3  ;;  %1664 = vst.msk [vmem:[#allocation2 + $0x260] sm:$0xff] %vm393_vm1, %v1548_v20  ;;  %v7502_v12 = vmul.f32 %v6883_v62, %v7294_v55  ;;  %6908 = vrcp.f32 %v790_v37  ;;  %v795_v44 = vadd.f32 1.0, %v6885_v21  ;;  %v7517_v3 = vadd.f32 %v7260_v31, %v636_v48  ;;  %v7531_v23 = vpop.f32.mrf.mxu0  ;;  %v1731_v32 = vld [vmem:[#allocation2 + $0x140] sm:$0xff] }
 0x101   : > { %v6889_v20 = vpop.eup %6888  ;;  %v1420_v55 = vsel %vm1390_vm2, %v1359_v16, %v1360_v61  ;;  %v1421_v6 = vsel %vm1390_vm2, %v1358_v19, %v1359_v16  ;;  %v1549_v5 = vsel %vm1519_vm3, %v1488_v40, %v1489_v11  ;;  %v1550_v22 = vsel %vm1519_vm3, %v1487_v8, %v1488_v40 }
 0x102   : > { %v6891_v62 = vpop.eup %6890  ;;  %v1425_v37 = vsel %vm7428_vm4, 0.0, %v1420_v55  ;;  %v1553_v61 = vsel %vm7434_vm5, 0.0, %v1549_v5  ;;  %1589 = vst.msk [vmem:[#allocation2 + $0x18] sm:$0xff] %vm393_vm1, %v1421_v6  ;;  %1662 = vst.msk [vmem:[#allocation2 + $0x250] sm:$0xff] %vm393_vm1, %v1550_v22  ;;  %v1364_v11 = vrot.slane %v7502_v12, 7  ;;  %v1493_v48 = vrot.slane %v7502_v12, 1 }
 0x103   : > { %1631 = vst.msk [vmem:[#allocation2 + $0x160] sm:$0xff] %vm393_vm1, %v7502_v12  ;;  %v1729_v21 = vld [vmem:[#allocation2 + $0x130] sm:$0xff]  ;;  %v6893_v16 = vpop.eup %6892  ;;  %1590 = vst.msk [vmem:[#allocation2 + $0x20] sm:$0xff] %vm393_vm1, %v1425_v37  ;;  %v881_v45 = vmul.f32 %v6887_v34, %v7300_v59  ;;  %v7547_v51 = vmul.f32 %v6891_v62, %v7311_v1  ;;  %6910 = vrcp.f32 %v795_v44  ;;  %v793_v40 = vadd.f32 1.0, %v6889_v20  ;;  %v6359_v34 = vpop.f32.mrf.mxu0 }
 0x104   : > { %1663 = vst.msk [vmem:[#allocation2 + $0x258] sm:$0xff] %vm393_vm1, %v1553_v61  ;;  %6370 = vmatprep.mubr.msk.f32.mxu1 %vm393_vm1, %v1729_v21  ;;  %v6895_v55 = vpop.eup %6894  ;;  %v796_v6 = vadd.f32 1.0, %v6893_v16  ;;  %6912 = vpow2.f32 %v5527_v56  ;;  %v7551_v12 = vmul.f32 -1.442695, %v7517_v3  ;;  %v634_v5 = vmul.f32 %v7255_v29, %v560_v0 }
 0x105   : > { %v6897_v22 = vpop.eup %6896  ;;  %v1362_v37 = vrot.slane %v881_v45, 7  ;;  %v1491_v61 = vrot.slane %v881_v45, 1  ;;  %1629 = vst.msk [vmem:[#allocation2 + $0x150] sm:$0xff] %vm393_vm1, %v881_v45  ;;  %v1365_v59 = vrot.slane %v7547_v51, 7  ;;  %v1494_v1 = vrot.slane %v7547_v51, 1  ;;  %1632 = vst.msk [vmem:[#allocation2 + $0x168] sm:$0xff] %vm393_vm1, %v7547_v51 }
 0x106   : > { %v882_v56 = vmul.f32 %v6895_v55, %v7328_v9  ;;  %6914 = vrcp.f32 %v793_v40  ;;  %v794_v20 = vadd.f32 1.0, %v6897_v22  ;;  %v7573_v62 = vadd.f32 %v7260_v31, %v634_v5  ;;  %v1730_v21 = vld [vmem:[#allocation2 + $0x138] sm:$0xff] }
 0x107   : > { %v6899_v16 = vpop.eup %6898  ;;  %v1418_v9 = vsel %vm1390_vm2, %v1361_v25, %v1362_v37  ;;  %v1547_v14 = vsel %vm1519_vm3, %v1490_v54, %v1491_v61  ;;  %v1415_v15 = vsel %vm1390_vm2, %v1364_v11, %v1365_v59  ;;  %v1544_v30 = vsel %vm1519_vm3, %v1493_v48, %v1494_v1  ;;  %6371 = vmatmul.mubr.msk.f32.gmra.mxu1 %vm393_vm1, %v1730_v21 }
 0x108   : > { %v6901_v45 = vpop.eup %6900  ;;  %v1427_v25 = vsel %vm7474_vm6, 0.0, %v1418_v9  ;;  %v1555_v54 = vsel %vm7480_vm7, 0.0, %v1547_v14  ;;  %1595 = vst.msk [vmem:[#allocation2 + $0x48] sm:$0xff] %vm393_vm1, %v1415_v15  ;;  %1668 = vst.msk [vmem:[#allocation2 + $0x280] sm:$0xff] %vm393_vm1, %v1544_v30  ;;  %v1363_v38 = vrot.slane %v882_v56, 7  ;;  %v1492_v40 = vrot.slane %v882_v56, 1  ;;  %6373 = vmatprep.mubr.msk.f32.mxu1 %vm393_vm1, %v1731_v32  ;;  %v7620_v14 = vpop.f32.mrf.mxu0 }
 0x109   : > { %1630 = vst.msk [vmem:[#allocation2 + $0x158] sm:$0xff] %vm393_vm1, %v882_v56  ;;  %v6903_v55 = vpop.eup %6902  ;;  %1592 = vst.msk [vmem:[#allocation2 + $0x30] sm:$0xff] %vm393_vm1, %v1427_v25  ;;  %v7603_v58 = vmul.f32 %v6899_v16, %v7341_v17  ;;  %v9822_v33 = vand.u32 15, %v7364_v43  ;;  %v9825_v22 = vand.u32 15, %v7356_v36  ;;  %6916 = vrcp.f32 %v796_v6  ;;  %v1732_v6 = vld [vmem:[#allocation2 + $0x148] sm:$0xff] }
 0x10a   : > { %1665 = vst.msk [vmem:[#allocation2 + $0x268] sm:$0xff] %vm393_vm1, %v1555_v54  ;;  %v799_v21 = vadd.f32 1.0, %v6901_v45  ;;  %v7618_v9 = vmul.f32 -1.442695, %v7573_v62  ;;  %v6905_v17 = vpop.eup %6904  ;;  %v1416_v43 = vsel %vm1390_vm2, %v1363_v38, %v1364_v11  ;;  %v1417_v16 = vsel %vm1390_vm2, %v1362_v37, %v1363_v38 }
 0x10b   : > { %vm7607_vm12 = vcmp.eq.s32.totalorder %v9822_v33, 0  ;;  %vm7613_vm13 = vcmp.eq.s32.totalorder %v9825_v22, 15  ;;  %v1545_v36 = vsel %vm1519_vm3, %v1492_v40, %v1493_v48  ;;  %v1546_v15 = vsel %vm1519_vm3, %v1491_v61, %v1492_v40  ;;  %v6907_v30 = vpop.eup %6906  ;;  %1593 = vst.msk [vmem:[#allocation2 + $0x38] sm:$0xff] %vm393_vm1, %v1417_v16  ;;  %1635 = vst.msk [vmem:[#allocation2 + $0x180] sm:$0xff] %vm393_vm1, %v7603_v58  ;;  %6374 = vmatmul.mubr.msk.f32.gmra.mxu1 %vm393_vm1, %v1732_v6 }
 0x10c   : > { %v1429_v32 = vsel %vm7506_vm8, 0.0, %v1416_v43  ;;  %v1557_v45 = vsel %vm7512_vm9, 0.0, %v1545_v36  ;;  %1666 = vst.msk [vmem:[#allocation2 + $0x270] sm:$0xff] %vm393_vm1, %v1546_v15  ;;  %v1368_v11 = vrot.slane %v7603_v58, 7  ;;  %v1497_v37 = vrot.slane %v7603_v58, 1  ;;  %v1733_v61 = vld [vmem:[#allocation2 + $0x150] sm:$0xff]  ;;  %v7652_v58 = vpop.f32.mrf.mxu0 }
 0x10d   : > { %1594 = vst.msk [vmem:[#allocation2 + $0x40] sm:$0xff] %vm393_vm1, %v1429_v32  ;;  %1667 = vst.msk [vmem:[#allocation2 + $0x278] sm:$0xff] %vm393_vm1, %v1557_v45  ;;  %v885_v2 = vmul.f32 %v6903_v55, %v7350_v27  ;;  %v7645_v18 = vmul.f32 %v6907_v30, %v7361_v42  ;;  %6918 = vrcp.f32 %v794_v20  ;;  %v797_v48 = vadd.f32 1.0, %v6905_v17  ;;  %v6909_v25 = vpop.eup %6908  ;;  %6376 = vmatprep.mubr.msk.f32.mxu1 %vm393_vm1, %v1733_v61  ;;  %v1735_v15 = vld [vmem:[#allocation2 + $0x160] sm:$0xff] }
 0x10e   : > { %6920 = vrcp.f32 %v799_v21  ;;  %v637_v54 = vmul.f32 %v7488_v4, %v7255_v29  ;;  %v635_v38 = vmul.f32 %v7255_v29, %v7531_v23  ;;  %v640_v40 = vmul.f32 %v6359_v34, %v7255_v29  ;;  %v579_v32 = vpop.f32.mrf.mxu0 }
 0x10f   : > { %v1366_v27 = vrot.slane %v885_v2, 7  ;;  %v1495_v42 = vrot.slane %v885_v2, 1  ;;  %1633 = vst.msk [vmem:[#allocation2 + $0x170] sm:$0xff] %vm393_vm1, %v885_v2  ;;  %v1369_v20 = vrot.slane %v7645_v18, 7  ;;  %v1498_v55 = vrot.slane %v7645_v18, 1  ;;  %1636 = vst.msk [vmem:[#allocation2 + $0x188] sm:$0xff] %vm393_vm1, %v7645_v18 }
 0x110   : > { %v886_v4 = vmul.f32 %v6909_v25, %v7370_v49  ;;  %v9828_v23 = vand.u32 15, %v7376_v57  ;;  %v9831_v33 = vand.u32 15, %v7367_v46  ;;  %6922 = vrcp.f32 %v797_v48  ;;  %v1734_v49 = vld [vmem:[#allocation2 + $0x158] sm:$0xff]  ;;  %v6911_v43 = vpop.eup %6910 }
 0x111   : > { %v7674_v21 = vadd.f32 %v7260_v31, %v637_v54  ;;  %v7677_v17 = vadd.f32 %v7260_v31, %v635_v38  ;;  %v1414_v57 = vsel %vm1390_vm2, %v1365_v59, %v1366_v27  ;;  %v1543_v46 = vsel %vm1519_vm3, %v1494_v1, %v1495_v42  ;;  %6377 = vmatmul.mubr.msk.f32.gmra.mxu1 %vm393_vm1, %v1734_v49  ;;  %v6913_v6 = vpop.eup %6912 }
 0x112   : > { %vm7663_vm14 = vcmp.eq.s32.totalorder %v9828_v23, 0  ;;  %vm7669_vm15 = vcmp.eq.s32.totalorder %v9831_v33, 15  ;;  %v1411_v16 = vsel %vm1390_vm2, %v1368_v11, %v1369_v20  ;;  %v1540_v36 = vsel %vm1519_vm3, %v1497_v37, %v1498_v55  ;;  %1634 = vst.msk [vmem:[#allocation2 + $0x178] sm:$0xff] %vm393_vm1, %v886_v4  ;;  %6379 = vmatprep.mubr.msk.f32.mxu1 %vm393_vm1, %v1735_v15 }
 0x113   : > { %v1431_v51 = vsel %vm7562_vm10, 0.0, %v1414_v57  ;;  %v1559_v59 = vsel %vm7568_vm11, 0.0, %v1543_v46  ;;  %1599 = vst.msk [vmem:[#allocation2 + $0x68] sm:$0xff] %vm393_vm1, %v1411_v16  ;;  %1672 = vst.msk [vmem:[#allocation2 + $0x2a0] sm:$0xff] %vm393_vm1, %v1540_v36  ;;  %v1367_v1 = vrot.slane %v886_v4, 7  ;;  %v1496_v30 = vrot.slane %v886_v4, 1  ;;  %v6915_v2 = vpop.eup %6914 }
 0x114   : > { %1596 = vst.msk [vmem:[#allocation2 + $0x50] sm:$0xff] %vm393_vm1, %v1431_v51  ;;  %1669 = vst.msk [vmem:[#allocation2 + $0x288] sm:$0xff] %vm393_vm1, %v1559_v59  ;;  %v7707_v44 = vmul.f32 %v6911_v43, %v7380_v63  ;;  %v800_v0 = vadd.f32 1.0, %v6913_v6  ;;  %6924 = vpow2.f32 %v7485_v13  ;;  %v5531_v45 = vmul.f32 -1.442695, %v7674_v21  ;;  %v1736_v63 = vld [vmem:[#allocation2 + $0x168] sm:$0xff] }
 0x115   : > { %v1412_v48 = vsel %vm1390_vm2, %v1367_v1, %v1368_v11  ;;  %v1413_v61 = vsel %vm1390_vm2, %v1366_v27, %v1367_v1  ;;  %v1541_v25 = vsel %vm1519_vm3, %v1496_v30, %v1497_v37  ;;  %v1542_v54 = vsel %vm1519_vm3, %v1495_v42, %v1496_v30  ;;  %6380 = vmatmul.mubr.msk.f32.gmra.mxu1 %vm393_vm1, %v1736_v63  ;;  %v7788_v1 = vld [vmem:[#allocation2 + $0x180] sm:$0xff] }
 0x116   : > { %v1433_v38 = vsel %vm7607_vm12, 0.0, %v1412_v48  ;;  %v1561_v13 = vsel %vm7613_vm13, 0.0, %v1541_v25  ;;  %1597 = vst.msk [vmem:[#allocation2 + $0x58] sm:$0xff] %vm393_vm1, %v1413_v61  ;;  %1670 = vst.msk [vmem:[#allocation2 + $0x290] sm:$0xff] %vm393_vm1, %v1542_v54  ;;  %v1372_v11 = vrot.slane %v7707_v44, 7  ;;  %v1501_v27 = vrot.slane %v7707_v44, 1  ;;  %v6917_v49 = vpop.eup %6916 }
 0x117   : > { %1639 = vst.msk [vmem:[#allocation2 + $0x1a0] sm:$0xff] %vm393_vm1, %v7707_v44  ;;  %v9834_v37 = vand.u32 15, %v7400_v41  ;;  %v9837_v5 = vand.u32 15, %v7392_v28  ;;  %1598 = vst.msk [vmem:[#allocation2 + $0x60] sm:$0xff] %vm393_vm1, %v1433_v38  ;;  %v7745_v4 = vmul.f32 %v6915_v2, %v7388_v24  ;;  %6926 = vrcp.f32 %v800_v0  ;;  %v7751_v28 = vpop.f32.mrf.mxu0  ;;  %v1737_v33 = vld [vmem:[#allocation2 + $0x170] sm:$0xff] }
 0x118   : > { %1671 = vst.msk [vmem:[#allocation2 + $0x298] sm:$0xff] %vm393_vm1, %v1561_v13  ;;  %v5529_v41 = vmul.f32 -1.442695, %v7677_v17  ;;  %v7749_v23 = vadd.f32 %v7260_v31, %v640_v40  ;;  %6928 = vpow2.f32 %v7551_v12  ;;  %v638_v43 = vmul.f32 %v7255_v29, %v7620_v14  ;;  %6382 = vmatprep.mubr.msk.f32.mxu1 %vm393_vm1, %v1737_v33 }
 0x119   : > { %vm7731_vm4 = vcmp.eq.s32.totalorder %v9834_v37, 0  ;;  %vm7737_vm5 = vcmp.eq.s32.totalorder %v9837_v5, 15  ;;  %v641_v57 = vmul.f32 %v7652_v58, %v7255_v29  ;;  %v639_v24 = vmul.f32 %v7255_v29, %v579_v32  ;;  %1637 = vst.msk [vmem:[#allocation2 + $0x190] sm:$0xff] %vm393_vm1, %v7745_v4  ;;  %v1738_v36 = vld [vmem:[#allocation2 + $0x178] sm:$0xff]  ;;  %v592_v59 = vpop.f32.mrf.mxu0 }
 0x11a   : > { %v1370_v46 = vrot.slane %v7745_v4, 7  ;;  %v1499_v40 = vrot.slane %v7745_v4, 1  ;;  %v7765_v16 = vmul.f32 %v6917_v49, %v7395_v35  ;;  %6930 = vpow2.f32 %v7618_v9  ;;  %v6919_v15 = vpop.eup %6918  ;;  %6383 = vmatmul.mubr.msk.f32.gmra.mxu1 %vm393_vm1, %v1738_v36 }
 0x11b   : > { %6932 = vpow2.f32 %v5531_v45  ;;  %v5534_v12 = vmul.f32 -1.442695, %v7749_v23  ;;  %v7770_v14 = vadd.f32 %v7260_v31, %v638_v43  ;;  %v7773_v58 = vadd.f32 %v7260_v31, %v641_v57  ;;  %v6921_v18 = vpop.eup %6920  ;;  %6385 = vmatprep.mubr.msk.f32.mxu1 %vm393_vm1, %v7788_v1  ;;  %v6364_v37 = vpop.f32.mrf.mxu0 }
 0x11c   : > { %v1410_v6 = vsel %vm1390_vm2, %v1369_v20, %v1370_v46  ;;  %v1539_v35 = vsel %vm1519_vm3, %v1498_v55, %v1499_v40  ;;  %v1373_v9 = vrot.slane %v7765_v16, 7  ;;  %v1502_v51 = vrot.slane %v7765_v16, 1  ;;  %1640 = vst.msk [vmem:[#allocation2 + $0x1a8] sm:$0xff] %vm393_vm1, %v7765_v16  ;;  %v7793_v20 = vld [vmem:[%s9761_s4 + $0x5] sm:$0x1] }
 0x11d   : > { %v1435_v55 = vsel %vm7663_vm14, 0.0, %v1410_v6  ;;  %v1563_v30 = vsel %vm7669_vm15, 0.0, %v1539_v35  ;;  %v890_v32 = vmul.f32 %v6919_v15, %v7407_v53  ;;  %6934 = vpow2.f32 %v5529_v41  ;;  %6821 = vmatprep.subr.msk.bf16.mxu0 %vm442_vm0, %v7793_v20  ;;  %v6923_v0 = vpop.eup %6922 }
 0x11e   : > { %1600 = vst.msk [vmem:[#allocation2 + $0x70] sm:$0xff] %vm393_vm1, %v1435_v55  ;;  %1673 = vst.msk [vmem:[#allocation2 + $0x2a8] sm:$0xff] %vm393_vm1, %v1563_v30  ;;  %v1407_v34 = vsel %vm1390_vm2, %v1372_v11, %v1373_v9  ;;  %v1536_v53 = vsel %vm1519_vm3, %v1501_v27, %v1502_v51  ;;  %v7815_v22 = vmul.f32 %v6921_v18, %v7420_v26  ;;  %6936 = vpow2.f32 %v5534_v12  ;;  %v7827_v26 = vld [vmem:[#allocation2 + $0x188] sm:$0xff] }
 0x11f   : > { %1603 = vst.msk [vmem:[#allocation2 + $0x88] sm:$0xff] %vm393_vm1, %v1407_v34  ;;  %1676 = vst.msk [vmem:[#allocation2 + $0x2c0] sm:$0xff] %vm393_vm1, %v1536_v53  ;;  %v1371_v45 = vrot.slane %v890_v32, 7  ;;  %v1500_v2 = vrot.slane %v890_v32, 1  ;;  %v9840_v48 = vand.u32 15, %v7414_v7  ;;  %v7832_v54 = vmul.f32 %v6923_v0, %v7439_v52  ;;  %6386 = vmatmul.mubr.msk.f32.gmra.mxu1 %vm393_vm1, %v7827_v26  ;;  %v7909_v34 = vld [vmem:[#allocation2 + $0x1a0] sm:$0xff] }
 0x120   : > { %1638 = vst.msk [vmem:[#allocation2 + $0x198] sm:$0xff] %vm393_vm1, %v890_v32  ;;  %v5532_v25 = vmul.f32 -1.442695, %v7770_v14  ;;  %1643 = vst.msk [vmem:[#allocation2 + $0x1c0] sm:$0xff] %vm393_vm1, %v7815_v22  ;;  %v9843_v63 = vand.u32 15, %v7403_v47  ;;  %v7842_v13 = vadd.f32 %v7260_v31, %v639_v24  ;;  %v7858_v41 = vld [vmem:[#allocation2 + $0x190] sm:$0xff]  ;;  %v644_v43 = vmul.f32 %v7751_v28, %v7255_v29 }
 0x121   : > { %vm7822_vm6 = vcmp.eq.s32.totalorder %v9840_v48, 0  ;;  %v5535_v7 = vmul.f32 -1.442695, %v7773_v58  ;;  %v1408_v52 = vsel %vm1390_vm2, %v1371_v45, %v1372_v11  ;;  %v1409_v47 = vsel %vm1390_vm2, %v1370_v46, %v1371_v45  ;;  %v6925_v33 = vpop.eup %6924  ;;  %1641 = vst.msk [vmem:[#allocation2 + $0x1b0] sm:$0xff] %vm393_vm1, %v7832_v54  ;;  %6388 = vmatprep.mubr.msk.f32.mxu1 %vm393_vm1, %v7858_v41 }
 0x122   : > { %vm7836_vm7 = vcmp.eq.s32.totalorder %v9843_v63, 15  ;;  %v1537_v5 = vsel %vm1519_vm3, %v1500_v2, %v1501_v27  ;;  %v1538_v4 = vsel %vm1519_vm3, %v1499_v40, %v1500_v2  ;;  %v1437_v49 = vsel %vm7731_vm4, 0.0, %v1408_v52  ;;  %1601 = vst.msk [vmem:[#allocation2 + $0x78] sm:$0xff] %vm393_vm1, %v1409_v47  ;;  %v595_v40 = vpop.f32.mrf.mxu0 }
 0x123   : > { %v1565_v11 = vsel %vm7737_vm5, 0.0, %v1537_v5  ;;  %1674 = vst.msk [vmem:[#allocation2 + $0x2b0] sm:$0xff] %vm393_vm1, %v1538_v4  ;;  %v1374_v44 = vrot.slane %v7832_v54, 7  ;;  %v1503_v27 = vrot.slane %v7832_v54, 1  ;;  %1602 = vst.msk [vmem:[#allocation2 + $0x80] sm:$0xff] %vm393_vm1, %v1437_v49  ;;  %v798_v42 = vadd.f32 1.0, %v6925_v33 }
 0x124   : > { %1675 = vst.msk [vmem:[#allocation2 + $0x2b8] sm:$0xff] %vm393_vm1, %v1565_v11  ;;  %6938 = vpow2.f32 %v5532_v25  ;;  %v5533_v56 = vmul.f32 -1.442695, %v7842_v13  ;;  %v642_v46 = vmul.f32 %v7255_v29, %v592_v59  ;;  %v6927_v16 = vpop.eup %6926  ;;  %v7891_v36 = vadd.f32 %v7260_v31, %v644_v43 }
 0x125   : > { %v1406_v57 = vsel %vm1390_vm2, %v1373_v9, %v1374_v44  ;;  %v1535_v24 = vsel %vm1519_vm3, %v1502_v51, %v1503_v27  ;;  %6940 = vpow2.f32 %v5535_v7  ;;  %v6929_v15 = vpop.eup %6928  ;;  %v1376_v6 = vrot.slane %v7815_v22, 7 }
 0x126   : > { %v1439_v12 = vsel %vm7822_vm6, 0.0, %v1406_v57  ;;  %v1567_v28 = vsel %vm7836_vm7, 0.0, %v1535_v24  ;;  %6942 = vrcp.f32 %v798_v42  ;;  %v7897_v35 = vmul.f32 %v6927_v16, %v7453_v39 }
 0x127   : > { %1604 = vst.msk [vmem:[#allocation2 + $0x90] sm:$0xff] %vm393_vm1, %v1439_v12  ;;  %1677 = vst.msk [vmem:[#allocation2 + $0x2c8] sm:$0xff] %vm393_vm1, %v1567_v28  ;;  %6944 = vpow2.f32 %v5533_v56  ;;  %v645_v9 = vmul.f32 %v6364_v37, %v7255_v29  ;;  %v7900_v51 = vld [vmem:[#allocation2 + $0x198] sm:$0xff]  ;;  %v6931_v59 = vpop.eup %6930  ;;  %v1505_v18 = vrot.slane %v7815_v22, 1  ;;  %v803_v55 = vadd.f32 1.0, %v6929_v15  ;;  %v7939_v37 = vld [vmem:[#allocation2 + $0x1a8] sm:$0xff] }
 0x128   : > { %v7904_v30 = vadd.f32 %v7260_v31, %v642_v46  ;;  %v643_v32 = vmul.f32 %v7255_v29, %v595_v40  ;;  %6389 = vmatmul.mubr.msk.f32.gmra.mxu1 %vm393_vm1, %v7900_v51  ;;  %v6933_v39 = vpop.eup %6932  ;;  %v1377_v53 = vrot.slane %v7897_v35, 7  ;;  %v1506_v0 = vrot.slane %v7897_v35, 1  ;;  %1644 = vst.msk [vmem:[#allocation2 + $0x1c8] sm:$0xff] %vm393_vm1, %v7897_v35  ;;  %v7924_v25 = vld [vmem:[#allocation2 + $0x1b0] sm:$0xff] }
 0x129   : > { %v801_v45 = vadd.f32 1.0, %v6931_v59  ;;  %v5538_v2 = vmul.f32 -1.442695, %v7891_v36  ;;  %6391 = vmatprep.mubr.msk.f32.mxu1 %vm393_vm1, %v7909_v34  ;;  %6946 = vrcp.f32 %v803_v55  ;;  %v804_v29 = vadd.f32 1.0, %v6933_v39 }
 0x12a   : > { %v7919_v48 = vadd.f32 %v7260_v31, %v645_v9  ;;  %v7922_v61 = vadd.f32 %v7260_v31, %v643_v32  ;;  %v6935_v63 = vpop.eup %6934  ;;  %v1403_v38 = vsel %vm1390_vm2, %v1376_v6, %v1377_v53  ;;  %v1532_v7 = vsel %vm1519_vm3, %v1505_v18, %v1506_v0 }
 0x12b   : > { %v927_v31 = vadd.s32 136, %v7286_v50  ;;  %6948 = vrcp.f32 %v801_v45  ;;  %v6937_v52 = vpop.eup %6936  ;;  %1607 = vst.msk [vmem:[#allocation2 + $0xa8] sm:$0xff] %vm393_vm1, %v1403_v38  ;;  %1680 = vst.msk [vmem:[#allocation2 + $0x2e0] sm:$0xff] %vm393_vm1, %v1532_v7  ;;  %v928_v47 = vadd.s32 144, %v7286_v50  ;;  %v802_v5 = vadd.f32 1.0, %v6935_v63 }
 0x12c   : > { %6950 = vrcp.f32 %v804_v29  ;;  %v5536_v4 = vmul.f32 -1.442695, %v7904_v30  ;;  %6392 = vmatmul.mubr.msk.f32.gmra.mxu1 %vm393_vm1, %v7939_v37  ;;  %v930_v33 = vadd.s32 160, %v7286_v50  ;;  %v807_v49 = vadd.f32 1.0, %v6937_v52 }
 0x12d   : > { %6952 = vpow2.f32 %v5538_v2  ;;  %v5539_v11 = vmul.f32 -1.442695, %v7919_v48  ;;  %6394 = vmatprep.mubr.msk.f32.mxu1 %vm393_vm1, %v7924_v25  ;;  %v929_v42 = vadd.s32 152, %v7286_v50  ;;  %v5537_v56 = vmul.f32 -1.442695, %v7922_v61 }
 0x12e   : > { %6954 = vrcp.f32 %v802_v5  ;;  %v931_v43 = vadd.s32 168, %v7286_v50  ;;  %v932_v57 = vadd.s32 176, %v7286_v50  ;;  %v1072_v24 = vand.u32 15, %v928_v47 }
 0x12f   : > { %6956 = vrcp.f32 %v807_v49  ;;  %v1065_v40 = vand.u32 15, %v927_v31  ;;  %v1086_v16 = vand.u32 15, %v930_v33  ;;  %v1079_v28 = vand.u32 15, %v929_v42 }
 0x130   : > { %6958 = vpow2.f32 %v5536_v4  ;;  %v1093_v59 = vand.u32 15, %v931_v43  ;;  %v1100_v55 = vand.u32 15, %v932_v57  ;;  %vm7956_vm8 = vcmp.eq.s32.totalorder %v1072_v24, 0 }
 0x131   : > { %v6939_v46 = vpop.eup %6938  ;;  %6960 = vpow2.f32 %v5539_v11  ;;  %vm7960_vm9 = vcmp.eq.s32.totalorder %v1065_v40, 15  ;;  %vm7964_vm10 = vcmp.eq.s32.totalorder %v1086_v16, 0  ;;  %vm7969_vm11 = vcmp.eq.s32.totalorder %v1079_v28, 15 }
 0x132   : > { %v6941_v12 = vpop.eup %6940  ;;  %v805_v15 = vadd.f32 1.0, %v6939_v46  ;;  %6962 = vpow2.f32 %v5537_v56  ;;  %v7974_v52 = vadd.s32 184, %v7286_v50  ;;  %vm7976_vm12 = vcmp.eq.s32.totalorder %v1100_v55, 0 }
 0x133   : > { %v6943_v9 = vpop.eup %6942  ;;  %v808_v32 = vadd.f32 1.0, %v6941_v12  ;;  %vm7980_vm13 = vcmp.eq.s32.totalorder %v1093_v59, 15  ;;  %v7985_v33 = vadd.s32 192, %v7286_v50  ;;  %v8018_v46 = vadd.s32 200, %v7286_v50 }
 0x134   : > { %v6945_v39 = vpop.eup %6944  ;;  %v894_v45 = vmul.f32 %v6943_v9, %v7465_v60  ;;  %6964 = vrcp.f32 %v805_v15  ;;  %v8021_v40 = vadd.s32 208, %v7286_v50 }
 0x135   : > { %6966 = vrcp.f32 %v808_v32  ;;  %v806_v38 = vadd.f32 1.0, %v6945_v39  ;;  %v1114_v29 = vand.u32 15, %v7985_v33 }
 0x136   : > { %v1375_v7 = vrot.slane %v894_v45, 7  ;;  %v1504_v31 = vrot.slane %v894_v45, 1  ;;  %1642 = vst.msk [vmem:[#allocation2 + $0x1b8] sm:$0xff] %vm393_vm1, %v894_v45  ;;  %v6947_v47 = vpop.eup %6946 }
 0x137   : > { %6968 = vrcp.f32 %v806_v38  ;;  %v899_v22 = vmul.f32 %v6947_v47, %v7517_v3  ;;  %v1128_v47 = vand.u32 15, %v8021_v40  ;;  %vm8094_vm14 = vcmp.eq.s32.totalorder %v1114_v29, 0 }
 0x138   : > { %v6949_v49 = vpop.eup %6948  ;;  %v1404_v11 = vsel %vm1390_vm2, %v1375_v7, %v1376_v6  ;;  %v1405_v42 = vsel %vm1390_vm2, %v1374_v44, %v1375_v7  ;;  %v1533_v56 = vsel %vm1519_vm3, %v1504_v31, %v1505_v18  ;;  %v1534_v43 = vsel %vm1519_vm3, %v1503_v27, %v1504_v31 }
 0x139   : > { %v6951_v57 = vpop.eup %6950  ;;  %v1441_v24 = vsel %vm7956_vm8, 0.0, %v1404_v11  ;;  %v1569_v6 = vsel %vm7960_vm9, 0.0, %v1533_v56  ;;  %1605 = vst.msk [vmem:[#allocation2 + $0x98] sm:$0xff] %vm393_vm1, %v1405_v42  ;;  %1678 = vst.msk [vmem:[#allocation2 + $0x2d0] sm:$0xff] %vm393_vm1, %v1534_v43  ;;  %v897_v44 = vmul.f32 %v6949_v49, %v7573_v62  ;;  %v1107_v27 = vand.u32 15, %v7974_v52 }
 0x13a   : > { %v6953_v18 = vpop.eup %6952  ;;  %1606 = vst.msk [vmem:[#allocation2 + $0xa0] sm:$0xff] %vm393_vm1, %v1441_v24  ;;  %1679 = vst.msk [vmem:[#allocation2 + $0x2d8] sm:$0xff] %vm393_vm1, %v1569_v6  ;;  %v8014_v54 = vmul.f32 %v6951_v57, %v7674_v21  ;;  %v1380_v3 = vrot.slane %v899_v22, 7  ;;  %v1509_v12 = vrot.slane %v899_v22, 1  ;;  %v1121_v52 = vand.u32 15, %v8018_v46  ;;  %v8079_v6 = vld [vmem:[#allocation2 + $0x1c8] sm:$0xff] }
 0x13b   : > { %v6955_v16 = vpop.eup %6954  ;;  %1647 = vst.msk [vmem:[#allocation2 + $0x1e0] sm:$0xff] %vm393_vm1, %v899_v22  ;;  %v1378_v62 = vrot.slane %v897_v44, 7  ;;  %v1507_v28 = vrot.slane %v897_v44, 1  ;;  %1645 = vst.msk [vmem:[#allocation2 + $0x1d0] sm:$0xff] %vm393_vm1, %v897_v44  ;;  %v811_v55 = vadd.f32 1.0, %v6953_v18  ;;  %vm8098_vm15 = vcmp.eq.s32.totalorder %v1107_v27, 15 }
 0x13c   : > { %v6957_v15 = vpop.eup %6956  ;;  %v1381_v21 = vrot.slane %v8014_v54, 7  ;;  %v1510_v9 = vrot.slane %v8014_v54, 1  ;;  %1648 = vst.msk [vmem:[#allocation2 + $0x1e8] sm:$0xff] %vm393_vm1, %v8014_v54  ;;  %v898_v59 = vmul.f32 %v6955_v16, %v7677_v17  ;;  %vm8125_vm4 = vcmp.eq.s32.totalorder %v1128_v47, 0 }
 0x13d   : > { %v6959_v32 = vpop.eup %6958  ;;  %v1402_v39 = vsel %vm1390_vm2, %v1377_v53, %v1378_v62  ;;  %v1531_v45 = vsel %vm1519_vm3, %v1506_v0, %v1507_v28  ;;  %v8039_v2 = vmul.f32 %v6957_v15, %v7749_v23  ;;  %v8042_v38 = vld [vmem:[#allocation2 + $0x1b8] sm:$0xff]  ;;  %v8059_v53 = vld [vmem:[#allocation2 + $0x1c0] sm:$0xff]  ;;  %6970 = vrcp.f32 %v811_v55 }
 0x13e   : > { %v6961_v17 = vpop.eup %6960  ;;  %v1443_v7 = vsel %vm7964_vm10, 0.0, %v1402_v39  ;;  %v1571_v31 = vsel %vm7969_vm11, 0.0, %v1531_v45  ;;  %v1399_v35 = vsel %vm1390_vm2, %v1380_v3, %v1381_v21  ;;  %v1528_v23 = vsel %vm1519_vm3, %v1509_v12, %v1510_v9  ;;  %1646 = vst.msk [vmem:[#allocation2 + $0x1d8] sm:$0xff] %vm393_vm1, %v898_v59  ;;  %6395 = vmatmul.mubr.msk.f32.gmra.mxu1 %vm393_vm1, %v8042_v38 }
 0x13f   : > { %v6963_v0 = vpop.eup %6962  ;;  %1608 = vst.msk [vmem:[#allocation2 + $0xb0] sm:$0xff] %vm393_vm1, %v1443_v7  ;;  %1681 = vst.msk [vmem:[#allocation2 + $0x2e8] sm:$0xff] %vm393_vm1, %v1571_v31  ;;  %v1379_v63 = vrot.slane %v898_v59, 7  ;;  %v1508_v60 = vrot.slane %v898_v59, 1  ;;  %6397 = vmatprep.mubr.msk.f32.mxu1 %vm393_vm1, %v8059_v53  ;;  %v809_v33 = vadd.f32 1.0, %v6959_v32  ;;  %v812_v49 = vadd.f32 1.0, %v6961_v17 }
 0x140   : > { %1611 = vst.msk [vmem:[#allocation2 + $0xc8] sm:$0xff] %vm393_vm1, %v1399_v35  ;;  %1684 = vst.msk [vmem:[#allocation2 + $0x300] sm:$0xff] %vm393_vm1, %v1528_v23  ;;  %v810_v11 = vadd.f32 1.0, %v6963_v0  ;;  %v1513_v27 = vrot.slane %v8039_v2, 1  ;;  %vm8129_vm5 = vcmp.eq.s32.totalorder %v1121_v52, 15  ;;  %v937_v7 = vadd.s32 216, %v7286_v50 }
 0x141   : > { %1651 = vst.msk [vmem:[#allocation2 + $0x200] sm:$0xff] %vm393_vm1, %v8039_v2  ;;  %v6965_v42 = vpop.eup %6964  ;;  %v1400_v56 = vsel %vm1390_vm2, %v1379_v63, %v1380_v3  ;;  %v1401_v43 = vsel %vm1390_vm2, %v1378_v62, %v1379_v63  ;;  %v1529_v57 = vsel %vm1519_vm3, %v1508_v60, %v1509_v12  ;;  %v1530_v24 = vsel %vm1519_vm3, %v1507_v28, %v1508_v60 }
 0x142   : > { %v6967_v22 = vpop.eup %6966  ;;  %v1445_v44 = vsel %vm7976_vm12, 0.0, %v1400_v56  ;;  %v1573_v18 = vsel %vm7980_vm13, 0.0, %v1529_v57  ;;  %1609 = vst.msk [vmem:[#allocation2 + $0xb8] sm:$0xff] %vm393_vm1, %v1401_v43  ;;  %1682 = vst.msk [vmem:[#allocation2 + $0x2f0] sm:$0xff] %vm393_vm1, %v1530_v24  ;;  %v901_v46 = vmul.f32 %v6965_v42, %v7770_v14  ;;  %6972 = vrcp.f32 %v809_v33  ;;  %6398 = vmatmul.mubr.msk.f32.gmra.mxu1 %vm393_vm1, %v8079_v6  ;;  %v8090_v40 = vld [vmem:[#allocation2 + $0x1d0] sm:$0xff] }
 0x143   : > { %1610 = vst.msk [vmem:[#allocation2 + $0xc0] sm:$0xff] %vm393_vm1, %v1445_v44  ;;  %1683 = vst.msk [vmem:[#allocation2 + $0x2f8] sm:$0xff] %vm393_vm1, %v1573_v18  ;;  %v8103_v14 = vmul.f32 %v6967_v22, %v7773_v58  ;;  %6974 = vrcp.f32 %v812_v49  ;;  %6400 = vmatprep.mubr.msk.f32.mxu1 %vm393_vm1, %v8090_v40  ;;  %v1384_v3 = vrot.slane %v8039_v2, 7  ;;  %v938_v31 = vadd.s32 224, %v7286_v50  ;;  %v8161_v63 = vld [vmem:[#allocation2 + $0x1e8] sm:$0xff] }
 0x144   : > { %v6969_v16 = vpop.eup %6968  ;;  %v1382_v12 = vrot.slane %v901_v46, 7  ;;  %v1511_v62 = vrot.slane %v901_v46, 1  ;;  %1649 = vst.msk [vmem:[#allocation2 + $0x1f0] sm:$0xff] %vm393_vm1, %v901_v46  ;;  %6976 = vrcp.f32 %v810_v11  ;;  %v941_v35 = vadd.s32 248, %v7286_v50 }
 0x145   : > { %v1385_v28 = vrot.slane %v8103_v14, 7  ;;  %v1514_v15 = vrot.slane %v8103_v14, 1  ;;  %1652 = vst.msk [vmem:[#allocation2 + $0x208] sm:$0xff] %vm393_vm1, %v8103_v14  ;;  %v902_v58 = vmul.f32 %v6969_v16, %v7842_v13  ;;  %v8115_v59 = vld [vmem:[#allocation2 + $0x1d8] sm:$0xff]  ;;  %v8135_v13 = vld [vmem:[#allocation2 + $0x1e0] sm:$0xff]  ;;  %v939_v23 = vadd.s32 232, %v7286_v50 }
 0x146   : > { %v1398_v55 = vsel %vm1390_vm2, %v1381_v21, %v1382_v12  ;;  %v1527_v32 = vsel %vm1519_vm3, %v1510_v9, %v1511_v62  ;;  %6401 = vmatmul.mubr.msk.f32.gmra.mxu1 %vm393_vm1, %v8115_v59  ;;  %v940_v0 = vadd.s32 240, %v7286_v50  ;;  %v1135_v56 = vand.u32 15, %v937_v7 }
 0x147   : > { %v1447_v21 = vsel %vm8094_vm14, 0.0, %v1398_v55  ;;  %v1575_v54 = vsel %vm8098_vm15, 0.0, %v1527_v32  ;;  %v1395_v9 = vsel %vm1390_vm2, %v1384_v3, %v1385_v28  ;;  %v1524_v2 = vsel %vm1519_vm3, %v1513_v27, %v1514_v15  ;;  %1650 = vst.msk [vmem:[#allocation2 + $0x1f8] sm:$0xff] %vm393_vm1, %v902_v58  ;;  %6403 = vmatprep.mubr.msk.f32.mxu1 %vm393_vm1, %v8135_v13  ;;  %v8325_v55 = vld [vmem:[#allocation2 + $0x30] sm:$0xff]  ;;  %v8335_v32 = vld [vmem:[#allocation2 + $0x38] sm:$0xff] }
 0x148   : > { %1612 = vst.msk [vmem:[#allocation2 + $0xd0] sm:$0xff] %vm393_vm1, %v1447_v21  ;;  %1685 = vst.msk [vmem:[#allocation2 + $0x308] sm:$0xff] %vm393_vm1, %v1575_v54  ;;  %v1383_v29 = vrot.slane %v902_v58, 7  ;;  %v1512_v17 = vrot.slane %v902_v58, 1  ;;  %v1142_v43 = vand.u32 15, %v938_v31  ;;  %v946_v24 = vand.u32 15, %v7286_v50 }
 0x149   : > { %1615 = vst.msk [vmem:[#allocation2 + $0xe8] sm:$0xff] %vm393_vm1, %v1395_v9  ;;  %1688 = vst.msk [vmem:[#allocation2 + $0x320] sm:$0xff] %vm393_vm1, %v1524_v2  ;;  %v1163_v22 = vand.u32 15, %v941_v35  ;;  %v1156_v44 = vand.u32 15, %v940_v0  ;;  %v1149_v46 = vand.u32 15, %v939_v23  ;;  %v8191_v16 = vld [vmem:[#allocation2 + $0x200] sm:$0xff] }
 0x14a   : > { %v1396_v60 = vsel %vm1390_vm2, %v1383_v29, %v1384_v3  ;;  %v1397_v52 = vsel %vm1390_vm2, %v1382_v12, %v1383_v29  ;;  %v1525_v47 = vsel %vm1519_vm3, %v1512_v17, %v1513_v27  ;;  %v1526_v33 = vsel %vm1519_vm3, %v1511_v62, %v1512_v17  ;;  %6404 = vmatmul.mubr.msk.f32.gmra.mxu1 %vm393_vm1, %v8161_v63  ;;  %v6971_v57 = vpop.eup %6970  ;;  %v2346_v50 = vld [vmem:[#allocation2 + $0x248] sm:$0xff]  ;;  %v8308_v62 = vld [vmem:[#allocation2 + $0x20] sm:$0xff] }
 0x14b   : > { %v1449_v49 = vsel %vm8125_vm4, 0.0, %v1396_v60  ;;  %v1577_v11 = vsel %vm8129_vm5, 0.0, %v1525_v47  ;;  %1613 = vst.msk [vmem:[#allocation2 + $0xd8] sm:$0xff] %vm393_vm1, %v1397_v52  ;;  %1686 = vst.msk [vmem:[#allocation2 + $0x310] sm:$0xff] %vm393_vm1, %v1526_v33  ;;  %v8179_v42 = vld [vmem:[#allocation2 + $0x1f0] sm:$0xff]  ;;  %v907_v18 = vmul.f32 %v6971_v57, %v7891_v36  ;;  %vm8195_vm6 = vcmp.eq.s32.totalorder %v1142_v43, 0 }
 0x14c   : > { %1614 = vst.msk [vmem:[#allocation2 + $0xe0] sm:$0xff] %vm393_vm1, %v1449_v49  ;;  %1687 = vst.msk [vmem:[#allocation2 + $0x318] sm:$0xff] %vm393_vm1, %v1577_v11  ;;  %6406 = vmatprep.mubr.msk.f32.mxu1 %vm393_vm1, %v8179_v42  ;;  %vm8199_vm7 = vcmp.eq.s32.totalorder %v1135_v56, 15  ;;  %vm8206_vm8 = vcmp.eq.s32.totalorder %v946_v24, 0  ;;  %vm8210_vm9 = vcmp.eq.s32.totalorder %v1163_v22, 15  ;;  %vm8214_vm10 = vcmp.eq.s32.totalorder %v1156_v44, 0  ;;  %v6369_v24 = vpop.f32.mrf.mxu1  ;;  %v6419_v22 = vpop.f32.mrf.mxu0 }
 0x14d   : > { %1655 = vst.msk [vmem:[#allocation2 + $0x220] sm:$0xff] %vm393_vm1, %v907_v18  ;;  %vm8220_vm11 = vcmp.eq.s32.totalorder %v1149_v46, 15  ;;  %v8224_v54 = vld [vmem:[#allocation2 + $0x208] sm:$0xff]  ;;  %v1388_v9 = vrot.slane %v907_v18, 7  ;;  %v1517_v2 = vrot.slane %v907_v18, 1  ;;  %v2345_v43 = vld [vmem:[#allocation2 + $0x240] sm:$0xff] }
 0x14e   : > { %v8187_v5 = vld [vmem:[#allocation2 + $0x1f8] sm:$0xff]  ;;  %v7106_v18 = vld [vmem:[%s9761_s4 + $0x4] sm:$0x1]  ;;  %v8313_v36 = vld [vmem:[#allocation2 + $0x250] sm:$0xff] }
 0x14f   : > { %v6973_v4 = vpop.eup %6972  ;;  %6407 = vmatmul.mubr.msk.f32.gmra.mxu1 %vm393_vm1, %v8187_v5  ;;  %v3192_v46 = vsel %vm442_vm0, %v7106_v18, 0  ;;  %v8457_v18 = vld [vmem:[#allocation2 + $0x2e0] sm:$0xff] }
 0x150   : > { %v6975_v3 = vpop.eup %6974  ;;  %v905_v12 = vmul.f32 %v6973_v4, %v7904_v30  ;;  %6409 = vmatprep.mubr.msk.f32.mxu1 %vm393_vm1, %v8191_v16  ;;  %v8295_v4 = vadd.f32 %v6419_v22, %v6369_v24  ;;  %v8329_v30 = vld [vmem:[#allocation2 + $0x260] sm:$0xff]  ;;  %v8449_v24 = vld [vmem:[#allocation2 + $0x2d8] sm:$0xff]  ;;  %v8453_v22 = vld [vmem:[#allocation2 + $0xb0] sm:$0xff]  ;;  %9889 = vst [vmem:[#allocation14_spill] sm:$0xff] %v8457_v18 }
 0x151   : > { %v6977_v27 = vpop.eup %6976  ;;  %v908_v58 = vmul.f32 %v6975_v3, %v7919_v48  ;;  %v8299_v3 = vld [vmem:[#allocation2 + $0x18] sm:$0xff]  ;;  %v8351_v48 = vld [vmem:[#allocation2 + $0x48] sm:$0xff]  ;;  %9888 = vst [vmem:[#allocation13_spill] sm:$0xff] %v8449_v24 }
 0x152   : > { %v1386_v39 = vrot.slane %v905_v12, 7  ;;  %v1515_v45 = vrot.slane %v905_v12, 1  ;;  %1653 = vst.msk [vmem:[#allocation2 + $0x210] sm:$0xff] %vm393_vm1, %v905_v12  ;;  %v906_v21 = vmul.f32 %v6977_v27, %v7922_v61  ;;  %9878 = vst [vmem:[#allocation3_spill] sm:$0xff] %v8295_v4  ;;  %v8304_v12 = vld [vmem:[%s9761_s4 + $0x6] sm:$0x1] }
 0x153   : > { %v1389_v29 = vrot.slane %v908_v58, 7  ;;  %v1518_v17 = vrot.slane %v908_v58, 1  ;;  %1656 = vst.msk [vmem:[#allocation2 + $0x228] sm:$0xff] %vm393_vm1, %v908_v58  ;;  %6410 = vmatmul.mubr.msk.f32.gmra.mxu1 %vm393_vm1, %v8224_v54  ;;  %v8319_v27 = vld [vmem:[#allocation2 + $0x28] sm:$0xff]  ;;  %v8321_v58 = vld [vmem:[#allocation2 + $0x258] sm:$0xff] }
 0x154   : > { %v1394_v61 = vsel %vm1390_vm2, %v1385_v28, %v1386_v39  ;;  %v1523_v7 = vsel %vm1519_vm3, %v1514_v15, %v1515_v45  ;;  %v1387_v31 = vrot.slane %v906_v21, 7  ;;  %v1516_v35 = vrot.slane %v906_v21, 1  ;;  %1654 = vst.msk [vmem:[#allocation2 + $0x218] sm:$0xff] %vm393_vm1, %v906_v21  ;;  %v8345_v21 = vld [vmem:[#allocation2 + $0x270] sm:$0xff]  ;;  %v8465_v4 = vld [vmem:[#allocation2 + $0x2e8] sm:$0xff] }
 0x155   : > { %v1451_v23 = vsel %vm8195_vm6, 0.0, %v1394_v61  ;;  %v1579_v0 = vsel %vm8199_vm7, 0.0, %v1523_v7  ;;  %v1391_v60 = vsel %vm1390_vm2, %v1388_v9, %v1389_v29  ;;  %v1422_v14 = vsel %vm1390_vm2, %v1389_v29, %v1358_v19  ;;  %v8361_v29 = vld [vmem:[#allocation2 + $0x280] sm:$0xff]  ;;  %v8369_v61 = vld [vmem:[#allocation2 + $0x288] sm:$0xff]  ;;  %9890 = vst [vmem:[#allocation15_spill] sm:$0xff] %v8465_v4 }
 0x156   : > { %1616 = vst.msk [vmem:[#allocation2 + $0xf0] sm:$0xff] %vm393_vm1, %v1451_v23  ;;  %1689 = vst.msk [vmem:[#allocation2 + $0x328] sm:$0xff] %vm393_vm1, %v1579_v0  ;;  %v1423_v28 = vsel %vm8206_vm8, 0.0, %v1422_v14  ;;  %v1520_v15 = vsel %vm1519_vm3, %v1517_v2, %v1518_v17  ;;  %v1551_v52 = vsel %vm1519_vm3, %v1518_v17, %v1487_v8  ;;  %v1392_v19 = vsel %vm1390_vm2, %v1387_v31, %v1388_v9  ;;  %v8353_v9 = vld [vmem:[#allocation2 + $0x278] sm:$0xff]  ;;  %v8373_v7 = vld [vmem:[#allocation2 + $0x60] sm:$0xff] }
 0x157   : > { %1619 = vst.msk [vmem:[#allocation2 + $0x108] sm:$0xff] %vm393_vm1, %v1391_v60  ;;  %v1583_v47 = vsel %vm8210_vm9, 0.0, %v1551_v52  ;;  %1588 = vst.msk [vmem:[#allocation2 + $0x10] sm:$0xff] %vm393_vm1, %v1423_v28  ;;  %v1393_v33 = vsel %vm1390_vm2, %v1386_v39, %v1387_v31  ;;  %v1453_v10 = vsel %vm8214_vm10, 0.0, %v1392_v19  ;;  %v1521_v8 = vsel %vm1519_vm3, %v1516_v35, %v1517_v2  ;;  %v8337_v39 = vld [vmem:[#allocation2 + $0x268] sm:$0xff]  ;;  %v8357_v2 = vld [vmem:[#allocation2 + $0x50] sm:$0xff] }
 0x158   : > { %1692 = vst.msk [vmem:[#allocation2 + $0x340] sm:$0xff] %vm393_vm1, %v1520_v15  ;;  %1693 = vst.msk [vmem:[#allocation2 + $0x348] sm:$0xff] %vm393_vm1, %v1583_v47  ;;  %v1522_v49 = vsel %vm1519_vm3, %v1515_v45, %v1516_v35  ;;  %v1581_v11 = vsel %vm8220_vm11, 0.0, %v1521_v8  ;;  %v8341_v45 = vld [vmem:[#allocation2 + $0x40] sm:$0xff]  ;;  %v8367_v17 = vld [vmem:[#allocation2 + $0x58] sm:$0xff] }
 0x159   : > { %1617 = vst.msk [vmem:[#allocation2 + $0xf8] sm:$0xff] %vm393_vm1, %v1393_v33  ;;  %1618 = vst.msk [vmem:[#allocation2 + $0x100] sm:$0xff] %vm393_vm1, %v1453_v10  ;;  %v8280_v56 = vld [vmem:[#allocation2 + $0x210] sm:$0xff]  ;;  %v8383_v35 = vld [vmem:[#allocation2 + $0x68] sm:$0xff] }
 0x15a   : > { %1690 = vst.msk [vmem:[#allocation2 + $0x330] sm:$0xff] %vm393_vm1, %v1522_v49  ;;  %1691 = vst.msk [vmem:[#allocation2 + $0x338] sm:$0xff] %vm393_vm1, %v1581_v11  ;;  %6412 = vmatprep.mubr.msk.f32.mxu1 %vm393_vm1, %v8280_v56  ;;  %v8377_v31 = vld [vmem:[#allocation2 + $0x290] sm:$0xff]  ;;  %v8385_v23 = vld [vmem:[#allocation2 + $0x298] sm:$0xff] }
 0x15b   : > { %v8284_v57 = vld [vmem:[#allocation2 + $0x218] sm:$0xff]  ;;  %9879 = vst [vmem:[#allocation4_spill] sm:$0xff] %v8377_v31  ;;  %9880 = vst [vmem:[#allocation5_spill] sm:$0xff] %v8385_v23  ;;  %v8389_v0 = vld [vmem:[#allocation2 + $0x70] sm:$0xff] }
 0x15c   : > { %6413 = vmatmul.mubr.msk.f32.gmra.mxu1 %vm393_vm1, %v8284_v57  ;;  %v8393_v60 = vld [vmem:[#allocation2 + $0x2a0] sm:$0xff]  ;;  %v8399_v14 = vld [vmem:[#allocation2 + $0x78] sm:$0xff]  ;;  %v8401_v28 = vld [vmem:[#allocation2 + $0x2a8] sm:$0xff] }
 0x15d   : > { %6467 = vmatprep.mubr.msk.f32.mxu1 %vm393_vm1, %v2345_v43  ;;  %9881 = vst [vmem:[#allocation6_spill] sm:$0xff] %v8393_v60  ;;  %9882 = vst [vmem:[#allocation7_spill] sm:$0xff] %v8401_v28  ;;  %v8405_v15 = vld [vmem:[#allocation2 + $0x80] sm:$0xff]  ;;  %v8409_v52 = vld [vmem:[#allocation2 + $0x2b0] sm:$0xff] }
 0x15e   : > { %v8289_v44 = vld [vmem:[#allocation2 + $0x10] sm:$0xff]  ;;  %9883 = vst [vmem:[#allocation8_spill] sm:$0xff] %v8409_v52  ;;  %v8415_v19 = vld [vmem:[#allocation2 + $0x88] sm:$0xff]  ;;  %v8417_v47 = vld [vmem:[#allocation2 + $0x2b8] sm:$0xff] }
 0x15f   : > { %6420 = vmatprep.mubr.msk.f32.mxu0 %vm393_vm1, %v8289_v44  ;;  %9884 = vst [vmem:[#allocation9_spill] sm:$0xff] %v8417_v47  ;;  %v8421_v33 = vld [vmem:[#allocation2 + $0x90] sm:$0xff]  ;;  %v8425_v10 = vld [vmem:[#allocation2 + $0x2c0] sm:$0xff]  ;;  %v8431_v8 = vld [vmem:[#allocation2 + $0x98] sm:$0xff] }
 0x160   : > { %6421 = vmatmul.mubr.msk.f32.gmra.mxu0 %vm393_vm1, %v8299_v3  ;;  %6468 = vmatmul.mubr.msk.f32.vlgmr.msra.gmra.mxu1 %vm393_vm1, %v2346_v50  ;;  %9885 = vst [vmem:[#allocation10_spill] sm:$0xff] %v8425_v10  ;;  %v8433_v49 = vld [vmem:[#allocation2 + $0x2c8] sm:$0xff]  ;;  %v8437_v11 = vld [vmem:[#allocation2 + $0xa0] sm:$0xff]  ;;  %v8441_v43 = vld [vmem:[#allocation2 + $0x2d0] sm:$0xff] }
 0x161   : > { %6423 = vmatprep.mubr.msk.f32.mxu0 %vm393_vm1, %v8308_v62  ;;  %6566 = vmatpush3.bf16.msra.mxu1 %v3192_v46  ;;  %9886 = vst [vmem:[#allocation11_spill] sm:$0xff] %v8433_v49  ;;  %9887 = vst [vmem:[#allocation12_spill] sm:$0xff] %v8441_v43  ;;  %v8447_v50 = vld [vmem:[#allocation2 + $0xa8] sm:$0xff]  ;;  %v8463_v46 = vld [vmem:[#allocation2 + $0xb8] sm:$0xff] }
 0x162   : > { %6470 = vmatprep.mubr.msk.f32.mxu1 %vm393_vm1, %v8313_v36  ;;  %6822 = vmatprep.subr.msk.bf16.mxu1 %vm442_vm0, %v8304_v12 }
 0x164   : > { %6424 = vmatmul.mubr.msk.f32.gmra.mxu0 %vm393_vm1, %v8319_v27  ;;  %6471 = vmatmul.mubr.msk.f32.gmra.mxu1 %vm393_vm1, %v8321_v58 }
 0x165   : > { %6426 = vmatprep.mubr.msk.f32.mxu0 %vm393_vm1, %v8325_v55  ;;  %6473 = vmatprep.mubr.msk.f32.mxu1 %vm393_vm1, %v8329_v30 }
 0x168   : > { %6427 = vmatmul.mubr.msk.f32.gmra.mxu0 %vm393_vm1, %v8335_v32  ;;  %6474 = vmatmul.mubr.msk.f32.gmra.mxu1 %vm393_vm1, %v8337_v39 }
 0x169   : > { %6429 = vmatprep.mubr.msk.f32.mxu0 %vm393_vm1, %v8341_v45  ;;  %6476 = vmatprep.mubr.msk.f32.mxu1 %vm393_vm1, %v8345_v21 }
 0x16c   : > { %6430 = vmatmul.mubr.msk.f32.gmra.mxu0 %vm393_vm1, %v8351_v48  ;;  %6477 = vmatmul.mubr.msk.f32.gmra.mxu1 %vm393_vm1, %v8353_v9 }
 0x16d   : > { %6432 = vmatprep.mubr.msk.f32.mxu0 %vm393_vm1, %v8357_v2  ;;  %6479 = vmatprep.mubr.msk.f32.mxu1 %vm393_vm1, %v8361_v29 }
 0x170   : > { %6433 = vmatmul.mubr.msk.f32.gmra.mxu0 %vm393_vm1, %v8367_v17  ;;  %6480 = vmatmul.mubr.msk.f32.gmra.mxu1 %vm393_vm1, %v8369_v61 }
 0x171   : > { %6435 = vmatprep.mubr.msk.f32.mxu0 %vm393_vm1, %v8373_v7  ;;  %6482 = vmatprep.mubr.msk.f32.mxu1 %vm393_vm1, %v8377_v31  ;;  %v8535_v31 = vld [vmem:[#allocation2 + $0x330] sm:$0xff] }
 0x174   : > { %6436 = vmatmul.mubr.msk.f32.gmra.mxu0 %vm393_vm1, %v8383_v35  ;;  %6483 = vmatmul.mubr.msk.f32.gmra.mxu1 %vm393_vm1, %v8385_v23  ;;  %v8529_v23 = vld [vmem:[#allocation2 + $0x328] sm:$0xff] }
 0x175   : > { %6438 = vmatprep.mubr.msk.f32.mxu0 %vm393_vm1, %v8389_v0  ;;  %6485 = vmatprep.mubr.msk.f32.mxu1 %vm393_vm1, %v8393_v60  ;;  %v8517_v60 = vld [vmem:[#allocation2 + $0xf0] sm:$0xff]  ;;  %9898 = vst [vmem:[#allocation23_spill] sm:$0xff] %v8529_v23 }
 0x178   : > { %6439 = vmatmul.mubr.msk.f32.gmra.mxu0 %vm393_vm1, %v8399_v14  ;;  %6486 = vmatmul.mubr.msk.f32.gmra.mxu1 %vm393_vm1, %v8401_v28  ;;  %v8513_v28 = vld [vmem:[#allocation2 + $0x318] sm:$0xff] }
 0x179   : > { %6441 = vmatprep.mubr.msk.f32.mxu0 %vm393_vm1, %v8405_v15  ;;  %6488 = vmatprep.mubr.msk.f32.mxu1 %vm393_vm1, %v8409_v52  ;;  %v8501_v52 = vld [vmem:[#allocation2 + $0xe0] sm:$0xff]  ;;  %9896 = vst [vmem:[#allocation21_spill] sm:$0xff] %v8513_v28 }
 0x17c   : > { %6442 = vmatmul.mubr.msk.f32.gmra.mxu0 %vm393_vm1, %v8415_v19  ;;  %6489 = vmatmul.mubr.msk.f32.gmra.mxu1 %vm393_vm1, %v8417_v47  ;;  %v8497_v47 = vld [vmem:[#allocation2 + $0x308] sm:$0xff] }
 0x17d   : > { %6444 = vmatprep.mubr.msk.f32.mxu0 %vm393_vm1, %v8421_v33  ;;  %6491 = vmatprep.mubr.msk.f32.mxu1 %vm393_vm1, %v8425_v10  ;;  %v8485_v10 = vld [vmem:[#allocation2 + $0xd0] sm:$0xff]  ;;  %9894 = vst [vmem:[#allocation19_spill] sm:$0xff] %v8497_v47 }
 0x180   : > { %6445 = vmatmul.mubr.msk.f32.gmra.mxu0 %vm393_vm1, %v8431_v8  ;;  %6492 = vmatmul.mubr.msk.f32.gmra.mxu1 %vm393_vm1, %v8433_v49  ;;  %v8481_v49 = vld [vmem:[#allocation2 + $0x2f8] sm:$0xff] }
 0x181   : > { %6447 = vmatprep.mubr.msk.f32.mxu0 %vm393_vm1, %v8437_v11  ;;  %6494 = vmatprep.mubr.msk.f32.mxu1 %vm393_vm1, %v8441_v43  ;;  %v8469_v43 = vld [vmem:[#allocation2 + $0xc0] sm:$0xff]  ;;  %9892 = vst [vmem:[#allocation17_spill] sm:$0xff] %v8481_v49 }
 0x184   : > { %6448 = vmatmul.mubr.msk.f32.gmra.mxu0 %vm393_vm1, %v8447_v50  ;;  %6495 = vmatmul.mubr.msk.f32.gmra.mxu1 %vm393_vm1, %v8449_v24  ;;  %v8473_v24 = vld [vmem:[#allocation2 + $0x2f0] sm:$0xff] }
 0x185   : > { %6450 = vmatprep.mubr.msk.f32.mxu0 %vm393_vm1, %v8453_v22  ;;  %6497 = vmatprep.mubr.msk.f32.mxu1 %vm393_vm1, %v8457_v18  ;;  %9891 = vst [vmem:[#allocation16_spill] sm:$0xff] %v8473_v24  ;;  %v8479_v18 = vld [vmem:[#allocation2 + $0xc8] sm:$0xff] }
 0x188   : > { %6451 = vmatmul.mubr.msk.f32.gmra.mxu0 %vm393_vm1, %v8463_v46  ;;  %6498 = vmatmul.mubr.msk.f32.gmra.mxu1 %vm393_vm1, %v8465_v4  ;;  %v8489_v4 = vld [vmem:[#allocation2 + $0x300] sm:$0xff] }
 0x189   : > { %6453 = vmatprep.mubr.msk.f32.mxu0 %vm393_vm1, %v8469_v43  ;;  %6500 = vmatprep.mubr.msk.f32.mxu1 %vm393_vm1, %v8473_v24  ;;  %9893 = vst [vmem:[#allocation18_spill] sm:$0xff] %v8489_v4  ;;  %v8495_v24 = vld [vmem:[#allocation2 + $0xd8] sm:$0xff] }
 0x18c   : > { %6454 = vmatmul.mubr.msk.f32.gmra.mxu0 %vm393_vm1, %v8479_v18  ;;  %6501 = vmatmul.mubr.msk.f32.gmra.mxu1 %vm393_vm1, %v8481_v49  ;;  %v8505_v49 = vld [vmem:[#allocation2 + $0x310] sm:$0xff] }
 0x18d   : > { %6456 = vmatprep.mubr.msk.f32.mxu0 %vm393_vm1, %v8485_v10  ;;  %6503 = vmatprep.mubr.msk.f32.mxu1 %vm393_vm1, %v8489_v4  ;;  %9895 = vst [vmem:[#allocation20_spill] sm:$0xff] %v8505_v49  ;;  %v8511_v4 = vld [vmem:[#allocation2 + $0xe8] sm:$0xff] }
 0x190   : > { %6457 = vmatmul.mubr.msk.f32.gmra.mxu0 %vm393_vm1, %v8495_v24  ;;  %6504 = vmatmul.mubr.msk.f32.gmra.mxu1 %vm393_vm1, %v8497_v47  ;;  %v8521_v47 = vld [vmem:[#allocation2 + $0x320] sm:$0xff] }
 0x191   : > { %6459 = vmatprep.mubr.msk.f32.mxu0 %vm393_vm1, %v8501_v52  ;;  %6506 = vmatprep.mubr.msk.f32.mxu1 %vm393_vm1, %v8505_v49  ;;  %9897 = vst [vmem:[#allocation22_spill] sm:$0xff] %v8521_v47  ;;  %v8527_v49 = vld [vmem:[#allocation2 + $0xf8] sm:$0xff] }
 0x194   : > { %6460 = vmatmul.mubr.msk.f32.gmra.mxu0 %vm393_vm1, %v8511_v4  ;;  %6507 = vmatmul.mubr.msk.f32.gmra.mxu1 %vm393_vm1, %v8513_v28  ;;  %v8541_v28 = vld [vmem:[#allocation2 + $0x338] sm:$0xff] }
 0x195   : > { %6462 = vmatprep.mubr.msk.f32.mxu0 %vm393_vm1, %v8517_v60  ;;  %6509 = vmatprep.mubr.msk.f32.mxu1 %vm393_vm1, %v8521_v47  ;;  %9899 = vst [vmem:[#allocation24_spill] sm:$0xff] %v8541_v28  ;;  %v3550_v47 = vsel %vm442_vm0, %v7793_v20, 0  ;;  %v3908_v20 = vsel %vm442_vm0, %v8304_v12, 0  ;;  %v7110_v12 = vld [vmem:[#allocation2 + $0x148] sm:$0xff] }
 0x198   : > { %6463 = vmatmul.mubr.msk.f32.gmra.mxu0 %vm393_vm1, %v8527_v49  ;;  %6510 = vmatmul.mubr.msk.f32.gmra.mxu1 %vm393_vm1, %v8529_v23  ;;  %v8552_v23 = vld [vmem:[%s9761_s4 + $0x7] sm:$0x1] }
 0x199   : > { %6517 = vmatprep.mubr.msk.f32.mxu0 %vm393_vm1, %v8289_v44  ;;  %6512 = vmatprep.mubr.msk.f32.mxu1 %vm393_vm1, %v8535_v31  ;;  %v7107_v44 = vld [vmem:[#allocation2 + $0x130] sm:$0xff] }
 0x19c   : > { %6518 = vmatmul.mubr.msk.f32.vlgmr.msra.gmra.mxu0 %vm393_vm1, %v8299_v3  ;;  %6513 = vmatmul.mubr.msk.f32.gmra.mxu1 %vm393_vm1, %v8541_v28  ;;  %v8564_v3 = vld [vmem:[%s9761_s4 + $0x8] sm:$0x1]  ;;  %v7108_v28 = vld [vmem:[#allocation2 + $0x138] sm:$0xff] }
 0x19d   : > { %6520 = vmatprep.mubr.msk.f32.mxu0 %vm393_vm1, %v8308_v62  ;;  %6567 = vmatprep.mubr.msk.f32.mxu1 %vm393_vm1, %v7107_v44  ;;  %v7112_v44 = vld [vmem:[#allocation2 + $0x158] sm:$0xff] }
 0x19e   : > { %6616 = vmatpush3.bf16.msra.mxu0 %v3550_v47  ;;  %v7109_v47 = vld [vmem:[#allocation2 + $0x140] sm:$0xff] }
 0x19f   : > { %6823 = vmatprep.subr.msk.bf16.mxu0 %vm442_vm0, %v8552_v23 }
 0x1a0   : > { %6521 = vmatmul.mubr.msk.f32.gmra.mxu0 %vm393_vm1, %v8319_v27  ;;  %6568 = vmatmul.mubr.msk.f32.vlgmr.msra.gmra.mxu1 %vm393_vm1, %v7108_v28  ;;  %v7111_v28 = vld [vmem:[#allocation2 + $0x150] sm:$0xff] }
 0x1a1   : > { %6523 = vmatprep.mubr.msk.f32.mxu0 %vm393_vm1, %v8325_v55  ;;  %6666 = vmatpush3.bf16.msra.mxu1 %v3908_v20  ;;  %v8585_v20 = vld [vmem:[#allocation2 + $0x160] sm:$0xff] }
 0x1a2   : > { %6570 = vmatprep.mubr.msk.f32.mxu1 %vm393_vm1, %v7109_v47  ;;  %6824 = vmatprep.subr.msk.bf16.mxu1 %vm442_vm0, %v8564_v3  ;;  %v8591_v47 = vld [vmem:[#allocation2 + $0x168] sm:$0xff] }
 0x1a4   : > { %6524 = vmatmul.mubr.msk.f32.gmra.mxu0 %vm393_vm1, %v8335_v32  ;;  %6571 = vmatmul.mubr.msk.f32.gmra.mxu1 %vm393_vm1, %v7110_v12  ;;  %v7115_v12 = vld [vmem:[#allocation2 + $0x170] sm:$0xff] }
 0x1a5   : > { %6526 = vmatprep.mubr.msk.f32.mxu0 %vm393_vm1, %v8341_v45  ;;  %6573 = vmatprep.mubr.msk.f32.mxu1 %vm393_vm1, %v7111_v28  ;;  %v7116_v28 = vld [vmem:[#allocation2 + $0x178] sm:$0xff] }
 0x1a8   : > { %6527 = vmatmul.mubr.msk.f32.gmra.mxu0 %vm393_vm1, %v8351_v48  ;;  %6574 = vmatmul.mubr.msk.f32.gmra.mxu1 %vm393_vm1, %v7112_v44  ;;  %v9915_v44 = vld [vmem:[#allocation18_spill] sm:$0xff] }
 0x1a9   : > { %6529 = vmatprep.mubr.msk.f32.mxu0 %vm393_vm1, %v8357_v2  ;;  %6576 = vmatprep.mubr.msk.f32.mxu1 %vm393_vm1, %v8585_v20 }
 0x1ac   : > { %6530 = vmatmul.mubr.msk.f32.gmra.mxu0 %vm393_vm1, %v8367_v17  ;;  %6577 = vmatmul.mubr.msk.f32.gmra.mxu1 %vm393_vm1, %v8591_v47 }
 0x1ad   : > { %6532 = vmatprep.mubr.msk.f32.mxu0 %vm393_vm1, %v8373_v7  ;;  %6579 = vmatprep.mubr.msk.f32.mxu1 %vm393_vm1, %v7115_v12  ;;  %v9916_v12 = vld [vmem:[#allocation19_spill] sm:$0xff] }
 0x1b0   : > { %6533 = vmatmul.mubr.msk.f32.gmra.mxu0 %vm393_vm1, %v8383_v35  ;;  %6580 = vmatmul.mubr.msk.f32.gmra.mxu1 %vm393_vm1, %v7116_v28  ;;  %v9917_v28 = vld [vmem:[#allocation20_spill] sm:$0xff] }
 0x1b1   : > { %6535 = vmatprep.mubr.msk.f32.mxu0 %vm393_vm1, %v8389_v0  ;;  %6582 = vmatprep.mubr.msk.f32.mxu1 %vm393_vm1, %v7788_v1  ;;  %v8653_v1 = vpop.f32.mrf.mxu1 }
 0x1b2   : > { %9900 = vst [vmem:[#allocation25_spill] sm:$0xff] %v8653_v1  ;;  %v9920_v1 = vld [vmem:[#allocation23_spill] sm:$0xff] }
 0x1b4   : > { %6536 = vmatmul.mubr.msk.f32.gmra.mxu0 %vm393_vm1, %v8399_v14  ;;  %6583 = vmatmul.mubr.msk.f32.gmra.mxu1 %vm393_vm1, %v7827_v26 }
 0x1b5   : > { %6538 = vmatprep.mubr.msk.f32.mxu0 %vm393_vm1, %v8405_v15  ;;  %6585 = vmatprep.mubr.msk.f32.mxu1 %vm393_vm1, %v7858_v41 }
 0x1b8   : > { %6539 = vmatmul.mubr.msk.f32.gmra.mxu0 %vm393_vm1, %v8415_v19  ;;  %6586 = vmatmul.mubr.msk.f32.gmra.mxu1 %vm393_vm1, %v7900_v51 }
 0x1b9   : > { %6541 = vmatprep.mubr.msk.f32.mxu0 %vm393_vm1, %v8421_v33  ;;  %6588 = vmatprep.mubr.msk.f32.mxu1 %vm393_vm1, %v7909_v34 }
 0x1bc   : > { %6542 = vmatmul.mubr.msk.f32.gmra.mxu0 %vm393_vm1, %v8431_v8  ;;  %6589 = vmatmul.mubr.msk.f32.gmra.mxu1 %vm393_vm1, %v7939_v37 }
 0x1bd   : > { %6544 = vmatprep.mubr.msk.f32.mxu0 %vm393_vm1, %v8437_v11  ;;  %6591 = vmatprep.mubr.msk.f32.mxu1 %vm393_vm1, %v7924_v25  ;;  %v8681_v25 = vld [vmem:[#allocation2 + $0x100] sm:$0xff] }
 0x1c0   : > { %6545 = vmatmul.mubr.msk.f32.gmra.mxu0 %vm393_vm1, %v8447_v50  ;;  %6592 = vmatmul.mubr.msk.f32.gmra.mxu1 %vm393_vm1, %v8042_v38 }
 0x1c1   : > { %6547 = vmatprep.mubr.msk.f32.mxu0 %vm393_vm1, %v8453_v22  ;;  %6594 = vmatprep.mubr.msk.f32.mxu1 %vm393_vm1, %v8059_v53  ;;  %v8693_v53 = vld [vmem:[#allocation2 + $0x108] sm:$0xff] }
 0x1c4   : > { %6548 = vmatmul.mubr.msk.f32.gmra.mxu0 %vm393_vm1, %v8463_v46  ;;  %6595 = vmatmul.mubr.msk.f32.gmra.mxu1 %vm393_vm1, %v8079_v6  ;;  %v8699_v6 = vld [vmem:[#allocation2 + $0x220] sm:$0xff] }
 0x1c5   : > { %6550 = vmatprep.mubr.msk.f32.mxu0 %vm393_vm1, %v8469_v43  ;;  %6597 = vmatprep.mubr.msk.f32.mxu1 %vm393_vm1, %v8090_v40 }
 0x1c7   : > { %v8655_v26 = vpop.f32.mrf.mxu1 }
 0x1c8   : > { %6551 = vmatmul.mubr.msk.f32.gmra.mxu0 %vm393_vm1, %v8479_v18  ;;  %6598 = vmatmul.mubr.msk.f32.gmra.mxu1 %vm393_vm1, %v8115_v59 }
 0x1c9   : > { %6553 = vmatprep.mubr.msk.f32.mxu0 %vm393_vm1, %v8485_v10  ;;  %6600 = vmatprep.mubr.msk.f32.mxu1 %vm393_vm1, %v8135_v13  ;;  %v8665_v41 = vpop.f32.mrf.mxu1  ;;  %v8709_v13 = vld [vmem:[#allocation2 + $0x228] sm:$0xff] }
 0x1cb   : > { %v8667_v51 = vpop.f32.mrf.mxu1 }
 0x1cc   : > { %6554 = vmatmul.mubr.msk.f32.gmra.mxu0 %vm393_vm1, %v8495_v24  ;;  %6601 = vmatmul.mubr.msk.f32.gmra.mxu1 %vm393_vm1, %v8161_v63  ;;  %v4266_v63 = vsel %vm442_vm0, %v8552_v23, 0  ;;  %v9910_v23 = vld [vmem:[#allocation13_spill] sm:$0xff] }
 0x1cd   : > { %6556 = vmatprep.mubr.msk.f32.mxu0 %vm393_vm1, %v8501_v52  ;;  %6603 = vmatprep.mubr.msk.f32.mxu1 %vm393_vm1, %v8179_v42  ;;  %v8677_v34 = vpop.f32.mrf.mxu1  ;;  %v4624_v42 = vsel %vm442_vm0, %v8564_v3, 0  ;;  %v9914_v3 = vld [vmem:[#allocation17_spill] sm:$0xff]  ;;  %vm5377_vm0 = vcmask 11264  }
 0x1d0   : > { %6557 = vmatmul.mubr.msk.f32.gmra.mxu0 %vm393_vm1, %v8511_v4  ;;  %6604 = vmatmul.mubr.msk.f32.gmra.mxu1 %vm393_vm1, %v8187_v5 }
 0x1d1   : > { %6559 = vmatprep.mubr.msk.f32.mxu0 %vm393_vm1, %v8517_v60  ;;  %6606 = vmatprep.mubr.msk.f32.mxu1 %vm393_vm1, %v8191_v16  ;;  %v8685_v37 = vpop.f32.mrf.mxu1 }
 0x1d3   : > { %v8691_v38 = vpop.f32.mrf.mxu1 }
 0x1d4   : > { %6560 = vmatmul.mubr.msk.f32.gmra.mxu0 %vm393_vm1, %v8527_v49  ;;  %6607 = vmatmul.mubr.msk.f32.gmra.mxu1 %vm393_vm1, %v8224_v54 }
 0x1d5   : > { %6562 = vmatprep.mubr.msk.f32.mxu0 %vm393_vm1, %v8681_v25  ;;  %6609 = vmatprep.mubr.msk.f32.mxu1 %vm393_vm1, %v8280_v56  ;;  %v8701_v40 = vpop.f32.mrf.mxu1  ;;  %v9901_v56 = vld [vmem:[#allocation4_spill] sm:$0xff] }
 0x1d7   : > { %v8707_v59 = vpop.f32.mrf.mxu1 }
 0x1d8   : > { %6563 = vmatmul.mubr.msk.f32.gmra.mxu0 %vm393_vm1, %v8693_v53  ;;  %6610 = vmatmul.mubr.msk.f32.gmra.mxu1 %vm393_vm1, %v8284_v57 }
 0x1d9   : > { %6617 = vmatprep.mubr.msk.f32.mxu0 %vm393_vm1, %v8313_v36  ;;  %6612 = vmatprep.mubr.msk.f32.mxu1 %vm393_vm1, %v8699_v6  ;;  %v9903_v36 = vld [vmem:[#allocation6_spill] sm:$0xff] }
 0x1da   : > { %v8723_v5 = vpop.f32.mrf.mxu1 }
 0x1dc   : > { %6618 = vmatmul.mubr.msk.f32.vlgmr.msra.gmra.mxu0 %vm393_vm1, %v8321_v58  ;;  %6613 = vmatmul.mubr.msk.f32.gmra.mxu1 %vm393_vm1, %v8709_v13  ;;  %v8733_v16 = vpop.f32.mrf.mxu1  ;;  %v9904_v58 = vld [vmem:[#allocation7_spill] sm:$0xff] }
 0x1dd   : > { %6620 = vmatprep.mubr.msk.f32.mxu0 %vm393_vm1, %v8329_v30  ;;  %6667 = vmatprep.mubr.msk.f32.mxu1 %vm393_vm1, %v8308_v62  ;;  %v9902_v62 = vld [vmem:[#allocation5_spill] sm:$0xff] }
 0x1de   : > { %6716 = vmatpush3.bf16.msra.mxu0 %v4266_v63  ;;  %v9918_v63 = vld [vmem:[#allocation21_spill] sm:$0xff] }
 0x1df   : > { %v8743_v54 = vpop.f32.mrf.mxu1 }
 0x1e0   : > { %6621 = vmatmul.mubr.msk.f32.gmra.mxu0 %vm393_vm1, %v8337_v39  ;;  %6668 = vmatmul.mubr.msk.f32.vlgmr.msra.gmra.mxu1 %vm393_vm1, %v8319_v27 }
 0x1e1   : > { %6623 = vmatprep.mubr.msk.f32.mxu0 %vm393_vm1, %v8345_v21  ;;  %6766 = vmatpush3.bf16.msra.mxu1 %v4624_v42  ;;  %v8753_v57 = vpop.f32.mrf.mxu1  ;;  %v9919_v42 = vld [vmem:[#allocation22_spill] sm:$0xff] }
 0x1e2   : > { %6670 = vmatprep.mubr.msk.f32.mxu1 %vm393_vm1, %v8325_v55  ;;  %v9905_v55 = vld [vmem:[#allocation8_spill] sm:$0xff] }
 0x1e4   : > { %6624 = vmatmul.mubr.msk.f32.gmra.mxu0 %vm393_vm1, %v8353_v9  ;;  %6671 = vmatmul.mubr.msk.f32.gmra.mxu1 %vm393_vm1, %v8335_v32 }
 0x1e5   : > { %6626 = vmatprep.mubr.msk.f32.mxu0 %vm393_vm1, %v8361_v29  ;;  %6673 = vmatprep.mubr.msk.f32.mxu1 %vm393_vm1, %v8341_v45  ;;  %v9906_v45 = vld [vmem:[#allocation9_spill] sm:$0xff] }
 0x1e8   : > { %6627 = vmatmul.mubr.msk.f32.gmra.mxu0 %vm393_vm1, %v8369_v61  ;;  %6674 = vmatmul.mubr.msk.f32.gmra.mxu1 %vm393_vm1, %v8351_v48  ;;  %v8763_v27 = vpop.f32.mrf.mxu1  ;;  %v9907_v48 = vld [vmem:[#allocation10_spill] sm:$0xff] }
 0x1e9   : > { %6629 = vmatprep.mubr.msk.f32.mxu0 %vm393_vm1, %v9901_v56  ;;  %6676 = vmatprep.mubr.msk.f32.mxu1 %vm393_vm1, %v8357_v2 }
 0x1ea   : > { %v8773_v32 = vpop.f32.mrf.mxu1 }
 0x1ec   : > { %6630 = vmatmul.mubr.msk.f32.gmra.mxu0 %vm393_vm1, %v9902_v62  ;;  %6677 = vmatmul.mubr.msk.f32.gmra.mxu1 %vm393_vm1, %v8367_v17  ;;  %v8783_v2 = vpop.f32.mrf.mxu1  ;;  %v9908_v17 = vld [vmem:[#allocation11_spill] sm:$0xff] }
 0x1ed   : > { %6632 = vmatprep.mubr.msk.f32.mxu0 %vm393_vm1, %v9903_v36  ;;  %6679 = vmatprep.mubr.msk.f32.mxu1 %vm393_vm1, %v8373_v7  ;;  %v9909_v7 = vld [vmem:[#allocation12_spill] sm:$0xff] }
 0x1f0   : > { %6633 = vmatmul.mubr.msk.f32.gmra.mxu0 %vm393_vm1, %v9904_v58  ;;  %6680 = vmatmul.mubr.msk.f32.gmra.mxu1 %vm393_vm1, %v8383_v35  ;;  %v8793_v35 = vpop.f32.mrf.mxu1 }
 0x1f1   : > { %6635 = vmatprep.mubr.msk.f32.mxu0 %vm393_vm1, %v9905_v55  ;;  %6682 = vmatprep.mubr.msk.f32.mxu1 %vm393_vm1, %v8389_v0  ;;  %v9911_v0 = vld [vmem:[#allocation14_spill] sm:$0xff] }
 0x1f4   : > { %6636 = vmatmul.mubr.msk.f32.gmra.mxu0 %vm393_vm1, %v9906_v45  ;;  %6683 = vmatmul.mubr.msk.f32.gmra.mxu1 %vm393_vm1, %v8399_v14 }
 0x1f5   : > { %6638 = vmatprep.mubr.msk.f32.mxu0 %vm393_vm1, %v9907_v48  ;;  %6685 = vmatprep.mubr.msk.f32.mxu1 %vm393_vm1, %v8405_v15  ;;  %v9912_v15 = vld [vmem:[#allocation15_spill] sm:$0xff] }
 0x1f8   : > { %6639 = vmatmul.mubr.msk.f32.gmra.mxu0 %vm393_vm1, %v9908_v17  ;;  %6686 = vmatmul.mubr.msk.f32.gmra.mxu1 %vm393_vm1, %v8415_v19 }
 0x1f9   : > { %6641 = vmatprep.mubr.msk.f32.mxu0 %vm393_vm1, %v9909_v7  ;;  %6688 = vmatprep.mubr.msk.f32.mxu1 %vm393_vm1, %v8421_v33  ;;  %v9913_v33 = vld [vmem:[#allocation16_spill] sm:$0xff] }
 0x1fc   : > { %6642 = vmatmul.mubr.msk.f32.gmra.mxu0 %vm393_vm1, %v9910_v23  ;;  %6689 = vmatmul.mubr.msk.f32.gmra.mxu1 %vm393_vm1, %v8431_v8 }
 0x1fd   : > { %6644 = vmatprep.mubr.msk.f32.mxu0 %vm393_vm1, %v9911_v0  ;;  %6691 = vmatprep.mubr.msk.f32.mxu1 %vm393_vm1, %v8437_v11 }
 0x1fe   : > { %v8803_v14 = vpop.f32.mrf.mxu1 }
 0x200   : > { %6645 = vmatmul.mubr.msk.f32.gmra.mxu0 %vm393_vm1, %v9912_v15  ;;  %6692 = vmatmul.mubr.msk.f32.gmra.mxu1 %vm393_vm1, %v8447_v50  ;;  %v8809_v19 = vpop.f32.mrf.mxu1 }
 0x201   : > { %6647 = vmatprep.mubr.msk.f32.mxu0 %vm393_vm1, %v9913_v33  ;;  %6694 = vmatprep.mubr.msk.f32.mxu1 %vm393_vm1, %v8453_v22 }
 0x202   : > { %v8815_v8 = vpop.f32.mrf.mxu1 }
 0x204   : > { %6648 = vmatmul.mubr.msk.f32.gmra.mxu0 %vm393_vm1, %v9914_v3  ;;  %6695 = vmatmul.mubr.msk.f32.gmra.mxu1 %vm393_vm1, %v8463_v46  ;;  %v8821_v11 = vpop.f32.mrf.mxu1 }
 0x205   : > { %6650 = vmatprep.mubr.msk.f32.mxu0 %vm393_vm1, %v9915_v44  ;;  %6697 = vmatprep.mubr.msk.f32.mxu1 %vm393_vm1, %v8469_v43 }
 0x206   : > { %v8827_v50 = vpop.f32.mrf.mxu1 }
 0x208   : > { %6651 = vmatmul.mubr.msk.f32.gmra.mxu0 %vm393_vm1, %v9916_v12  ;;  %6698 = vmatmul.mubr.msk.f32.gmra.mxu1 %vm393_vm1, %v8479_v18  ;;  %v8833_v22 = vpop.f32.mrf.mxu1 }
 0x209   : > { %6653 = vmatprep.mubr.msk.f32.mxu0 %vm393_vm1, %v9917_v28  ;;  %6700 = vmatprep.mubr.msk.f32.mxu1 %vm393_vm1, %v8485_v10 }
 0x20a   : > { %v8839_v46 = vpop.f32.mrf.mxu1 }
 0x20c   : > { %6654 = vmatmul.mubr.msk.f32.gmra.mxu0 %vm393_vm1, %v9918_v63  ;;  %6701 = vmatmul.mubr.msk.f32.gmra.mxu1 %vm393_vm1, %v8495_v24  ;;  %v8845_v43 = vpop.f32.mrf.mxu1  ;;  %v9921_v24 = vld [vmem:[#allocation24_spill] sm:$0xff] }
 0x20d   : > { %6656 = vmatprep.mubr.msk.f32.mxu0 %vm393_vm1, %v9919_v42  ;;  %6703 = vmatprep.mubr.msk.f32.mxu1 %vm393_vm1, %v8501_v52  ;;  %v8865_v52 = vld [vmem:[#allocation2 + $0x340] sm:$0xff] }
 0x20e   : > { %9922 = vst [vmem:[#allocation4_spill] sm:$0xff] %v8865_v52 }
 0x20f   : > { %v8851_v18 = vpop.f32.mrf.mxu1 }
 0x210   : > { %6657 = vmatmul.mubr.msk.f32.gmra.mxu0 %vm393_vm1, %v9920_v1  ;;  %6704 = vmatmul.mubr.msk.f32.gmra.mxu1 %vm393_vm1, %v8511_v4  ;;  %v3807_v4 = vld [vmem:[#allocation2 + $0x110] sm:$0xff] }
 0x211   : > { %6659 = vmatprep.mubr.msk.f32.mxu0 %vm393_vm1, %v8535_v31  ;;  %6706 = vmatprep.mubr.msk.f32.mxu1 %vm393_vm1, %v8517_v60  ;;  %v8861_v10 = vpop.f32.mrf.mxu1  ;;  %v8875_v31 = vld [vmem:[#allocation2 + $0x348] sm:$0xff]  ;;  %v4135_v60 = vld [vmem:[#allocation2 + $0x140] sm:$0xff] }
 0x212   : > { %9923 = vst [vmem:[#allocation5_spill] sm:$0xff] %v8875_v31 }
 0x213   : > { %v8869_v1 = vpop.f32.mrf.mxu1 }
 0x214   : > { %6660 = vmatmul.mubr.msk.f32.gmra.mxu0 %vm393_vm1, %v9921_v24  ;;  %6707 = vmatmul.mubr.msk.f32.gmra.mxu1 %vm393_vm1, %v8527_v49  ;;  %v3808_v49 = vld [vmem:[#allocation2 + $0x118] sm:$0xff]  ;;  %v4136_v24 = vld [vmem:[#allocation2 + $0x148] sm:$0xff] }
 0x215   : > { %6662 = vmatprep.mubr.msk.f32.mxu0 %vm393_vm1, %v8865_v52  ;;  %6709 = vmatprep.mubr.msk.f32.mxu1 %vm393_vm1, %v8681_v25  ;;  %v8881_v42 = vpop.f32.mrf.mxu1  ;;  %v4137_v52 = vld [vmem:[#allocation2 + $0x150] sm:$0xff] }
 0x216   : > { %9924 = vst [vmem:[#allocation6_spill] sm:$0xff] %v8881_v42 }
 0x218   : > { %6663 = vmatmul.mubr.msk.f32.gmra.mxu0 %vm393_vm1, %v8875_v31  ;;  %6710 = vmatmul.mubr.msk.f32.gmra.mxu1 %vm393_vm1, %v8693_v53  ;;  %v8892_v53 = vpop.f32.mrf.mxu0 }
 0x219   : > { %6717 = vmatprep.mubr.msk.f32.mxu0 %vm393_vm1, %v4135_v60  ;;  %6712 = vmatprep.mubr.msk.f32.mxu1 %vm393_vm1, %v3807_v4  ;;  %9925 = vst [vmem:[#allocation7_spill] sm:$0xff] %v8892_v53  ;;  %v4138_v60 = vld [vmem:[#allocation2 + $0x158] sm:$0xff] }
 0x21c   : > { %6718 = vmatmul.mubr.msk.f32.vlgmr.msra.gmra.mxu0 %vm393_vm1, %v4136_v24  ;;  %v8886_v25 = vpop.f32.mrf.mxu1  ;;  %6713 = vmatmul.mubr.msk.f32.gmra.mxu1 %vm393_vm1, %v3808_v49  ;;  %v9927_v24 = vld [vmem:[#allocation3_spill] sm:$0xff] }
 0x21d   : > { %6720 = vmatprep.mubr.msk.f32.mxu0 %vm393_vm1, %v4137_v52  ;;  %6767 = vmatprep.mubr.msk.f32.mxu1 %vm393_vm1, %v8329_v30 }
 0x21e   : > { %v8894_v31 = vpop.f32.mrf.mxu1 }
 0x21f   : > { %9926 = vst [vmem:[#allocation8_spill] sm:$0xff] %v8894_v31 }
 0x220   : > { %v6422_v4 = vpop.f32.mrf.mxu0  ;;  %6721 = vmatmul.mubr.msk.f32.gmra.mxu0 %vm393_vm1, %v4138_v60  ;;  %v6469_v42 = vpop.f32.mrf.mxu1  ;;  %6768 = vmatmul.mubr.msk.f32.vlgmr.msra.gmra.mxu1 %vm393_vm1, %v8337_v39  ;;  %v4141_v39 = vld [vmem:[#allocation2 + $0x170] sm:$0xff] }
 0x221   : > { %v8900_v49 = vadd.f32 %v6469_v42, %v9927_v24  ;;  %6723 = vmatprep.mubr.msk.f32.mxu0 %vm393_vm1, %v8585_v20  ;;  %6770 = vmatprep.mubr.msk.f32.mxu1 %vm393_vm1, %v8345_v21  ;;  %v2202_v31 = vadd.f32 %v6422_v4, %v8655_v26 }
 0x222   : > { %v2196_v30 = vpop.f32.mrf.mxu0  ;;  %v8906_v52 = vpop.f32.mrf.mxu1 }
 0x223   : > { %9928 = vst [vmem:[#allocation9_spill] sm:$0xff] %v8900_v49  ;;  %9929 = vst [vmem:[#allocation10_spill] sm:$0xff] %v8906_v52  ;;  %v2197_v42 = vadd.f32 %v2196_v30, %v8665_v41  ;;  %v4143_v52 = vld [vmem:[#allocation2 + $0x180] sm:$0xff] }
 0x224   : > { %v6425_v53 = vpop.f32.mrf.mxu0  ;;  %6724 = vmatmul.mubr.msk.f32.gmra.mxu0 %vm393_vm1, %v8591_v47  ;;  %v6472_v60 = vpop.f32.mrf.mxu1  ;;  %6771 = vmatmul.mubr.msk.f32.gmra.mxu1 %vm393_vm1, %v8353_v9  ;;  %v4142_v47 = vld [vmem:[#allocation2 + $0x178] sm:$0xff] }
 0x225   : > { %v8914_v20 = vadd.f32 %v6472_v60, %v2202_v31  ;;  %6726 = vmatprep.mubr.msk.f32.mxu0 %vm393_vm1, %v4141_v39  ;;  %6773 = vmatprep.mubr.msk.f32.mxu1 %vm393_vm1, %v8361_v29  ;;  %v2212_v4 = vadd.f32 %v6425_v53, %v8667_v51  ;;  %v4144_v60 = vld [vmem:[#allocation2 + $0x188] sm:$0xff] }
 0x226   : > { %v2206_v21 = vpop.f32.mrf.mxu0  ;;  %v2522_v26 = vpop.f32.mrf.mxu1 }
 0x227   : > { %v8920_v24 = vadd.f32 %v2522_v26, %v2197_v42  ;;  %v2207_v41 = vadd.f32 %v2206_v21, %v8677_v34  ;;  %v4145_v42 = vld [vmem:[#allocation2 + $0x190] sm:$0xff]  ;;  %v4146_v26 = vld [vmem:[#allocation2 + $0x198] sm:$0xff] }
 0x228   : > { %v6428_v49 = vpop.f32.mrf.mxu0  ;;  %6727 = vmatmul.mubr.msk.f32.gmra.mxu0 %vm393_vm1, %v4142_v47  ;;  %v6475_v9 = vpop.f32.mrf.mxu1  ;;  %6774 = vmatmul.mubr.msk.f32.gmra.mxu1 %vm393_vm1, %v8369_v61  ;;  %v4147_v47 = vld [vmem:[#allocation2 + $0x1a0] sm:$0xff] }
 0x229   : > { %v8926_v31 = vadd.f32 %v6475_v9, %v2212_v4  ;;  %6729 = vmatprep.mubr.msk.f32.mxu0 %vm393_vm1, %v4143_v52  ;;  %6776 = vmatprep.mubr.msk.f32.mxu1 %vm393_vm1, %v9901_v56  ;;  %v2222_v53 = vadd.f32 %v6428_v49, %v8685_v37 }
 0x22a   : > { %v2216_v29 = vpop.f32.mrf.mxu0  ;;  %v2532_v51 = vpop.f32.mrf.mxu1 }
 0x22b   : > { %v8932_v30 = vadd.f32 %v2532_v51, %v2207_v41  ;;  %v2217_v34 = vadd.f32 %v2216_v29, %v8691_v38  ;;  %v4148_v51 = vld [vmem:[#allocation2 + $0x1a8] sm:$0xff] }
 0x22c   : > { %v6431_v39 = vpop.f32.mrf.mxu0  ;;  %6730 = vmatmul.mubr.msk.f32.gmra.mxu0 %vm393_vm1, %v4144_v60  ;;  %v6478_v61 = vpop.f32.mrf.mxu1  ;;  %6777 = vmatmul.mubr.msk.f32.gmra.mxu1 %vm393_vm1, %v9902_v62  ;;  %v4149_v60 = vld [vmem:[#allocation2 + $0x1b0] sm:$0xff] }
 0x22d   : > { %v8938_v52 = vadd.f32 %v6478_v61, %v2222_v53  ;;  %6732 = vmatprep.mubr.msk.f32.mxu0 %vm393_vm1, %v4145_v42  ;;  %6779 = vmatprep.mubr.msk.f32.mxu1 %vm393_vm1, %v9903_v36  ;;  %v2232_v49 = vadd.f32 %v6431_v39, %v8701_v40 }
 0x22e   : > { %v2226_v37 = vpop.f32.mrf.mxu0  ;;  %v2542_v56 = vpop.f32.mrf.mxu1 }
 0x22f   : > { %v8944_v21 = vadd.f32 %v2542_v56, %v2217_v34  ;;  %v2227_v38 = vadd.f32 %v2226_v37, %v8707_v59  ;;  %v4150_v34 = vld [vmem:[#allocation2 + $0x1b8] sm:$0xff]  ;;  %v4151_v56 = vld [vmem:[#allocation2 + $0x1c0] sm:$0xff] }
 0x230   : > { %v6434_v4 = vpop.f32.mrf.mxu0  ;;  %6733 = vmatmul.mubr.msk.f32.gmra.mxu0 %vm393_vm1, %v4146_v26  ;;  %v6481_v62 = vpop.f32.mrf.mxu1  ;;  %6780 = vmatmul.mubr.msk.f32.gmra.mxu1 %vm393_vm1, %v9904_v58 }
 0x231   : > { %v8950_v9 = vadd.f32 %v6481_v62, %v2232_v49  ;;  %6735 = vmatprep.mubr.msk.f32.mxu0 %vm393_vm1, %v4147_v47  ;;  %6782 = vmatprep.mubr.msk.f32.mxu1 %vm393_vm1, %v9905_v55  ;;  %v2242_v41 = vadd.f32 %v6434_v4, %v8723_v5  ;;  %v4152_v62 = vld [vmem:[#allocation2 + $0x1c8] sm:$0xff] }
 0x232   : > { %v2236_v40 = vpop.f32.mrf.mxu0  ;;  %v2552_v36 = vpop.f32.mrf.mxu1 }
 0x233   : > { %v8956_v29 = vadd.f32 %v2552_v36, %v2227_v38  ;;  %v2237_v59 = vadd.f32 %v2236_v40, %v8733_v16  ;;  %v4153_v38 = vld [vmem:[#allocation2 + $0x1d0] sm:$0xff] }
 0x234   : > { %v6437_v53 = vpop.f32.mrf.mxu0  ;;  %6736 = vmatmul.mubr.msk.f32.gmra.mxu0 %vm393_vm1, %v4148_v51  ;;  %v6484_v58 = vpop.f32.mrf.mxu1  ;;  %6783 = vmatmul.mubr.msk.f32.gmra.mxu1 %vm393_vm1, %v9906_v45  ;;  %v4154_v51 = vld [vmem:[#allocation2 + $0x1d8] sm:$0xff] }
 0x235   : > { %v8962_v39 = vadd.f32 %v6484_v58, %v2242_v41  ;;  %6738 = vmatprep.mubr.msk.f32.mxu0 %vm393_vm1, %v4149_v60  ;;  %6785 = vmatprep.mubr.msk.f32.mxu1 %vm393_vm1, %v9907_v48  ;;  %v2252_v61 = vadd.f32 %v6437_v53, %v8743_v54  ;;  %v4155_v58 = vld [vmem:[#allocation2 + $0x1e0] sm:$0xff] }
 0x236   : > { %v2246_v5 = vpop.f32.mrf.mxu0  ;;  %v2562_v55 = vpop.f32.mrf.mxu1 }
 0x237   : > { %v8968_v42 = vadd.f32 %v2562_v55, %v2237_v59  ;;  %v2247_v16 = vadd.f32 %v2246_v5, %v8753_v57  ;;  %v4156_v55 = vld [vmem:[#allocation2 + $0x1e8] sm:$0xff] }
 0x238   : > { %v6440_v37 = vpop.f32.mrf.mxu0  ;;  %6739 = vmatmul.mubr.msk.f32.gmra.mxu0 %vm393_vm1, %v4150_v34  ;;  %v6487_v45 = vpop.f32.mrf.mxu1  ;;  %6786 = vmatmul.mubr.msk.f32.gmra.mxu1 %vm393_vm1, %v9908_v17  ;;  %v4157_v34 = vld [vmem:[#allocation2 + $0x1f0] sm:$0xff] }
 0x239   : > { %v8974_v49 = vadd.f32 %v6487_v45, %v2252_v61  ;;  %6741 = vmatprep.mubr.msk.f32.mxu0 %vm393_vm1, %v4151_v56  ;;  %6788 = vmatprep.mubr.msk.f32.mxu1 %vm393_vm1, %v9909_v7  ;;  %v2262_v26 = vadd.f32 %v6440_v37, %v8763_v27 }
 0x23a   : > { %v2256_v54 = vpop.f32.mrf.mxu0  ;;  %v2572_v48 = vpop.f32.mrf.mxu1 }
 0x23b   : > { %v8980_v4 = vadd.f32 %v2572_v48, %v2247_v16  ;;  %v2257_v57 = vadd.f32 %v2256_v54, %v8773_v32  ;;  %v4158_v16 = vld [vmem:[#allocation2 + $0x1f8] sm:$0xff]  ;;  %v4159_v48 = vld [vmem:[#allocation2 + $0x200] sm:$0xff] }
 0x23c   : > { %v6443_v47 = vpop.f32.mrf.mxu0  ;;  %6742 = vmatmul.mubr.msk.f32.gmra.mxu0 %vm393_vm1, %v4152_v62  ;;  %v6490_v17 = vpop.f32.mrf.mxu1  ;;  %6789 = vmatmul.mubr.msk.f32.gmra.mxu1 %vm393_vm1, %v9910_v23 }
 0x23d   : > { %v8986_v40 = vadd.f32 %v6490_v17, %v2262_v26  ;;  %6744 = vmatprep.mubr.msk.f32.mxu0 %vm393_vm1, %v4153_v38  ;;  %6791 = vmatprep.mubr.msk.f32.mxu1 %vm393_vm1, %v9911_v0  ;;  %v2272_v36 = vadd.f32 %v6443_v47, %v8783_v2  ;;  %v4160_v17 = vld [vmem:[#allocation2 + $0x208] sm:$0xff] }
 0x23e   : > { %v2266_v27 = vpop.f32.mrf.mxu0  ;;  %v2582_v7 = vpop.f32.mrf.mxu1 }
 0x23f   : > { %v8992_v41 = vadd.f32 %v2582_v7, %v2257_v57  ;;  %v2267_v32 = vadd.f32 %v2266_v27, %v8793_v35  ;;  %v4161_v57 = vld [vmem:[#allocation2 + $0x210] sm:$0xff] }
 0x240   : > { %v6446_v53 = vpop.f32.mrf.mxu0  ;;  %6745 = vmatmul.mubr.msk.f32.gmra.mxu0 %vm393_vm1, %v4154_v51  ;;  %v6493_v23 = vpop.f32.mrf.mxu1  ;;  %6792 = vmatmul.mubr.msk.f32.gmra.mxu1 %vm393_vm1, %v9912_v15 }
 0x241   : > { %v8998_v60 = vadd.f32 %v6493_v23, %v2272_v36  ;;  %6747 = vmatprep.mubr.msk.f32.mxu0 %vm393_vm1, %v4155_v58  ;;  %6794 = vmatprep.mubr.msk.f32.mxu1 %vm393_vm1, %v9913_v33  ;;  %v2282_v59 = vadd.f32 %v6446_v53, %v8803_v14  ;;  %v4162_v23 = vld [vmem:[#allocation2 + $0x218] sm:$0xff]  ;;  %v4518_v58 = vld [vmem:[#allocation2 + $0x328] sm:$0xff] }
 0x242   : > { %v2276_v2 = vpop.f32.mrf.mxu0  ;;  %v2592_v0 = vpop.f32.mrf.mxu1 }
 0x243   : > { %v9004_v5 = vadd.f32 %v2592_v0, %v2267_v32  ;;  %v2277_v35 = vadd.f32 %v2276_v2, %v8809_v19  ;;  %v4519_v32 = vld [vmem:[#allocation2 + $0x330] sm:$0xff] }
 0x244   : > { %v6449_v61 = vpop.f32.mrf.mxu0  ;;  %6748 = vmatmul.mubr.msk.f32.gmra.mxu0 %vm393_vm1, %v4156_v55  ;;  %v6496_v15 = vpop.f32.mrf.mxu1  ;;  %6795 = vmatmul.mubr.msk.f32.gmra.mxu1 %vm393_vm1, %v9914_v3 }
 0x245   : > { %v9010_v37 = vadd.f32 %v6496_v15, %v2282_v59  ;;  %6750 = vmatprep.mubr.msk.f32.mxu0 %vm393_vm1, %v4157_v34  ;;  %6797 = vmatprep.mubr.msk.f32.mxu1 %vm393_vm1, %v9915_v44  ;;  %v2292_v45 = vadd.f32 %v6449_v61, %v8815_v8  ;;  %v4165_v59 = vld [vmem:[#allocation2 + $0x230] sm:$0xff]  ;;  %v4520_v15 = vld [vmem:[#allocation2 + $0x338] sm:$0xff] }
 0x246   : > { %v2286_v14 = vpop.f32.mrf.mxu0  ;;  %v2602_v33 = vpop.f32.mrf.mxu1 }
 0x247   : > { %v9016_v56 = vadd.f32 %v2602_v33, %v2277_v35  ;;  %v2287_v19 = vadd.f32 %v2286_v14, %v8821_v11  ;;  %v4517_v11 = vld [vmem:[#allocation2 + $0x320] sm:$0xff]  ;;  %v9930_v14 = vld [vmem:[#allocation4_spill] sm:$0xff] }
 0x248   : > { %v6452_v54 = vpop.f32.mrf.mxu0  ;;  %6751 = vmatmul.mubr.msk.f32.gmra.mxu0 %vm393_vm1, %v4158_v16  ;;  %v6499_v3 = vpop.f32.mrf.mxu1  ;;  %6798 = vmatmul.mubr.msk.f32.gmra.mxu1 %vm393_vm1, %v9916_v12  ;;  %v4523_v16 = vld [vmem:[#allocation2 + $0x350] sm:$0xff] }
 0x249   : > { %v9022_v26 = vadd.f32 %v6499_v3, %v2292_v45  ;;  %6753 = vmatprep.mubr.msk.f32.mxu0 %vm393_vm1, %v4159_v48  ;;  %6800 = vmatprep.mubr.msk.f32.mxu1 %vm393_vm1, %v9917_v28  ;;  %v2302_v62 = vadd.f32 %v6452_v54, %v8827_v50  ;;  %v9931_v54 = vld [vmem:[#allocation6_spill] sm:$0xff] }
 0x24a   : > { %v2296_v8 = vpop.f32.mrf.mxu0  ;;  %v2612_v44 = vpop.f32.mrf.mxu1 }
 0x24b   : > { %v9028_v47 = vadd.f32 %v2612_v44, %v2287_v19  ;;  %v2297_v27 = vadd.f32 %v2296_v8, %v8833_v22 }
 0x24c   : > { %v6455_v38 = vpop.f32.mrf.mxu0  ;;  %6754 = vmatmul.mubr.msk.f32.gmra.mxu0 %vm393_vm1, %v4160_v17  ;;  %v6502_v12 = vpop.f32.mrf.mxu1  ;;  %6801 = vmatmul.mubr.msk.f32.gmra.mxu1 %vm393_vm1, %v9918_v63 }
 0x24d   : > { %v9034_v7 = vadd.f32 %v6502_v12, %v2302_v62  ;;  %6756 = vmatprep.mubr.msk.f32.mxu0 %vm393_vm1, %v4161_v57  ;;  %6803 = vmatprep.mubr.msk.f32.mxu1 %vm393_vm1, %v4517_v11  ;;  %v2312_v36 = vadd.f32 %v6455_v38, %v8839_v46  ;;  %v4524_v62 = vld [vmem:[#allocation2 + $0x358] sm:$0xff]  ;;  %v9933_v12 = vld [vmem:[#allocation25_spill] sm:$0xff]  ;;  %v9934_v57 = vld [vmem:[#allocation7_spill] sm:$0xff] }
 0x24e   : > { %v2306_v50 = vpop.f32.mrf.mxu0  ;;  %v2622_v28 = vpop.f32.mrf.mxu1  ;;  %v2187_v11 = vadd.f32 %v9934_v57, %v9933_v12 }
 0x24f   : > { %v2307_v51 = vadd.f32 %v2306_v50, %v8845_v43  ;;  %v9040_v53 = vadd.f32 %v2622_v28, %v2297_v27  ;;  %v9935_v27 = vld [vmem:[#allocation8_spill] sm:$0xff] }
 0x250   : > { %v6458_v63 = vpop.f32.mrf.mxu0  ;;  %6757 = vmatmul.mubr.msk.f32.gmra.mxu0 %vm393_vm1, %v4162_v23  ;;  %v6505_v22 = vpop.f32.mrf.mxu1  ;;  %6804 = vmatmul.mubr.msk.f32.gmra.mxu1 %vm393_vm1, %v4518_v58  ;;  %v9936_v23 = vld [vmem:[#allocation10_spill] sm:$0xff]  ;;  %v9937_v58 = vld [vmem:[#allocation9_spill] sm:$0xff] }
 0x251   : > { %v2322_v2 = vadd.f32 %v6458_v63, %v8851_v18  ;;  %v9045_v0 = vadd.f32 %v6505_v22, %v2312_v36  ;;  %6759 = vmatprep.mubr.msk.f32.mxu0 %vm393_vm1, %v8699_v6  ;;  %6806 = vmatprep.mubr.msk.f32.mxu1 %vm393_vm1, %v4519_v32 }
 0x252   : > { %v2316_v46 = vpop.f32.mrf.mxu0  ;;  %v2632_v43 = vpop.f32.mrf.mxu1 }
 0x253   : > { %v2317_v55 = vadd.f32 %v2316_v46, %v8861_v10  ;;  %v9051_v61 = vadd.f32 %v2632_v43, %v2307_v51  ;;  %v4166_v10 = vld [vmem:[#allocation2 + $0x238] sm:$0xff] }
 0x254   : > { %v6461_v34 = vpop.f32.mrf.mxu0  ;;  %6760 = vmatmul.mubr.msk.f32.gmra.mxu0 %vm393_vm1, %v8709_v13  ;;  %v6508_v18 = vpop.f32.mrf.mxu1  ;;  %6807 = vmatmul.mubr.msk.f32.gmra.mxu1 %vm393_vm1, %v4520_v15 }
 0x255   : > { %v2332_v35 = vadd.f32 %v6461_v34, %v8869_v1  ;;  %v9057_v6 = vadd.f32 %v6508_v18, %v2322_v2  ;;  %6809 = vmatprep.mubr.msk.f32.mxu1 %vm393_vm1, %v9930_v14  ;;  %6762 = vmatprep.mubr.msk.f32.mxu0 %vm393_vm1, %v4165_v59  ;;  %v9932_v1 = vld [vmem:[#allocation5_spill] sm:$0xff] }
 0x256   : > { %v2326_v33 = vpop.f32.mrf.mxu0  ;;  %v2642_v45 = vpop.f32.mrf.mxu1 }
 0x257   : > { %v2327_v3 = vadd.f32 %v2326_v33, %v9931_v54  ;;  %v9063_v48 = vadd.f32 %v2642_v45, %v2317_v55 }
 0x258   : > { %v6464_v13 = vpop.f32.mrf.mxu0  ;;  %6763 = vmatmul.mubr.msk.f32.gmra.mxu0 %vm393_vm1, %v4166_v10  ;;  %v6511_v19 = vpop.f32.mrf.mxu1  ;;  %6810 = vmatmul.mubr.msk.f32.gmra.mxu1 %vm393_vm1, %v9932_v1 }
 0x259   : > { %v2342_v8 = vadd.f32 %v6464_v13, %v8886_v25  ;;  %v9069_v44 = vadd.f32 %v6511_v19, %v2332_v35  ;;  %6812 = vmatprep.mubr.msk.f32.mxu1 %vm393_vm1, %v4523_v16  ;;  %v2671_v25 = vadd.f32 %v9936_v23, %v2187_v11 }
 0x25a   : > { %v2336_v17 = vpop.f32.mrf.mxu0  ;;  %v2652_v38 = vpop.f32.mrf.mxu1 }
 0x25b   : > { %v2337_v50 = vadd.f32 %v2336_v17, %v9935_v27  ;;  %v9075_v28 = vadd.f32 %v2652_v38, %v2327_v3 }
 0x25c   : > { %v6519_v36 = vpop.f32.mrf.mxu0  ;;  %v6514_v51 = vpop.f32.mrf.mxu1  ;;  %6813 = vmatmul.mubr.msk.f32.gmra.mxu1 %vm393_vm1, %v4524_v62 }
 0x25d   : > { %v3030_v63 = vadd.f32 %v6519_v36, %v9937_v58  ;;  %v9080_v22 = vadd.f32 %v6514_v51, %v2342_v8 }
 0x25e   : > { %v2870_v32 = vpop.f32.mrf.mxu0  ;;  %v2662_v2 = vpop.f32.mrf.mxu1 }
 0x25f   : > { %v3029_v46 = vadd.f32 %v2870_v32, %v2671_v25  ;;  %v9082_v43 = vadd.f32 %v2662_v2, %v2337_v50 }
 0x260   : > { %v6522_v59 = vpop.f32.mrf.mxu0  ;;  %v6569_v55 = vpop.f32.mrf.mxu1 }
 0x261   : > { %v3032_v15 = vadd.f32 %v6522_v59, %v8914_v20  ;;  %v9085_v34 = vadd.f32 %v6569_v55, %v3030_v63 }
 0x262   : > { %v2880_v18 = vpop.f32.mrf.mxu0  ;;  %v3228_v35 = vpop.f32.mrf.mxu1 }
 0x263   : > { %v3031_v14 = vadd.f32 %v2880_v18, %v8920_v24  ;;  %v9088_v10 = vadd.f32 %v3228_v35, %v3029_v46 }
 0x264   : > { %v6525_v33 = vpop.f32.mrf.mxu0  ;;  %v6572_v45 = vpop.f32.mrf.mxu1 }
 0x265   : > { %v3034_v16 = vadd.f32 %v6525_v33, %v8926_v31  ;;  %v9091_v54 = vadd.f32 %v6572_v45, %v3032_v15 }
 0x266   : > { %v2890_v3 = vpop.f32.mrf.mxu0  ;;  %v3238_v13 = vpop.f32.mrf.mxu1 }
 0x267   : > { %v3033_v19 = vadd.f32 %v2890_v3, %v8932_v30  ;;  %v9094_v1 = vadd.f32 %v3238_v13, %v3031_v14 }
 0x268   : > { %v6528_v20 = vpop.f32.mrf.mxu0  ;;  %v6575_v8 = vpop.f32.mrf.mxu1 }
 0x269   : > { %v3036_v62 = vadd.f32 %v6528_v20, %v8938_v52  ;;  %v9097_v17 = vadd.f32 %v6575_v8, %v3034_v16 }
 0x26a   : > { %v2900_v24 = vpop.f32.mrf.mxu0  ;;  %v3248_v38 = vpop.f32.mrf.mxu1 }
 0x26b   : > { %v3035_v12 = vadd.f32 %v2900_v24, %v8944_v21  ;;  %v9100_v57 = vadd.f32 %v3248_v38, %v3033_v19 }
 0x26c   : > { %v6531_v31 = vpop.f32.mrf.mxu0  ;;  %v6578_v11 = vpop.f32.mrf.mxu1 }
 0x26d   : > { %v3038_v27 = vadd.f32 %v6531_v31, %v8950_v9  ;;  %v9103_v50 = vadd.f32 %v6578_v11, %v3036_v62 }
 0x26e   : > { %v2910_v30 = vpop.f32.mrf.mxu0  ;;  %v3258_v36 = vpop.f32.mrf.mxu1 }
 0x26f   : > { %v3037_v51 = vadd.f32 %v2910_v30, %v8956_v29  ;;  %v9106_v23 = vadd.f32 %v3258_v36, %v3035_v12 }
 0x270   : > { %v6534_v52 = vpop.f32.mrf.mxu0  ;;  %v6581_v25 = vpop.f32.mrf.mxu1 }
 0x271   : > { %v3040_v58 = vadd.f32 %v6534_v52, %v8962_v39  ;;  %v9109_v63 = vadd.f32 %v6581_v25, %v3038_v27 }
 0x272   : > { %v2920_v21 = vpop.f32.mrf.mxu0  ;;  %v3268_v32 = vpop.f32.mrf.mxu1 }
 0x273   : > { %v3039_v2 = vadd.f32 %v2920_v21, %v8968_v42  ;;  %v9112_v46 = vadd.f32 %v3268_v32, %v3037_v51 }
 0x274   : > { %v6537_v9 = vpop.f32.mrf.mxu0  ;;  %v6584_v59 = vpop.f32.mrf.mxu1 }
 0x275   : > { %v3042_v55 = vadd.f32 %v6537_v9, %v8974_v49  ;;  %v9115_v15 = vadd.f32 %v6584_v59, %v3040_v58 }
 0x276   : > { %v2930_v29 = vpop.f32.mrf.mxu0  ;;  %v3278_v18 = vpop.f32.mrf.mxu1 }
 0x277   : > { %v3041_v35 = vadd.f32 %v2930_v29, %v8980_v4  ;;  %v9118_v14 = vadd.f32 %v3278_v18, %v3039_v2 }
 0x278   : > { %v6540_v39 = vpop.f32.mrf.mxu0  ;;  %v6587_v33 = vpop.f32.mrf.mxu1 }
 0x279   : > { %v3044_v45 = vadd.f32 %v6540_v39, %v8986_v40  ;;  %v9121_v16 = vadd.f32 %v6587_v33, %v3042_v55 }
 0x27a   : > { %v2940_v42 = vpop.f32.mrf.mxu0  ;;  %v3288_v3 = vpop.f32.mrf.mxu1 }
 0x27b   : > { %v3043_v13 = vadd.f32 %v2940_v42, %v8992_v41  ;;  %v9124_v19 = vadd.f32 %v3288_v3, %v3041_v35 }
 0x27c   : > { %v6543_v49 = vpop.f32.mrf.mxu0  ;;  %v6590_v20 = vpop.f32.mrf.mxu1 }
 0x27d   : > { %9938 = vst [vmem:[#allocation11_spill] sm:$0xff] %v9124_v19  ;;  %v3046_v8 = vadd.f32 %v6543_v49, %v8998_v60  ;;  %v9127_v62 = vadd.f32 %v6590_v20, %v3044_v45 }
 0x27e   : > { %v2950_v4 = vpop.f32.mrf.mxu0  ;;  %v3298_v24 = vpop.f32.mrf.mxu1 }
 0x27f   : > { %9939 = vst [vmem:[#allocation12_spill] sm:$0xff] %v9127_v62  ;;  %v3045_v38 = vadd.f32 %v2950_v4, %v9004_v5  ;;  %v9130_v12 = vadd.f32 %v3298_v24, %v3043_v13 }
 0x280   : > { %v6546_v40 = vpop.f32.mrf.mxu0  ;;  %v6593_v31 = vpop.f32.mrf.mxu1 }
 0x281   : > { %9940 = vst [vmem:[#allocation13_spill] sm:$0xff] %v9130_v12  ;;  %v3048_v11 = vadd.f32 %v6546_v40, %v9010_v37  ;;  %v9133_v27 = vadd.f32 %v6593_v31, %v3046_v8 }
 0x282   : > { %v2960_v41 = vpop.f32.mrf.mxu0  ;;  %v3308_v30 = vpop.f32.mrf.mxu1 }
 0x283   : > { %9941 = vst [vmem:[#allocation14_spill] sm:$0xff] %v9133_v27  ;;  %v3047_v36 = vadd.f32 %v2960_v41, %v9016_v56  ;;  %v9136_v51 = vadd.f32 %v3308_v30, %v3045_v38 }
 0x284   : > { %v6549_v60 = vpop.f32.mrf.mxu0  ;;  %v6596_v52 = vpop.f32.mrf.mxu1 }
 0x285   : > { %v3050_v25 = vadd.f32 %v6549_v60, %v9022_v26  ;;  %v9139_v58 = vadd.f32 %v6596_v52, %v3048_v11 }
 0x286   : > { %v2970_v5 = vpop.f32.mrf.mxu0  ;;  %v3318_v21 = vpop.f32.mrf.mxu1 }
 0x287   : > { %9942 = vst [vmem:[#allocation15_spill] sm:$0xff] %v9139_v58  ;;  %v3049_v32 = vadd.f32 %v2970_v5, %v9028_v47  ;;  %v9142_v2 = vadd.f32 %v3318_v21, %v3047_v36 }
 0x288   : > { %v6552_v37 = vpop.f32.mrf.mxu0  ;;  %v6599_v9 = vpop.f32.mrf.mxu1 }
 0x289   : > { %v3052_v59 = vadd.f32 %v6552_v37, %v9034_v7  ;;  %v9145_v55 = vadd.f32 %v6599_v9, %v3050_v25 }
 0x28a   : > { %v2980_v56 = vpop.f32.mrf.mxu0  ;;  %v3328_v29 = vpop.f32.mrf.mxu1 }
 0x28b   : > { %v3051_v18 = vadd.f32 %v2980_v56, %v9040_v53  ;;  %v9148_v35 = vadd.f32 %v3328_v29, %v3049_v32 }
 0x28c   : > { %v6555_v26 = vpop.f32.mrf.mxu0  ;;  %v6602_v39 = vpop.f32.mrf.mxu1 }
 0x28d   : > { %v3054_v33 = vadd.f32 %v6555_v26, %v9045_v0  ;;  %v9151_v45 = vadd.f32 %v6602_v39, %v3052_v59 }
 0x28e   : > { %v2990_v47 = vpop.f32.mrf.mxu0  ;;  %v3338_v42 = vpop.f32.mrf.mxu1 }
 0x28f   : > { %v3053_v3 = vadd.f32 %v2990_v47, %v9051_v61  ;;  %v9154_v13 = vadd.f32 %v3338_v42, %v3051_v18 }
 0x290   : > { %v6558_v7 = vpop.f32.mrf.mxu0  ;;  %v6605_v49 = vpop.f32.mrf.mxu1 }
 0x291   : > { %v3056_v20 = vadd.f32 %v6558_v7, %v9057_v6  ;;  %v9157_v8 = vadd.f32 %v6605_v49, %v3054_v33 }
 0x292   : > { %v3000_v53 = vpop.f32.mrf.mxu0  ;;  %v3348_v4 = vpop.f32.mrf.mxu1 }
 0x293   : > { %v3055_v24 = vadd.f32 %v3000_v53, %v9063_v48  ;;  %v9160_v38 = vadd.f32 %v3348_v4, %v3053_v3 }
 0x294   : > { %v6561_v0 = vpop.f32.mrf.mxu0  ;;  %v6608_v40 = vpop.f32.mrf.mxu1 }
 0x295   : > { %v3058_v31 = vadd.f32 %v6561_v0, %v9069_v44  ;;  %v9163_v11 = vadd.f32 %v6608_v40, %v3056_v20 }
 0x296   : > { %v3010_v61 = vpop.f32.mrf.mxu0  ;;  %v3358_v41 = vpop.f32.mrf.mxu1 }
 0x297   : > { %v3057_v30 = vadd.f32 %v3010_v61, %v9075_v28  ;;  %v9166_v36 = vadd.f32 %v3358_v41, %v3055_v24 }
 0x298   : > { %v6564_v6 = vpop.f32.mrf.mxu0  ;;  %v6611_v60 = vpop.f32.mrf.mxu1 }
 0x299   : > { %v3060_v52 = vadd.f32 %v6564_v6, %v9080_v22  ;;  %v9169_v25 = vadd.f32 %v6611_v60, %v3058_v31 }
 0x29a   : > { %v3020_v48 = vpop.f32.mrf.mxu0  ;;  %v3368_v5 = vpop.f32.mrf.mxu1 }
 0x29b   : > { %v3059_v21 = vadd.f32 %v3020_v48, %v9082_v43  ;;  %v9172_v32 = vadd.f32 %v3368_v5, %v3057_v30 }
 0x29c   : > { %v9174_v44 = vpop.f32.mrf.mxu0  ;;  %v6614_v37 = vpop.f32.mrf.mxu1 }
 0x29d   : > { %v9176_v9 = vadd.f32 %v6614_v37, %v3060_v52 }
 0x29e   : > { %v9178_v28 = vpop.f32.mrf.mxu0  ;;  %v3378_v59 = vpop.f32.mrf.mxu1 }
 0x29f   : > { %v9180_v56 = vadd.f32 %v3378_v59, %v3059_v21 }
 0x2a0   : > { %v9182_v29 = vpop.f32.mrf.mxu0  ;;  %v9184_v22 = vpop.f32.mrf.mxu1 }
 0x2a2   : > { %v9186_v18 = vpop.f32.mrf.mxu0  ;;  %v9188_v26 = vpop.f32.mrf.mxu1 }
 0x2a4   : > { %v9190_v43 = vpop.f32.mrf.mxu0  ;;  %v9192_v39 = vpop.f32.mrf.mxu1 }
 0x2a6   : > { %v9194_v33 = vpop.f32.mrf.mxu0  ;;  %v9196_v47 = vpop.f32.mrf.mxu1 }
 0x2a8   : > { %v9198_v42 = vpop.f32.mrf.mxu0  ;;  %v9200_v3 = vpop.f32.mrf.mxu1 }
 0x2aa   : > { %v9202_v7 = vpop.f32.mrf.mxu0  ;;  %v9204_v49 = vpop.f32.mrf.mxu1 }
 0x2ac   : > { %v9206_v20 = vpop.f32.mrf.mxu0  ;;  %v9208_v53 = vpop.f32.mrf.mxu1 }
 0x2ae   : > { %v9210_v4 = vpop.f32.mrf.mxu0  ;;  %v9212_v24 = vpop.f32.mrf.mxu1 }
 0x2b0   : > { %v9214_v0 = vpop.f32.mrf.mxu0  ;;  %v9216_v40 = vpop.f32.mrf.mxu1 }
 0x2b2   : > { %v9218_v31 = vpop.f32.mrf.mxu0  ;;  %v9220_v61 = vpop.f32.mrf.mxu1 }
 0x2b4   : > { %v9222_v41 = vpop.f32.mrf.mxu0  ;;  %v9224_v30 = vpop.f32.mrf.mxu1 }
 0x2b5   : > { %9943 = vst [vmem:[#allocation16_spill] sm:$0xff] %v9222_v41  ;;  %9944 = vst [vmem:[#allocation17_spill] sm:$0xff] %v9224_v30 }
 0x2b6   : > { %v9226_v6 = vpop.f32.mrf.mxu0  ;;  %v9228_v60 = vpop.f32.mrf.mxu1 }
 0x2b7   : > { %9945 = vst [vmem:[#allocation18_spill] sm:$0xff] %v9226_v6  ;;  %9946 = vst [vmem:[#allocation19_spill] sm:$0xff] %v9228_v60 }
 0x2b8   : > { %v9230_v52 = vpop.f32.mrf.mxu0  ;;  %v9232_v48 = vpop.f32.mrf.mxu1 }
 0x2b9   : > { %9947 = vst [vmem:[#allocation20_spill] sm:$0xff] %v9230_v52  ;;  %9948 = vst [vmem:[#allocation21_spill] sm:$0xff] %v9232_v48 }
 0x2ba   : > { %v9234_v5 = vpop.f32.mrf.mxu0  ;;  %v9236_v21 = vpop.f32.mrf.mxu1 }
 0x2bb   : > { %9949 = vst [vmem:[#allocation22_spill] sm:$0xff] %v9234_v5  ;;  %9950 = vst [vmem:[#allocation23_spill] sm:$0xff] %v9236_v21 }
 0x2bc   : > { %v9238_v37 = vpop.f32.mrf.mxu0  ;;  %v9240_v59 = vpop.f32.mrf.mxu1 }
 0x2bd   : > { %9951 = vst [vmem:[#allocation24_spill] sm:$0xff] %v9238_v37  ;;  %9952 = vst [vmem:[#allocation3_spill] sm:$0xff] %v9240_v59 }
 0x2be   : > { %v3666_v58 = vpop.f32.mrf.mxu0  ;;  %v9242_v27 = vpop.f32.mrf.mxu1 }
 0x2bf   : > { %9953 = vst [vmem:[#allocation4_spill] sm:$0xff] %v9242_v27  ;;  %v3761_v12 = vadd.f32 %v3666_v58, %v9136_v51 }
 0x2c0   : > { %v9245_v62 = vpop.f32.mrf.mxu0  ;;  %v9247_v60 = vpop.f32.mrf.mxu1 }
 0x2c1   : > { %9954 = vst [vmem:[#allocation6_spill] sm:$0xff] %v9245_v62  ;;  %9955 = vst [vmem:[#allocation5_spill] sm:$0xff] %v9247_v60 }
 0x2c2   : > { %v3676_v52 = vpop.f32.mrf.mxu0  ;;  %v4024_v6 = vpop.f32.mrf.mxu1 }
 0x2c3   : > { %v3763_v48 = vadd.f32 %v3676_v52, %v9142_v2  ;;  %v9250_v5 = vadd.f32 %v4024_v6, %v3761_v12 }
 0x2c4   : > { %v6649_v21 = vpop.f32.mrf.mxu0  ;;  %v9252_v19 = vpop.f32.mrf.mxu1 }
 0x2c5   : > { %9956 = vst [vmem:[#allocation25_spill] sm:$0xff] %v9250_v5  ;;  %9957 = vst [vmem:[#allocation7_spill] sm:$0xff] %v9252_v19  ;;  %v3766_v59 = vadd.f32 %v6649_v21, %v9145_v55 }
 0x2c6   : > { %v3686_v37 = vpop.f32.mrf.mxu0  ;;  %v4034_v30 = vpop.f32.mrf.mxu1 }
 0x2c7   : > { %v3765_v27 = vadd.f32 %v3686_v37, %v9148_v35  ;;  %v9256_v51 = vadd.f32 %v4034_v30, %v3763_v48 }
 0x2c8   : > { %v6652_v58 = vpop.f32.mrf.mxu0  ;;  %v6699_v62 = vpop.f32.mrf.mxu1 }
 0x2c9   : > { %v3768_v60 = vadd.f32 %v6652_v58, %v9151_v45  ;;  %v9259_v41 = vadd.f32 %v6699_v62, %v3766_v59 }
 0x2ca   : > { %v3696_v2 = vpop.f32.mrf.mxu0  ;;  %v4044_v12 = vpop.f32.mrf.mxu1 }
 0x2cb   : > { %v3767_v6 = vadd.f32 %v3696_v2, %v9154_v13  ;;  %v9262_v52 = vadd.f32 %v4044_v12, %v3765_v27 }
 0x2cc   : > { %v6655_v5 = vpop.f32.mrf.mxu0  ;;  %v6702_v55 = vpop.f32.mrf.mxu1 }
 0x2cd   : > { %v3770_v21 = vadd.f32 %v6655_v5, %v9157_v8  ;;  %v9265_v19 = vadd.f32 %v6702_v55, %v3768_v60 }
 0x2ce   : > { %v3706_v35 = vpop.f32.mrf.mxu0  ;;  %v4054_v30 = vpop.f32.mrf.mxu1 }
 0x2cf   : > { %v3769_v48 = vadd.f32 %v3706_v35, %v9160_v38  ;;  %v9268_v37 = vadd.f32 %v4054_v30, %v3767_v6  ;;  %v9283_v35 = vld [vmem:[%s7187_s8] sm:$0xff]  }
 0x2d0   : > { %v6658_v62 = vpop.f32.mrf.mxu0  ;;  %v6705_v45 = vpop.f32.mrf.mxu1 }
 0x2d1   : > { %v3772_v59 = vadd.f32 %v6658_v62, %v9163_v11  ;;  %v9271_v13 = vadd.f32 %v6705_v45, %v3770_v21 }
 0x2d2   : > { %v3716_v27 = vpop.f32.mrf.mxu0  ;;  %v4064_v58 = vpop.f32.mrf.mxu1 }
 0x2d3   : > { %v3771_v8 = vadd.f32 %v3716_v27, %v9166_v36  ;;  %v9274_v60 = vadd.f32 %v4064_v58, %v3769_v48  ;;  %v9286_v48 = vld [vmem:[%s7187_s8 + $0x8] sm:$0xff]   ;;  %v3748_v58 = vadd.f32 %v9182_v29, %v9091_v54  ;;  %v3750_v54 = vadd.f32 %v9190_v43, %v9097_v17 }
 0x2d4   : > { %v6661_v5 = vpop.f32.mrf.mxu0  ;;  %v6708_v38 = vpop.f32.mrf.mxu1 }
 0x2d5   : > { %v3774_v2 = vadd.f32 %v6661_v5, %v9169_v25  ;;  %v9277_v12 = vadd.f32 %v6708_v38, %v3772_v59  ;;  %v9292_v25 = vld [vmem:[%s7187_s8 + $0x10] sm:$0xff]   ;;  %v9295_v59 = vld [vmem:[%s7187_s8 + $0x18] sm:$0xff]   ;;  %v3746_v5 = vadd.f32 %v9174_v44, %v9085_v34  ;;  %v3745_v44 = vadd.f32 %v9178_v28, %v9088_v10 }
 0x2d6   : > { %v3726_v6 = vpop.f32.mrf.mxu0  ;;  %v4074_v55 = vpop.f32.mrf.mxu1  ;;  %v3747_v10 = vadd.f32 %v9186_v18, %v9094_v1  ;;  %v4106_v29 = vadd.f32 %v9192_v39, %v3748_v58  ;;  %v3752_v39 = vadd.f32 %v9198_v42, %v9103_v50  ;;  %v4108_v58 = vadd.f32 %v9200_v3, %v3750_v54 }
 0x2d7   : > { %v3773_v11 = vadd.f32 %v3726_v6, %v9172_v32  ;;  %v9280_v21 = vadd.f32 %v4074_v55, %v3771_v8  ;;  %v9309_v55 = vld [vmem:[%s7187_s8 + $0x28] sm:$0xff]   ;;  %v4103_v28 = vadd.f32 %v9188_v26, %v3745_v44  ;;  %v3749_v26 = vadd.f32 %v9194_v33, %v9100_v57  ;;  %v9361_v33 = vld [vmem:[%s7187_s8 + $0x40] sm:$0xff]  }
 0x2d8   : > { %v6664_v36 = vpop.f32.mrf.mxu0  ;;  %v6711_v30 = vpop.f32.mrf.mxu1  ;;  %v5960_v1 = vunpack.c.l.bf16 %v9309_v55 }
 0x2d9   : > { %v3776_v62 = vadd.f32 %v6664_v36, %v9176_v9  ;;  %v9289_v45 = vadd.f32 %v6711_v30, %v3774_v2  ;;  %v9306_v2 = vld [vmem:[%s7187_s8 + $0x20] sm:$0xff]  }
 0x2da   : > { %v3736_v27 = vpop.f32.mrf.mxu0  ;;  %v4084_v32 = vpop.f32.mrf.mxu1 }
 0x2db   : > { %9958 = vst [vmem:[#allocation8_spill] sm:$0xff] %v9289_v45  ;;  %v3775_v38 = vadd.f32 %v3736_v27, %v9180_v56  ;;  %v9302_v6 = vadd.f32 %v4084_v32, %v3773_v11  ;;  %v4104_v56 = vadd.f32 %v9184_v22, %v3746_v5  ;;  %v5952_v27 = vunpack.c.l.bf16 %v9295_v59  ;;  %v9322_v32 = vld [vmem:[%s7187_s8 + $0x30] sm:$0xff]   ;;  %v9335_v5 = vld [vmem:[%s7187_s8 + $0x38] sm:$0xff]  }
 0x2dc   : > { %v6719_v36 = vpop.f32.mrf.mxu0  ;;  %v6714_v30 = vpop.f32.mrf.mxu1  ;;  %v5957_v45 = vunpack.c.h.bf16 %v9306_v2 }
 0x2dd   : > { %9959 = vst [vmem:[#allocation10_spill] sm:$0xff] %v9302_v6  ;;  %v9318_v11 = vadd.f32 %v6714_v30, %v3776_v62  ;;  %v4462_v22 = vadd.f32 %v6719_v36, %v4104_v56  ;;  %v9343_v6 = vld [vmem:[%s9762_s5] ss:$0 sm:$0xff]  ;;  %v9976_v56 = vld [vmem:[#allocation6_spill] sm:$0xff] }
 0x2de   : > { %v4302_v8 = vpop.f32.mrf.mxu0  ;;  %v4094_v9 = vpop.f32.mrf.mxu1 }
 0x2df   : > { %v9332_v62 = vadd.f32 %v4094_v9, %v3775_v38  ;;  %v4105_v38 = vadd.f32 %v9196_v47, %v3747_v10  ;;  %v4461_v17 = vadd.f32 %v4302_v8, %v4103_v28  ;;  %v9356_v9 = vld [vmem:[%s9763_s6] ss:$0 sm:$0xff]  ;;  %v3751_v47 = vadd.f32 %v9202_v7, %v9106_v23 }
 0x2e0   : > { %v6722_v30 = vpop.f32.mrf.mxu0  ;;  %v6769_v34 = vpop.f32.mrf.mxu1  ;;  %v4107_v8 = vadd.f32 %v9204_v49, %v3749_v26  ;;  %v4110_v10 = vadd.f32 %v9208_v53, %v3752_v39  ;;  %v3753_v49 = vadd.f32 %v9210_v4, %v9112_v46 }
 0x2e1   : > { %v4820_v43 = vadd.f32 %v6769_v34, %v4462_v22  ;;  %v4464_v50 = vadd.f32 %v6722_v30, %v4106_v29  ;;  %v3754_v34 = vadd.f32 %v9206_v20, %v9109_v63  ;;  %v9377_v30 = vld [vmem:[%s7187_s8 + $0x48] sm:$0xff]   ;;  %v4109_v63 = vadd.f32 %v9212_v24, %v3751_v47  ;;  %v9973_v29 = vld [vmem:[#allocation3_spill] sm:$0xff] }
 0x2e2   : > { %v4312_v36 = vpop.f32.mrf.mxu0  ;;  %v4660_v44 = vpop.f32.mrf.mxu1 }
 0x2e3   : > { %v4859_v42 = vmul.f32 %v9343_v6, %v4820_v43  ;;  %v4819_v3 = vadd.f32 %v4660_v44, %v4461_v17  ;;  %v4463_v20 = vadd.f32 %v4312_v36, %v4105_v38  ;;  %v3756_v43 = vadd.f32 %v9214_v0, %v9115_v15 }
 0x2e4   : > { %v6725_v28 = vpop.f32.mrf.mxu0  ;;  %v6772_v22 = vpop.f32.mrf.mxu1 }
 0x2e5   : > { %v9372_v57 = vadd.f32 %v9356_v9, %v4859_v42  ;;  %v4858_v23 = vmul.f32 %v9343_v6, %v4819_v3  ;;  %v4822_v7 = vadd.f32 %v6772_v22, %v4464_v50  ;;  %v4112_v42 = vadd.f32 %v9216_v40, %v3754_v34 }
 0x2e6   : > { %v4322_v53 = vpop.f32.mrf.mxu0  ;;  %v4670_v26 = vpop.f32.mrf.mxu1  ;;  %v4466_v46 = vadd.f32 %v6725_v28, %v4108_v58  ;;  %v3755_v3 = vadd.f32 %v9218_v31, %v9118_v14  ;;  %v4111_v22 = vadd.f32 %v9220_v61, %v3753_v49 }
 0x2e7   : > { %v5839_v39 = vmul.f32 -1.442695, %v9372_v57  ;;  %v9387_v44 = vadd.f32 %v9356_v9, %v4858_v23  ;;  %v4861_v50 = vmul.f32 %v9343_v6, %v4822_v7  ;;  %v4821_v4 = vadd.f32 %v4670_v26, %v4463_v20  ;;  %v9960_v26 = vld [vmem:[#allocation16_spill] sm:$0xff] }
 0x2e8   : > { %v6728_v24 = vpop.f32.mrf.mxu0  ;;  %v6775_v38 = vpop.f32.mrf.mxu1  ;;  %v4465_v0 = vadd.f32 %v4322_v53, %v4107_v8 }
 0x2e9   : > { %6978 = vpow2.f32 %v5839_v39  ;;  %v5838_v47 = vmul.f32 -1.442695, %v9387_v44  ;;  %v9394_v15 = vadd.f32 %v9356_v9, %v4861_v50  ;;  %v4860_v40 = vmul.f32 %v9343_v6, %v4821_v4  ;;  %v9961_v50 = vld [vmem:[#allocation17_spill] sm:$0xff] }
 0x2ea   : > { %v4824_v58 = vadd.f32 %v6775_v38, %v4466_v46  ;;  %v4332_v34 = vpop.f32.mrf.mxu0  ;;  %v4680_v28 = vpop.f32.mrf.mxu1  ;;  %v4468_v7 = vadd.f32 %v6728_v24, %v4110_v10  ;;  %v3758_v39 = vadd.f32 %v9960_v26, %v9121_v16  ;;  %v4114_v8 = vadd.f32 %v9961_v50, %v3756_v43  ;;  %v9962_v38 = vld [vmem:[#allocation11_spill] sm:$0xff]  ;;  %v9963_v10 = vld [vmem:[#allocation18_spill] sm:$0xff]  ;;  %v9966_v26 = vld [vmem:[#allocation20_spill] sm:$0xff] }
 0x2eb   : > { %6980 = vpow2.f32 %v5838_v47  ;;  %v5841_v23 = vmul.f32 -1.442695, %v9394_v15  ;;  %v4823_v20 = vadd.f32 %v4680_v28, %v4465_v0  ;;  %v9405_v53 = vadd.f32 %v9356_v9, %v4860_v40  ;;  %v9964_v47 = vld [vmem:[#allocation19_spill] sm:$0xff] }
 0x2ec   : > { %v4863_v14 = vmul.f32 %v9343_v6, %v4824_v58  ;;  %v6731_v31 = vpop.f32.mrf.mxu0  ;;  %v6778_v61 = vpop.f32.mrf.mxu1  ;;  %v4467_v49 = vadd.f32 %v4332_v34, %v4109_v63  ;;  %v3757_v24 = vadd.f32 %v9963_v10, %v9962_v38  ;;  %v4113_v0 = vadd.f32 %v9964_v47, %v3755_v3  ;;  %v9965_v58 = vld [vmem:[#allocation12_spill] sm:$0xff]  ;;  %v9968_v10 = vld [vmem:[#allocation13_spill] sm:$0xff]  ;;  %v9969_v47 = vld [vmem:[#allocation22_spill] sm:$0xff] }
 0x2ed   : > { %6982 = vpow2.f32 %v5841_v23  ;;  %v4862_v46 = vmul.f32 %v9343_v6, %v4823_v20  ;;  %v4826_v4 = vadd.f32 %v6778_v61, %v4468_v7  ;;  %v5840_v16 = vmul.f32 -1.442695, %v9405_v53  ;;  %v9967_v7 = vld [vmem:[#allocation21_spill] sm:$0xff] }
 0x2ee   : > { %v9414_v43 = vadd.f32 %v9356_v9, %v4863_v14  ;;  %v4342_v40 = vpop.f32.mrf.mxu0  ;;  %v4690_v28 = vpop.f32.mrf.mxu1  ;;  %v3760_v50 = vadd.f32 %v9966_v26, %v9965_v58  ;;  %v4116_v20 = vadd.f32 %v9967_v7, %v3758_v39  ;;  %v4470_v61 = vadd.f32 %v6731_v31, %v4112_v42 }
 0x2ef   : > { %v9419_v63 = vadd.f32 %v9356_v9, %v4862_v46  ;;  %v4865_v34 = vmul.f32 %v9343_v6, %v4826_v4  ;;  %v4825_v23 = vadd.f32 %v4690_v28, %v4467_v49  ;;  %6984 = vpow2.f32 %v5840_v16  ;;  %v9970_v4 = vld [vmem:[#allocation23_spill] sm:$0xff] }
 0x2f0   : > { %v5843_v3 = vmul.f32 -1.442695, %v9414_v43  ;;  %v6734_v38 = vpop.f32.mrf.mxu0  ;;  %v6781_v14 = vpop.f32.mrf.mxu1  ;;  %v3759_v36 = vadd.f32 %v9969_v47, %v9968_v10  ;;  %v4115_v49 = vadd.f32 %v9970_v4, %v3757_v24  ;;  %v4469_v39 = vadd.f32 %v4342_v40, %v4111_v22  ;;  %v9971_v10 = vld [vmem:[#allocation14_spill] sm:$0xff]  ;;  %v9972_v47 = vld [vmem:[#allocation24_spill] sm:$0xff] }
 0x2f1   : > { %v5842_v17 = vmul.f32 -1.442695, %v9419_v63  ;;  %v9428_v58 = vadd.f32 %v9356_v9, %v4865_v34  ;;  %v4864_v46 = vmul.f32 %v9343_v6, %v4825_v23  ;;  %v4828_v16 = vadd.f32 %v6781_v14, %v4470_v61  ;;  %v9974_v40 = vld [vmem:[#allocation4_spill] sm:$0xff] }
 0x2f2   : > { %6986 = vpow2.f32 %v5843_v3  ;;  %v4352_v28 = vpop.f32.mrf.mxu0  ;;  %v4700_v26 = vpop.f32.mrf.mxu1  ;;  %v4472_v7 = vadd.f32 %v6734_v38, %v4114_v8  ;;  %v3762_v34 = vadd.f32 %v9972_v47, %v9971_v10  ;;  %v4118_v54 = vadd.f32 %v9973_v29, %v3760_v50 }
 0x2f3   : > { %6988 = vpow2.f32 %v5842_v17  ;;  %v5845_v42 = vmul.f32 -1.442695, %v9428_v58  ;;  %v9434_v31 = vadd.f32 %v9356_v9, %v4864_v46  ;;  %v4867_v23 = vmul.f32 %v9343_v6, %v4828_v16  ;;  %v9975_v46 = vld [vmem:[#allocation15_spill] sm:$0xff]  ;;  %v9977_v16 = vld [vmem:[#allocation5_spill] sm:$0xff] }
 0x2f4   : > { %v4827_v24 = vadd.f32 %v4700_v26, %v4469_v39  ;;  %v6737_v3 = vpop.f32.mrf.mxu0  ;;  %v6784_v22 = vpop.f32.mrf.mxu1  ;;  %v4117_v61 = vadd.f32 %v9974_v40, %v3759_v36  ;;  %v3764_v8 = vadd.f32 %v9976_v56, %v9975_v46  ;;  %v4471_v10 = vadd.f32 %v4352_v28, %v4113_v0 }
 0x2f5   : > { %6990 = vpow2.f32 %v5845_v42  ;;  %v5844_v17 = vmul.f32 -1.442695, %v9434_v31  ;;  %v4830_v14 = vadd.f32 %v6784_v22, %v4472_v7  ;;  %v9445_v38 = vadd.f32 %v9356_v9, %v4867_v23 }
 0x2f6   : > { %v6979_v4 = vpop.eup %6978  ;;  %v4866_v29 = vmul.f32 %v9343_v6, %v4827_v24  ;;  %v4362_v50 = vpop.f32.mrf.mxu0  ;;  %v4120_v26 = vadd.f32 %v9977_v16, %v3762_v34  ;;  %v4474_v56 = vadd.f32 %v6737_v3, %v4116_v20 }
 0x2f7   : > { %v4710_v39 = vpop.f32.mrf.mxu1  ;;  %v5026_v47 = vadd.f32 1.0, %v6979_v4  ;;  %6992 = vpow2.f32 %v5844_v17  ;;  %v4869_v36 = vmul.f32 %v9343_v6, %v4830_v14  ;;  %v5847_v7 = vmul.f32 -1.442695, %v9445_v38 }
 0x2f8   : > { %v6981_v42 = vpop.eup %6980  ;;  %v9452_v22 = vadd.f32 %v9356_v9, %v4866_v29  ;;  %v4829_v23 = vadd.f32 %v4710_v39, %v4471_v10  ;;  %v6740_v40 = vpop.f32.mrf.mxu0  ;;  %v4473_v34 = vadd.f32 %v4362_v50, %v4115_v49 }
 0x2f9   : > { %v6787_v0 = vpop.f32.mrf.mxu1  ;;  %6994 = vrcp.f32 %v5026_v47  ;;  %v5025_v28 = vadd.f32 1.0, %v6981_v42  ;;  %v9455_v24 = vadd.f32 %v9356_v9, %v4869_v36  ;;  %v4476_v10 = vadd.f32 %v6740_v40, %v4118_v54 }
 0x2fa   : > { %v6983_v4 = vpop.eup %6982  ;;  %6996 = vpow2.f32 %v5847_v7  ;;  %v5846_v17 = vmul.f32 -1.442695, %v9452_v22  ;;  %v4868_v14 = vmul.f32 %v9343_v6, %v4829_v23  ;;  %v4832_v46 = vadd.f32 %v6787_v0, %v4474_v56  ;;  %v4372_v16 = vpop.f32.mrf.mxu0  ;;  %v9978_v7 = vld [vmem:[#allocation7_spill] sm:$0xff] }
 0x2fb   : > { %v4720_v29 = vpop.f32.mrf.mxu1  ;;  %6998 = vrcp.f32 %v5025_v28  ;;  %v5028_v20 = vadd.f32 1.0, %v6983_v4  ;;  %v5849_v3 = vmul.f32 -1.442695, %v9455_v24  ;;  %v4122_v23 = vadd.f32 %v9978_v7, %v3764_v8 }
 0x2fc   : > { %7000 = vpow2.f32 %v5846_v17  ;;  %v9461_v39 = vadd.f32 %v9356_v9, %v4868_v14  ;;  %v4871_v49 = vmul.f32 %v9343_v6, %v4832_v46  ;;  %v4831_v50 = vadd.f32 %v4720_v29, %v4473_v34  ;;  %v6743_v47 = vpop.f32.mrf.mxu0  ;;  %v6985_v42 = vpop.eup %6984 }
 0x2fd   : > { %v6790_v36 = vpop.f32.mrf.mxu1  ;;  %7002 = vrcp.f32 %v5028_v20  ;;  %v4475_v56 = vadd.f32 %v4372_v16, %v4117_v61  ;;  %v5027_v28 = vadd.f32 1.0, %v6985_v42  ;;  %v4478_v46 = vadd.f32 %v6743_v47, %v4120_v26  ;;  %v9979_v20 = vld [vmem:[#allocation25_spill] sm:$0xff] }
 0x2fe   : > { %v4834_v0 = vadd.f32 %v6790_v36, %v4476_v10  ;;  %7004 = vpow2.f32 %v5849_v3  ;;  %v5848_v4 = vmul.f32 -1.442695, %v9461_v39  ;;  %v9467_v54 = vadd.f32 %v9356_v9, %v4871_v49  ;;  %v4382_v40 = vpop.f32.mrf.mxu0 }
 0x2ff   : > { %v4730_v17 = vpop.f32.mrf.mxu1  ;;  %v6987_v14 = vpop.eup %6986  ;;  %v4870_v34 = vmul.f32 %v9343_v6, %v4831_v50  ;;  %7006 = vrcp.f32 %v5027_v28  ;;  %v4477_v3 = vadd.f32 %v4382_v40, %v9979_v20 }
 0x300   : > { %v4873_v29 = vmul.f32 %v9343_v6, %v4834_v0  ;;  %v4833_v18 = vadd.f32 %v4730_v17, %v4475_v56  ;;  %v6989_v8 = vpop.eup %6988  ;;  %v5030_v61 = vadd.f32 1.0, %v6987_v14  ;;  %v5851_v16 = vmul.f32 -1.442695, %v9467_v54  ;;  %v6746_v10 = vpop.f32.mrf.mxu0 }
 0x301   : > { %v6793_v36 = vpop.f32.mrf.mxu1  ;;  %v5029_v49 = vadd.f32 1.0, %v6989_v8  ;;  %7008 = vpow2.f32 %v5848_v4  ;;  %v9474_v42 = vadd.f32 %v9356_v9, %v4870_v34  ;;  %v4480_v7 = vadd.f32 %v6746_v10, %v4122_v23 }
 0x302   : > { %v9477_v50 = vadd.f32 %v9356_v9, %v4873_v29  ;;  %v6991_v26 = vpop.eup %6990  ;;  %7010 = vrcp.f32 %v5030_v61  ;;  %v4872_v47 = vmul.f32 %v9343_v6, %v4833_v18  ;;  %v4836_v56 = vadd.f32 %v6793_v36, %v4478_v46  ;;  %v4392_v0 = vpop.f32.mrf.mxu0 }
 0x303   : > { %v4740_v28 = vpop.f32.mrf.mxu1  ;;  %7012 = vrcp.f32 %v5029_v49  ;;  %v5032_v40 = vadd.f32 1.0, %v6991_v26  ;;  %v5850_v17 = vmul.f32 -1.442695, %v9474_v42  ;;  %v4479_v8 = vadd.f32 %v4392_v0, %v9256_v51 }
 0x304   : > { %v5853_v4 = vmul.f32 -1.442695, %v9477_v50  ;;  %v6993_v14 = vpop.eup %6992  ;;  %7014 = vpow2.f32 %v5851_v16  ;;  %v9483_v34 = vadd.f32 %v9356_v9, %v4872_v47  ;;  %v4875_v29 = vmul.f32 %v9343_v6, %v4836_v56  ;;  %v6749_v18 = vpop.f32.mrf.mxu0 }
 0x305   : > { %v6796_v23 = vpop.f32.mrf.mxu1  ;;  %7016 = vrcp.f32 %v5032_v40  ;;  %v5031_v46 = vadd.f32 1.0, %v6993_v14  ;;  %v4835_v61 = vadd.f32 %v4740_v28, %v4477_v3  ;;  %v4482_v20 = vadd.f32 %v6749_v18, %v9259_v41 }
 0x306   : > { %v6995_v10 = vpop.eup %6994  ;;  %7018 = vpow2.f32 %v5850_v17  ;;  %v5852_v36 = vmul.f32 -1.442695, %v9483_v34  ;;  %v9490_v16 = vadd.f32 %v9356_v9, %v4875_v29  ;;  %v4838_v49 = vadd.f32 %v6796_v23, %v4480_v7  ;;  %v4402_v26 = vpop.f32.mrf.mxu0 }
 0x307   : > { %v4750_v47 = vpop.f32.mrf.mxu1  ;;  %v6997_v56 = vpop.eup %6996  ;;  %v5122_v51 = vmul.f32 %v6995_v10, %v9372_v57  ;;  %7020 = vrcp.f32 %v5031_v46  ;;  %v4874_v0 = vmul.f32 %v9343_v6, %v4835_v61  ;;  %v9495_v3 = vadd.f32 %v4402_v26, %v9262_v52 }
 0x308   : > { %v6999_v41 = vpop.eup %6998  ;;  %v5034_v28 = vadd.f32 1.0, %v6997_v56  ;;  %7022 = vpow2.f32 %v5853_v4  ;;  %v5855_v40 = vmul.f32 -1.442695, %v9490_v16  ;;  %v4877_v17 = vmul.f32 %v9343_v6, %v4838_v49  ;;  %v6752_v7 = vpop.f32.mrf.mxu0 }
 0x309   : > { %v6799_v14 = vpop.f32.mrf.mxu1  ;;  %v7001_v29 = vpop.eup %7000  ;;  %v9980_v18 = vunpack.c.h.bf16 %v9283_v35  ;;  %v5121_v23 = vmul.f32 %v6999_v41, %v9387_v44  ;;  %7024 = vpow2.f32 %v5852_v36  ;;  %v9503_v46 = vadd.f32 %v9356_v9, %v4874_v0 }
 0x30a   : > { %v7003_v52 = vpop.eup %7002  ;;  %7026 = vrcp.f32 %v5034_v28  ;;  %v5033_v4 = vadd.f32 1.0, %v7001_v29  ;;  %v9513_v61 = vadd.f32 %v9356_v9, %v4877_v17  ;;  %v4837_v10 = vadd.f32 %v4750_v47, %v4479_v8  ;;  %v4412_v49 = vpop.f32.mrf.mxu0 }
 0x30b   : > { %v5218_v57 = vadd.f32 %v9980_v18, %v5122_v51  ;;  %v4760_v44 = vpop.f32.mrf.mxu1  ;;  %v7005_v36 = vpop.eup %7004  ;;  %v9981_v56 = vunpack.c.l.bf16 %v9283_v35  ;;  %v5124_v0 = vmul.f32 %v7003_v52, %v9394_v15  ;;  %7028 = vpow2.f32 %v5855_v40 }
 0x30c   : > { %7030 = vrcp.f32 %v5033_v4  ;;  %v5036_v41 = vadd.f32 1.0, %v7005_v36  ;;  %v5854_v28 = vmul.f32 -1.442695, %v9503_v46  ;;  %v5857_v29 = vmul.f32 -1.442695, %v9513_v61  ;;  %v6755_v17 = vpop.f32.mrf.mxu0  ;;  %v7007_v8 = vpop.eup %7006 }
 0x30d   : > { %v5907_v26 = vpack.c.bf16 %v5218_v57, %v5218_v57  ;;  %v5217_v51 = vadd.f32 %v9981_v56, %v5121_v23  ;;  %v6802_v18 = vpop.f32.mrf.mxu1  ;;  %v9982_v57 = vunpack.c.h.bf16 %v9286_v48  ;;  %v4876_v23 = vmul.f32 %v9343_v6, %v4837_v10 }
 0x30e   : > { %v4484_v15 = vadd.f32 %v6752_v7, %v9265_v19  ;;  %v7009_v40 = vpop.eup %7008  ;;  %v5123_v52 = vmul.f32 %v7007_v8, %v9405_v53  ;;  %7032 = vrcp.f32 %v5036_v41  ;;  %v4840_v4 = vadd.f32 %v6799_v14, %v4482_v20  ;;  %v9530_v56 = vpop.f32.mrf.mxu0 }
 0x30f   : > { %5379 = vst.msk [vmem:[%s9510_s20 + $0x4] sm:$0xf] %vm5377_vm0, %v5907_v26  ;;  %v5906_v47 = vpack.c.bf16 %v5217_v51, %v5217_v51  ;;  %v5220_v35 = vadd.f32 %v9982_v57, %v5124_v0  ;;  %v9528_v36 = vadd.f32 %v4412_v49, %v9268_v37  ;;  %v9532_v26 = vpop.f32.mrf.mxu1  ;;  %v7011_v51 = vpop.eup %7010  ;;  %v5035_v10 = vadd.f32 1.0, %v7009_v40 }
 0x310   : > { %7034 = vpow2.f32 %v5854_v28  ;;  %v9537_v19 = vadd.f32 %v9356_v9, %v4876_v23  ;;  %v7013_v53 = vpop.eup %7012  ;;  %v9983_v20 = vunpack.c.l.bf16 %v9286_v48  ;;  %v5126_v37 = vmul.f32 %v7011_v51, %v9414_v43  ;;  %v9543_v49 = vpop.f32.mrf.mxu0 }
 0x311   : > { %5378 = vst.msk [vmem:[%s9510_s20] sm:$0xf] %vm5377_vm0, %v5906_v47  ;;  %v5909_v0 = vpack.c.bf16 %v5220_v35, %v5220_v35  ;;  %7036 = vpow2.f32 %v5857_v29  ;;  %v4879_v14 = vmul.f32 %v9343_v6, %v4840_v4  ;;  %v9545_v41 = vpop.f32.mrf.mxu1  ;;  %v7015_v8 = vpop.eup %7014  ;;  %v5125_v28 = vmul.f32 %v7013_v53, %v9419_v63 }
 0x312   : > { %v5219_v7 = vadd.f32 %v9983_v20, %v5123_v52  ;;  %7038 = vrcp.f32 %v5035_v10  ;;  %v5856_v47 = vmul.f32 -1.442695, %v9537_v19  ;;  %v4839_v48 = vadd.f32 %v4760_v44, %v9495_v3  ;;  %v7017_v57 = vpop.eup %7016 }
 0x313   : > { %5381 = vst.msk [vmem:[%s9510_s20 + $0xc] sm:$0xf] %vm5377_vm0, %v5909_v0  ;;  %v9984_v29 = vunpack.c.h.bf16 %v9292_v25  ;;  %v5038_v23 = vadd.f32 1.0, %v7015_v8  ;;  %v9555_v40 = vadd.f32 %v9356_v9, %v4879_v14  ;;  %v9557_v52 = vpop.f32.mrf.mxu1  ;;  %v7019_v4 = vpop.eup %7018  ;;  %v9985_v63 = vunpack.c.l.bf16 %v9292_v25 }
 0x314   : > { %v5908_v43 = vpack.c.bf16 %v5219_v7, %v5219_v7  ;;  %v5128_v0 = vmul.f32 %v7017_v57, %v9428_v58  ;;  %7040 = vpow2.f32 %v5856_v47  ;;  %v4878_v3 = vmul.f32 %v9343_v6, %v4839_v48  ;;  %v7021_v44 = vpop.eup %7020  ;;  %v4432_v7 = vpop.f32.mrf.mxu0 }
 0x315   : > { %v5222_v35 = vadd.f32 %v9984_v29, %v5126_v37  ;;  %v5221_v51 = vadd.f32 %v9985_v63, %v5125_v28  ;;  %7042 = vrcp.f32 %v5038_v23  ;;  %v5037_v53 = vadd.f32 1.0, %v7019_v4  ;;  %v7023_v37 = vpop.eup %7022  ;;  %v9575_v29 = vpop.f32.mrf.mxu1 }
 0x316   : > { %5380 = vst.msk [vmem:[%s9510_s20 + $0x8] sm:$0xf] %vm5377_vm0, %v5908_v43  ;;  %v5859_v20 = vmul.f32 -1.442695, %v9555_v40  ;;  %v9986_v25 = vunpack.c.h.bf16 %v9295_v59  ;;  %v5127_v58 = vmul.f32 %v7021_v44, %v9434_v31  ;;  %v9570_v28 = vadd.f32 %v9356_v9, %v4878_v3  ;;  %v7025_v47 = vpop.eup %7024 }
 0x317   : > { %v5911_v10 = vpack.c.bf16 %v5222_v35, %v5222_v35  ;;  %v5910_v14 = vpack.c.bf16 %v5221_v51, %v5221_v51  ;;  %7044 = vrcp.f32 %v5037_v53  ;;  %v5040_v48 = vadd.f32 1.0, %v7023_v37  ;;  %v7027_v35 = vpop.eup %7026 }
 0x318   : > { %v5224_v8 = vadd.f32 %v9986_v25, %v5128_v0  ;;  %v4486_v57 = vadd.f32 %v6755_v17, %v9271_v13  ;;  %v4842_v43 = vadd.f32 %v6802_v18, %v4484_v15  ;;  %v5223_v31 = vadd.f32 %v5952_v27, %v5127_v58  ;;  %v7029_v63 = vpop.eup %7028  ;;  %v6761_v18 = vpop.f32.mrf.mxu0 }
 0x319   : > { %5383 = vst.msk [vmem:[%s9510_s20 + $0x14] sm:$0xf] %vm5377_vm0, %v5911_v10  ;;  %5382 = vst.msk [vmem:[%s9510_s20 + $0x10] sm:$0xf] %vm5377_vm0, %v5910_v14  ;;  %v5039_v4 = vadd.f32 1.0, %v7025_v47  ;;  %7046 = vpow2.f32 %v5859_v20  ;;  %v5130_v51 = vmul.f32 %v7027_v35, %v9445_v38  ;;  %v7031_v15 = vpop.eup %7030  ;;  %v5042_v3 = vadd.f32 1.0, %v7029_v63  ;;  %v4790_v10 = vpop.f32.mrf.mxu1 }
 0x31a   : > { %v5913_v23 = vpack.c.bf16 %v5224_v8, %v5224_v8  ;;  %7048 = vrcp.f32 %v5040_v48  ;;  %v5858_v13 = vmul.f32 -1.442695, %v9570_v28  ;;  %v4881_v17 = vmul.f32 %v9343_v6, %v4842_v43  ;;  %v4442_v58 = vpop.f32.mrf.mxu0  ;;  %v9989_v63 = vld [vmem:[#allocation8_spill] sm:$0xff] }
 0x31b   : > { %v5912_v0 = vpack.c.bf16 %v5223_v31, %v5223_v31  ;;  %7050 = vrcp.f32 %v5039_v4  ;;  %v4485_v59 = vadd.f32 %v9530_v56, %v9274_v60  ;;  %v5226_v27 = vadd.f32 %v5957_v45, %v5130_v51  ;;  %v7033_v53 = vpop.eup %7032  ;;  %v9612_v43 = vpop.f32.mrf.mxu1 }
 0x31c   : > { %5385 = vst.msk [vmem:[%s9510_s20 + $0x1c] sm:$0xf] %vm5377_vm0, %v5913_v23  ;;  %v5129_v38 = vmul.f32 %v7031_v15, %v9452_v22  ;;  %7052 = vpow2.f32 %v5858_v13  ;;  %v9592_v44 = vadd.f32 %v9356_v9, %v4881_v17  ;;  %v4841_v20 = vadd.f32 %v9532_v26, %v9528_v36  ;;  %v6764_v13 = vpop.f32.mrf.mxu0 }
 0x31d   : > { %5384 = vst.msk [vmem:[%s9510_s20 + $0x18] sm:$0xf] %vm5377_vm0, %v5912_v0  ;;  %7054 = vrcp.f32 %v5042_v3  ;;  %v4488_v60 = vadd.f32 %v9543_v49, %v9277_v12  ;;  %v4844_v45 = vadd.f32 %v9545_v41, %v4486_v57  ;;  %v7035_v56 = vpop.eup %7034  ;;  %v5915_v22 = vpack.c.bf16 %v5226_v27, %v5226_v27 }
 0x31e   : > { %v9987_v37 = vunpack.c.l.bf16 %v9306_v2  ;;  %v5132_v25 = vmul.f32 %v7033_v53, %v9455_v24  ;;  %v5861_v8 = vmul.f32 -1.442695, %v9592_v44  ;;  %v7037_v47 = vpop.eup %7036  ;;  %v5041_v48 = vadd.f32 1.0, %v7035_v56  ;;  %v4800_v53 = vpop.f32.mrf.mxu1 }
 0x31f   : > { %v4880_v36 = vmul.f32 %v9343_v6, %v4841_v20  ;;  %v4883_v26 = vmul.f32 %v9343_v6, %v4844_v45  ;;  %v4487_v12 = vadd.f32 %v4432_v7, %v9280_v21  ;;  %v7039_v49 = vpop.eup %7038  ;;  %5387 = vst.msk [vmem:[%s9510_s20 + $0x24] sm:$0xf] %vm5377_vm0, %v5915_v22  ;;  %v9988_v2 = vunpack.c.h.bf16 %v9309_v55 }
 0x320   : > { %v5225_v14 = vadd.f32 %v9987_v37, %v5129_v38  ;;  %v5044_v24 = vadd.f32 1.0, %v7037_v47  ;;  %7056 = vpow2.f32 %v5861_v8  ;;  %v5131_v35 = vmul.f32 %v7039_v49, %v9461_v39 }
 0x321   : > { %v5228_v57 = vadd.f32 %v9988_v2, %v5132_v25  ;;  %7058 = vrcp.f32 %v5041_v48  ;;  %v9616_v23 = vadd.f32 %v9356_v9, %v4880_v36  ;;  %v9619_v21 = vadd.f32 %v9356_v9, %v4883_v26  ;;  %v7041_v7 = vpop.eup %7040  ;;  %v6814_v36 = vpop.f32.mrf.mxu1 }
 0x322   : > { %v5914_v41 = vpack.c.bf16 %v5225_v14, %v5225_v14  ;;  %7060 = vrcp.f32 %v5044_v24  ;;  %v4843_v4 = vadd.f32 %v9557_v52, %v4485_v59  ;;  %v4490_v51 = vadd.f32 %v6761_v18, %v9989_v63  ;;  %v7043_v17 = vpop.eup %7042  ;;  %v9990_v18 = vld [vmem:[#allocation10_spill] sm:$0xff]  ;;  %v4452_v2 = vpop.f32.mrf.mxu0 }
 0x323   : > { %v5917_v31 = vpack.c.bf16 %v5228_v57, %v5228_v57  ;;  %v5227_v39 = vadd.f32 %v5960_v1, %v5131_v35  ;;  %v5043_v15 = vadd.f32 1.0, %v7041_v7  ;;  %v5860_v0 = vmul.f32 -1.442695, %v9616_v23 }
 0x324   : > { %5386 = vst.msk [vmem:[%s9510_s20 + $0x20] sm:$0xf] %vm5377_vm0, %v5914_v41  ;;  %v5863_v3 = vmul.f32 -1.442695, %v9619_v21  ;;  %v5134_v27 = vmul.f32 %v7043_v17, %v9467_v54  ;;  %v4882_v38 = vmul.f32 %v9343_v6, %v4843_v4  ;;  %v4846_v52 = vadd.f32 %v9575_v29, %v4488_v60  ;;  %v7045_v20 = vpop.eup %7044 }
 0x325   : > { %5389 = vst.msk [vmem:[%s9510_s20 + $0x2c] sm:$0xf] %vm5377_vm0, %v5917_v31  ;;  %v4489_v59 = vadd.f32 %v4442_v58, %v9990_v18  ;;  %v5916_v55 = vpack.c.bf16 %v5227_v39, %v5227_v39  ;;  %7062 = vrcp.f32 %v5043_v15  ;;  %v4845_v1 = vadd.f32 %v4790_v10, %v4487_v12  ;;  %v4810_v15 = vpop.f32.mrf.mxu1 }
 0x326   : > { %v4492_v45 = vadd.f32 %v6764_v13, %v9318_v11  ;;  %v7047_v56 = vpop.eup %7046  ;;  %v9991_v22 = vunpack.c.h.bf16 %v9322_v32  ;;  %v5133_v54 = vmul.f32 %v7045_v20, %v9474_v42  ;;  %7064 = vpow2.f32 %v5860_v0 }
 0x327   : > { %v9640_v14 = vadd.f32 %v9356_v9, %v4882_v38  ;;  %v7049_v29 = vpop.eup %7048  ;;  %5388 = vst.msk [vmem:[%s9510_s20 + $0x28] sm:$0xf] %vm5377_vm0, %v5916_v55  ;;  %v5046_v60 = vadd.f32 1.0, %v7047_v56  ;;  %7066 = vpow2.f32 %v5863_v3  ;;  %v4885_v10 = vmul.f32 %v9343_v6, %v4846_v52  ;;  %v6011_v55 = vld [vmem:[%s7187_s8 + $0x50] sm:$0xff]  }
 0x328   : > { %v5230_v37 = vadd.f32 %v9991_v22, %v5134_v27  ;;  %v4884_v11 = vmul.f32 %v9343_v6, %v4845_v1  ;;  %v7051_v25 = vpop.eup %7050  ;;  %v9992_v58 = vunpack.c.l.bf16 %v9322_v32  ;;  %v5136_v42 = vmul.f32 %v7049_v29, %v9477_v50 }
 0x329   : > { %v5862_v48 = vmul.f32 -1.442695, %v9640_v14  ;;  %v7053_v26 = vpop.eup %7052  ;;  %v5135_v12 = vmul.f32 %v7051_v25, %v9483_v34  ;;  %7068 = vrcp.f32 %v5046_v60  ;;  %v9652_v49 = vadd.f32 %v9356_v9, %v4885_v10 }
 0x32a   : > { %v5919_v8 = vpack.c.bf16 %v5230_v37, %v5230_v37  ;;  %v5229_v47 = vadd.f32 %v9992_v58, %v5133_v54  ;;  %v9655_v41 = vadd.f32 %v9356_v9, %v4884_v11  ;;  %v7055_v57 = vpop.eup %7054  ;;  %v9993_v50 = vunpack.c.h.bf16 %v9335_v5 }
 0x32b   : > { %v5045_v35 = vadd.f32 1.0, %v7053_v26  ;;  %7070 = vpow2.f32 %v5862_v48  ;;  %v9994_v7 = vunpack.c.l.bf16 %v9335_v5  ;;  %v5138_v31 = vmul.f32 %v7055_v57, %v9490_v16 }
 0x32c   : > { %5391 = vst.msk [vmem:[%s9510_s20 + $0x34] sm:$0xf] %vm5377_vm0, %v5919_v8  ;;  %v5918_v32 = vpack.c.bf16 %v5229_v47, %v5229_v47  ;;  %v5232_v24 = vadd.f32 %v9993_v50, %v5136_v42  ;;  %v5865_v4 = vmul.f32 -1.442695, %v9652_v49  ;;  %v5864_v63 = vmul.f32 -1.442695, %v9655_v41 }
 0x32d   : > { %v5231_v34 = vadd.f32 %v9994_v7, %v5135_v12  ;;  %7072 = vrcp.f32 %v5045_v35  ;;  %v4848_v17 = vadd.f32 %v9612_v43, %v4490_v51  ;;  %v4491_v39 = vadd.f32 %v4452_v2, %v9332_v62  ;;  %v7057_v5 = vpop.eup %7056 }
 0x32e   : > { %5390 = vst.msk [vmem:[%s9510_s20 + $0x30] sm:$0xf] %vm5377_vm0, %v5918_v32  ;;  %v5921_v13 = vpack.c.bf16 %v5232_v24, %v5232_v24  ;;  %v9995_v3 = vunpack.c.h.bf16 %v9361_v33  ;;  %7074 = vpow2.f32 %v5865_v4  ;;  %v4847_v27 = vadd.f32 %v4800_v53, %v4489_v59  ;;  %v7059_v38 = vpop.eup %7058 }
 0x32f   : > { %v5920_v0 = vpack.c.bf16 %v5231_v34, %v5231_v34  ;;  %v5048_v52 = vadd.f32 1.0, %v7057_v5  ;;  %7076 = vpow2.f32 %v5864_v63  ;;  %v4887_v18 = vmul.f32 %v9343_v6, %v4848_v17  ;;  %v7061_v51 = vpop.eup %7060 }
 0x330   : > { %v5234_v16 = vadd.f32 %v9995_v3, %v5138_v31  ;;  %5393 = vst.msk [vmem:[%s9510_s20 + $0x3c] sm:$0xf] %vm5377_vm0, %v5921_v13  ;;  %v4850_v43 = vadd.f32 %v6814_v36, %v4492_v45  ;;  %v5137_v20 = vmul.f32 %v7059_v38, %v9503_v46  ;;  %v4886_v1 = vmul.f32 %v9343_v6, %v4847_v27  ;;  %v6012_v31 = vld [vmem:[%s7187_s8 + $0x58] sm:$0xff]   ;;  %v6013_v27 = vld [vmem:[%s7187_s8 + $0x60] sm:$0xff]  }
 0x331   : > { %5392 = vst.msk [vmem:[%s9510_s20 + $0x38] sm:$0xf] %vm5377_vm0, %v5920_v0  ;;  %v4849_v56 = vadd.f32 %v4810_v15, %v4491_v39  ;;  %v5140_v59 = vmul.f32 %v7061_v51, %v9513_v61  ;;  %7078 = vrcp.f32 %v5048_v52  ;;  %v9682_v53 = vadd.f32 %v9356_v9, %v4887_v18 }
 0x332   : > { %v5923_v62 = vpack.c.bf16 %v5234_v16, %v5234_v16  ;;  %v4889_v22 = vmul.f32 %v9343_v6, %v4850_v43  ;;  %v9996_v45 = vunpack.c.l.bf16 %v9361_v33  ;;  %v5976_v54 = vunpack.c.l.bf16 %v9377_v30  ;;  %v7063_v61 = vpop.eup %7062 }
 0x333   : > { %v9691_v46 = vadd.f32 %v9356_v9, %v4886_v1  ;;  %v4888_v29 = vmul.f32 %v9343_v6, %v4849_v56  ;;  %v9997_v60 = vunpack.c.h.bf16 %v9377_v30  ;;  %v5981_v11 = vunpack.c.h.bf16 %v6011_v55  ;;  %v7065_v33 = vpop.eup %7064 }
 0x334   : > { %5395 = vst.msk [vmem:[%s9510_s20 + $0x44] sm:$0xf] %vm5377_vm0, %v5923_v62  ;;  %v5233_v37 = vadd.f32 %v9996_v45, %v5137_v20  ;;  %v5867_v25 = vmul.f32 -1.442695, %v9682_v53  ;;  %v9698_v8 = vadd.f32 %v9356_v9, %v4889_v22  ;;  %v5139_v47 = vmul.f32 %v7063_v61, %v9537_v19  ;;  %v7067_v48 = vpop.eup %7066 }
 0x335   : > { %v5236_v10 = vadd.f32 %v9997_v60, %v5140_v59  ;;  %v5866_v42 = vmul.f32 -1.442695, %v9691_v46  ;;  %v9703_v6 = vadd.f32 %v9356_v9, %v4888_v29  ;;  %v5047_v30 = vadd.f32 1.0, %v7065_v33 }
 0x336   : > { %v5922_v58 = vpack.c.bf16 %v5233_v37, %v5233_v37  ;;  %7080 = vpow2.f32 %v5867_v25  ;;  %v5869_v26 = vmul.f32 -1.442695, %v9698_v8  ;;  %v5235_v12 = vadd.f32 %v5976_v54, %v5139_v47  ;;  %v7069_v57 = vpop.eup %7068  ;;  %v6014_v54 = vld [vmem:[%s7187_s8 + $0x68] sm:$0xff]  }
 0x337   : > { %v5925_v36 = vpack.c.bf16 %v5236_v10, %v5236_v10  ;;  %v5050_v2 = vadd.f32 1.0, %v7067_v48  ;;  %7082 = vpow2.f32 %v5866_v42  ;;  %v5868_v19 = vmul.f32 -1.442695, %v9703_v6 }
 0x338   : > { %5394 = vst.msk [vmem:[%s9510_s20 + $0x40] sm:$0xf] %vm5377_vm0, %v5922_v58  ;;  %7084 = vrcp.f32 %v5047_v30  ;;  %v7071_v9 = vpop.eup %7070  ;;  %v5924_v32 = vpack.c.bf16 %v5235_v12, %v5235_v12  ;;  %v5142_v50 = vmul.f32 %v7069_v57, %v9555_v40  ;;  %v5980_v24 = vunpack.c.l.bf16 %v6011_v55 }
 0x339   : > { %5397 = vst.msk [vmem:[%s9510_s20 + $0x4c] sm:$0xf] %vm5377_vm0, %v5925_v36  ;;  %7086 = vrcp.f32 %v5050_v2  ;;  %v5049_v35 = vadd.f32 1.0, %v7071_v9  ;;  %v5985_v15 = vunpack.c.h.bf16 %v6012_v31  ;;  %v5984_v43 = vunpack.c.l.bf16 %v6012_v31 }
 0x33a   : > { %7088 = vpow2.f32 %v5869_v26  ;;  %v7073_v7 = vpop.eup %7072  ;;  %5396 = vst.msk [vmem:[%s9510_s20 + $0x48] sm:$0xf] %vm5377_vm0, %v5924_v32  ;;  %v5238_v34 = vadd.f32 %v5981_v11, %v5142_v50  ;;  %v5989_v20 = vunpack.c.h.bf16 %v6013_v27  ;;  %v5988_v37 = vunpack.c.l.bf16 %v6013_v27  ;;  %v6015_v26 = vld [vmem:[%s7187_s8 + $0x70] sm:$0xff]   ;;  %v6016_v50 = vld [vmem:[%s7187_s8 + $0x78] sm:$0xff]  }
 0x33b   : > { %7090 = vpow2.f32 %v5868_v19  ;;  %v7075_v4 = vpop.eup %7074  ;;  %v5141_v63 = vmul.f32 %v7073_v7, %v9570_v28  ;;  %v5993_v33 = vunpack.c.h.bf16 %v6014_v54  ;;  %v5992_v47 = vunpack.c.l.bf16 %v6014_v54 }
 0x33c   : > { %7092 = vrcp.f32 %v5049_v35  ;;  %v7077_v13 = vpop.eup %7076  ;;  %v5927_v17 = vpack.c.bf16 %v5238_v34, %v5238_v34  ;;  %v5052_v40 = vadd.f32 1.0, %v7075_v4  ;;  %v5997_v57 = vunpack.c.h.bf16 %v6015_v26 }
 0x33d   : > { %v5237_v39 = vadd.f32 %v5980_v24, %v5141_v63  ;;  %v5051_v5 = vadd.f32 1.0, %v7077_v13  ;;  %v5996_v32 = vunpack.c.l.bf16 %v6015_v26  ;;  %v6001_v7 = vunpack.c.h.bf16 %v6016_v50 }
 0x33e   : > { %v7079_v0 = vpop.eup %7078  ;;  %5399 = vst.msk [vmem:[%s9510_s20 + $0x54] sm:$0xf] %vm5377_vm0, %v5927_v17  ;;  %7094 = vrcp.f32 %v5052_v40  ;;  %v6000_v4 = vunpack.c.l.bf16 %v6016_v50 }
 0x33f   : > { %v5926_v3 = vpack.c.bf16 %v5237_v39, %v5237_v39  ;;  %v5144_v16 = vmul.f32 %v7079_v0, %v9592_v44  ;;  %7096 = vrcp.f32 %v5051_v5 }
 0x341   : > { %5398 = vst.msk [vmem:[%s9510_s20 + $0x50] sm:$0xf] %vm5377_vm0, %v5926_v3  ;;  %v5240_v28 = vadd.f32 %v5985_v15, %v5144_v16 }
 0x343   : > { %v7081_v38 = vpop.eup %7080  ;;  %v5929_v18 = vpack.c.bf16 %v5240_v28, %v5240_v28 }
 0x344   : > { %v7083_v52 = vpop.eup %7082  ;;  %v5054_v51 = vadd.f32 1.0, %v7081_v38 }
 0x345   : > { %v7085_v62 = vpop.eup %7084  ;;  %v5053_v55 = vadd.f32 1.0, %v7083_v52  ;;  %5401 = vst.msk [vmem:[%s9510_s20 + $0x5c] sm:$0xf] %vm5377_vm0, %v5929_v18 }
 0x346   : > { %v7087_v1 = vpop.eup %7086  ;;  %v5143_v56 = vmul.f32 %v7085_v62, %v9616_v23  ;;  %7098 = vrcp.f32 %v5054_v51 }
 0x347   : > { %v7089_v44 = vpop.eup %7088  ;;  %v5146_v59 = vmul.f32 %v7087_v1, %v9619_v21  ;;  %7100 = vrcp.f32 %v5053_v55 }
 0x348   : > { %v7091_v22 = vpop.eup %7090  ;;  %v5239_v45 = vadd.f32 %v5984_v43, %v5143_v56  ;;  %v5056_v29 = vadd.f32 1.0, %v7089_v44 }
 0x349   : > { %v7093_v61 = vpop.eup %7092  ;;  %v5242_v60 = vadd.f32 %v5989_v20, %v5146_v59  ;;  %v5055_v10 = vadd.f32 1.0, %v7091_v22 }
 0x34a   : > { %v5928_v11 = vpack.c.bf16 %v5239_v45, %v5239_v45  ;;  %v5145_v25 = vmul.f32 %v7093_v61, %v9640_v14  ;;  %7102 = vrcp.f32 %v5056_v29 }
 0x34b   : > { %v5931_v23 = vpack.c.bf16 %v5242_v60, %v5242_v60  ;;  %7104 = vrcp.f32 %v5055_v10  ;;  %v7095_v21 = vpop.eup %7094 }
 0x34c   : > { %5400 = vst.msk [vmem:[%s9510_s20 + $0x58] sm:$0xf] %vm5377_vm0, %v5928_v11  ;;  %v5241_v58 = vadd.f32 %v5988_v37, %v5145_v25  ;;  %v7097_v42 = vpop.eup %7096  ;;  %v5148_v48 = vmul.f32 %v7095_v21, %v9652_v49 }
 0x34d   : > { %5403 = vst.msk [vmem:[%s9510_s20 + $0x64] sm:$0xf] %vm5377_vm0, %v5931_v23  ;;  %v5147_v14 = vmul.f32 %v7097_v42, %v9655_v41 }
 0x34e   : > { %v5930_v36 = vpack.c.bf16 %v5241_v58, %v5241_v58  ;;  %v5244_v30 = vadd.f32 %v5993_v33, %v5148_v48 }
 0x34f   : > { %v5243_v12 = vadd.f32 %v5992_v47, %v5147_v14 }
 0x350   : > { %5402 = vst.msk [vmem:[%s9510_s20 + $0x60] sm:$0xf] %vm5377_vm0, %v5930_v36  ;;  %v5933_v2 = vpack.c.bf16 %v5244_v30, %v5244_v30 }
 0x351   : > { %v5932_v19 = vpack.c.bf16 %v5243_v12, %v5243_v12 }
 0x352   : > { %5405 = vst.msk [vmem:[%s9510_s20 + $0x6c] sm:$0xf] %vm5377_vm0, %v5933_v2 }
 0x353   : > { %v7099_v9 = vpop.eup %7098  ;;  %5404 = vst.msk [vmem:[%s9510_s20 + $0x68] sm:$0xf] %vm5377_vm0, %v5932_v19 }
 0x354   : > { %v7101_v24 = vpop.eup %7100  ;;  %v5150_v49 = vmul.f32 %v7099_v9, %v9682_v53 }
 0x355   : > { %v5149_v41 = vmul.f32 %v7101_v24, %v9691_v46 }
 0x356   : > { %v5246_v35 = vadd.f32 %v5997_v57, %v5150_v49 }
 0x357   : > { %v7103_v34 = vpop.eup %7102  ;;  %v5245_v31 = vadd.f32 %v5996_v32, %v5149_v41 }
 0x358   : > { %v7105_v63 = vpop.eup %7104  ;;  %v5935_v13 = vpack.c.bf16 %v5246_v35, %v5246_v35  ;;  %v5152_v17 = vmul.f32 %v7103_v34, %v9698_v8 }
 0x359   : > { %v5934_v40 = vpack.c.bf16 %v5245_v31, %v5245_v31  ;;  %v5151_v39 = vmul.f32 %v7105_v63, %v9703_v6 }
 0x35a   : > { %5407 = vst.msk [vmem:[%s9510_s20 + $0x74] sm:$0xf] %vm5377_vm0, %v5935_v13  ;;  %v5248_v15 = vadd.f32 %v6001_v7, %v5152_v17 }
 0x35b   : > { %5406 = vst.msk [vmem:[%s9510_s20 + $0x70] sm:$0xf] %vm5377_vm0, %v5934_v40  ;;  %v5247_v53 = vadd.f32 %v6000_v4, %v5151_v39 }
 0x35c   : > { %v5937_v46 = vpack.c.bf16 %v5248_v15, %v5248_v15 }
 0x35d   : > { %v5936_v5 = vpack.c.bf16 %v5247_v53, %v5247_v53 }
 0x35e   : > { %5409 = vst.msk [vmem:[%s9510_s20 + $0x7c] sm:$0xf] %vm5377_vm0, %v5937_v46 }
 0x35f   : > { %5408 = vst.msk [vmem:[%s9510_s20 + $0x78] sm:$0xf] %vm5377_vm0, %v5936_v5 }
 0x360 PF: > { %s17_s24 = sadd.s32 1, %s7123_s24  }
 0x361   : > { %p14_p4 = scmp.ge.s32.totalorder %s17_s24, 4  }
 0x363   :  { %16 = sbr.rel (!%p14_p4) target bundleno = 1 (0x1), region = 88 }

</bundles_post_ra>
